<compile_context>
chip_gen: v5e
topology: v5e:2x2
jax: 0.10.0
libtpu: 0.0.40
codegen_flags: <defaults>
</compile_context>

<pallas_src>
import functools

import jax
import jax.numpy as jnp
import numpy as np
from jax.experimental import pallas as pl
from jax.experimental.pallas import tpu as pltpu

BN_EPS = 1e-5     # nn.BatchNorm3d default


# ----------------------------- Pallas kernel ------------------------------

def _residual_block_kernel(x_ref, w1_ref, b1_ref, w2_ref, b2_ref, mask_ref,
                           o_ref, t1_ref, *, offsets, n_mid, n_out, res_off):
    """Fused conv1+bn1+relu -> conv2+bn2+residual+relu for one batch item.

    x_ref   : (Cp, P2)   padded input, flattened padded spatial axis with an
                         extra flat margin of m0 zeros on both ends.
    w*_ref  : (T, Cp, Cp) per-tap weights, BN scale folded into output rows.
    b*_ref  : (Cp, 1)    folded conv-bias + BN shift.
    mask_ref: (1, P1)    1.0 at interior (valid) padded-grid positions.
    o_ref   : (Cp, Lout) block output, flat over the padded grid prefix.
    t1_ref  : (Cp, P1)   VMEM scratch: the re-zero-padded intermediate.
    """
    cp = t1_ref.shape[0]

    # conv1 + bn1 + relu, evaluated over the whole padded grid so the result
    # lands directly in the zero-padded layout conv2 expects.
    acc1 = jnp.zeros((cp, n_mid), jnp.float32)
    for t, off in enumerate(offsets):
        acc1 = acc1 + jnp.dot(w1_ref[t], x_ref[:, off:off + n_mid],
                              preferred_element_type=jnp.float32)
    t1_ref[...] = jnp.maximum(acc1 + b1_ref[...], 0.0) * mask_ref[...]

    # conv2 + bn2 + residual add + relu.
    acc2 = jnp.zeros((cp, n_out), jnp.float32)
    for t, off in enumerate(offsets):
        acc2 = acc2 + jnp.dot(w2_ref[t], t1_ref[:, off:off + n_out],
                              preferred_element_type=jnp.float32)
    residual = x_ref[:, res_off:res_off + n_out]
    o_ref[...] = jnp.maximum(acc2 + b2_ref[...] + residual,
                             0.0).astype(o_ref.dtype)


# ------------------------------- JAX glue ---------------------------------

def _prep_conv(w, b, gamma, beta, mean, var, cp):
    """Reorder (Cout,Cin,KD,KH,KW) -> (T,Cp,Cp) taps, fold BN scale/shift."""
    c_out, c_in = w.shape[0], w.shape[1]
    s = gamma / jnp.sqrt(var + BN_EPS)                      # (Cout,)
    bias = (b - mean) * s + beta                            # (Cout,)
    wt = jnp.transpose(w, (2, 3, 4, 0, 1)).reshape(-1, c_out, c_in)
    wt = wt * s[None, :, None]                              # fold scale
    wt = jnp.pad(wt, ((0, 0), (0, cp - c_out), (0, cp - c_in)))
    bias = jnp.pad(bias, (0, cp - c_out)).reshape(cp, 1)
    return wt.astype(jnp.float32), bias.astype(jnp.float32)


def residual_block_forward(x, params):
    """ResidualBlock.forward for stride=1, downsample=None (Cin == Cout)."""
    kd, kh, kw = params["ksize"]
    assert kd % 2 == 1 and kh % 2 == 1 and kw % 2 == 1, "odd kernel dims expected"
    pd, ph, pw = (kd - 1) // 2, (kh - 1) // 2, (kw - 1) // 2

    n, c, d, h, w_dim = x.shape
    assert params["conv1_w"].shape[0] == c, "stride=1 block needs Cin == Cout"
    cp = max(8, ((c + 7) // 8) * 8)                  # sublane-pad channels

    dp, hp, wp = d + 2 * pd, h + 2 * ph, w_dim + 2 * pw
    p1 = dp * hp * wp                                # flattened padded volume
    m0 = pd * hp * wp + ph * wp + pw                 # flat offset of valid (0,0,0)
    lout = p1 - 2 * m0                               # covers every valid output
    p2 = p1 + 2 * m0                                 # input slab w/ flat margins

    # tap offsets in flat padded coordinates (kernel-offset major)
    offsets = tuple(a * hp * wp + b * wp + cc
                    for a in range(kd) for b in range(kh) for cc in range(kw))
    taps = kd * kh * kw

    # zero-pad spatially, flatten spatial dims, add a flat margin of m0 so
    # conv1 can be evaluated at every padded-grid position in one shot.
    x_c = jnp.pad(x.astype(jnp.float32),
                  ((0, 0), (0, cp - c), (pd, pd), (ph, ph), (pw, pw)))
    x2 = jnp.pad(x_c.reshape(n, cp, p1), ((0, 0), (0, 0), (m0, m0)))

    # validity mask of the padded grid (1 at interior positions).
    mask = jnp.pad(jnp.ones((d, h, w_dim), jnp.float32),
                   ((pd, pd), (ph, ph), (pw, pw))).reshape(1, p1)

    w1, b1 = _prep_conv(params["conv1_w"], params["conv1_b"],
                        params["bn1_gamma"], params["bn1_beta"],
                        params["bn1_mean"], params["bn1_var"], cp)
    w2, b2 = _prep_conv(params["conv2_w"], params["conv2_b"],
                        params["bn2_gamma"], params["bn2_beta"],
                        params["bn2_mean"], params["bn2_var"], cp)

    kernel = functools.partial(_residual_block_kernel, offsets=offsets,
                               n_mid=p1, n_out=lout, res_off=2 * m0)

    out = pl.pallas_call(
        kernel,
        out_shape=jax.ShapeDtypeStruct((n, cp, lout), jnp.float32),
        grid=(n,),
        in_specs=[
            pl.BlockSpec((None, cp, p2), lambda i: (i, 0, 0)),   # input slab
            pl.BlockSpec((taps, cp, cp), lambda i: (0, 0, 0)),   # w1 taps
            pl.BlockSpec((cp, 1), lambda i: (0, 0)),             # b1
            pl.BlockSpec((taps, cp, cp), lambda i: (0, 0, 0)),   # w2 taps
            pl.BlockSpec((cp, 1), lambda i: (0, 0)),             # b2
            pl.BlockSpec((1, p1), lambda i: (0, 0)),             # validity mask
        ],
        out_specs=pl.BlockSpec((None, cp, lout), lambda i: (i, 0, 0)),
        scratch_shapes=[pltpu.VMEM((cp, p1), jnp.float32)],
        compiler_params=pltpu.CompilerParams(
            dimension_semantics=("parallel",)),
    )(x2, w1, b1, w2, b2, mask)

    # un-flatten: (N, Cp, Lout) lane-dense result -> NCDHW, drop the padding.
    out = jnp.pad(out[:, :c, :], ((0, 0), (0, 0), (0, d * hp * wp - lout)))
    return out.reshape(n, c, d, hp, wp)[:, :, :, :h, :w_dim]


# --------------------------- pure-JAX reference ----------------------------

def _ref_block(x, params, eps=BN_EPS):
    def conv_bn(inp, w, b, gamma, beta, mean, var):
        kd, kh, kw = w.shape[2:]
        pads = [((kd - 1) // 2,) * 2, ((kh - 1) // 2,) * 2, ((kw - 1) // 2,) * 2]
        y = jax.lax.conv_general_dilated(
            inp, w, window_strides=(1, 1, 1), padding=pads,
            dimension_numbers=("NCDHW", "OIDHW", "NCDHW"),
            precision=jax.lax.Precision.HIGHEST)
        y = y + b.reshape(1, -1, 1, 1, 1)
        s = (gamma / jnp.sqrt(var + eps)).reshape(1, -1, 1, 1, 1)
        return (y - mean.reshape(1, -1, 1, 1, 1)) * s + beta.reshape(1, -1, 1, 1, 1)

    o = jax.nn.relu(conv_bn(x, params["conv1_w"], params["conv1_b"],
                            params["bn1_gamma"], params["bn1_beta"],
                            params["bn1_mean"], params["bn1_var"]))
    o = conv_bn(o, params["conv2_w"], params["conv2_b"],
                params["bn2_gamma"], params["bn2_beta"],
                params["bn2_mean"], params["bn2_var"])
    return jax.nn.relu(o + x)


# --------------------------------- main ------------------------------------

if __name__ == "__main__":
    key = jax.random.PRNGKey(0)
    keys = jax.random.split(key, 13)

    # small shapes consistent with the module: NCDHW input, Cin == Cout
    N, C, D, H, W = 2, 4, 4, 16, 16
    depth_k = 3                      # stands in for depth_input=21 (small, odd)
    ksize = (depth_k, 3, 3)          # kernel_size = [depth_input, 3, 3]

    x = jax.random.normal(keys[0], (N, C, D, H, W), jnp.float32)
    params = {
        "ksize": ksize,
        "conv1_w": 0.1 * jax.random.normal(keys[1], (C, C) + ksize, jnp.float32),
        "conv1_b": 0.1 * jax.random.normal(keys[2], (C,), jnp.float32),
        "bn1_gamma": 1.0 + 0.1 * jax.random.normal(keys[3], (C,), jnp.float32),
        "bn1_beta": 0.1 * jax.random.normal(keys[4], (C,), jnp.float32),
        "bn1_mean": 0.1 * jax.random.normal(keys[5], (C,), jnp.float32),
        "bn1_var": jnp.abs(jax.random.normal(keys[6], (C,), jnp.float32)) + 0.5,
        "conv2_w": 0.1 * jax.random.normal(keys[7], (C, C) + ksize, jnp.float32),
        "conv2_b": 0.1 * jax.random.normal(keys[8], (C,), jnp.float32),
        "bn2_gamma": 1.0 + 0.1 * jax.random.normal(keys[9], (C,), jnp.float32),
        "bn2_beta": 0.1 * jax.random.normal(keys[10], (C,), jnp.float32),
        "bn2_mean": 0.1 * jax.random.normal(keys[11], (C,), jnp.float32),
        "bn2_var": jnp.abs(jax.random.normal(keys[12], (C,), jnp.float32)) + 0.5,
    }

    out = jax.block_until_ready(residual_block_forward(x, params))
    ref = jax.block_until_ready(_ref_block(x, params))

    assert out.shape == (N, C, D, H, W), out.shape
    np.testing.assert_allclose(np.asarray(out), np.asarray(ref),
                               rtol=1e-4, atol=1e-4)
    print("KERNEL_OK")
</pallas_src>

<mosaic_0001>
module attributes {stable_mosaic.version = 11 : i64} {
  func.func @_residual_block_kernel(%arg0: i32, %arg1: memref<1x8x2630xf32, #tpu.memory_space<vmem>>, %arg2: memref<27x8x8xf32, #tpu.memory_space<vmem>>, %arg3: memref<8x1xf32, #tpu.memory_space<vmem>>, %arg4: memref<27x8x8xf32, #tpu.memory_space<vmem>>, %arg5: memref<8x1xf32, #tpu.memory_space<vmem>>, %arg6: memref<1x1944xf32, #tpu.memory_space<vmem>>, %arg7: memref<1x8x1258xf32, #tpu.memory_space<vmem>>, %arg8: memref<8x1944xf32, #tpu.memory_space<vmem>>) attributes {dimension_semantics = [#tpu.dimension_semantics<parallel>], iteration_bounds = array<i64: 2>, scalar_prefetch = 0 : i64, scratch_operands = 1 : i64, tpu.core_type = #tpu.core_type<tc>, window_params = [{transform_indices = @transform_0, window_bounds = array<i64: 1, 8, 2630>}, {pipeline_mode = #tpu.pipeline_mode<synchronous>, transform_indices = @transform_1, window_bounds = array<i64: 27, 8, 8>}, {pipeline_mode = #tpu.pipeline_mode<synchronous>, transform_indices = @transform_2, window_bounds = array<i64: 8, 1>}, {pipeline_mode = #tpu.pipeline_mode<synchronous>, transform_indices = @transform_3, window_bounds = array<i64: 27, 8, 8>}, {pipeline_mode = #tpu.pipeline_mode<synchronous>, transform_indices = @transform_4, window_bounds = array<i64: 8, 1>}, {pipeline_mode = #tpu.pipeline_mode<synchronous>, transform_indices = @transform_5, window_bounds = array<i64: 1, 1944>}, {transform_indices = @transform_6, window_bounds = array<i64: 1, 8, 1258>}]} {
    %cst = arith.constant 0.000000e+00 : f32
    %0 = vector.broadcast %cst : f32 to vector<8x1944xf32>
    %c0 = arith.constant 0 : index
    %c0_0 = arith.constant 0 : index
    %c0_1 = arith.constant 0 : index
    %1 = vector.load %arg2[%c0, %c0_0, %c0_1] : memref<27x8x8xf32, #tpu.memory_space<vmem>>, vector<1x8x8xf32>
    %2 = vector.shape_cast %1 : vector<1x8x8xf32> to vector<8x8xf32>
    %c0_2 = arith.constant 0 : index
    %c0_3 = arith.constant 0 : index
    %c0_4 = arith.constant 0 : index
    %3 = vector.load %arg1[%c0_2, %c0_3, %c0_4] : memref<1x8x2630xf32, #tpu.memory_space<vmem>>, vector<1x8x1944xf32>
    %4 = vector.shape_cast %3 : vector<1x8x1944xf32> to vector<8x1944xf32>
    %cst_5 = arith.constant dense<0.000000e+00> : vector<8x1944xf32>
    %5 = tpu.matmul %2, %4, %cst_5 {dimension_numbers = #tpu.dot_dimension_numbers<[1], [0], [0], [1], [0, 0, 1, 1], [], []>} : vector<8x8xf32>, vector<8x1944xf32>, vector<8x1944xf32> -> vector<8x1944xf32>
    %6 = arith.addf %0, %5 : vector<8x1944xf32>
    %c1 = arith.constant 1 : index
    %c0_6 = arith.constant 0 : index
    %c0_7 = arith.constant 0 : index
    %7 = vector.load %arg2[%c1, %c0_6, %c0_7] : memref<27x8x8xf32, #tpu.memory_space<vmem>>, vector<1x8x8xf32>
    %8 = vector.shape_cast %7 : vector<1x8x8xf32> to vector<8x8xf32>
    %c0_8 = arith.constant 0 : index
    %c0_9 = arith.constant 0 : index
    %c1_10 = arith.constant 1 : index
    %9 = vector.load %arg1[%c0_8, %c0_9, %c1_10] : memref<1x8x2630xf32, #tpu.memory_space<vmem>>, vector<1x8x1944xf32>
    %10 = vector.shape_cast %9 : vector<1x8x1944xf32> to vector<8x1944xf32>
    %cst_11 = arith.constant dense<0.000000e+00> : vector<8x1944xf32>
    %11 = tpu.matmul %8, %10, %cst_11 {dimension_numbers = #tpu.dot_dimension_numbers<[1], [0], [0], [1], [0, 0, 1, 1], [], []>} : vector<8x8xf32>, vector<8x1944xf32>, vector<8x1944xf32> -> vector<8x1944xf32>
    %12 = arith.addf %6, %11 : vector<8x1944xf32>
    %c2 = arith.constant 2 : index
    %c0_12 = arith.constant 0 : index
    %c0_13 = arith.constant 0 : index
    %13 = vector.load %arg2[%c2, %c0_12, %c0_13] : memref<27x8x8xf32, #tpu.memory_space<vmem>>, vector<1x8x8xf32>
    %14 = vector.shape_cast %13 : vector<1x8x8xf32> to vector<8x8xf32>
    %c0_14 = arith.constant 0 : index
    %c0_15 = arith.constant 0 : index
    %c2_16 = arith.constant 2 : index
    %15 = vector.load %arg1[%c0_14, %c0_15, %c2_16] : memref<1x8x2630xf32, #tpu.memory_space<vmem>>, vector<1x8x1944xf32>
    %16 = vector.shape_cast %15 : vector<1x8x1944xf32> to vector<8x1944xf32>
    %cst_17 = arith.constant dense<0.000000e+00> : vector<8x1944xf32>
    %17 = tpu.matmul %14, %16, %cst_17 {dimension_numbers = #tpu.dot_dimension_numbers<[1], [0], [0], [1], [0, 0, 1, 1], [], []>} : vector<8x8xf32>, vector<8x1944xf32>, vector<8x1944xf32> -> vector<8x1944xf32>
    %18 = arith.addf %12, %17 : vector<8x1944xf32>
    %c3 = arith.constant 3 : index
    %c0_18 = arith.constant 0 : index
    %c0_19 = arith.constant 0 : index
    %19 = vector.load %arg2[%c3, %c0_18, %c0_19] : memref<27x8x8xf32, #tpu.memory_space<vmem>>, vector<1x8x8xf32>
    %20 = vector.shape_cast %19 : vector<1x8x8xf32> to vector<8x8xf32>
    %c0_20 = arith.constant 0 : index
    %c0_21 = arith.constant 0 : index
    %c18 = arith.constant 18 : index
    %21 = vector.load %arg1[%c0_20, %c0_21, %c18] : memref<1x8x2630xf32, #tpu.memory_space<vmem>>, vector<1x8x1944xf32>
    %22 = vector.shape_cast %21 : vector<1x8x1944xf32> to vector<8x1944xf32>
    %cst_22 = arith.constant dense<0.000000e+00> : vector<8x1944xf32>
    %23 = tpu.matmul %20, %22, %cst_22 {dimension_numbers = #tpu.dot_dimension_numbers<[1], [0], [0], [1], [0, 0, 1, 1], [], []>} : vector<8x8xf32>, vector<8x1944xf32>, vector<8x1944xf32> -> vector<8x1944xf32>
    %24 = arith.addf %18, %23 : vector<8x1944xf32>
    %c4 = arith.constant 4 : index
    %c0_23 = arith.constant 0 : index
    %c0_24 = arith.constant 0 : index
    %25 = vector.load %arg2[%c4, %c0_23, %c0_24] : memref<27x8x8xf32, #tpu.memory_space<vmem>>, vector<1x8x8xf32>
    %26 = vector.shape_cast %25 : vector<1x8x8xf32> to vector<8x8xf32>
    %c0_25 = arith.constant 0 : index
    %c0_26 = arith.constant 0 : index
    %c19 = arith.constant 19 : index
    %27 = vector.load %arg1[%c0_25, %c0_26, %c19] : memref<1x8x2630xf32, #tpu.memory_space<vmem>>, vector<1x8x1944xf32>
    %28 = vector.shape_cast %27 : vector<1x8x1944xf32> to vector<8x1944xf32>
    %cst_27 = arith.constant dense<0.000000e+00> : vector<8x1944xf32>
    %29 = tpu.matmul %26, %28, %cst_27 {dimension_numbers = #tpu.dot_dimension_numbers<[1], [0], [0], [1], [0, 0, 1, 1], [], []>} : vector<8x8xf32>, vector<8x1944xf32>, vector<8x1944xf32> -> vector<8x1944xf32>
    %30 = arith.addf %24, %29 : vector<8x1944xf32>
    %c5 = arith.constant 5 : index
    %c0_28 = arith.constant 0 : index
    %c0_29 = arith.constant 0 : index
    %31 = vector.load %arg2[%c5, %c0_28, %c0_29] : memref<27x8x8xf32, #tpu.memory_space<vmem>>, vector<1x8x8xf32>
    %32 = vector.shape_cast %31 : vector<1x8x8xf32> to vector<8x8xf32>
    %c0_30 = arith.constant 0 : index
    %c0_31 = arith.constant 0 : index
    %c20 = arith.constant 20 : index
    %33 = vector.load %arg1[%c0_30, %c0_31, %c20] : memref<1x8x2630xf32, #tpu.memory_space<vmem>>, vector<1x8x1944xf32>
    %34 = vector.shape_cast %33 : vector<1x8x1944xf32> to vector<8x1944xf32>
    %cst_32 = arith.constant dense<0.000000e+00> : vector<8x1944xf32>
    %35 = tpu.matmul %32, %34, %cst_32 {dimension_numbers = #tpu.dot_dimension_numbers<[1], [0], [0], [1], [0, 0, 1, 1], [], []>} : vector<8x8xf32>, vector<8x1944xf32>, vector<8x1944xf32> -> vector<8x1944xf32>
    %36 = arith.addf %30, %35 : vector<8x1944xf32>
    %c6 = arith.constant 6 : index
    %c0_33 = arith.constant 0 : index
    %c0_34 = arith.constant 0 : index
    %37 = vector.load %arg2[%c6, %c0_33, %c0_34] : memref<27x8x8xf32, #tpu.memory_space<vmem>>, vector<1x8x8xf32>
    %38 = vector.shape_cast %37 : vector<1x8x8xf32> to vector<8x8xf32>
    %c0_35 = arith.constant 0 : index
    %c0_36 = arith.constant 0 : index
    %c36 = arith.constant 36 : index
    %39 = vector.load %arg1[%c0_35, %c0_36, %c36] : memref<1x8x2630xf32, #tpu.memory_space<vmem>>, vector<1x8x1944xf32>
    %40 = vector.shape_cast %39 : vector<1x8x1944xf32> to vector<8x1944xf32>
    %cst_37 = arith.constant dense<0.000000e+00> : vector<8x1944xf32>
    %41 = tpu.matmul %38, %40, %cst_37 {dimension_numbers = #tpu.dot_dimension_numbers<[1], [0], [0], [1], [0, 0, 1, 1], [], []>} : vector<8x8xf32>, vector<8x1944xf32>, vector<8x1944xf32> -> vector<8x1944xf32>
    %42 = arith.addf %36, %41 : vector<8x1944xf32>
    %c7 = arith.constant 7 : index
    %c0_38 = arith.constant 0 : index
    %c0_39 = arith.constant 0 : index
    %43 = vector.load %arg2[%c7, %c0_38, %c0_39] : memref<27x8x8xf32, #tpu.memory_space<vmem>>, vector<1x8x8xf32>
    %44 = vector.shape_cast %43 : vector<1x8x8xf32> to vector<8x8xf32>
    %c0_40 = arith.constant 0 : index
    %c0_41 = arith.constant 0 : index
    %c37 = arith.constant 37 : index
    %45 = vector.load %arg1[%c0_40, %c0_41, %c37] : memref<1x8x2630xf32, #tpu.memory_space<vmem>>, vector<1x8x1944xf32>
    %46 = vector.shape_cast %45 : vector<1x8x1944xf32> to vector<8x1944xf32>
    %cst_42 = arith.constant dense<0.000000e+00> : vector<8x1944xf32>
    %47 = tpu.matmul %44, %46, %cst_42 {dimension_numbers = #tpu.dot_dimension_numbers<[1], [0], [0], [1], [0, 0, 1, 1], [], []>} : vector<8x8xf32>, vector<8x1944xf32>, vector<8x1944xf32> -> vector<8x1944xf32>
    %48 = arith.addf %42, %47 : vector<8x1944xf32>
    %c8 = arith.constant 8 : index
    %c0_43 = arith.constant 0 : index
    %c0_44 = arith.constant 0 : index
    %49 = vector.load %arg2[%c8, %c0_43, %c0_44] : memref<27x8x8xf32, #tpu.memory_space<vmem>>, vector<1x8x8xf32>
    %50 = vector.shape_cast %49 : vector<1x8x8xf32> to vector<8x8xf32>
    %c0_45 = arith.constant 0 : index
    %c0_46 = arith.constant 0 : index
    %c38 = arith.constant 38 : index
    %51 = vector.load %arg1[%c0_45, %c0_46, %c38] : memref<1x8x2630xf32, #tpu.memory_space<vmem>>, vector<1x8x1944xf32>
    %52 = vector.shape_cast %51 : vector<1x8x1944xf32> to vector<8x1944xf32>
    %cst_47 = arith.constant dense<0.000000e+00> : vector<8x1944xf32>
    %53 = tpu.matmul %50, %52, %cst_47 {dimension_numbers = #tpu.dot_dimension_numbers<[1], [0], [0], [1], [0, 0, 1, 1], [], []>} : vector<8x8xf32>, vector<8x1944xf32>, vector<8x1944xf32> -> vector<8x1944xf32>
    %54 = arith.addf %48, %53 : vector<8x1944xf32>
    %c9 = arith.constant 9 : index
    %c0_48 = arith.constant 0 : index
    %c0_49 = arith.constant 0 : index
    %55 = vector.load %arg2[%c9, %c0_48, %c0_49] : memref<27x8x8xf32, #tpu.memory_space<vmem>>, vector<1x8x8xf32>
    %56 = vector.shape_cast %55 : vector<1x8x8xf32> to vector<8x8xf32>
    %c0_50 = arith.constant 0 : index
    %c0_51 = arith.constant 0 : index
    %c324 = arith.constant 324 : index
    %57 = vector.load %arg1[%c0_50, %c0_51, %c324] : memref<1x8x2630xf32, #tpu.memory_space<vmem>>, vector<1x8x1944xf32>
    %58 = vector.shape_cast %57 : vector<1x8x1944xf32> to vector<8x1944xf32>
    %cst_52 = arith.constant dense<0.000000e+00> : vector<8x1944xf32>
    %59 = tpu.matmul %56, %58, %cst_52 {dimension_numbers = #tpu.dot_dimension_numbers<[1], [0], [0], [1], [0, 0, 1, 1], [], []>} : vector<8x8xf32>, vector<8x1944xf32>, vector<8x1944xf32> -> vector<8x1944xf32>
    %60 = arith.addf %54, %59 : vector<8x1944xf32>
    %c10 = arith.constant 10 : index
    %c0_53 = arith.constant 0 : index
    %c0_54 = arith.constant 0 : index
    %61 = vector.load %arg2[%c10, %c0_53, %c0_54] : memref<27x8x8xf32, #tpu.memory_space<vmem>>, vector<1x8x8xf32>
    %62 = vector.shape_cast %61 : vector<1x8x8xf32> to vector<8x8xf32>
    %c0_55 = arith.constant 0 : index
    %c0_56 = arith.constant 0 : index
    %c325 = arith.constant 325 : index
    %63 = vector.load %arg1[%c0_55, %c0_56, %c325] : memref<1x8x2630xf32, #tpu.memory_space<vmem>>, vector<1x8x1944xf32>
    %64 = vector.shape_cast %63 : vector<1x8x1944xf32> to vector<8x1944xf32>
    %cst_57 = arith.constant dense<0.000000e+00> : vector<8x1944xf32>
    %65 = tpu.matmul %62, %64, %cst_57 {dimension_numbers = #tpu.dot_dimension_numbers<[1], [0], [0], [1], [0, 0, 1, 1], [], []>} : vector<8x8xf32>, vector<8x1944xf32>, vector<8x1944xf32> -> vector<8x1944xf32>
    %66 = arith.addf %60, %65 : vector<8x1944xf32>
    %c11 = arith.constant 11 : index
    %c0_58 = arith.constant 0 : index
    %c0_59 = arith.constant 0 : index
    %67 = vector.load %arg2[%c11, %c0_58, %c0_59] : memref<27x8x8xf32, #tpu.memory_space<vmem>>, vector<1x8x8xf32>
    %68 = vector.shape_cast %67 : vector<1x8x8xf32> to vector<8x8xf32>
    %c0_60 = arith.constant 0 : index
    %c0_61 = arith.constant 0 : index
    %c326 = arith.constant 326 : index
    %69 = vector.load %arg1[%c0_60, %c0_61, %c326] : memref<1x8x2630xf32, #tpu.memory_space<vmem>>, vector<1x8x1944xf32>
    %70 = vector.shape_cast %69 : vector<1x8x1944xf32> to vector<8x1944xf32>
    %cst_62 = arith.constant dense<0.000000e+00> : vector<8x1944xf32>
    %71 = tpu.matmul %68, %70, %cst_62 {dimension_numbers = #tpu.dot_dimension_numbers<[1], [0], [0], [1], [0, 0, 1, 1], [], []>} : vector<8x8xf32>, vector<8x1944xf32>, vector<8x1944xf32> -> vector<8x1944xf32>
    %72 = arith.addf %66, %71 : vector<8x1944xf32>
    %c12 = arith.constant 12 : index
    %c0_63 = arith.constant 0 : index
    %c0_64 = arith.constant 0 : index
    %73 = vector.load %arg2[%c12, %c0_63, %c0_64] : memref<27x8x8xf32, #tpu.memory_space<vmem>>, vector<1x8x8xf32>
    %74 = vector.shape_cast %73 : vector<1x8x8xf32> to vector<8x8xf32>
    %c0_65 = arith.constant 0 : index
    %c0_66 = arith.constant 0 : index
    %c342 = arith.constant 342 : index
    %75 = vector.load %arg1[%c0_65, %c0_66, %c342] : memref<1x8x2630xf32, #tpu.memory_space<vmem>>, vector<1x8x1944xf32>
    %76 = vector.shape_cast %75 : vector<1x8x1944xf32> to vector<8x1944xf32>
    %cst_67 = arith.constant dense<0.000000e+00> : vector<8x1944xf32>
    %77 = tpu.matmul %74, %76, %cst_67 {dimension_numbers = #tpu.dot_dimension_numbers<[1], [0], [0], [1], [0, 0, 1, 1], [], []>} : vector<8x8xf32>, vector<8x1944xf32>, vector<8x1944xf32> -> vector<8x1944xf32>
    %78 = arith.addf %72, %77 : vector<8x1944xf32>
    %c13 = arith.constant 13 : index
    %c0_68 = arith.constant 0 : index
    %c0_69 = arith.constant 0 : index
    %79 = vector.load %arg2[%c13, %c0_68, %c0_69] : memref<27x8x8xf32, #tpu.memory_space<vmem>>, vector<1x8x8xf32>
    %80 = vector.shape_cast %79 : vector<1x8x8xf32> to vector<8x8xf32>
    %c0_70 = arith.constant 0 : index
    %c0_71 = arith.constant 0 : index
    %c343 = arith.constant 343 : index
    %81 = vector.load %arg1[%c0_70, %c0_71, %c343] : memref<1x8x2630xf32, #tpu.memory_space<vmem>>, vector<1x8x1944xf32>
    %82 = vector.shape_cast %81 : vector<1x8x1944xf32> to vector<8x1944xf32>
    %cst_72 = arith.constant dense<0.000000e+00> : vector<8x1944xf32>
    %83 = tpu.matmul %80, %82, %cst_72 {dimension_numbers = #tpu.dot_dimension_numbers<[1], [0], [0], [1], [0, 0, 1, 1], [], []>} : vector<8x8xf32>, vector<8x1944xf32>, vector<8x1944xf32> -> vector<8x1944xf32>
    %84 = arith.addf %78, %83 : vector<8x1944xf32>
    %c14 = arith.constant 14 : index
    %c0_73 = arith.constant 0 : index
    %c0_74 = arith.constant 0 : index
    %85 = vector.load %arg2[%c14, %c0_73, %c0_74] : memref<27x8x8xf32, #tpu.memory_space<vmem>>, vector<1x8x8xf32>
    %86 = vector.shape_cast %85 : vector<1x8x8xf32> to vector<8x8xf32>
    %c0_75 = arith.constant 0 : index
    %c0_76 = arith.constant 0 : index
    %c344 = arith.constant 344 : index
    %87 = vector.load %arg1[%c0_75, %c0_76, %c344] : memref<1x8x2630xf32, #tpu.memory_space<vmem>>, vector<1x8x1944xf32>
    %88 = vector.shape_cast %87 : vector<1x8x1944xf32> to vector<8x1944xf32>
    %cst_77 = arith.constant dense<0.000000e+00> : vector<8x1944xf32>
    %89 = tpu.matmul %86, %88, %cst_77 {dimension_numbers = #tpu.dot_dimension_numbers<[1], [0], [0], [1], [0, 0, 1, 1], [], []>} : vector<8x8xf32>, vector<8x1944xf32>, vector<8x1944xf32> -> vector<8x1944xf32>
    %90 = arith.addf %84, %89 : vector<8x1944xf32>
    %c15 = arith.constant 15 : index
    %c0_78 = arith.constant 0 : index
    %c0_79 = arith.constant 0 : index
    %91 = vector.load %arg2[%c15, %c0_78, %c0_79] : memref<27x8x8xf32, #tpu.memory_space<vmem>>, vector<1x8x8xf32>
    %92 = vector.shape_cast %91 : vector<1x8x8xf32> to vector<8x8xf32>
    %c0_80 = arith.constant 0 : index
    %c0_81 = arith.constant 0 : index
    %c360 = arith.constant 360 : index
    %93 = vector.load %arg1[%c0_80, %c0_81, %c360] : memref<1x8x2630xf32, #tpu.memory_space<vmem>>, vector<1x8x1944xf32>
    %94 = vector.shape_cast %93 : vector<1x8x1944xf32> to vector<8x1944xf32>
    %cst_82 = arith.constant dense<0.000000e+00> : vector<8x1944xf32>
    %95 = tpu.matmul %92, %94, %cst_82 {dimension_numbers = #tpu.dot_dimension_numbers<[1], [0], [0], [1], [0, 0, 1, 1], [], []>} : vector<8x8xf32>, vector<8x1944xf32>, vector<8x1944xf32> -> vector<8x1944xf32>
    %96 = arith.addf %90, %95 : vector<8x1944xf32>
    %c16 = arith.constant 16 : index
    %c0_83 = arith.constant 0 : index
    %c0_84 = arith.constant 0 : index
    %97 = vector.load %arg2[%c16, %c0_83, %c0_84] : memref<27x8x8xf32, #tpu.memory_space<vmem>>, vector<1x8x8xf32>
    %98 = vector.shape_cast %97 : vector<1x8x8xf32> to vector<8x8xf32>
    %c0_85 = arith.constant 0 : index
    %c0_86 = arith.constant 0 : index
    %c361 = arith.constant 361 : index
    %99 = vector.load %arg1[%c0_85, %c0_86, %c361] : memref<1x8x2630xf32, #tpu.memory_space<vmem>>, vector<1x8x1944xf32>
    %100 = vector.shape_cast %99 : vector<1x8x1944xf32> to vector<8x1944xf32>
    %cst_87 = arith.constant dense<0.000000e+00> : vector<8x1944xf32>
    %101 = tpu.matmul %98, %100, %cst_87 {dimension_numbers = #tpu.dot_dimension_numbers<[1], [0], [0], [1], [0, 0, 1, 1], [], []>} : vector<8x8xf32>, vector<8x1944xf32>, vector<8x1944xf32> -> vector<8x1944xf32>
    %102 = arith.addf %96, %101 : vector<8x1944xf32>
    %c17 = arith.constant 17 : index
    %c0_88 = arith.constant 0 : index
    %c0_89 = arith.constant 0 : index
    %103 = vector.load %arg2[%c17, %c0_88, %c0_89] : memref<27x8x8xf32, #tpu.memory_space<vmem>>, vector<1x8x8xf32>
    %104 = vector.shape_cast %103 : vector<1x8x8xf32> to vector<8x8xf32>
    %c0_90 = arith.constant 0 : index
    %c0_91 = arith.constant 0 : index
    %c362 = arith.constant 362 : index
    %105 = vector.load %arg1[%c0_90, %c0_91, %c362] : memref<1x8x2630xf32, #tpu.memory_space<vmem>>, vector<1x8x1944xf32>
    %106 = vector.shape_cast %105 : vector<1x8x1944xf32> to vector<8x1944xf32>
    %cst_92 = arith.constant dense<0.000000e+00> : vector<8x1944xf32>
    %107 = tpu.matmul %104, %106, %cst_92 {dimension_numbers = #tpu.dot_dimension_numbers<[1], [0], [0], [1], [0, 0, 1, 1], [], []>} : vector<8x8xf32>, vector<8x1944xf32>, vector<8x1944xf32> -> vector<8x1944xf32>
    %108 = arith.addf %102, %107 : vector<8x1944xf32>
    %c18_93 = arith.constant 18 : index
    %c0_94 = arith.constant 0 : index
    %c0_95 = arith.constant 0 : index
    %109 = vector.load %arg2[%c18_93, %c0_94, %c0_95] : memref<27x8x8xf32, #tpu.memory_space<vmem>>, vector<1x8x8xf32>
    %110 = vector.shape_cast %109 : vector<1x8x8xf32> to vector<8x8xf32>
    %c0_96 = arith.constant 0 : index
    %c0_97 = arith.constant 0 : index
    %c648 = arith.constant 648 : index
    %111 = vector.load %arg1[%c0_96, %c0_97, %c648] : memref<1x8x2630xf32, #tpu.memory_space<vmem>>, vector<1x8x1944xf32>
    %112 = vector.shape_cast %111 : vector<1x8x1944xf32> to vector<8x1944xf32>
    %cst_98 = arith.constant dense<0.000000e+00> : vector<8x1944xf32>
    %113 = tpu.matmul %110, %112, %cst_98 {dimension_numbers = #tpu.dot_dimension_numbers<[1], [0], [0], [1], [0, 0, 1, 1], [], []>} : vector<8x8xf32>, vector<8x1944xf32>, vector<8x1944xf32> -> vector<8x1944xf32>
    %114 = arith.addf %108, %113 : vector<8x1944xf32>
    %c19_99 = arith.constant 19 : index
    %c0_100 = arith.constant 0 : index
    %c0_101 = arith.constant 0 : index
    %115 = vector.load %arg2[%c19_99, %c0_100, %c0_101] : memref<27x8x8xf32, #tpu.memory_space<vmem>>, vector<1x8x8xf32>
    %116 = vector.shape_cast %115 : vector<1x8x8xf32> to vector<8x8xf32>
    %c0_102 = arith.constant 0 : index
    %c0_103 = arith.constant 0 : index
    %c649 = arith.constant 649 : index
    %117 = vector.load %arg1[%c0_102, %c0_103, %c649] : memref<1x8x2630xf32, #tpu.memory_space<vmem>>, vector<1x8x1944xf32>
    %118 = vector.shape_cast %117 : vector<1x8x1944xf32> to vector<8x1944xf32>
    %cst_104 = arith.constant dense<0.000000e+00> : vector<8x1944xf32>
    %119 = tpu.matmul %116, %118, %cst_104 {dimension_numbers = #tpu.dot_dimension_numbers<[1], [0], [0], [1], [0, 0, 1, 1], [], []>} : vector<8x8xf32>, vector<8x1944xf32>, vector<8x1944xf32> -> vector<8x1944xf32>
    %120 = arith.addf %114, %119 : vector<8x1944xf32>
    %c20_105 = arith.constant 20 : index
    %c0_106 = arith.constant 0 : index
    %c0_107 = arith.constant 0 : index
    %121 = vector.load %arg2[%c20_105, %c0_106, %c0_107] : memref<27x8x8xf32, #tpu.memory_space<vmem>>, vector<1x8x8xf32>
    %122 = vector.shape_cast %121 : vector<1x8x8xf32> to vector<8x8xf32>
    %c0_108 = arith.constant 0 : index
    %c0_109 = arith.constant 0 : index
    %c650 = arith.constant 650 : index
    %123 = vector.load %arg1[%c0_108, %c0_109, %c650] : memref<1x8x2630xf32, #tpu.memory_space<vmem>>, vector<1x8x1944xf32>
    %124 = vector.shape_cast %123 : vector<1x8x1944xf32> to vector<8x1944xf32>
    %cst_110 = arith.constant dense<0.000000e+00> : vector<8x1944xf32>
    %125 = tpu.matmul %122, %124, %cst_110 {dimension_numbers = #tpu.dot_dimension_numbers<[1], [0], [0], [1], [0, 0, 1, 1], [], []>} : vector<8x8xf32>, vector<8x1944xf32>, vector<8x1944xf32> -> vector<8x1944xf32>
    %126 = arith.addf %120, %125 : vector<8x1944xf32>
    %c21 = arith.constant 21 : index
    %c0_111 = arith.constant 0 : index
    %c0_112 = arith.constant 0 : index
    %127 = vector.load %arg2[%c21, %c0_111, %c0_112] : memref<27x8x8xf32, #tpu.memory_space<vmem>>, vector<1x8x8xf32>
    %128 = vector.shape_cast %127 : vector<1x8x8xf32> to vector<8x8xf32>
    %c0_113 = arith.constant 0 : index
    %c0_114 = arith.constant 0 : index
    %c666 = arith.constant 666 : index
    %129 = vector.load %arg1[%c0_113, %c0_114, %c666] : memref<1x8x2630xf32, #tpu.memory_space<vmem>>, vector<1x8x1944xf32>
    %130 = vector.shape_cast %129 : vector<1x8x1944xf32> to vector<8x1944xf32>
    %cst_115 = arith.constant dense<0.000000e+00> : vector<8x1944xf32>
    %131 = tpu.matmul %128, %130, %cst_115 {dimension_numbers = #tpu.dot_dimension_numbers<[1], [0], [0], [1], [0, 0, 1, 1], [], []>} : vector<8x8xf32>, vector<8x1944xf32>, vector<8x1944xf32> -> vector<8x1944xf32>
    %132 = arith.addf %126, %131 : vector<8x1944xf32>
    %c22 = arith.constant 22 : index
    %c0_116 = arith.constant 0 : index
    %c0_117 = arith.constant 0 : index
    %133 = vector.load %arg2[%c22, %c0_116, %c0_117] : memref<27x8x8xf32, #tpu.memory_space<vmem>>, vector<1x8x8xf32>
    %134 = vector.shape_cast %133 : vector<1x8x8xf32> to vector<8x8xf32>
    %c0_118 = arith.constant 0 : index
    %c0_119 = arith.constant 0 : index
    %c667 = arith.constant 667 : index
    %135 = vector.load %arg1[%c0_118, %c0_119, %c667] : memref<1x8x2630xf32, #tpu.memory_space<vmem>>, vector<1x8x1944xf32>
    %136 = vector.shape_cast %135 : vector<1x8x1944xf32> to vector<8x1944xf32>
    %cst_120 = arith.constant dense<0.000000e+00> : vector<8x1944xf32>
    %137 = tpu.matmul %134, %136, %cst_120 {dimension_numbers = #tpu.dot_dimension_numbers<[1], [0], [0], [1], [0, 0, 1, 1], [], []>} : vector<8x8xf32>, vector<8x1944xf32>, vector<8x1944xf32> -> vector<8x1944xf32>
    %138 = arith.addf %132, %137 : vector<8x1944xf32>
    %c23 = arith.constant 23 : index
    %c0_121 = arith.constant 0 : index
    %c0_122 = arith.constant 0 : index
    %139 = vector.load %arg2[%c23, %c0_121, %c0_122] : memref<27x8x8xf32, #tpu.memory_space<vmem>>, vector<1x8x8xf32>
    %140 = vector.shape_cast %139 : vector<1x8x8xf32> to vector<8x8xf32>
    %c0_123 = arith.constant 0 : index
    %c0_124 = arith.constant 0 : index
    %c668 = arith.constant 668 : index
    %141 = vector.load %arg1[%c0_123, %c0_124, %c668] : memref<1x8x2630xf32, #tpu.memory_space<vmem>>, vector<1x8x1944xf32>
    %142 = vector.shape_cast %141 : vector<1x8x1944xf32> to vector<8x1944xf32>
    %cst_125 = arith.constant dense<0.000000e+00> : vector<8x1944xf32>
    %143 = tpu.matmul %140, %142, %cst_125 {dimension_numbers = #tpu.dot_dimension_numbers<[1], [0], [0], [1], [0, 0, 1, 1], [], []>} : vector<8x8xf32>, vector<8x1944xf32>, vector<8x1944xf32> -> vector<8x1944xf32>
    %144 = arith.addf %138, %143 : vector<8x1944xf32>
    %c24 = arith.constant 24 : index
    %c0_126 = arith.constant 0 : index
    %c0_127 = arith.constant 0 : index
    %145 = vector.load %arg2[%c24, %c0_126, %c0_127] : memref<27x8x8xf32, #tpu.memory_space<vmem>>, vector<1x8x8xf32>
    %146 = vector.shape_cast %145 : vector<1x8x8xf32> to vector<8x8xf32>
    %c0_128 = arith.constant 0 : index
    %c0_129 = arith.constant 0 : index
    %c684 = arith.constant 684 : index
    %147 = vector.load %arg1[%c0_128, %c0_129, %c684] : memref<1x8x2630xf32, #tpu.memory_space<vmem>>, vector<1x8x1944xf32>
    %148 = vector.shape_cast %147 : vector<1x8x1944xf32> to vector<8x1944xf32>
    %cst_130 = arith.constant dense<0.000000e+00> : vector<8x1944xf32>
    %149 = tpu.matmul %146, %148, %cst_130 {dimension_numbers = #tpu.dot_dimension_numbers<[1], [0], [0], [1], [0, 0, 1, 1], [], []>} : vector<8x8xf32>, vector<8x1944xf32>, vector<8x1944xf32> -> vector<8x1944xf32>
    %150 = arith.addf %144, %149 : vector<8x1944xf32>
    %c25 = arith.constant 25 : index
    %c0_131 = arith.constant 0 : index
    %c0_132 = arith.constant 0 : index
    %151 = vector.load %arg2[%c25, %c0_131, %c0_132] : memref<27x8x8xf32, #tpu.memory_space<vmem>>, vector<1x8x8xf32>
    %152 = vector.shape_cast %151 : vector<1x8x8xf32> to vector<8x8xf32>
    %c0_133 = arith.constant 0 : index
    %c0_134 = arith.constant 0 : index
    %c685 = arith.constant 685 : index
    %153 = vector.load %arg1[%c0_133, %c0_134, %c685] : memref<1x8x2630xf32, #tpu.memory_space<vmem>>, vector<1x8x1944xf32>
    %154 = vector.shape_cast %153 : vector<1x8x1944xf32> to vector<8x1944xf32>
    %cst_135 = arith.constant dense<0.000000e+00> : vector<8x1944xf32>
    %155 = tpu.matmul %152, %154, %cst_135 {dimension_numbers = #tpu.dot_dimension_numbers<[1], [0], [0], [1], [0, 0, 1, 1], [], []>} : vector<8x8xf32>, vector<8x1944xf32>, vector<8x1944xf32> -> vector<8x1944xf32>
    %156 = arith.addf %150, %155 : vector<8x1944xf32>
    %c26 = arith.constant 26 : index
    %c0_136 = arith.constant 0 : index
    %c0_137 = arith.constant 0 : index
    %157 = vector.load %arg2[%c26, %c0_136, %c0_137] : memref<27x8x8xf32, #tpu.memory_space<vmem>>, vector<1x8x8xf32>
    %158 = vector.shape_cast %157 : vector<1x8x8xf32> to vector<8x8xf32>
    %c0_138 = arith.constant 0 : index
    %c0_139 = arith.constant 0 : index
    %c686 = arith.constant 686 : index
    %159 = vector.load %arg1[%c0_138, %c0_139, %c686] : memref<1x8x2630xf32, #tpu.memory_space<vmem>>, vector<1x8x1944xf32>
    %160 = vector.shape_cast %159 : vector<1x8x1944xf32> to vector<8x1944xf32>
    %cst_140 = arith.constant dense<0.000000e+00> : vector<8x1944xf32>
    %161 = tpu.matmul %158, %160, %cst_140 {dimension_numbers = #tpu.dot_dimension_numbers<[1], [0], [0], [1], [0, 0, 1, 1], [], []>} : vector<8x8xf32>, vector<8x1944xf32>, vector<8x1944xf32> -> vector<8x1944xf32>
    %162 = arith.addf %156, %161 : vector<8x1944xf32>
    %c0_141 = arith.constant 0 : index
    %c0_142 = arith.constant 0 : index
    %163 = vector.load %arg3[%c0_141, %c0_142] : memref<8x1xf32, #tpu.memory_space<vmem>>, vector<8x1xf32>
    %164 = vector.broadcast %163 : vector<8x1xf32> to vector<8x1944xf32>
    %165 = arith.addf %162, %164 : vector<8x1944xf32>
    %cst_143 = arith.constant 0.000000e+00 : f32
    %166 = vector.broadcast %cst_143 : f32 to vector<8x1944xf32>
    %167 = arith.maximumf %165, %166 : vector<8x1944xf32>
    %c0_144 = arith.constant 0 : index
    %c0_145 = arith.constant 0 : index
    %168 = vector.load %arg6[%c0_144, %c0_145] : memref<1x1944xf32, #tpu.memory_space<vmem>>, vector<1x1944xf32>
    %169 = vector.broadcast %168 : vector<1x1944xf32> to vector<8x1944xf32>
    %170 = arith.mulf %167, %169 : vector<8x1944xf32>
    %c0_146 = arith.constant 0 : index
    %c0_147 = arith.constant 0 : index
    %171 = vector.load %arg8[%c0_146, %c0_147] : memref<8x1944xf32, #tpu.memory_space<vmem>>, vector<8x1944xf32>
    tpu.vector_store %arg8[%c0_146, %c0_147], %170 {strides = array<i32>} : memref<8x1944xf32, #tpu.memory_space<vmem>>, vector<8x1944xf32>,
    %cst_148 = arith.constant 0.000000e+00 : f32
    %172 = vector.broadcast %cst_148 : f32 to vector<8x1258xf32>
    %c0_149 = arith.constant 0 : index
    %c0_150 = arith.constant 0 : index
    %c0_151 = arith.constant 0 : index
    %173 = vector.load %arg4[%c0_149, %c0_150, %c0_151] : memref<27x8x8xf32, #tpu.memory_space<vmem>>, vector<1x8x8xf32>
    %174 = vector.shape_cast %173 : vector<1x8x8xf32> to vector<8x8xf32>
    %c0_152 = arith.constant 0 : index
    %c0_153 = arith.constant 0 : index
    %175 = vector.load %arg8[%c0_152, %c0_153] : memref<8x1944xf32, #tpu.memory_space<vmem>>, vector<8x1258xf32>
    %cst_154 = arith.constant dense<0.000000e+00> : vector<8x1258xf32>
    %176 = tpu.matmul %174, %175, %cst_154 {dimension_numbers = #tpu.dot_dimension_numbers<[1], [0], [0], [1], [0, 0, 1, 1], [], []>} : vector<8x8xf32>, vector<8x1258xf32>, vector<8x1258xf32> -> vector<8x1258xf32>
    %177 = arith.addf %172, %176 : vector<8x1258xf32>
    %c1_155 = arith.constant 1 : index
    %c0_156 = arith.constant 0 : index
    %c0_157 = arith.constant 0 : index
    %178 = vector.load %arg4[%c1_155, %c0_156, %c0_157] : memref<27x8x8xf32, #tpu.memory_space<vmem>>, vector<1x8x8xf32>
    %179 = vector.shape_cast %178 : vector<1x8x8xf32> to vector<8x8xf32>
    %c0_158 = arith.constant 0 : index
    %c1_159 = arith.constant 1 : index
    %180 = vector.load %arg8[%c0_158, %c1_159] : memref<8x1944xf32, #tpu.memory_space<vmem>>, vector<8x1258xf32>
    %cst_160 = arith.constant dense<0.000000e+00> : vector<8x1258xf32>
    %181 = tpu.matmul %179, %180, %cst_160 {dimension_numbers = #tpu.dot_dimension_numbers<[1], [0], [0], [1], [0, 0, 1, 1], [], []>} : vector<8x8xf32>, vector<8x1258xf32>, vector<8x1258xf32> -> vector<8x1258xf32>
    %182 = arith.addf %177, %181 : vector<8x1258xf32>
    %c2_161 = arith.constant 2 : index
    %c0_162 = arith.constant 0 : index
    %c0_163 = arith.constant 0 : index
    %183 = vector.load %arg4[%c2_161, %c0_162, %c0_163] : memref<27x8x8xf32, #tpu.memory_space<vmem>>, vector<1x8x8xf32>
    %184 = vector.shape_cast %183 : vector<1x8x8xf32> to vector<8x8xf32>
    %c0_164 = arith.constant 0 : index
    %c2_165 = arith.constant 2 : index
    %185 = vector.load %arg8[%c0_164, %c2_165] : memref<8x1944xf32, #tpu.memory_space<vmem>>, vector<8x1258xf32>
    %cst_166 = arith.constant dense<0.000000e+00> : vector<8x1258xf32>
    %186 = tpu.matmul %184, %185, %cst_166 {dimension_numbers = #tpu.dot_dimension_numbers<[1], [0], [0], [1], [0, 0, 1, 1], [], []>} : vector<8x8xf32>, vector<8x1258xf32>, vector<8x1258xf32> -> vector<8x1258xf32>
    %187 = arith.addf %182, %186 : vector<8x1258xf32>
    %c3_167 = arith.constant 3 : index
    %c0_168 = arith.constant 0 : index
    %c0_169 = arith.constant 0 : index
    %188 = vector.load %arg4[%c3_167, %c0_168, %c0_169] : memref<27x8x8xf32, #tpu.memory_space<vmem>>, vector<1x8x8xf32>
    %189 = vector.shape_cast %188 : vector<1x8x8xf32> to vector<8x8xf32>
    %c0_170 = arith.constant 0 : index
    %c18_171 = arith.constant 18 : index
    %190 = vector.load %arg8[%c0_170, %c18_171] : memref<8x1944xf32, #tpu.memory_space<vmem>>, vector<8x1258xf32>
    %cst_172 = arith.constant dense<0.000000e+00> : vector<8x1258xf32>
    %191 = tpu.matmul %189, %190, %cst_172 {dimension_numbers = #tpu.dot_dimension_numbers<[1], [0], [0], [1], [0, 0, 1, 1], [], []>} : vector<8x8xf32>, vector<8x1258xf32>, vector<8x1258xf32> -> vector<8x1258xf32>
    %192 = arith.addf %187, %191 : vector<8x1258xf32>
    %c4_173 = arith.constant 4 : index
    %c0_174 = arith.constant 0 : index
    %c0_175 = arith.constant 0 : index
    %193 = vector.load %arg4[%c4_173, %c0_174, %c0_175] : memref<27x8x8xf32, #tpu.memory_space<vmem>>, vector<1x8x8xf32>
    %194 = vector.shape_cast %193 : vector<1x8x8xf32> to vector<8x8xf32>
    %c0_176 = arith.constant 0 : index
    %c19_177 = arith.constant 19 : index
    %195 = vector.load %arg8[%c0_176, %c19_177] : memref<8x1944xf32, #tpu.memory_space<vmem>>, vector<8x1258xf32>
    %cst_178 = arith.constant dense<0.000000e+00> : vector<8x1258xf32>
    %196 = tpu.matmul %194, %195, %cst_178 {dimension_numbers = #tpu.dot_dimension_numbers<[1], [0], [0], [1], [0, 0, 1, 1], [], []>} : vector<8x8xf32>, vector<8x1258xf32>, vector<8x1258xf32> -> vector<8x1258xf32>
    %197 = arith.addf %192, %196 : vector<8x1258xf32>
    %c5_179 = arith.constant 5 : index
    %c0_180 = arith.constant 0 : index
    %c0_181 = arith.constant 0 : index
    %198 = vector.load %arg4[%c5_179, %c0_180, %c0_181] : memref<27x8x8xf32, #tpu.memory_space<vmem>>, vector<1x8x8xf32>
    %199 = vector.shape_cast %198 : vector<1x8x8xf32> to vector<8x8xf32>
    %c0_182 = arith.constant 0 : index
    %c20_183 = arith.constant 20 : index
    %200 = vector.load %arg8[%c0_182, %c20_183] : memref<8x1944xf32, #tpu.memory_space<vmem>>, vector<8x1258xf32>
    %cst_184 = arith.constant dense<0.000000e+00> : vector<8x1258xf32>
    %201 = tpu.matmul %199, %200, %cst_184 {dimension_numbers = #tpu.dot_dimension_numbers<[1], [0], [0], [1], [0, 0, 1, 1], [], []>} : vector<8x8xf32>, vector<8x1258xf32>, vector<8x1258xf32> -> vector<8x1258xf32>
    %202 = arith.addf %197, %201 : vector<8x1258xf32>
    %c6_185 = arith.constant 6 : index
    %c0_186 = arith.constant 0 : index
    %c0_187 = arith.constant 0 : index
    %203 = vector.load %arg4[%c6_185, %c0_186, %c0_187] : memref<27x8x8xf32, #tpu.memory_space<vmem>>, vector<1x8x8xf32>
    %204 = vector.shape_cast %203 : vector<1x8x8xf32> to vector<8x8xf32>
    %c0_188 = arith.constant 0 : index
    %c36_189 = arith.constant 36 : index
    %205 = vector.load %arg8[%c0_188, %c36_189] : memref<8x1944xf32, #tpu.memory_space<vmem>>, vector<8x1258xf32>
    %cst_190 = arith.constant dense<0.000000e+00> : vector<8x1258xf32>
    %206 = tpu.matmul %204, %205, %cst_190 {dimension_numbers = #tpu.dot_dimension_numbers<[1], [0], [0], [1], [0, 0, 1, 1], [], []>} : vector<8x8xf32>, vector<8x1258xf32>, vector<8x1258xf32> -> vector<8x1258xf32>
    %207 = arith.addf %202, %206 : vector<8x1258xf32>
    %c7_191 = arith.constant 7 : index
    %c0_192 = arith.constant 0 : index
    %c0_193 = arith.constant 0 : index
    %208 = vector.load %arg4[%c7_191, %c0_192, %c0_193] : memref<27x8x8xf32, #tpu.memory_space<vmem>>, vector<1x8x8xf32>
    %209 = vector.shape_cast %208 : vector<1x8x8xf32> to vector<8x8xf32>
    %c0_194 = arith.constant 0 : index
    %c37_195 = arith.constant 37 : index
    %210 = vector.load %arg8[%c0_194, %c37_195] : memref<8x1944xf32, #tpu.memory_space<vmem>>, vector<8x1258xf32>
    %cst_196 = arith.constant dense<0.000000e+00> : vector<8x1258xf32>
    %211 = tpu.matmul %209, %210, %cst_196 {dimension_numbers = #tpu.dot_dimension_numbers<[1], [0], [0], [1], [0, 0, 1, 1], [], []>} : vector<8x8xf32>, vector<8x1258xf32>, vector<8x1258xf32> -> vector<8x1258xf32>
    %212 = arith.addf %207, %211 : vector<8x1258xf32>
    %c8_197 = arith.constant 8 : index
    %c0_198 = arith.constant 0 : index
    %c0_199 = arith.constant 0 : index
    %213 = vector.load %arg4[%c8_197, %c0_198, %c0_199] : memref<27x8x8xf32, #tpu.memory_space<vmem>>, vector<1x8x8xf32>
    %214 = vector.shape_cast %213 : vector<1x8x8xf32> to vector<8x8xf32>
    %c0_200 = arith.constant 0 : index
    %c38_201 = arith.constant 38 : index
    %215 = vector.load %arg8[%c0_200, %c38_201] : memref<8x1944xf32, #tpu.memory_space<vmem>>, vector<8x1258xf32>
    %cst_202 = arith.constant dense<0.000000e+00> : vector<8x1258xf32>
    %216 = tpu.matmul %214, %215, %cst_202 {dimension_numbers = #tpu.dot_dimension_numbers<[1], [0], [0], [1], [0, 0, 1, 1], [], []>} : vector<8x8xf32>, vector<8x1258xf32>, vector<8x1258xf32> -> vector<8x1258xf32>
    %217 = arith.addf %212, %216 : vector<8x1258xf32>
    %c9_203 = arith.constant 9 : index
    %c0_204 = arith.constant 0 : index
    %c0_205 = arith.constant 0 : index
    %218 = vector.load %arg4[%c9_203, %c0_204, %c0_205] : memref<27x8x8xf32, #tpu.memory_space<vmem>>, vector<1x8x8xf32>
    %219 = vector.shape_cast %218 : vector<1x8x8xf32> to vector<8x8xf32>
    %c0_206 = arith.constant 0 : index
    %c324_207 = arith.constant 324 : index
    %220 = vector.load %arg8[%c0_206, %c324_207] : memref<8x1944xf32, #tpu.memory_space<vmem>>, vector<8x1258xf32>
    %cst_208 = arith.constant dense<0.000000e+00> : vector<8x1258xf32>
    %221 = tpu.matmul %219, %220, %cst_208 {dimension_numbers = #tpu.dot_dimension_numbers<[1], [0], [0], [1], [0, 0, 1, 1], [], []>} : vector<8x8xf32>, vector<8x1258xf32>, vector<8x1258xf32> -> vector<8x1258xf32>
    %222 = arith.addf %217, %221 : vector<8x1258xf32>
    %c10_209 = arith.constant 10 : index
    %c0_210 = arith.constant 0 : index
    %c0_211 = arith.constant 0 : index
    %223 = vector.load %arg4[%c10_209, %c0_210, %c0_211] : memref<27x8x8xf32, #tpu.memory_space<vmem>>, vector<1x8x8xf32>
    %224 = vector.shape_cast %223 : vector<1x8x8xf32> to vector<8x8xf32>
    %c0_212 = arith.constant 0 : index
    %c325_213 = arith.constant 325 : index
    %225 = vector.load %arg8[%c0_212, %c325_213] : memref<8x1944xf32, #tpu.memory_space<vmem>>, vector<8x1258xf32>
    %cst_214 = arith.constant dense<0.000000e+00> : vector<8x1258xf32>
    %226 = tpu.matmul %224, %225, %cst_214 {dimension_numbers = #tpu.dot_dimension_numbers<[1], [0], [0], [1], [0, 0, 1, 1], [], []>} : vector<8x8xf32>, vector<8x1258xf32>, vector<8x1258xf32> -> vector<8x1258xf32>
    %227 = arith.addf %222, %226 : vector<8x1258xf32>
    %c11_215 = arith.constant 11 : index
    %c0_216 = arith.constant 0 : index
    %c0_217 = arith.constant 0 : index
    %228 = vector.load %arg4[%c11_215, %c0_216, %c0_217] : memref<27x8x8xf32, #tpu.memory_space<vmem>>, vector<1x8x8xf32>
    %229 = vector.shape_cast %228 : vector<1x8x8xf32> to vector<8x8xf32>
    %c0_218 = arith.constant 0 : index
    %c326_219 = arith.constant 326 : index
    %230 = vector.load %arg8[%c0_218, %c326_219] : memref<8x1944xf32, #tpu.memory_space<vmem>>, vector<8x1258xf32>
    %cst_220 = arith.constant dense<0.000000e+00> : vector<8x1258xf32>
    %231 = tpu.matmul %229, %230, %cst_220 {dimension_numbers = #tpu.dot_dimension_numbers<[1], [0], [0], [1], [0, 0, 1, 1], [], []>} : vector<8x8xf32>, vector<8x1258xf32>, vector<8x1258xf32> -> vector<8x1258xf32>
    %232 = arith.addf %227, %231 : vector<8x1258xf32>
    %c12_221 = arith.constant 12 : index
    %c0_222 = arith.constant 0 : index
    %c0_223 = arith.constant 0 : index
    %233 = vector.load %arg4[%c12_221, %c0_222, %c0_223] : memref<27x8x8xf32, #tpu.memory_space<vmem>>, vector<1x8x8xf32>
    %234 = vector.shape_cast %233 : vector<1x8x8xf32> to vector<8x8xf32>
    %c0_224 = arith.constant 0 : index
    %c342_225 = arith.constant 342 : index
    %235 = vector.load %arg8[%c0_224, %c342_225] : memref<8x1944xf32, #tpu.memory_space<vmem>>, vector<8x1258xf32>
    %cst_226 = arith.constant dense<0.000000e+00> : vector<8x1258xf32>
    %236 = tpu.matmul %234, %235, %cst_226 {dimension_numbers = #tpu.dot_dimension_numbers<[1], [0], [0], [1], [0, 0, 1, 1], [], []>} : vector<8x8xf32>, vector<8x1258xf32>, vector<8x1258xf32> -> vector<8x1258xf32>
    %237 = arith.addf %232, %236 : vector<8x1258xf32>
    %c13_227 = arith.constant 13 : index
    %c0_228 = arith.constant 0 : index
    %c0_229 = arith.constant 0 : index
    %238 = vector.load %arg4[%c13_227, %c0_228, %c0_229] : memref<27x8x8xf32, #tpu.memory_space<vmem>>, vector<1x8x8xf32>
    %239 = vector.shape_cast %238 : vector<1x8x8xf32> to vector<8x8xf32>
    %c0_230 = arith.constant 0 : index
    %c343_231 = arith.constant 343 : index
    %240 = vector.load %arg8[%c0_230, %c343_231] : memref<8x1944xf32, #tpu.memory_space<vmem>>, vector<8x1258xf32>
    %cst_232 = arith.constant dense<0.000000e+00> : vector<8x1258xf32>
    %241 = tpu.matmul %239, %240, %cst_232 {dimension_numbers = #tpu.dot_dimension_numbers<[1], [0], [0], [1], [0, 0, 1, 1], [], []>} : vector<8x8xf32>, vector<8x1258xf32>, vector<8x1258xf32> -> vector<8x1258xf32>
    %242 = arith.addf %237, %241 : vector<8x1258xf32>
    %c14_233 = arith.constant 14 : index
    %c0_234 = arith.constant 0 : index
    %c0_235 = arith.constant 0 : index
    %243 = vector.load %arg4[%c14_233, %c0_234, %c0_235] : memref<27x8x8xf32, #tpu.memory_space<vmem>>, vector<1x8x8xf32>
    %244 = vector.shape_cast %243 : vector<1x8x8xf32> to vector<8x8xf32>
    %c0_236 = arith.constant 0 : index
    %c344_237 = arith.constant 344 : index
    %245 = vector.load %arg8[%c0_236, %c344_237] : memref<8x1944xf32, #tpu.memory_space<vmem>>, vector<8x1258xf32>
    %cst_238 = arith.constant dense<0.000000e+00> : vector<8x1258xf32>
    %246 = tpu.matmul %244, %245, %cst_238 {dimension_numbers = #tpu.dot_dimension_numbers<[1], [0], [0], [1], [0, 0, 1, 1], [], []>} : vector<8x8xf32>, vector<8x1258xf32>, vector<8x1258xf32> -> vector<8x1258xf32>
    %247 = arith.addf %242, %246 : vector<8x1258xf32>
    %c15_239 = arith.constant 15 : index
    %c0_240 = arith.constant 0 : index
    %c0_241 = arith.constant 0 : index
    %248 = vector.load %arg4[%c15_239, %c0_240, %c0_241] : memref<27x8x8xf32, #tpu.memory_space<vmem>>, vector<1x8x8xf32>
    %249 = vector.shape_cast %248 : vector<1x8x8xf32> to vector<8x8xf32>
    %c0_242 = arith.constant 0 : index
    %c360_243 = arith.constant 360 : index
    %250 = vector.load %arg8[%c0_242, %c360_243] : memref<8x1944xf32, #tpu.memory_space<vmem>>, vector<8x1258xf32>
    %cst_244 = arith.constant dense<0.000000e+00> : vector<8x1258xf32>
    %251 = tpu.matmul %249, %250, %cst_244 {dimension_numbers = #tpu.dot_dimension_numbers<[1], [0], [0], [1], [0, 0, 1, 1], [], []>} : vector<8x8xf32>, vector<8x1258xf32>, vector<8x1258xf32> -> vector<8x1258xf32>
    %252 = arith.addf %247, %251 : vector<8x1258xf32>
    %c16_245 = arith.constant 16 : index
    %c0_246 = arith.constant 0 : index
    %c0_247 = arith.constant 0 : index
    %253 = vector.load %arg4[%c16_245, %c0_246, %c0_247] : memref<27x8x8xf32, #tpu.memory_space<vmem>>, vector<1x8x8xf32>
    %254 = vector.shape_cast %253 : vector<1x8x8xf32> to vector<8x8xf32>
    %c0_248 = arith.constant 0 : index
    %c361_249 = arith.constant 361 : index
    %255 = vector.load %arg8[%c0_248, %c361_249] : memref<8x1944xf32, #tpu.memory_space<vmem>>, vector<8x1258xf32>
    %cst_250 = arith.constant dense<0.000000e+00> : vector<8x1258xf32>
    %256 = tpu.matmul %254, %255, %cst_250 {dimension_numbers = #tpu.dot_dimension_numbers<[1], [0], [0], [1], [0, 0, 1, 1], [], []>} : vector<8x8xf32>, vector<8x1258xf32>, vector<8x1258xf32> -> vector<8x1258xf32>
    %257 = arith.addf %252, %256 : vector<8x1258xf32>
    %c17_251 = arith.constant 17 : index
    %c0_252 = arith.constant 0 : index
    %c0_253 = arith.constant 0 : index
    %258 = vector.load %arg4[%c17_251, %c0_252, %c0_253] : memref<27x8x8xf32, #tpu.memory_space<vmem>>, vector<1x8x8xf32>
    %259 = vector.shape_cast %258 : vector<1x8x8xf32> to vector<8x8xf32>
    %c0_254 = arith.constant 0 : index
    %c362_255 = arith.constant 362 : index
    %260 = vector.load %arg8[%c0_254, %c362_255] : memref<8x1944xf32, #tpu.memory_space<vmem>>, vector<8x1258xf32>
    %cst_256 = arith.constant dense<0.000000e+00> : vector<8x1258xf32>
    %261 = tpu.matmul %259, %260, %cst_256 {dimension_numbers = #tpu.dot_dimension_numbers<[1], [0], [0], [1], [0, 0, 1, 1], [], []>} : vector<8x8xf32>, vector<8x1258xf32>, vector<8x1258xf32> -> vector<8x1258xf32>
    %262 = arith.addf %257, %261 : vector<8x1258xf32>
    %c18_257 = arith.constant 18 : index
    %c0_258 = arith.constant 0 : index
    %c0_259 = arith.constant 0 : index
    %263 = vector.load %arg4[%c18_257, %c0_258, %c0_259] : memref<27x8x8xf32, #tpu.memory_space<vmem>>, vector<1x8x8xf32>
    %264 = vector.shape_cast %263 : vector<1x8x8xf32> to vector<8x8xf32>
    %c0_260 = arith.constant 0 : index
    %c648_261 = arith.constant 648 : index
    %265 = vector.load %arg8[%c0_260, %c648_261] : memref<8x1944xf32, #tpu.memory_space<vmem>>, vector<8x1258xf32>
    %cst_262 = arith.constant dense<0.000000e+00> : vector<8x1258xf32>
    %266 = tpu.matmul %264, %265, %cst_262 {dimension_numbers = #tpu.dot_dimension_numbers<[1], [0], [0], [1], [0, 0, 1, 1], [], []>} : vector<8x8xf32>, vector<8x1258xf32>, vector<8x1258xf32> -> vector<8x1258xf32>
    %267 = arith.addf %262, %266 : vector<8x1258xf32>
    %c19_263 = arith.constant 19 : index
    %c0_264 = arith.constant 0 : index
    %c0_265 = arith.constant 0 : index
    %268 = vector.load %arg4[%c19_263, %c0_264, %c0_265] : memref<27x8x8xf32, #tpu.memory_space<vmem>>, vector<1x8x8xf32>
    %269 = vector.shape_cast %268 : vector<1x8x8xf32> to vector<8x8xf32>
    %c0_266 = arith.constant 0 : index
    %c649_267 = arith.constant 649 : index
    %270 = vector.load %arg8[%c0_266, %c649_267] : memref<8x1944xf32, #tpu.memory_space<vmem>>, vector<8x1258xf32>
    %cst_268 = arith.constant dense<0.000000e+00> : vector<8x1258xf32>
    %271 = tpu.matmul %269, %270, %cst_268 {dimension_numbers = #tpu.dot_dimension_numbers<[1], [0], [0], [1], [0, 0, 1, 1], [], []>} : vector<8x8xf32>, vector<8x1258xf32>, vector<8x1258xf32> -> vector<8x1258xf32>
    %272 = arith.addf %267, %271 : vector<8x1258xf32>
    %c20_269 = arith.constant 20 : index
    %c0_270 = arith.constant 0 : index
    %c0_271 = arith.constant 0 : index
    %273 = vector.load %arg4[%c20_269, %c0_270, %c0_271] : memref<27x8x8xf32, #tpu.memory_space<vmem>>, vector<1x8x8xf32>
    %274 = vector.shape_cast %273 : vector<1x8x8xf32> to vector<8x8xf32>
    %c0_272 = arith.constant 0 : index
    %c650_273 = arith.constant 650 : index
    %275 = vector.load %arg8[%c0_272, %c650_273] : memref<8x1944xf32, #tpu.memory_space<vmem>>, vector<8x1258xf32>
    %cst_274 = arith.constant dense<0.000000e+00> : vector<8x1258xf32>
    %276 = tpu.matmul %274, %275, %cst_274 {dimension_numbers = #tpu.dot_dimension_numbers<[1], [0], [0], [1], [0, 0, 1, 1], [], []>} : vector<8x8xf32>, vector<8x1258xf32>, vector<8x1258xf32> -> vector<8x1258xf32>
    %277 = arith.addf %272, %276 : vector<8x1258xf32>
    %c21_275 = arith.constant 21 : index
    %c0_276 = arith.constant 0 : index
    %c0_277 = arith.constant 0 : index
    %278 = vector.load %arg4[%c21_275, %c0_276, %c0_277] : memref<27x8x8xf32, #tpu.memory_space<vmem>>, vector<1x8x8xf32>
    %279 = vector.shape_cast %278 : vector<1x8x8xf32> to vector<8x8xf32>
    %c0_278 = arith.constant 0 : index
    %c666_279 = arith.constant 666 : index
    %280 = vector.load %arg8[%c0_278, %c666_279] : memref<8x1944xf32, #tpu.memory_space<vmem>>, vector<8x1258xf32>
    %cst_280 = arith.constant dense<0.000000e+00> : vector<8x1258xf32>
    %281 = tpu.matmul %279, %280, %cst_280 {dimension_numbers = #tpu.dot_dimension_numbers<[1], [0], [0], [1], [0, 0, 1, 1], [], []>} : vector<8x8xf32>, vector<8x1258xf32>, vector<8x1258xf32> -> vector<8x1258xf32>
    %282 = arith.addf %277, %281 : vector<8x1258xf32>
    %c22_281 = arith.constant 22 : index
    %c0_282 = arith.constant 0 : index
    %c0_283 = arith.constant 0 : index
    %283 = vector.load %arg4[%c22_281, %c0_282, %c0_283] : memref<27x8x8xf32, #tpu.memory_space<vmem>>, vector<1x8x8xf32>
    %284 = vector.shape_cast %283 : vector<1x8x8xf32> to vector<8x8xf32>
    %c0_284 = arith.constant 0 : index
    %c667_285 = arith.constant 667 : index
    %285 = vector.load %arg8[%c0_284, %c667_285] : memref<8x1944xf32, #tpu.memory_space<vmem>>, vector<8x1258xf32>
    %cst_286 = arith.constant dense<0.000000e+00> : vector<8x1258xf32>
    %286 = tpu.matmul %284, %285, %cst_286 {dimension_numbers = #tpu.dot_dimension_numbers<[1], [0], [0], [1], [0, 0, 1, 1], [], []>} : vector<8x8xf32>, vector<8x1258xf32>, vector<8x1258xf32> -> vector<8x1258xf32>
    %287 = arith.addf %282, %286 : vector<8x1258xf32>
    %c23_287 = arith.constant 23 : index
    %c0_288 = arith.constant 0 : index
    %c0_289 = arith.constant 0 : index
    %288 = vector.load %arg4[%c23_287, %c0_288, %c0_289] : memref<27x8x8xf32, #tpu.memory_space<vmem>>, vector<1x8x8xf32>
    %289 = vector.shape_cast %288 : vector<1x8x8xf32> to vector<8x8xf32>
    %c0_290 = arith.constant 0 : index
    %c668_291 = arith.constant 668 : index
    %290 = vector.load %arg8[%c0_290, %c668_291] : memref<8x1944xf32, #tpu.memory_space<vmem>>, vector<8x1258xf32>
    %cst_292 = arith.constant dense<0.000000e+00> : vector<8x1258xf32>
    %291 = tpu.matmul %289, %290, %cst_292 {dimension_numbers = #tpu.dot_dimension_numbers<[1], [0], [0], [1], [0, 0, 1, 1], [], []>} : vector<8x8xf32>, vector<8x1258xf32>, vector<8x1258xf32> -> vector<8x1258xf32>
    %292 = arith.addf %287, %291 : vector<8x1258xf32>
    %c24_293 = arith.constant 24 : index
    %c0_294 = arith.constant 0 : index
    %c0_295 = arith.constant 0 : index
    %293 = vector.load %arg4[%c24_293, %c0_294, %c0_295] : memref<27x8x8xf32, #tpu.memory_space<vmem>>, vector<1x8x8xf32>
    %294 = vector.shape_cast %293 : vector<1x8x8xf32> to vector<8x8xf32>
    %c0_296 = arith.constant 0 : index
    %c684_297 = arith.constant 684 : index
    %295 = vector.load %arg8[%c0_296, %c684_297] : memref<8x1944xf32, #tpu.memory_space<vmem>>, vector<8x1258xf32>
    %cst_298 = arith.constant dense<0.000000e+00> : vector<8x1258xf32>
    %296 = tpu.matmul %294, %295, %cst_298 {dimension_numbers = #tpu.dot_dimension_numbers<[1], [0], [0], [1], [0, 0, 1, 1], [], []>} : vector<8x8xf32>, vector<8x1258xf32>, vector<8x1258xf32> -> vector<8x1258xf32>
    %297 = arith.addf %292, %296 : vector<8x1258xf32>
    %c25_299 = arith.constant 25 : index
    %c0_300 = arith.constant 0 : index
    %c0_301 = arith.constant 0 : index
    %298 = vector.load %arg4[%c25_299, %c0_300, %c0_301] : memref<27x8x8xf32, #tpu.memory_space<vmem>>, vector<1x8x8xf32>
    %299 = vector.shape_cast %298 : vector<1x8x8xf32> to vector<8x8xf32>
    %c0_302 = arith.constant 0 : index
    %c685_303 = arith.constant 685 : index
    %300 = vector.load %arg8[%c0_302, %c685_303] : memref<8x1944xf32, #tpu.memory_space<vmem>>, vector<8x1258xf32>
    %cst_304 = arith.constant dense<0.000000e+00> : vector<8x1258xf32>
    %301 = tpu.matmul %299, %300, %cst_304 {dimension_numbers = #tpu.dot_dimension_numbers<[1], [0], [0], [1], [0, 0, 1, 1], [], []>} : vector<8x8xf32>, vector<8x1258xf32>, vector<8x1258xf32> -> vector<8x1258xf32>
    %302 = arith.addf %297, %301 : vector<8x1258xf32>
    %c26_305 = arith.constant 26 : index
    %c0_306 = arith.constant 0 : index
    %c0_307 = arith.constant 0 : index
    %303 = vector.load %arg4[%c26_305, %c0_306, %c0_307] : memref<27x8x8xf32, #tpu.memory_space<vmem>>, vector<1x8x8xf32>
    %304 = vector.shape_cast %303 : vector<1x8x8xf32> to vector<8x8xf32>
    %c0_308 = arith.constant 0 : index
    %c686_309 = arith.constant 686 : index
    %305 = vector.load %arg8[%c0_308, %c686_309] : memref<8x1944xf32, #tpu.memory_space<vmem>>, vector<8x1258xf32>
    %cst_310 = arith.constant dense<0.000000e+00> : vector<8x1258xf32>
    %306 = tpu.matmul %304, %305, %cst_310 {dimension_numbers = #tpu.dot_dimension_numbers<[1], [0], [0], [1], [0, 0, 1, 1], [], []>} : vector<8x8xf32>, vector<8x1258xf32>, vector<8x1258xf32> -> vector<8x1258xf32>
    %307 = arith.addf %302, %306 : vector<8x1258xf32>
    %c0_311 = arith.constant 0 : index
    %c0_312 = arith.constant 0 : index
    %c686_313 = arith.constant 686 : index
    %308 = vector.load %arg1[%c0_311, %c0_312, %c686_313] : memref<1x8x2630xf32, #tpu.memory_space<vmem>>, vector<1x8x1258xf32>
    %309 = vector.shape_cast %308 : vector<1x8x1258xf32> to vector<8x1258xf32>
    %c0_314 = arith.constant 0 : index
    %c0_315 = arith.constant 0 : index
    %310 = vector.load %arg5[%c0_314, %c0_315] : memref<8x1xf32, #tpu.memory_space<vmem>>, vector<8x1xf32>
    %311 = vector.broadcast %310 : vector<8x1xf32> to vector<8x1258xf32>
    %312 = arith.addf %307, %311 : vector<8x1258xf32>
    %313 = arith.addf %312, %309 : vector<8x1258xf32>
    %cst_316 = arith.constant 0.000000e+00 : f32
    %314 = vector.broadcast %cst_316 : f32 to vector<8x1258xf32>
    %315 = arith.maximumf %313, %314 : vector<8x1258xf32>
    %c0_317 = arith.constant 0 : index
    %c0_318 = arith.constant 0 : index
    %c0_319 = arith.constant 0 : index
    %316 = vector.load %arg7[%c0_317, %c0_318, %c0_319] : memref<1x8x1258xf32, #tpu.memory_space<vmem>>, vector<1x8x1258xf32>
    %317 = vector.shape_cast %316 : vector<1x8x1258xf32> to vector<8x1258xf32>
    %318 = vector.shape_cast %315 : vector<8x1258xf32> to vector<1x8x1258xf32>
    tpu.vector_store %arg7[%c0_317, %c0_318, %c0_319], %318 {strides = array<i32>} : memref<1x8x1258xf32, #tpu.memory_space<vmem>>, vector<1x8x1258xf32>,
    return
  }
  func.func @transform_0(%arg0: i32) -> (i32, i32, i32) {
    %c0_i32 = arith.constant 0 : i32
    %c0_i32_0 = arith.constant 0 : i32
    %c0_i32_1 = arith.constant 0 : i32
    return %arg0, %c0_i32, %c0_i32_0 : i32, i32, i32
  }
  func.func @transform_1(%arg0: i32) -> (i32, i32, i32) {
    %c0_i32 = arith.constant 0 : i32
    %c0_i32_0 = arith.constant 0 : i32
    %c0_i32_1 = arith.constant 0 : i32
    %c0_i32_2 = arith.constant 0 : i32
    return %c0_i32, %c0_i32_0, %c0_i32_1 : i32, i32, i32
  }
  func.func @transform_2(%arg0: i32) -> (i32, i32) {
    %c0_i32 = arith.constant 0 : i32
    %c0_i32_0 = arith.constant 0 : i32
    %c0_i32_1 = arith.constant 0 : i32
    return %c0_i32, %c0_i32_0 : i32, i32
  }
  func.func @transform_3(%arg0: i32) -> (i32, i32, i32) {
    %c0_i32 = arith.constant 0 : i32
    %c0_i32_0 = arith.constant 0 : i32
    %c0_i32_1 = arith.constant 0 : i32
    %c0_i32_2 = arith.constant 0 : i32
    return %c0_i32, %c0_i32_0, %c0_i32_1 : i32, i32, i32
  }
  func.func @transform_4(%arg0: i32) -> (i32, i32) {
    %c0_i32 = arith.constant 0 : i32
    %c0_i32_0 = arith.constant 0 : i32
    %c0_i32_1 = arith.constant 0 : i32
    return %c0_i32, %c0_i32_0 : i32, i32
  }
  func.func @transform_5(%arg0: i32) -> (i32, i32) {
    %c0_i32 = arith.constant 0 : i32
    %c0_i32_0 = arith.constant 0 : i32
    %c0_i32_1 = arith.constant 0 : i32
    return %c0_i32, %c0_i32_0 : i32, i32
  }
  func.func @transform_6(%arg0: i32) -> (i32, i32, i32) {
    %c0_i32 = arith.constant 0 : i32
    %c0_i32_0 = arith.constant 0 : i32
    %c0_i32_1 = arith.constant 0 : i32
    return %arg0, %c0_i32, %c0_i32_0 : i32, i32, i32
  }
}

</mosaic_0001>

<bundles_post_ra>
// kernel: tpu_custom_call.1
= control target key start
LH: loop header
LB: loop body
LE: loop exit
PB: predicated region body
PF: predicated region fallthrough
CT: control target
= control target key end

     0   :  { %11 = vsyncpa [#allocation4], 0  ;;  %s27467_s0 = inlined_call_operand.vmem [shape: f32[2,8,2630], index: 0, kind: input, shape index: {}]   ;;  %s27468_s1 = inlined_call_operand.vmem [shape: f32[27,8,8], index: 1, kind: input, shape index: {}]   ;;  %s27469_s2 = inlined_call_operand.vmem [shape: f32[8,1], index: 2, kind: input, shape index: {}]   ;;  %s27470_s3 = inlined_call_operand.vmem [shape: f32[27,8,8], index: 3, kind: input, shape index: {}]   ;;  %s27471_s4 = inlined_call_operand.vmem [shape: f32[8,1], index: 4, kind: input, shape index: {}]   ;;  %s27472_s5 = inlined_call_operand.vmem [shape: f32[1,1944], index: 5, kind: input, shape index: {}]   ;;  %s27473_s6 = inlined_call_operand.hbm [shape: f32[2,8,1258], index: 6, kind: output, shape index: {}]  }
   0x1   :  { %13 = vsyncpa [#allocation4 + $0x1], 0  ;;  %s21158_s21 = smov 0   ;;  %s21160_s22 = smov 0  }
   0x2   :  { %s21162_s23 = smov 0   ;;  %s21164_s24 = smov 0  }
   0x3 LB: > { %s21179_s25 = sadd.s32 4294967295, %s21094_s24   ;;  %s18476_s26 = sadd.s32 4294967294, %s21094_s24   ;;  %s21094_s24 = sphi %s21164_s24, %s27995_s24   ;;  %s21090_s23 = sphi %s21162_s23, %s27994_s23   ;;  %s21086_s22 = sphi %s21160_s22, %s27993_s22   ;;  %s21082_s21 = sphi %s21158_s21, %s27992_s21  }
   0x4   : > { %s21183_s27 = sadd.s32 1, %s21094_s24   ;;  %s157_s28 = sadd.s32 1, %s21090_s23 }
   0x5   : > { %s154_s29 = ssub.s32 %s21094_s24, %s21183_s27  ;;  %p167_p0 = scmp.ne.s32.totalorder %s21090_s23, %s21086_s22 }
   0x6   : > { %p155_p1 = scmp.eq.s32.totalorder %s154_s29, 0  ;;  %p168_p2 = scmp.eq.s32.totalorder %s21179_s25, 1 }
   0x7   : > { %p173_p3 = scmp.ne.s32.totalorder %s21086_s22, %s21082_s21  ;;  %p174_p4 = scmp.eq.s32.totalorder %s18476_s26, 1 }
   0x8   : > { %s21194_s30 = scalar_select %p155_p1, %s21090_s23, %s157_s28  }
   0x9   : > { %p21196_p5 = por %p168_p2, %p167_p0  ;;  %p21200_p6 = por %p174_p4, %p173_p3 }
   0xa   : > { %p18479_p7 = scmp.ge.s32.totalorder %s21094_s24, 1  ;;  %p215_p8 = scmp.lt.s32.totalorder %s21094_s24, 3 }
   0xc   : > { %p216_p9 = pnand %p18479_p7, %p215_p8 }
   0xe   : > { %219 = sbr.rel (%p216_p9) target bundleno = 1925 (0x785), region = 44 }
  0x13   : > { %p245_p10 = scmp.lt.s32.totalorder %s21179_s25, 1  ;;  %s21096_s14 = smov 127   ;;  %vm317_vm0 = vcmask 1039360   ;;  %v21350_v33 = vld [vmem:[%s27468_s1 + $0x8] sm:$0xff]  ;;  %vm349_vm1 = vcmask 64512   ;;  %vm1030_vm2 = vcmask 1031168  }
  0x14   : > { %s21097_s15 = smov 126   ;;  %s21098_s16 = smov 110   ;;  %vm1435_vm3 = vcmask 900096   ;;  %vm1840_vm4 = vcmask 891904   ;;  %vm2245_vm5 = vcmask 883712   ;;  %vm2650_vm6 = vcmask 752640  }
  0x15   : > { %s246_s9 = scalar_select %p245_p10, %s21179_s25, 1  ;;  %vm3055_vm7 = vcmask 744448   ;;  %vm3460_vm8 = vcmask 736256   ;;  %vm3897_vm9 = vcmask 490496   ;;  %vm4302_vm10 = vcmask 482304  }
  0x16   : > { %s21099_s17 = smov 109   ;;  %s21100_s20 = smov 108   ;;  %vm4707_vm11 = vcmask 474112   ;;  %vm5112_vm12 = vcmask 343040   ;;  %vm27493_vm13 = vcmask 334848   ;;  %vm27488_vm14 = vcmask 326656  }
  0x17   : > { %s19239_s10 = smul.u32 168, %s246_s9  ;;  %s21101_s29 = smov 92   ;;  %vm6327_vm15 = vcmask 195584  }
  0x18   : > { %s21102_s11 = smov 91   ;;  %s21103_s19 = smov 90  }
  0x19   : > { %s21211_s13 = scalar_lea.vmem %s27467_s0, %s19239_s10  ;;  %s21104_s9 = smov 60  }
  0x1a   : > { %v21214_v0 = vld [vmem:[%s21211_s13 + $0x20] sm:$0xff]  ;;  %v21217_v1 = vld [vmem:[%s21211_s13 + $0x28] sm:$0xff]  ;;  %v21244_v8 = vld [vmem:[%s21211_s13 + $0x30] sm:$0xff]  ;;  %s27494_s18 = smov 59   ;;  %s27474_s10 = smov 58  }
  0x1b   : > { %v21220_v2 = vld [vmem:[%s21211_s13] sm:$0xff]  ;;  %v21224_v3 = vpack.i.bf16 %v21217_v1, %v21214_v0  ;;  %v21227_v4 = vld [vmem:[%s21211_s13 + $0x8] sm:$0xff]  ;;  %v21247_v9 = vld [vmem:[%s21211_s13 + $0x38] sm:$0xff]  ;;  %s27476_s28 = smov 42   ;;  %s27478_s12 = smov 41  }
  0x1c   : > { %v21231_v5 = vpack.i.bf16 %v21227_v4, %v21220_v2  ;;  %v21236_v6 = vld [vmem:[%s21211_s13 + $0x40] sm:$0xff]  ;;  %v21239_v7 = vld [vmem:[%s21211_s13 + $0x48] sm:$0xff]  ;;  %v21254_v11 = vld [vmem:[%s21211_s13 + $0x10] sm:$0xff]  ;;  %v21263_v13 = vpack.i.bf16 %v21247_v9, %v21244_v8  ;;  %s27498_s26 = smov 102  }
  0x1d   : > { %19318 = vrot.lane.b32.xlu1 %v21224_v3, %s21096_s14  ;;  %v21251_v10 = vpack.i.bf16 %v21239_v7, %v21236_v6  ;;  %v21257_v12 = vld [vmem:[%s21211_s13 + $0x18] sm:$0xff]  ;;  %v21266_v14 = vld [vmem:[%s21211_s13 + $0x50] sm:$0xff]  ;;  %v21290_v20 = vld [vmem:[%s21211_s13 + $0x60] sm:$0xff] }
  0x1e   : > { %19308 = vrot.lane.b32.xlu0 %v21231_v5, %s21096_s14  ;;  %v21269_v15 = vld [vmem:[%s21211_s13 + $0x58] sm:$0xff]  ;;  %v21273_v16 = vpack.i.bf16 %v21257_v12, %v21254_v11  ;;  %v21284_v18 = vld [vmem:[%s21211_s13 + $0x70] sm:$0xff]  ;;  %v21293_v21 = vld [vmem:[%s21211_s13 + $0x68] sm:$0xff] }
  0x1f   : > { %19328 = vrot.lane.b32.xlu2 %v21251_v10, %s21096_s14  ;;  %v21277_v17 = vpack.i.bf16 %v21269_v15, %v21266_v14  ;;  %v21287_v19 = vld [vmem:[%s21211_s13 + $0x78] sm:$0xff]  ;;  %v21303_v23 = vpack.i.bf16 %v21293_v21, %v21290_v20 }
  0x20   : > { %v21299_v22 = vpack.i.bf16 %v21287_v19, %v21284_v18 }
  0x25   : > { %19323 = vrot.lane.b32.xlu1 %v21263_v13, %s21096_s14 }
  0x26   : > { %19313 = vrot.lane.b32.xlu0 %v21273_v16, %s21096_s14 }
  0x27   : > { %19333 = vrot.lane.b32.xlu2 %v21277_v17, %s21096_s14 }
  0x2d   : > { %19343 = vrot.lane.b32.xlu1 %v21299_v22, %s21096_s14 }
  0x2e   : > { %19338 = vrot.lane.b32.xlu0 %v21303_v23, %s21096_s14 }
  0x2f   : > { %19348 = vrot.lane.b32.xlu2 %v21231_v5, %s21097_s15 }
  0x35   : > { %19358 = vrot.lane.b32.xlu1 %v21224_v3, %s21097_s15 }
  0x36   : > { %19353 = vrot.lane.b32.xlu0 %v21273_v16, %s21097_s15 }
  0x37   : > { %19363 = vrot.lane.b32.xlu2 %v21263_v13, %s21097_s15 }
  0x3d   : > { %19373 = vrot.lane.b32.xlu1 %v21277_v17, %s21097_s15 }
  0x3e   : > { %19368 = vrot.lane.b32.xlu0 %v21251_v10, %s21097_s15 }
  0x3f   : > { %19378 = vrot.lane.b32.xlu2 %v21303_v23, %s21097_s15 }
  0x45   : > { %19388 = vrot.lane.b32.xlu1 %v21231_v5, %s21098_s16 }
  0x46   : > { %19383 = vrot.lane.b32.xlu0 %v21299_v22, %s21097_s15 }
  0x47   : > { %19393 = vrot.lane.b32.xlu2 %v21273_v16, %s21098_s16 }
  0x4d   : > { %19403 = vrot.lane.b32.xlu1 %v21263_v13, %s21098_s16 }
  0x4e   : > { %19398 = vrot.lane.b32.xlu0 %v21224_v3, %s21098_s16 }
  0x4f   : > { %19408 = vrot.lane.b32.xlu2 %v21251_v10, %s21098_s16 }
  0x55   : > { %19418 = vrot.lane.b32.xlu1 %v21303_v23, %s21098_s16 }
  0x56   : > { %19413 = vrot.lane.b32.xlu0 %v21277_v17, %s21098_s16 }
  0x57   : > { %19423 = vrot.lane.b32.xlu2 %v21299_v22, %s21098_s16 }
  0x5d   : > { %19433 = vrot.lane.b32.xlu1 %v21273_v16, %s21099_s17 }
  0x5e   : > { %19428 = vrot.lane.b32.xlu0 %v21231_v5, %s21099_s17 }
  0x5f   : > { %19438 = vrot.lane.b32.xlu2 %v21224_v3, %s21099_s17 }
  0x65   : > { %19448 = vrot.lane.b32.xlu1 %v21251_v10, %s21099_s17 }
  0x66   : > { %19443 = vrot.lane.b32.xlu0 %v21263_v13, %s21099_s17 }
  0x67   : > { %19453 = vrot.lane.b32.xlu2 %v21277_v17, %s21099_s17 }
  0x6d   : > { %19463 = vrot.lane.b32.xlu1 %v21299_v22, %s21099_s17 }
  0x6e   : > { %19458 = vrot.lane.b32.xlu0 %v21303_v23, %s21099_s17 }
  0x6f   : > { %19468 = vrot.lane.b32.xlu2 %v21231_v5, %s21100_s20 }
  0x75   : > { %19478 = vrot.lane.b32.xlu1 %v21224_v3, %s21100_s20 }
  0x76   : > { %19473 = vrot.lane.b32.xlu0 %v21273_v16, %s21100_s20 }
  0x77   : > { %19483 = vrot.lane.b32.xlu2 %v21263_v13, %s21100_s20 }
  0x79   : > { %v19329_v24 = vpop.permute.xlu2 %19328 }
  0x7a   : > { %v19331_v29 = vunpack.i.h.bf16 %v19329_v24  ;;  %v19330_v30 = vunpack.i.l.bf16 %v19329_v24 }
  0x7c   : > { %v326_v36 = vsel %vm317_vm0, %v19330_v30, %v19331_v29 }
  0x7d   : > { %19493 = vrot.lane.b32.xlu1 %v21277_v17, %s21100_s20 }
  0x7e   : > { %19488 = vrot.lane.b32.xlu0 %v21251_v10, %s21100_s20 }
  0x7f   : > { %19498 = vrot.lane.b32.xlu2 %v21303_v23, %s21100_s20 }
  0x81   : > { %v19334_v37 = vpop.permute.xlu2 %19333 }
  0x82   : > { %v19335_v44 = vunpack.i.l.bf16 %v19334_v37  ;;  %v19336_v45 = vunpack.i.h.bf16 %v19334_v37 }
  0x84   : > { %v327_v52 = vsel %vm317_vm0, %v19331_v29, %v19335_v44  ;;  %v328_v53 = vsel %vm317_vm0, %v19335_v44, %v19336_v45  ;;  %v21486_v29 = vld [vmem:[%s27468_s1 + $0x10] sm:$0xff] }
  0x85   : > { %19508 = vrot.lane.b32.xlu1 %v21231_v5, %s21101_s29 }
  0x86   : > { %19503 = vrot.lane.b32.xlu0 %v21299_v22, %s21100_s20 }
  0x87   : > { %19513 = vrot.lane.b32.xlu2 %v21273_v16, %s21101_s29 }
  0x8d   : > { %19523 = vrot.lane.b32.xlu1 %v21263_v13, %s21101_s29 }
  0x8e   : > { %19518 = vrot.lane.b32.xlu0 %v21224_v3, %s21101_s29 }
  0x8f   : > { %v19319_v25 = vpop.permute.xlu1 %19318  ;;  %19528 = vrot.lane.b32.xlu2 %v21251_v10, %s21101_s29 }
  0x90   : > { %v19321_v26 = vunpack.i.h.bf16 %v19319_v25  ;;  %v19320_v27 = vunpack.i.l.bf16 %v19319_v25  ;;  %v19309_v28 = vpop.permute.xlu0 %19308 }
  0x91   : > { %v19311_v31 = vunpack.i.h.bf16 %v19309_v28  ;;  %v19310_v32 = vunpack.i.l.bf16 %v19309_v28 }
  0x92   : > { %v322_v35 = vsel %vm317_vm0, %v19320_v27, %v19321_v26 }
  0x93   : > { %v318_v34 = vsel %vm317_vm0, %v19310_v32, %v19311_v31 }
  0x94   : > { %368 = vmatpush.msra.mxu0 %v318_v34 }
  0x95   : > { %18482 = vmatmul.msk.f32.vlgmr.msra.gmra.mxu0 %vm349_vm1, %v21350_v33  ;;  %19538 = vrot.lane.b32.xlu1 %v21303_v23, %s21101_s29 }
  0x96   : > { %448 = vmatpush.msrb.mxu0 %v322_v35  ;;  %19533 = vrot.lane.b32.xlu0 %v21277_v17, %s21101_s29 }
  0x97   : > { %v19324_v38 = vpop.permute.xlu1 %19323  ;;  %19543 = vrot.lane.b32.xlu2 %v21299_v22, %s21101_s29 }
  0x98   : > { %528 = vmatpush.msra.mxu0 %v326_v36  ;;  %v19325_v39 = vunpack.i.l.bf16 %v19324_v38  ;;  %v19314_v40 = vpop.permute.xlu0 %19313  ;;  %v19326_v41 = vunpack.i.h.bf16 %v19324_v38 }
  0x99   : > { %v19316_v42 = vunpack.i.h.bf16 %v19314_v40  ;;  %v19315_v43 = vunpack.i.l.bf16 %v19314_v40 }
  0x9a   : > { %v323_v49 = vsel %vm317_vm0, %v19321_v26, %v19325_v39  ;;  %v324_v50 = vsel %vm317_vm0, %v19325_v39, %v19326_v41  ;;  %v325_v51 = vsel %vm317_vm0, %v19326_v41, %v19330_v30 }
  0x9b   : > { %v319_v46 = vsel %vm317_vm0, %v19311_v31, %v19315_v43  ;;  %v320_v47 = vsel %vm317_vm0, %v19315_v43, %v19316_v42  ;;  %v321_v48 = vsel %vm317_vm0, %v19316_v42, %v19320_v27 }
  0x9c   : > { %388 = vmatpush.msra.mxu1 %v319_v46  ;;  %408 = vmatpush.msra.mxu2 %v320_v47 }
  0x9d   : > { %428 = vmatpush.msra.mxu3 %v321_v48  ;;  %18483 = vmatmul.msk.f32.vlgmr.msra.gmra.mxu1 %vm349_vm1, %v21350_v33 }
  0x9e   : > { %18484 = vmatmul.msk.f32.vlgmr.msra.gmra.mxu2 %vm349_vm1, %v21350_v33  ;;  %18485 = vmatmul.msk.f32.vlgmr.msra.gmra.mxu3 %vm349_vm1, %v21350_v33 }
  0x9f   : > { %18486 = vmatmul.msk.f32.vlgmr.msrb.gmra.mxu0 %vm349_vm1, %v21350_v33  ;;  %468 = vmatpush.msrb.mxu1 %v323_v49  ;;  %v19344_v54 = vpop.permute.xlu1 %19343 }
  0xa0   : > { %488 = vmatpush.msrb.mxu2 %v324_v50  ;;  %508 = vmatpush.msrb.mxu3 %v325_v51  ;;  %v19339_v55 = vpop.permute.xlu0 %19338  ;;  %v19346_v58 = vunpack.i.h.bf16 %v19344_v54  ;;  %v19345_v59 = vunpack.i.l.bf16 %v19344_v54 }
  0xa1   : > { %548 = vmatpush.msra.mxu1 %v327_v52  ;;  %v19341_v56 = vunpack.i.h.bf16 %v19339_v55  ;;  %v19340_v57 = vunpack.i.l.bf16 %v19339_v55  ;;  %19553 = vrot.lane.b32.xlu1 %v21273_v16, %s21102_s11 }
  0xa2   : > { %568 = vmatpush.msra.mxu2 %v328_v53  ;;  %v332_v63 = vsel %vm317_vm0, %v19345_v59, %v19346_v58  ;;  %19548 = vrot.lane.b32.xlu0 %v21231_v5, %s21102_s11 }
  0xa3   : > { %v329_v60 = vsel %vm317_vm0, %v19336_v45, %v19340_v57  ;;  %v330_v61 = vsel %vm317_vm0, %v19340_v57, %v19341_v56  ;;  %v331_v62 = vsel %vm317_vm0, %v19341_v56, %v19345_v59  ;;  %19558 = vrot.lane.b32.xlu2 %v21224_v3, %s21102_s11 }
  0xa4   : > { %588 = vmatpush.msra.mxu3 %v329_v60  ;;  %608 = vmatpush.msrb.mxu0 %v330_v61 }
  0xa5   : > { %18487 = vmatmul.msk.f32.vlgmr.msrb.gmra.mxu1 %vm349_vm1, %v21350_v33 }
  0xa6   : > { %18488 = vmatmul.msk.f32.vlgmr.msrb.gmra.mxu2 %vm349_vm1, %v21350_v33  ;;  %18489 = vmatmul.msk.f32.vlgmr.msrb.gmra.mxu3 %vm349_vm1, %v21350_v33 }
  0xa7   : > { %18490 = vmatmul.msk.f32.vlgmr.msra.gmra.mxu0 %vm349_vm1, %v21350_v33  ;;  %668 = vmatpush.msrb.mxu3 %v19346_v58 }
  0xa8   : > { %628 = vmatpush.msrb.mxu1 %v331_v62  ;;  %648 = vmatpush.msrb.mxu2 %v332_v63 }
  0xa9   : > { %691 = vmatpush.msra.mxu0 %v21220_v2  ;;  %v21417_v2 = vld [vmem:[%s27468_s1] sm:$0xff]  ;;  %19568 = vrot.lane.b32.xlu1 %v21251_v10, %s21102_s11 }
  0xaa   : > { %19563 = vrot.lane.b32.xlu0 %v21263_v13, %s21102_s11 }
  0xab   : > { %19573 = vrot.lane.b32.xlu2 %v21277_v17, %s21102_s11 }
  0xad   : > { %18491 = vmatmul.msk.f32.vlgmr.msra.gmra.mxu1 %vm349_vm1, %v21350_v33 }
  0xae   : > { %18492 = vmatmul.msk.f32.vlgmr.msra.gmra.mxu2 %vm349_vm1, %v21350_v33  ;;  %18493 = vmatmul.msk.f32.vlgmr.msra.gmra.mxu3 %vm349_vm1, %v21350_v33 }
  0xaf   : > { %18494 = vmatmul.msk.f32.vlgmr.msrb.gmra.mxu0 %vm349_vm1, %v21350_v33  ;;  %711 = vmatpush.msra.mxu1 %v21227_v4 }
  0xb0   : > { %731 = vmatpush.msra.mxu2 %v21254_v11  ;;  %751 = vmatpush.msra.mxu3 %v21257_v12 }
  0xb1   : > { %771 = vmatpush.msrb.mxu0 %v21214_v0  ;;  %v19349_v0 = vpop.permute.xlu2 %19348  ;;  %19583 = vrot.lane.b32.xlu1 %v21299_v22, %s21102_s11 }
  0xb2   : > { %v19350_v4 = vunpack.i.l.bf16 %v19349_v0  ;;  %19578 = vrot.lane.b32.xlu0 %v21303_v23, %s21102_s11 }
  0xb3   : > { %19588 = vrot.lane.b32.xlu2 %v21231_v5, %s21103_s19 }
  0xb5   : > { %18495 = vmatmul.msk.f32.vlgmr.msrb.gmra.mxu1 %vm349_vm1, %v21350_v33 }
  0xb6   : > { %18496 = vmatmul.msk.f32.vlgmr.msrb.gmra.mxu2 %vm349_vm1, %v21350_v33  ;;  %18497 = vmatmul.msk.f32.vlgmr.msrb.gmra.mxu3 %vm349_vm1, %v21350_v33 }
  0xb7   : > { %18498 = vmatmul.msk.f32.vlgmr.msra.gmra.mxu0 %vm349_vm1, %v21417_v2  ;;  %791 = vmatpush.msrb.mxu1 %v21217_v1  ;;  %v19351_v1 = vunpack.i.h.bf16 %v19349_v0 }
  0xb8   : > { %811 = vmatpush.msrb.mxu2 %v21244_v8  ;;  %831 = vmatpush.msrb.mxu3 %v21247_v9  ;;  %v19359_v8 = vpop.permute.xlu1 %19358 }
  0xb9   : > { %851 = vmatpush.msra.mxu0 %v21236_v6  ;;  %v19354_v6 = vpop.permute.xlu0 %19353  ;;  %v19360_v11 = vunpack.i.l.bf16 %v19359_v8  ;;  %19598 = vrot.lane.b32.xlu1 %v21224_v3, %s21103_s19 }
  0xba   : > { %v19355_v9 = vunpack.i.l.bf16 %v19354_v6  ;;  %v19356_v12 = vunpack.i.h.bf16 %v19354_v6  ;;  %19593 = vrot.lane.b32.xlu0 %v21273_v16, %s21103_s19 }
  0xbb   : > { %19603 = vrot.lane.b32.xlu2 %v21263_v13, %s21103_s19  ;;  %v3840_v13 = vld [vmem:[%s21211_s13 + $0x48] sm:$0xff] }
  0xbd   : > { %18499 = vmatmul.msk.f32.vlgmr.msra.gmra.mxu1 %vm349_vm1, %v21417_v2 }
  0xbe   : > { %18500 = vmatmul.msk.f32.vlgmr.msra.gmra.mxu2 %vm349_vm1, %v21417_v2  ;;  %18501 = vmatmul.msk.f32.vlgmr.msra.gmra.mxu3 %vm349_vm1, %v21417_v2 }
  0xbf   : > { %18502 = vmatmul.msk.f32.vlgmr.msrb.gmra.mxu0 %vm349_vm1, %v21417_v2  ;;  %871 = vmatpush.msra.mxu1 %v21239_v7  ;;  %v1031_v7 = vsel %vm1030_vm2, %v19350_v4, %v19351_v1 }
  0xc0   : > { %891 = vmatpush.msra.mxu2 %v21266_v14  ;;  %911 = vmatpush.msra.mxu3 %v21269_v15  ;;  %v19361_v14 = vunpack.i.h.bf16 %v19359_v8  ;;  %v1032_v15 = vsel %vm1030_vm2, %v19351_v1, %v19355_v9  ;;  %v19374_v33 = vpop.permute.xlu1 %19373 }
  0xc1   : > { %931 = vmatpush.msrb.mxu0 %v21290_v20  ;;  %v19364_v20 = vpop.permute.xlu2 %19363  ;;  %v19369_v24 = vpop.permute.xlu0 %19368  ;;  %v19375_v36 = vunpack.i.l.bf16 %v19374_v33  ;;  %v19376_v37 = vunpack.i.h.bf16 %v19374_v33  ;;  %19613 = vrot.lane.b32.xlu1 %v21277_v17, %s21103_s19 }
  0xc2   : > { %v19365_v25 = vunpack.i.l.bf16 %v19364_v20  ;;  %v19366_v26 = vunpack.i.h.bf16 %v19364_v20  ;;  %v19370_v27 = vunpack.i.l.bf16 %v19369_v24  ;;  %v19371_v28 = vunpack.i.h.bf16 %v19369_v24  ;;  %19608 = vrot.lane.b32.xlu0 %v21251_v10, %s21103_s19 }
  0xc3   : > { %v1041_v42 = vsel %vm1030_vm2, %v19375_v36, %v19376_v37  ;;  %19618 = vrot.lane.b32.xlu2 %v21303_v23, %s21103_s19  ;;  %v3846_v23 = vld [vmem:[%s21211_s13 + $0x78] sm:$0xff] }
  0xc4   : > { %v1036_v30 = vsel %vm1030_vm2, %v19361_v14, %v19365_v25  ;;  %v1037_v31 = vsel %vm1030_vm2, %v19365_v25, %v19366_v26  ;;  %v1038_v32 = vsel %vm1030_vm2, %v19366_v26, %v19370_v27  ;;  %v1039_v34 = vsel %vm1030_vm2, %v19370_v27, %v19371_v28 }
  0xc5   : > { %18503 = vmatmul.msk.f32.vlgmr.msrb.gmra.mxu1 %vm349_vm1, %v21417_v2  ;;  %v1040_v40 = vsel %vm1030_vm2, %v19371_v28, %v19375_v36 }
  0xc6   : > { %18504 = vmatmul.msk.f32.vlgmr.msrb.gmra.mxu2 %vm349_vm1, %v21417_v2  ;;  %18505 = vmatmul.msk.f32.vlgmr.msrb.gmra.mxu3 %vm349_vm1, %v21417_v2 }
  0xc7   : > { %18506 = vmatmul.msk.f32.vlgmr.msra.gmra.mxu0 %vm349_vm1, %v21417_v2  ;;  %951 = vmatpush.msrb.mxu1 %v21293_v21  ;;  %v1035_v21 = vsel %vm1030_vm2, %v19360_v11, %v19361_v14 }
  0xc8   : > { %971 = vmatpush.msrb.mxu2 %v21284_v18  ;;  %991 = vmatpush.msrb.mxu3 %v21287_v19  ;;  %v1033_v18 = vsel %vm1030_vm2, %v19355_v9, %v19356_v12  ;;  %v1034_v19 = vsel %vm1030_vm2, %v19356_v12, %v19360_v11  ;;  %v19389_v45 = vpop.permute.xlu1 %19388 }
  0xc9   : > { %1080 = vmatpush.msra.mxu0 %v1031_v7  ;;  %v19379_v35 = vpop.permute.xlu2 %19378  ;;  %v19384_v41 = vpop.permute.xlu0 %19383  ;;  %v19391_v48 = vunpack.i.h.bf16 %v19389_v45  ;;  %v19390_v49 = vunpack.i.l.bf16 %v19389_v45  ;;  %v21554_v7 = vld [vmem:[%s27468_s1 + $0x18] sm:$0xff]  ;;  %19628 = vrot.lane.b32.xlu1 %v21273_v16, %s21104_s9 }
  0xca   : > { %v19380_v38 = vunpack.i.l.bf16 %v19379_v35  ;;  %v19381_v39 = vunpack.i.h.bf16 %v19379_v35  ;;  %v19386_v46 = vunpack.i.h.bf16 %v19384_v41  ;;  %v19385_v47 = vunpack.i.l.bf16 %v19384_v41  ;;  %19623 = vrot.lane.b32.xlu0 %v21299_v22, %s21103_s19  ;;  %v3838_v16 = vld [vmem:[%s21211_s13 + $0x38] sm:$0xff] }
  0xcb   : > { %v1436_v53 = vsel %vm1435_vm3, %v19390_v49, %v19391_v48 }
  0xcc   : > { %v1042_v43 = vsel %vm1030_vm2, %v19376_v37, %v19380_v38  ;;  %v1043_v44 = vsel %vm1030_vm2, %v19380_v38, %v19381_v39  ;;  %v1044_v51 = vsel %vm1030_vm2, %v19381_v39, %v19385_v47  ;;  %v1045_v52 = vsel %vm1030_vm2, %v19385_v47, %v19386_v46 }
  0xcd   : > { %18507 = vmatmul.msk.f32.vlgmr.msra.gmra.mxu1 %vm349_vm1, %v21417_v2 }
  0xce   : > { %18508 = vmatmul.msk.f32.vlgmr.msra.gmra.mxu2 %vm349_vm1, %v21417_v2  ;;  %18509 = vmatmul.msk.f32.vlgmr.msra.gmra.mxu3 %vm349_vm1, %v21417_v2 }
  0xcf   : > { %18510 = vmatmul.msk.f32.vlgmr.msrb.gmra.mxu0 %vm349_vm1, %v21417_v2  ;;  %1100 = vmatpush.msra.mxu1 %v1032_v15 }
  0xd0   : > { %1120 = vmatpush.msra.mxu2 %v1033_v18  ;;  %1140 = vmatpush.msra.mxu3 %v1034_v19  ;;  %v19404_v60 = vpop.permute.xlu1 %19403 }
  0xd1   : > { %1160 = vmatpush.msrb.mxu0 %v1035_v21  ;;  %v19394_v50 = vpop.permute.xlu2 %19393  ;;  %v19399_v54 = vpop.permute.xlu0 %19398  ;;  %v19405_v0 = vunpack.i.l.bf16 %v19404_v60  ;;  %v19406_v1 = vunpack.i.h.bf16 %v19404_v60 }
  0xd2   : > { %v19395_v55 = vunpack.i.l.bf16 %v19394_v50  ;;  %v19396_v56 = vunpack.i.h.bf16 %v19394_v50  ;;  %v19400_v57 = vunpack.i.l.bf16 %v19399_v54  ;;  %v19401_v58 = vunpack.i.h.bf16 %v19399_v54 }
  0xd3   : > { %v1442_v9 = vsel %vm1435_vm3, %v19405_v0, %v19406_v1 }
  0xd4   : > { %v1437_v59 = vsel %vm1435_vm3, %v19391_v48, %v19395_v55  ;;  %v1438_v61 = vsel %vm1435_vm3, %v19395_v55, %v19396_v56  ;;  %v1439_v62 = vsel %vm1435_vm3, %v19396_v56, %v19400_v57  ;;  %v1440_v63 = vsel %vm1435_vm3, %v19400_v57, %v19401_v58 }
  0xd5   : > { %18511 = vmatmul.msk.f32.vlgmr.msrb.gmra.mxu1 %vm349_vm1, %v21417_v2  ;;  %v1441_v8 = vsel %vm1435_vm3, %v19401_v58, %v19405_v0 }
  0xd6   : > { %18512 = vmatmul.msk.f32.vlgmr.msrb.gmra.mxu2 %vm349_vm1, %v21417_v2  ;;  %18513 = vmatmul.msk.f32.vlgmr.msrb.gmra.mxu3 %vm349_vm1, %v21417_v2 }
  0xd7   : > { %18515 = vmatmul.msk.f32.vlgmr.msra.gmra.mxu0 %vm349_vm1, %v21486_v29  ;;  %1180 = vmatpush.msrb.mxu1 %v1036_v30 }
  0xd8   : > { %1200 = vmatpush.msrb.mxu2 %v1037_v31  ;;  %1220 = vmatpush.msrb.mxu3 %v1038_v32  ;;  %v19419_v15 = vpop.permute.xlu1 %19418 }
  0xd9   : > { %1240 = vmatpush.msra.mxu0 %v1039_v34  ;;  %v19409_v2 = vpop.permute.xlu2 %19408  ;;  %v19414_v12 = vpop.permute.xlu0 %19413  ;;  %v19420_v18 = vunpack.i.l.bf16 %v19419_v15  ;;  %v19421_v21 = vunpack.i.h.bf16 %v19419_v15 }
  0xda   : > { %v19410_v4 = vunpack.i.l.bf16 %v19409_v2  ;;  %v19411_v6 = vunpack.i.h.bf16 %v19409_v2  ;;  %v19415_v20 = vunpack.i.l.bf16 %v19414_v12  ;;  %v19416_v19 = vunpack.i.h.bf16 %v19414_v12 }
  0xdb   : > { %v1448_v28 = vsel %vm1435_vm3, %v19420_v18, %v19421_v21 }
  0xdc   : > { %v1443_v11 = vsel %vm1435_vm3, %v19406_v1, %v19410_v4  ;;  %v1444_v14 = vsel %vm1435_vm3, %v19410_v4, %v19411_v6  ;;  %v1445_v24 = vsel %vm1435_vm3, %v19411_v6, %v19415_v20  ;;  %v1446_v26 = vsel %vm1435_vm3, %v19415_v20, %v19416_v19 }
  0xdd   : > { %18516 = vmatmul.msk.f32.vlgmr.msra.gmra.mxu1 %vm349_vm1, %v21486_v29  ;;  %v1447_v27 = vsel %vm1435_vm3, %v19416_v19, %v19420_v18 }
  0xde   : > { %18517 = vmatmul.msk.f32.vlgmr.msra.gmra.mxu2 %vm349_vm1, %v21486_v29  ;;  %18518 = vmatmul.msk.f32.vlgmr.msra.gmra.mxu3 %vm349_vm1, %v21486_v29 }
  0xdf   : > { %18519 = vmatmul.msk.f32.vlgmr.msrb.gmra.mxu0 %vm349_vm1, %v21486_v29  ;;  %1260 = vmatpush.msra.mxu1 %v1040_v40 }
  0xe0   : > { %1280 = vmatpush.msra.mxu2 %v1041_v42  ;;  %1300 = vmatpush.msra.mxu3 %v1042_v43  ;;  %v19434_v34 = vpop.permute.xlu1 %19433 }
  0xe1   : > { %1320 = vmatpush.msrb.mxu0 %v1043_v44  ;;  %v19424_v25 = vpop.permute.xlu2 %19423  ;;  %v19435_v39 = vunpack.i.l.bf16 %v19434_v34  ;;  %v19436_v40 = vunpack.i.h.bf16 %v19434_v34 }
  0xe2   : > { %v19426_v30 = vunpack.i.h.bf16 %v19424_v25  ;;  %v19425_v31 = vunpack.i.l.bf16 %v19424_v25 }
  0xe3   : > { %v1843_v45 = vsel %vm1840_vm4, %v19435_v39, %v19436_v40 }
  0xe4   : > { %v1449_v35 = vsel %vm1435_vm3, %v19421_v21, %v19425_v31  ;;  %v1450_v36 = vsel %vm1435_vm3, %v19425_v31, %v19426_v30 }
  0xe5   : > { %18520 = vmatmul.msk.f32.vlgmr.msrb.gmra.mxu1 %vm349_vm1, %v21486_v29 }
  0xe6   : > { %18521 = vmatmul.msk.f32.vlgmr.msrb.gmra.mxu2 %vm349_vm1, %v21486_v29  ;;  %18522 = vmatmul.msk.f32.vlgmr.msrb.gmra.mxu3 %vm349_vm1, %v21486_v29 }
  0xe7   : > { %18523 = vmatmul.msk.f32.vlgmr.msra.gmra.mxu0 %vm349_vm1, %v21486_v29  ;;  %1380 = vmatpush.msrb.mxu3 %v19386_v46 }
  0xe8   : > { %1340 = vmatpush.msrb.mxu1 %v1044_v51  ;;  %1360 = vmatpush.msrb.mxu2 %v1045_v52  ;;  %v19449_v3 = vpop.permute.xlu1 %19448 }
  0xe9   : > { %1485 = vmatpush.msra.mxu0 %v1436_v53  ;;  %v19439_v38 = vpop.permute.xlu2 %19438  ;;  %v19450_v49 = vunpack.i.l.bf16 %v19449_v3  ;;  %v19451_v52 = vunpack.i.h.bf16 %v19449_v3  ;;  %v21624_v53 = vld [vmem:[%s27468_s1 + $0x20] sm:$0xff] }
  0xea   : > { %v19440_v41 = vunpack.i.l.bf16 %v19439_v38  ;;  %v19441_v42 = vunpack.i.h.bf16 %v19439_v38 }
  0xeb   : > { %v1849_v10 = vsel %vm1840_vm4, %v19450_v49, %v19451_v52 }
  0xec   : > { %v1844_v46 = vsel %vm1840_vm4, %v19436_v40, %v19440_v41  ;;  %v1845_v47 = vsel %vm1840_vm4, %v19440_v41, %v19441_v42 }
  0xed   : > { %18524 = vmatmul.msk.f32.vlgmr.msra.gmra.mxu1 %vm349_vm1, %v21486_v29 }
  0xee   : > { %18525 = vmatmul.msk.f32.vlgmr.msra.gmra.mxu2 %vm349_vm1, %v21486_v29  ;;  %18526 = vmatmul.msk.f32.vlgmr.msra.gmra.mxu3 %vm349_vm1, %v21486_v29 }
  0xef   : > { %18527 = vmatmul.msk.f32.vlgmr.msrb.gmra.mxu0 %vm349_vm1, %v21486_v29  ;;  %1505 = vmatpush.msra.mxu1 %v1437_v59 }
  0xf0   : > { %1525 = vmatpush.msra.mxu2 %v1438_v61  ;;  %1545 = vmatpush.msra.mxu3 %v1439_v62  ;;  %v19464_v1 = vpop.permute.xlu1 %19463 }
  0xf1   : > { %1565 = vmatpush.msrb.mxu0 %v1440_v63  ;;  %v19454_v57 = vpop.permute.xlu2 %19453 }
  0xf2   : > { %v19455_v59 = vunpack.i.l.bf16 %v19454_v57  ;;  %v19456_v60 = vunpack.i.h.bf16 %v19454_v57  ;;  %v3845_v57 = vld [vmem:[%s21211_s13 + $0x70] sm:$0xff] }
  0xf4   : > { %v1850_v0 = vsel %vm1840_vm4, %v19451_v52, %v19455_v59  ;;  %v1851_v4 = vsel %vm1840_vm4, %v19455_v59, %v19456_v60 }
  0xf5   : > { %18528 = vmatmul.msk.f32.vlgmr.msrb.gmra.mxu1 %vm349_vm1, %v21486_v29 }
  0xf6   : > { %18529 = vmatmul.msk.f32.vlgmr.msrb.gmra.mxu2 %vm349_vm1, %v21486_v29  ;;  %18530 = vmatmul.msk.f32.vlgmr.msrb.gmra.mxu3 %vm349_vm1, %v21486_v29  ;;  %v19429_v29 = vpop.permute.xlu0 %19428 }
  0xf7   : > { %18532 = vmatmul.msk.f32.vlgmr.msra.gmra.mxu0 %vm349_vm1, %v21554_v7  ;;  %1585 = vmatpush.msrb.mxu1 %v1441_v8  ;;  %v19431_v32 = vunpack.i.h.bf16 %v19429_v29  ;;  %v19430_v33 = vunpack.i.l.bf16 %v19429_v29 }
  0xf8   : > { %1605 = vmatpush.msrb.mxu2 %v1442_v9  ;;  %1625 = vmatpush.msrb.mxu3 %v1443_v11  ;;  %v19466_v9 = vunpack.i.h.bf16 %v19464_v1  ;;  %v19465_v11 = vunpack.i.l.bf16 %v19464_v1  ;;  %v19479_v25 = vpop.permute.xlu1 %19478 }
  0xf9   : > { %1645 = vmatpush.msra.mxu0 %v1444_v14  ;;  %v1841_v37 = vsel %vm1840_vm4, %v19430_v33, %v19431_v32  ;;  %v1842_v43 = vsel %vm1840_vm4, %v19431_v32, %v19435_v39  ;;  %v19469_v17 = vpop.permute.xlu2 %19468  ;;  %v19481_v33 = vunpack.i.h.bf16 %v19479_v25  ;;  %v3839_v39 = vld [vmem:[%s21211_s13 + $0x40] sm:$0xff] }
  0xfa   : > { %v19471_v14 = vunpack.i.h.bf16 %v19469_v17  ;;  %v19470_v15 = vunpack.i.l.bf16 %v19469_v17  ;;  %v1855_v21 = vsel %vm1840_vm4, %v19465_v11, %v19466_v9 }
  0xfc   : > { %v2246_v22 = vsel %vm2245_vm5, %v19470_v15, %v19471_v14 }
  0xfd   : > { %18533 = vmatmul.msk.f32.vlgmr.msra.gmra.mxu1 %vm349_vm1, %v21554_v7 }
  0xfe   : > { %18534 = vmatmul.msk.f32.vlgmr.msra.gmra.mxu2 %vm349_vm1, %v21554_v7  ;;  %18535 = vmatmul.msk.f32.vlgmr.msra.gmra.mxu3 %vm349_vm1, %v21554_v7  ;;  %v19444_v44 = vpop.permute.xlu0 %19443 }
  0xff   : > { %18536 = vmatmul.msk.f32.vlgmr.msrb.gmra.mxu0 %vm349_vm1, %v21554_v7  ;;  %1665 = vmatpush.msra.mxu1 %v1445_v24  ;;  %v19445_v48 = vunpack.i.l.bf16 %v19444_v44  ;;  %v19446_v50 = vunpack.i.h.bf16 %v19444_v44  ;;  %v3837_v24 = vld [vmem:[%s21211_s13 + $0x30] sm:$0xff] }
 0x100   : > { %1685 = vmatpush.msra.mxu2 %v1446_v26  ;;  %1705 = vmatpush.msra.mxu3 %v1447_v27  ;;  %v21683_v26 = vpack.i.bf16 %v3838_v16, %v3837_v24 }
 0x101   : > { %1725 = vmatpush.msrb.mxu0 %v1448_v28  ;;  %v1846_v54 = vsel %vm1840_vm4, %v19441_v42, %v19445_v48  ;;  %v1847_v55 = vsel %vm1840_vm4, %v19445_v48, %v19446_v50  ;;  %v1848_v56 = vsel %vm1840_vm4, %v19446_v50, %v19450_v49  ;;  %v21709_v42 = vpack.i.bf16 %v3840_v13, %v3839_v39  ;;  %v21728_v50 = vld [vmem:[%s27468_s1 + $0x28] sm:$0xff] }
 0x102   : > { %19638 = vrot.lane.b32.xlu0 %v21683_v26, %s21104_s9 }
 0x103   : > { %19643 = vrot.lane.b32.xlu1 %v21709_v42, %s21104_s9 }
 0x105   : > { %18537 = vmatmul.msk.f32.vlgmr.msrb.gmra.mxu1 %vm349_vm1, %v21554_v7 }
 0x106   : > { %18538 = vmatmul.msk.f32.vlgmr.msrb.gmra.mxu2 %vm349_vm1, %v21554_v7  ;;  %18539 = vmatmul.msk.f32.vlgmr.msrb.gmra.mxu3 %vm349_vm1, %v21554_v7  ;;  %v19459_v58 = vpop.permute.xlu0 %19458 }
 0x107   : > { %18540 = vmatmul.msk.f32.vlgmr.msra.gmra.mxu0 %vm349_vm1, %v21554_v7  ;;  %1785 = vmatpush.msrb.mxu3 %v19426_v30  ;;  %v19460_v61 = vunpack.i.l.bf16 %v19459_v58  ;;  %v19461_v63 = vunpack.i.h.bf16 %v19459_v58  ;;  %v19480_v30 = vunpack.i.l.bf16 %v19479_v25  ;;  %v20999_v25 = vld [vmem:[%s21211_s13 + $0x18] sm:$0xff] }
 0x108   : > { %1745 = vmatpush.msrb.mxu1 %v1449_v35  ;;  %1765 = vmatpush.msrb.mxu2 %v1450_v36  ;;  %v19484_v36 = vpop.permute.xlu2 %19483 }
 0x109   : > { %1890 = vmatpush.msra.mxu0 %v1841_v37  ;;  %v1852_v6 = vsel %vm1840_vm4, %v19456_v60, %v19460_v61  ;;  %v1853_v5 = vsel %vm1840_vm4, %v19460_v61, %v19461_v63  ;;  %v1854_v19 = vsel %vm1840_vm4, %v19461_v63, %v19465_v11  ;;  %v2250_v40 = vsel %vm2245_vm5, %v19480_v30, %v19481_v33  ;;  %v3844_v61 = vld [vmem:[%s21211_s13 + $0x68] sm:$0xff] }
 0x10a   : > { %v21743_v60 = vpack.i.bf16 %v3846_v23, %v3845_v57 }
 0x10c   : > { %19658 = vrot.lane.b32.xlu1 %v21743_v60, %s21104_s9 }
 0x10d   : > { %18541 = vmatmul.msk.f32.vlgmr.msra.gmra.mxu1 %vm349_vm1, %v21554_v7 }
 0x10e   : > { %18542 = vmatmul.msk.f32.vlgmr.msra.gmra.mxu2 %vm349_vm1, %v21554_v7  ;;  %18543 = vmatmul.msk.f32.vlgmr.msra.gmra.mxu3 %vm349_vm1, %v21554_v7  ;;  %v19474_v18 = vpop.permute.xlu0 %19473 }
 0x10f   : > { %18544 = vmatmul.msk.f32.vlgmr.msrb.gmra.mxu0 %vm349_vm1, %v21554_v7  ;;  %1910 = vmatpush.msra.mxu1 %v1842_v43  ;;  %v19475_v27 = vunpack.i.l.bf16 %v19474_v18  ;;  %v19476_v31 = vunpack.i.h.bf16 %v19474_v18  ;;  %v19485_v43 = vunpack.i.l.bf16 %v19484_v36 }
 0x110   : > { %1930 = vmatpush.msra.mxu2 %v1843_v45  ;;  %1950 = vmatpush.msra.mxu3 %v1844_v46  ;;  %v19486_v46 = vunpack.i.h.bf16 %v19484_v36  ;;  %v19499_v59 = vpop.permute.xlu2 %19498 }
 0x111   : > { %1970 = vmatpush.msrb.mxu0 %v1845_v47  ;;  %v2247_v35 = vsel %vm2245_vm5, %v19471_v14, %v19475_v27  ;;  %v2248_v37 = vsel %vm2245_vm5, %v19475_v27, %v19476_v31  ;;  %v2249_v38 = vsel %vm2245_vm5, %v19476_v31, %v19480_v30  ;;  %v2251_v52 = vsel %vm2245_vm5, %v19481_v33, %v19485_v43 }
 0x112   : > { %v21617_v51 = vpop.f32.mrf.mxu0  ;;  %v19501_v17 = vunpack.i.h.bf16 %v19499_v59 }
 0x115   : > { %18545 = vmatmul.msk.f32.vlgmr.msrb.gmra.mxu1 %vm349_vm1, %v21554_v7 }
 0x116   : > { %18546 = vmatmul.msk.f32.vlgmr.msrb.gmra.mxu2 %vm349_vm1, %v21554_v7  ;;  %18547 = vmatmul.msk.f32.vlgmr.msrb.gmra.mxu3 %vm349_vm1, %v21554_v7  ;;  %v19489_v41 = vpop.permute.xlu0 %19488 }
 0x117   : > { %18549 = vmatmul.msk.f32.vlgmr.msra.gmra.mxu0 %vm349_vm1, %v21624_v53  ;;  %1990 = vmatpush.msrb.mxu1 %v1846_v54  ;;  %v19490_v47 = vunpack.i.l.bf16 %v19489_v41  ;;  %v19491_v48 = vunpack.i.h.bf16 %v19489_v41  ;;  %v2252_v54 = vsel %vm2245_vm5, %v19485_v43, %v19486_v46 }
 0x118   : > { %2010 = vmatpush.msrb.mxu2 %v1847_v55  ;;  %2030 = vmatpush.msrb.mxu3 %v1848_v56  ;;  %v19494_v56 = vpop.permute.xlu1 %19493  ;;  %v19514_v43 = vpop.permute.xlu2 %19513 }
 0x119   : > { %2050 = vmatpush.msra.mxu0 %v1849_v10  ;;  %v2253_v55 = vsel %vm2245_vm5, %v19486_v46, %v19490_v47  ;;  %v3843_v10 = vld [vmem:[%s21211_s13 + $0x60] sm:$0xff]  ;;  %v2254_v58 = vsel %vm2245_vm5, %v19490_v47, %v19491_v48  ;;  %v3841_v46 = vld [vmem:[%s21211_s13 + $0x50] sm:$0xff]  ;;  %v3842_v47 = vld [vmem:[%s21211_s13 + $0x58] sm:$0xff]  ;;  %v19516_v23 = vunpack.i.h.bf16 %v19514_v43 }
 0x11a   : > { %v21640_v62 = vpop.f32.mrf.mxu1  ;;  %v21748_v63 = vpack.i.bf16 %v3844_v61, %v3843_v10 }
 0x11c   : > { %v21644_v2 = vpop.f32.mrf.mxu0  ;;  %19653 = vrot.lane.b32.xlu0 %v21748_v63, %s21104_s9 }
 0x11d   : > { %18550 = vmatmul.msk.f32.vlgmr.msra.gmra.mxu1 %vm349_vm1, %v21624_v53 }
 0x11e   : > { %18551 = vmatmul.msk.f32.vlgmr.msra.gmra.mxu2 %vm349_vm1, %v21624_v53  ;;  %18552 = vmatmul.msk.f32.vlgmr.msra.gmra.mxu3 %vm349_vm1, %v21624_v53  ;;  %v19504_v14 = vpop.permute.xlu0 %19503 }
 0x11f   : > { %18553 = vmatmul.msk.f32.vlgmr.msrb.gmra.mxu0 %vm349_vm1, %v21624_v53  ;;  %2070 = vmatpush.msra.mxu1 %v1850_v0  ;;  %v19495_v0 = vunpack.i.l.bf16 %v19494_v56  ;;  %v19505_v36 = vunpack.i.l.bf16 %v19504_v14 }
 0x120   : > { %2090 = vmatpush.msra.mxu2 %v1851_v4  ;;  %2110 = vmatpush.msra.mxu3 %v1852_v6  ;;  %v19496_v4 = vunpack.i.h.bf16 %v19494_v56  ;;  %v19500_v6 = vunpack.i.l.bf16 %v19499_v59  ;;  %v19509_v30 = vpop.permute.xlu1 %19508 }
 0x121   : > { %v21658_v7 = vpop.f32.mrf.mxu2  ;;  %v21660_v8 = vpop.f32.mrf.mxu3  ;;  %2130 = vmatpush.msrb.mxu0 %v1853_v5  ;;  %v2255_v11 = vsel %vm2245_vm5, %v19491_v48, %v19495_v0  ;;  %v19511_v13 = vunpack.i.h.bf16 %v19509_v30 }
 0x122   : > { %v21664_v12 = vpop.f32.mrf.mxu1  ;;  %v2256_v15 = vsel %vm2245_vm5, %v19495_v0, %v19496_v4  ;;  %v2257_v18 = vsel %vm2245_vm5, %v19496_v4, %v19500_v6  ;;  %v2258_v24 = vsel %vm2245_vm5, %v19500_v6, %v19501_v17 }
 0x124   : > { %v21668_v20 = vpop.f32.mrf.mxu0 }
 0x125   : > { %18554 = vmatmul.msk.f32.vlgmr.msrb.gmra.mxu1 %vm349_vm1, %v21624_v53 }
 0x126   : > { %18555 = vmatmul.msk.f32.vlgmr.msrb.gmra.mxu2 %vm349_vm1, %v21624_v53  ;;  %18556 = vmatmul.msk.f32.vlgmr.msrb.gmra.mxu3 %vm349_vm1, %v21624_v53 }
 0x127   : > { %18557 = vmatmul.msk.f32.vlgmr.msra.gmra.mxu0 %vm349_vm1, %v21624_v53  ;;  %2190 = vmatpush.msrb.mxu3 %v19466_v9 }
 0x128   : > { %2150 = vmatpush.msrb.mxu1 %v1854_v19  ;;  %2170 = vmatpush.msrb.mxu2 %v1855_v21  ;;  %v3835_v19 = vld [vmem:[%s21211_s13 + $0x20] sm:$0xff]  ;;  %v3836_v21 = vld [vmem:[%s21211_s13 + $0x28] sm:$0xff] }
 0x129   : > { %v21685_v28 = vpop.f32.mrf.mxu2  ;;  %v21687_v29 = vpop.f32.mrf.mxu3  ;;  %2295 = vmatpush.msra.mxu0 %v2246_v22  ;;  %v21774_v16 = vpack.i.bf16 %v3836_v21, %v3835_v19  ;;  %v20998_v22 = vld [vmem:[%s21211_s13 + $0x10] sm:$0xff] }
 0x12a   : > { %v21691_v32 = vpop.f32.mrf.mxu1  ;;  %v21778_v27 = vpack.i.bf16 %v20999_v25, %v20998_v22 }
 0x12b   : > { %19633 = vrot.lane.b32.xlu2 %v21774_v16, %s21104_s9  ;;  %19673 = vrot.lane.b32.xlu1 %v21774_v16, %s27494_s18 }
 0x12c   : > { %v21695_v34 = vpop.f32.mrf.mxu0  ;;  %19668 = vrot.lane.b32.xlu0 %v21778_v27, %s27494_s18 }
 0x12d   : > { %18558 = vmatmul.msk.f32.vlgmr.msra.gmra.mxu1 %vm349_vm1, %v21624_v53 }
 0x12e   : > { %18559 = vmatmul.msk.f32.vlgmr.msra.gmra.mxu2 %vm349_vm1, %v21624_v53  ;;  %18560 = vmatmul.msk.f32.vlgmr.msra.gmra.mxu3 %vm349_vm1, %v21624_v53 }
 0x12f   : > { %18561 = vmatmul.msk.f32.vlgmr.msrb.gmra.mxu0 %vm349_vm1, %v21624_v53  ;;  %2315 = vmatpush.msra.mxu1 %v2247_v35  ;;  %v19506_v35 = vunpack.i.h.bf16 %v19504_v14  ;;  %v19529_v14 = vpop.permute.xlu2 %19528 }
 0x130   : > { %2335 = vmatpush.msra.mxu2 %v2248_v37  ;;  %2355 = vmatpush.msra.mxu3 %v2249_v38 }
 0x131   : > { %v21713_v44 = vpop.f32.mrf.mxu2  ;;  %v21715_v45 = vpop.f32.mrf.mxu3  ;;  %2375 = vmatpush.msrb.mxu0 %v2250_v40  ;;  %v19510_v40 = vunpack.i.l.bf16 %v19509_v30 }
 0x132   : > { %v21719_v3 = vpop.f32.mrf.mxu1 }
 0x133   : > { %v2651_v48 = vsel %vm2650_vm6, %v19510_v40, %v19511_v13  ;;  %v3847_v40 = vld [vmem:[%s21211_s13 + $0x80] sm:$0xff] }
 0x134   : > { %v21723_v49 = vpop.f32.mrf.mxu0  ;;  %19683 = vrot.lane.b32.xlu0 %v21709_v42, %s27494_s18 }
 0x135   : > { %18562 = vmatmul.msk.f32.vlgmr.msrb.gmra.mxu1 %vm349_vm1, %v21624_v53 }
 0x136   : > { %18563 = vmatmul.msk.f32.vlgmr.msrb.gmra.mxu2 %vm349_vm1, %v21624_v53  ;;  %18564 = vmatmul.msk.f32.vlgmr.msrb.gmra.mxu3 %vm349_vm1, %v21624_v53 }
 0x137   : > { %18566 = vmatmul.msk.f32.vlgmr.msra.gmra.mxu0 %vm349_vm1, %v21728_v50  ;;  %2395 = vmatpush.msrb.mxu1 %v2251_v52  ;;  %v19519_v52 = vpop.permute.xlu0 %19518 }
 0x138   : > { %2415 = vmatpush.msrb.mxu2 %v2252_v54  ;;  %2435 = vmatpush.msrb.mxu3 %v2253_v55  ;;  %v21809_v54 = vpack.i.bf16 %v3842_v47, %v3841_v46  ;;  %v19515_v55 = vunpack.i.l.bf16 %v19514_v43  ;;  %v19520_v10 = vunpack.i.l.bf16 %v19519_v52  ;;  %v19521_v0 = vunpack.i.h.bf16 %v19519_v52  ;;  %v3848_v43 = vld [vmem:[%s21211_s13 + $0x88] sm:$0xff] }
 0x139   : > { %v21750_v1 = vpop.f32.mrf.mxu2  ;;  %v21752_v53 = vpop.f32.mrf.mxu3  ;;  %2455 = vmatpush.msra.mxu0 %v2254_v58  ;;  %v21868_v46 = vpack.i.bf16 %v3848_v43, %v3847_v40 }
 0x13a   : > { %v21756_v5 = vpop.f32.mrf.mxu1  ;;  %19648 = vrot.lane.b32.xlu2 %v21809_v54, %s21104_s9  ;;  %v2652_v6 = vsel %vm2650_vm6, %v19511_v13, %v19515_v55  ;;  %19688 = vrot.lane.b32.xlu1 %v21809_v54, %s27494_s18 }
 0x13c   : > { %v21760_v9 = vpop.f32.mrf.mxu0  ;;  %19698 = vrot.lane.b32.xlu0 %v21743_v60, %s27494_s18 }
 0x13d   : > { %18567 = vmatmul.msk.f32.vlgmr.msra.gmra.mxu1 %vm349_vm1, %v21728_v50 }
 0x13e   : > { %18568 = vmatmul.msk.f32.vlgmr.msra.gmra.mxu2 %vm349_vm1, %v21728_v50  ;;  %18569 = vmatmul.msk.f32.vlgmr.msra.gmra.mxu3 %vm349_vm1, %v21728_v50 }
 0x13f   : > { %18570 = vmatmul.msk.f32.vlgmr.msrb.gmra.mxu0 %vm349_vm1, %v21728_v50  ;;  %2475 = vmatpush.msra.mxu1 %v2255_v11  ;;  %v2654_v11 = vsel %vm2650_vm6, %v19516_v23, %v19520_v10  ;;  %v19534_v13 = vpop.permute.xlu0 %19533 }
 0x140   : > { %2495 = vmatpush.msra.mxu2 %v2256_v15  ;;  %2515 = vmatpush.msra.mxu3 %v2257_v18  ;;  %v19535_v47 = vunpack.i.l.bf16 %v19534_v13 }
 0x141   : > { %v733_v31 = vpop.f32.mrf.mxu2  ;;  %v753_v33 = vpop.f32.mrf.mxu3  ;;  %2535 = vmatpush.msrb.mxu0 %v2258_v24  ;;  %v19530_v24 = vunpack.i.l.bf16 %v19529_v14 }
 0x142   : > { %v21785_v37 = vadd.f32 %v733_v31, %v21658_v7  ;;  %v21788_v38 = vadd.f32 %v753_v33, %v21660_v8  ;;  %v21790_v39 = vpop.f32.mrf.mxu1  ;;  %v2259_v7 = vsel %vm2245_vm5, %v19501_v17, %v19505_v36  ;;  %v2260_v8 = vsel %vm2245_vm5, %v19505_v36, %v19506_v35  ;;  %v19524_v17 = vpop.permute.xlu1 %19523  ;;  %19663 = vrot.lane.b32.xlu2 %v21868_v46, %s21104_s9 }
 0x143   : > { %v19525_v15 = vunpack.i.l.bf16 %v19524_v17  ;;  %v19526_v21 = vunpack.i.h.bf16 %v19524_v17  ;;  %v19531_v31 = vunpack.i.h.bf16 %v19529_v14  ;;  %v19544_v17 = vpop.permute.xlu2 %19543  ;;  %19703 = vrot.lane.b32.xlu1 %v21868_v46, %s27494_s18 }
 0x144   : > { %v21794_v41 = vpop.f32.mrf.mxu0  ;;  %19713 = vrot.lane.b32.xlu0 %v21774_v16, %s27474_s10 }
 0x145   : > { %18571 = vmatmul.msk.f32.vlgmr.msrb.gmra.mxu1 %vm349_vm1, %v21728_v50  ;;  %v2656_v36 = vsel %vm2650_vm6, %v19521_v0, %v19525_v15 }
 0x146   : > { %18572 = vmatmul.msk.f32.vlgmr.msrb.gmra.mxu2 %vm349_vm1, %v21728_v50  ;;  %18573 = vmatmul.msk.f32.vlgmr.msrb.gmra.mxu3 %vm349_vm1, %v21728_v50 }
 0x147   : > { %18574 = vmatmul.msk.f32.vlgmr.msra.gmra.mxu0 %vm349_vm1, %v21728_v50  ;;  %2595 = vmatpush.msrb.mxu3 %v19506_v35  ;;  %v21854_v35 = vld [vmem:[%s27468_s1 + $0x30] sm:$0xff] }
 0x148   : > { %2555 = vmatpush.msrb.mxu1 %v2259_v7  ;;  %2575 = vmatpush.msrb.mxu2 %v2260_v8  ;;  %v2659_v7 = vsel %vm2650_vm6, %v19530_v24, %v19531_v31 }
 0x149   : > { %v813_v56 = vpop.f32.mrf.mxu2  ;;  %v833_v57 = vpop.f32.mrf.mxu3  ;;  %2700 = vmatpush.msra.mxu0 %v2651_v48 }
 0x14a   : > { %v21814_v58 = vadd.f32 %v813_v56, %v21685_v28  ;;  %v21817_v59 = vadd.f32 %v833_v57, %v21687_v29  ;;  %v21819_v61 = vpop.f32.mrf.mxu1  ;;  %v2653_v28 = vsel %vm2650_vm6, %v19515_v55, %v19516_v23  ;;  %v2655_v29 = vsel %vm2650_vm6, %v19520_v10, %v19521_v0  ;;  %v19539_v8 = vpop.permute.xlu1 %19538  ;;  %19678 = vrot.lane.b32.xlu2 %v21683_v26, %s27494_s18 }
 0x14b   : > { %v19540_v55 = vunpack.i.l.bf16 %v19539_v8  ;;  %v19536_v56 = vunpack.i.h.bf16 %v19534_v13  ;;  %v19541_v10 = vunpack.i.h.bf16 %v19539_v8  ;;  %v19559_v40 = vpop.permute.xlu2 %19558  ;;  %19718 = vrot.lane.b32.xlu1 %v21683_v26, %s27474_s10 }
 0x14c   : > { %v21823_v4 = vpop.f32.mrf.mxu0  ;;  %19728 = vrot.lane.b32.xlu0 %v21809_v54, %s27474_s10 }
 0x14d   : > { %18575 = vmatmul.msk.f32.vlgmr.msra.gmra.mxu1 %vm349_vm1, %v21728_v50 }
 0x14e   : > { %18576 = vmatmul.msk.f32.vlgmr.msra.gmra.mxu2 %vm349_vm1, %v21728_v50  ;;  %18577 = vmatmul.msk.f32.vlgmr.msra.gmra.mxu3 %vm349_vm1, %v21728_v50 }
 0x14f   : > { %18578 = vmatmul.msk.f32.vlgmr.msrb.gmra.mxu0 %vm349_vm1, %v21728_v50  ;;  %2720 = vmatpush.msra.mxu1 %v2652_v6  ;;  %v2660_v6 = vsel %vm2650_vm6, %v19531_v31, %v19535_v47 }
 0x150   : > { %2740 = vmatpush.msra.mxu2 %v2653_v28  ;;  %2760 = vmatpush.msra.mxu3 %v2654_v11  ;;  %v2662_v28 = vsel %vm2650_vm6, %v19536_v56, %v19540_v55  ;;  %v19549_v11 = vpop.permute.xlu0 %19548 }
 0x151   : > { %v893_v18 = vpop.f32.mrf.mxu2  ;;  %v913_v19 = vpop.f32.mrf.mxu3  ;;  %2780 = vmatpush.msrb.mxu0 %v2655_v29  ;;  %v19551_v31 = vunpack.i.h.bf16 %v19549_v11 }
 0x152   : > { %v21840_v22 = vadd.f32 %v893_v18, %v21713_v44  ;;  %v21843_v25 = vadd.f32 %v913_v19, %v21715_v45  ;;  %v21845_v30 = vpop.f32.mrf.mxu1  ;;  %v2657_v44 = vsel %vm2650_vm6, %v19525_v15, %v19526_v21  ;;  %v2658_v45 = vsel %vm2650_vm6, %v19526_v21, %v19530_v24  ;;  %19693 = vrot.lane.b32.xlu2 %v21748_v63, %s27494_s18  ;;  %s21118_s18 = smov 100  }
 0x153   : > { %v19546_v15 = vunpack.i.h.bf16 %v19544_v17  ;;  %v19545_v18 = vunpack.i.l.bf16 %v19544_v17  ;;  %19733 = vrot.lane.b32.xlu1 %v21748_v63, %s27474_s10 }
 0x154   : > { %v21849_v33 = vpop.f32.mrf.mxu0  ;;  %19743 = vrot.lane.b32.xlu0 %v21868_v46, %s27474_s10 }
 0x155   : > { %18579 = vmatmul.msk.f32.vlgmr.msrb.gmra.mxu1 %vm349_vm1, %v21728_v50  ;;  %v2665_v13 = vsel %vm2650_vm6, %v19545_v18, %v19546_v15 }
 0x156   : > { %18580 = vmatmul.msk.f32.vlgmr.msrb.gmra.mxu2 %vm349_vm1, %v21728_v50  ;;  %18581 = vmatmul.msk.f32.vlgmr.msrb.gmra.mxu3 %vm349_vm1, %v21728_v50 }
 0x157   : > { %18583 = vmatmul.msk.f32.vlgmr.msra.gmra.mxu0 %vm349_vm1, %v21854_v35  ;;  %2800 = vmatpush.msrb.mxu1 %v2656_v36  ;;  %v19550_v36 = vunpack.i.l.bf16 %v19549_v11 }
 0x158   : > { %2820 = vmatpush.msrb.mxu2 %v2657_v44  ;;  %2840 = vmatpush.msrb.mxu3 %v2658_v45  ;;  %v19554_v45 = vpop.permute.xlu1 %19553 }
 0x159   : > { %v973_v48 = vpop.f32.mrf.mxu2  ;;  %v993_v52 = vpop.f32.mrf.mxu3  ;;  %2860 = vmatpush.msra.mxu0 %v2659_v7  ;;  %v19555_v43 = vunpack.i.l.bf16 %v19554_v45 }
 0x15a   : > { %v21875_v50 = vadd.f32 %v973_v48, %v21750_v1  ;;  %v21878_v57 = vadd.f32 %v993_v52, %v21752_v53  ;;  %v21880_v23 = vpop.f32.mrf.mxu1  ;;  %v2661_v1 = vsel %vm2650_vm6, %v19535_v47, %v19536_v56  ;;  %v2663_v53 = vsel %vm2650_vm6, %v19540_v55, %v19541_v10  ;;  %19708 = vrot.lane.b32.xlu2 %v21778_v27, %s27474_s10 }
 0x15b   : > { %v19556_v47 = vunpack.i.h.bf16 %v19554_v45  ;;  %v19560_v48 = vunpack.i.l.bf16 %v19559_v40  ;;  %v3057_v17 = vsel %vm3055_vm7, %v19551_v31, %v19555_v43  ;;  %19748 = vrot.lane.b32.xlu1 %v21778_v27, %s27476_s28 }
 0x15c   : > { %v21884_v0 = vpop.f32.mrf.mxu0  ;;  %19758 = vrot.lane.b32.xlu0 %v21683_v26, %s27476_s28 }
 0x15d   : > { %18584 = vmatmul.msk.f32.vlgmr.msra.gmra.mxu1 %vm349_vm1, %v21854_v35 }
 0x15e   : > { %18585 = vmatmul.msk.f32.vlgmr.msra.gmra.mxu2 %vm349_vm1, %v21854_v35  ;;  %18586 = vmatmul.msk.f32.vlgmr.msra.gmra.mxu3 %vm349_vm1, %v21854_v35 }
 0x15f   : > { %18587 = vmatmul.msk.f32.vlgmr.msrb.gmra.mxu0 %vm349_vm1, %v21854_v35  ;;  %2880 = vmatpush.msra.mxu1 %v2660_v6 }
 0x160   : > { %2900 = vmatpush.msra.mxu2 %v2661_v1  ;;  %2920 = vmatpush.msra.mxu3 %v2662_v28  ;;  %v19564_v1 = vpop.permute.xlu0 %19563  ;;  %v3059_v28 = vsel %vm3055_vm7, %v19556_v47, %v19560_v48 }
 0x161   : > { %v1122_v29 = vpop.f32.mrf.mxu2  ;;  %v1142_v14 = vpop.f32.mrf.mxu3  ;;  %2940 = vmatpush.msrb.mxu0 %v2663_v53  ;;  %v19565_v11 = vunpack.i.l.bf16 %v19564_v1 }
 0x162   : > { %v21901_v19 = vadd.f32 %v1122_v29, %v21785_v37  ;;  %v21904_v21 = vadd.f32 %v1142_v14, %v21788_v38  ;;  %v21906_v24 = vpop.f32.mrf.mxu1  ;;  %v2664_v37 = vsel %vm2650_vm6, %v19541_v10, %v19545_v18  ;;  %v3056_v38 = vsel %vm3055_vm7, %v19550_v36, %v19551_v31  ;;  %v19569_v53 = vpop.permute.xlu1 %19568  ;;  %19723 = vrot.lane.b32.xlu2 %v21709_v42, %s27474_s10 }
 0x163   : > { %27515 = vst [vmem:[#allocation6_spill] sm:$0xff] %v21906_v24  ;;  %v19561_v10 = vunpack.i.h.bf16 %v19559_v40  ;;  %v19566_v18 = vunpack.i.h.bf16 %v19564_v1  ;;  %19763 = vrot.lane.b32.xlu1 %v21709_v42, %s27476_s28 }
 0x164   : > { %v21910_v44 = vpop.f32.mrf.mxu0  ;;  %19773 = vrot.lane.b32.xlu0 %v21748_v63, %s27476_s28 }
 0x165   : > { %27516 = vst [vmem:[#allocation7_spill] sm:$0xff] %v21910_v44  ;;  %18588 = vmatmul.msk.f32.vlgmr.msrb.gmra.mxu1 %vm349_vm1, %v21854_v35  ;;  %v3061_v40 = vsel %vm3055_vm7, %v19561_v10, %v19565_v11 }
 0x166   : > { %18589 = vmatmul.msk.f32.vlgmr.msrb.gmra.mxu2 %vm349_vm1, %v21854_v35  ;;  %18590 = vmatmul.msk.f32.vlgmr.msrb.gmra.mxu3 %vm349_vm1, %v21854_v35 }
 0x167   : > { %18591 = vmatmul.msk.f32.vlgmr.msra.gmra.mxu0 %vm349_vm1, %v21854_v35  ;;  %3000 = vmatpush.msrb.mxu3 %v19546_v15  ;;  %v19570_v15 = vunpack.i.l.bf16 %v19569_v53 }
 0x168   : > { %2960 = vmatpush.msrb.mxu1 %v2664_v37  ;;  %2980 = vmatpush.msrb.mxu2 %v2665_v13  ;;  %v19571_v37 = vunpack.i.h.bf16 %v19569_v53 }
 0x169   : > { %v1202_v7 = vpop.f32.mrf.mxu2  ;;  %v1222_v8 = vpop.f32.mrf.mxu3  ;;  %3105 = vmatpush.msra.mxu0 %v3056_v38  ;;  %v21966_v38 = vld [vmem:[%s27468_s1 + $0x38] sm:$0xff] }
 0x16a   : > { %v21926_v52 = vadd.f32 %v1202_v7, %v21814_v58  ;;  %v21929_v55 = vadd.f32 %v1222_v8, %v21817_v59  ;;  %v21931_v56 = vpop.f32.mrf.mxu1  ;;  %v3058_v58 = vsel %vm3055_vm7, %v19555_v43, %v19556_v47  ;;  %v3060_v59 = vsel %vm3055_vm7, %v19560_v48, %v19561_v10  ;;  %v19574_v43 = vpop.permute.xlu2 %19573  ;;  %19738 = vrot.lane.b32.xlu2 %v21743_v60, %s27474_s10  ;;  %s27480_s10 = smov 40  }
 0x16b   : > { %27517 = vst [vmem:[#allocation8_spill] sm:$0xff] %v21931_v56  ;;  %v3064_v7 = vsel %vm3055_vm7, %v19570_v15, %v19571_v37  ;;  %v19579_v8 = vpop.permute.xlu0 %19578  ;;  %v19575_v47 = vunpack.i.l.bf16 %v19574_v43  ;;  %19778 = vrot.lane.b32.xlu1 %v21743_v60, %s27476_s28 }
 0x16c   : > { %v21935_v6 = vpop.f32.mrf.mxu0  ;;  %v19580_v1 = vunpack.i.l.bf16 %v19579_v8  ;;  %19788 = vrot.lane.b32.xlu0 %v21778_v27, %s27478_s12 }
 0x16d   : > { %27518 = vst [vmem:[#allocation9_spill] sm:$0xff] %v21935_v6  ;;  %18592 = vmatmul.msk.f32.vlgmr.msra.gmra.mxu1 %vm349_vm1, %v21854_v35 }
 0x16e   : > { %18593 = vmatmul.msk.f32.vlgmr.msra.gmra.mxu2 %vm349_vm1, %v21854_v35  ;;  %18594 = vmatmul.msk.f32.vlgmr.msra.gmra.mxu3 %vm349_vm1, %v21854_v35 }
 0x16f   : > { %18595 = vmatmul.msk.f32.vlgmr.msrb.gmra.mxu0 %vm349_vm1, %v21854_v35  ;;  %3125 = vmatpush.msra.mxu1 %v3057_v17  ;;  %v19576_v17 = vunpack.i.h.bf16 %v19574_v43 }
 0x170   : > { %3145 = vmatpush.msra.mxu2 %v3058_v58  ;;  %3165 = vmatpush.msra.mxu3 %v3059_v28 }
 0x171   : > { %v1282_v29 = vpop.f32.mrf.mxu2  ;;  %v1302_v14 = vpop.f32.mrf.mxu3  ;;  %3185 = vmatpush.msrb.mxu0 %v3060_v59  ;;  %v19581_v59 = vunpack.i.h.bf16 %v19579_v8 }
 0x172   : > { %v21952_v31 = vadd.f32 %v1282_v29, %v21840_v22  ;;  %v21955_v36 = vadd.f32 %v1302_v14, %v21843_v25  ;;  %v21957_v45 = vpop.f32.mrf.mxu1  ;;  %v3062_v22 = vsel %vm3055_vm7, %v19565_v11, %v19566_v18  ;;  %v3063_v25 = vsel %vm3055_vm7, %v19566_v18, %v19570_v15  ;;  %v19584_v29 = vpop.permute.xlu1 %19583  ;;  %19753 = vrot.lane.b32.xlu2 %v21774_v16, %s27476_s28 }
 0x173   : > { %27519 = vst [vmem:[#allocation10_spill] sm:$0xff] %v21957_v45  ;;  %v3065_v11 = vsel %vm3055_vm7, %v19571_v37, %v19575_v47  ;;  %v3067_v14 = vsel %vm3055_vm7, %v19576_v17, %v19580_v1  ;;  %v19589_v15 = vpop.permute.xlu2 %19588  ;;  %19793 = vrot.lane.b32.xlu1 %v21774_v16, %s27478_s12 }
 0x174   : > { %v21961_v13 = vpop.f32.mrf.mxu0  ;;  %v19591_v8 = vunpack.i.h.bf16 %v19589_v15  ;;  %19803 = vrot.lane.b32.xlu0 %v21709_v42, %s27478_s12 }
 0x175   : > { %18596 = vmatmul.msk.f32.vlgmr.msrb.gmra.mxu1 %vm349_vm1, %v21854_v35 }
 0x176   : > { %18597 = vmatmul.msk.f32.vlgmr.msrb.gmra.mxu2 %vm349_vm1, %v21854_v35  ;;  %18598 = vmatmul.msk.f32.vlgmr.msrb.gmra.mxu3 %vm349_vm1, %v21854_v35 }
 0x177   : > { %18600 = vmatmul.msk.f32.vlgmr.msra.gmra.mxu0 %vm349_vm1, %v21966_v38  ;;  %3205 = vmatpush.msrb.mxu1 %v3061_v40  ;;  %v19586_v40 = vunpack.i.h.bf16 %v19584_v29 }
 0x178   : > { %3225 = vmatpush.msrb.mxu2 %v3062_v22  ;;  %3245 = vmatpush.msrb.mxu3 %v3063_v25  ;;  %v19585_v22 = vunpack.i.l.bf16 %v19584_v29 }
 0x179   : > { %v1362_v48 = vpop.f32.mrf.mxu2  ;;  %v1382_v10 = vpop.f32.mrf.mxu3  ;;  %3265 = vmatpush.msra.mxu0 %v3064_v7 }
 0x17a   : > { %v21983_v35 = vadd.f32 %v1362_v48, %v21875_v50  ;;  %v21986_v58 = vadd.f32 %v1382_v10, %v21878_v57  ;;  %v21988_v28 = vpop.f32.mrf.mxu1  ;;  %v3066_v50 = vsel %vm3055_vm7, %v19575_v47, %v19576_v17  ;;  %v3068_v57 = vsel %vm3055_vm7, %v19580_v1, %v19581_v59  ;;  %v19594_v10 = vpop.permute.xlu0 %19593  ;;  %19768 = vrot.lane.b32.xlu2 %v21809_v54, %s27476_s28 }
 0x17b   : > { %27520 = vst [vmem:[#allocation11_spill] sm:$0xff] %v21988_v28  ;;  %v19590_v47 = vunpack.i.l.bf16 %v19589_v15  ;;  %v3070_v17 = vsel %vm3055_vm7, %v19585_v22, %v19586_v40  ;;  %v19599_v1 = vpop.permute.xlu1 %19598  ;;  %19808 = vrot.lane.b32.xlu1 %v21809_v54, %s27478_s12 }
 0x17c   : > { %v21992_v53 = vpop.f32.mrf.mxu0  ;;  %19818 = vrot.lane.b32.xlu0 %v21743_v60, %s27478_s12 }
 0x17d   : > { %27521 = vst [vmem:[#allocation12_spill] sm:$0xff] %v21992_v53  ;;  %18601 = vmatmul.msk.f32.vlgmr.msra.gmra.mxu1 %vm349_vm1, %v21966_v38 }
 0x17e   : > { %18602 = vmatmul.msk.f32.vlgmr.msra.gmra.mxu2 %vm349_vm1, %v21966_v38  ;;  %18603 = vmatmul.msk.f32.vlgmr.msra.gmra.mxu3 %vm349_vm1, %v21966_v38 }
 0x17f   : > { %18604 = vmatmul.msk.f32.vlgmr.msrb.gmra.mxu0 %vm349_vm1, %v21966_v38  ;;  %3285 = vmatpush.msra.mxu1 %v3065_v11  ;;  %v19595_v11 = vunpack.i.l.bf16 %v19594_v10 }
 0x180   : > { %3305 = vmatpush.msra.mxu2 %v3066_v50  ;;  %3325 = vmatpush.msra.mxu3 %v3067_v14  ;;  %v19600_v50 = vunpack.i.l.bf16 %v19599_v1  ;;  %v19596_v14 = vunpack.i.h.bf16 %v19594_v10 }
 0x181   : > { %v1527_v18 = vpop.f32.mrf.mxu2  ;;  %v1547_v37 = vpop.f32.mrf.mxu3  ;;  %3345 = vmatpush.msrb.mxu0 %v3068_v57 }
 0x182   : > { %v22009_v25 = vadd.f32 %v1527_v18, %v21901_v19  ;;  %v22012_v43 = vadd.f32 %v1547_v37, %v21904_v21  ;;  %v22014_v7 = vpop.f32.mrf.mxu1  ;;  %v3069_v19 = vsel %vm3055_vm7, %v19581_v59, %v19585_v22  ;;  %v3461_v21 = vsel %vm3460_vm8, %v19590_v47, %v19591_v8  ;;  %v19604_v47 = vpop.permute.xlu2 %19603  ;;  %19783 = vrot.lane.b32.xlu2 %v21868_v46, %s27476_s28  ;;  %s27482_s28 = smov 24  }
 0x183   : > { %27522 = vst [vmem:[#allocation13_spill] sm:$0xff] %v22014_v7  ;;  %v19601_v37 = vunpack.i.h.bf16 %v19599_v1  ;;  %v3462_v22 = vsel %vm3460_vm8, %v19591_v8, %v19595_v11  ;;  %v3464_v10 = vsel %vm3460_vm8, %v19596_v14, %v19600_v50  ;;  %v19605_v8 = vunpack.i.l.bf16 %v19604_v47  ;;  %19823 = vrot.lane.b32.xlu1 %v21868_v46, %s27478_s12 }
 0x184   : > { %v22018_v48 = vpop.f32.mrf.mxu0  ;;  %19833 = vrot.lane.b32.xlu0 %v21774_v16, %s27480_s10 }
 0x185   : > { %27523 = vst [vmem:[#allocation14_spill] sm:$0xff] %v22018_v48  ;;  %18605 = vmatmul.msk.f32.vlgmr.msrb.gmra.mxu1 %vm349_vm1, %v21966_v38  ;;  %v3465_v26 = vsel %vm3460_vm8, %v19600_v50, %v19601_v37  ;;  %v21015_v48 = vld [vmem:[%s21211_s13 + $0x88] sm:$0xff] }
 0x186   : > { %18606 = vmatmul.msk.f32.vlgmr.msrb.gmra.mxu2 %vm349_vm1, %v21966_v38  ;;  %18607 = vmatmul.msk.f32.vlgmr.msrb.gmra.mxu3 %vm349_vm1, %v21966_v38 }
 0x187   : > { %18608 = vmatmul.msk.f32.vlgmr.msra.gmra.mxu0 %vm349_vm1, %v21966_v38  ;;  %3405 = vmatpush.msrb.mxu3 %v19586_v40 }
 0x188   : > { %3365 = vmatpush.msrb.mxu1 %v3069_v19  ;;  %3385 = vmatpush.msrb.mxu2 %v3070_v17 }
 0x189   : > { %v1607_v29 = vpop.f32.mrf.mxu2  ;;  %v1627_v59 = vpop.f32.mrf.mxu3  ;;  %3510 = vmatpush.msra.mxu0 %v3461_v21  ;;  %v19606_v21 = vunpack.i.h.bf16 %v19604_v47  ;;  %v3466_v47 = vsel %vm3460_vm8, %v19601_v37, %v19605_v8 }
 0x18a   : > { %v22034_v57 = vadd.f32 %v1607_v29, %v21926_v52  ;;  %v22037_v15 = vadd.f32 %v1627_v59, %v21929_v55  ;;  %v22039_v18 = vpop.f32.mrf.mxu1  ;;  %v3463_v52 = vsel %vm3460_vm8, %v19595_v11, %v19596_v14  ;;  %v19609_v55 = vpop.permute.xlu0 %19608 }
 0x18b   : > { %27524 = vst [vmem:[#allocation15_spill] sm:$0xff] %v22039_v18  ;;  %v19610_v1 = vunpack.i.l.bf16 %v19609_v55  ;;  %v19611_v50 = vunpack.i.h.bf16 %v19609_v55  ;;  %v21014_v18 = vld [vmem:[%s21211_s13 + $0x80] sm:$0xff] }
 0x18c   : > { %v22043_v40 = vpop.f32.mrf.mxu0  ;;  %19848 = vrot.lane.b32.xlu0 %v21809_v54, %s27480_s10  ;;  %v19902_v7 = vpack.i.bf16 %v21015_v48, %v21014_v18 }
 0x18d   : > { %27525 = vst [vmem:[#allocation16_spill] sm:$0xff] %v22043_v40  ;;  %18609 = vmatmul.msk.f32.vlgmr.msra.gmra.mxu1 %vm349_vm1, %v21966_v38 }
 0x18e   : > { %18610 = vmatmul.msk.f32.vlgmr.msra.gmra.mxu2 %vm349_vm1, %v21966_v38  ;;  %18611 = vmatmul.msk.f32.vlgmr.msra.gmra.mxu3 %vm349_vm1, %v21966_v38 }
 0x18f   : > { %18612 = vmatmul.msk.f32.vlgmr.msrb.gmra.mxu0 %vm349_vm1, %v21966_v38  ;;  %3530 = vmatpush.msra.mxu1 %v3462_v22  ;;  %v22074_v22 = vld [vmem:[%s27468_s1 + $0x40] sm:$0xff] }
 0x190   : > { %3550 = vmatpush.msra.mxu2 %v3463_v52  ;;  %3570 = vmatpush.msra.mxu3 %v3464_v10  ;;  %v19614_v52 = vpop.permute.xlu1 %19613  ;;  %v3469_v10 = vsel %vm3460_vm8, %v19610_v1, %v19611_v50 }
 0x191   : > { %v1687_v19 = vpop.f32.mrf.mxu2  ;;  %v1707_v17 = vpop.f32.mrf.mxu3  ;;  %3590 = vmatpush.msrb.mxu0 %v3465_v26  ;;  %v19615_v37 = vunpack.i.l.bf16 %v19614_v52 }
 0x192   : > { %v22060_v11 = vadd.f32 %v1687_v19, %v21952_v31  ;;  %v22063_v29 = vadd.f32 %v1707_v17, %v21955_v36  ;;  %v22065_v59 = vpop.f32.mrf.mxu1  ;;  %v3467_v31 = vsel %vm3460_vm8, %v19605_v8, %v19606_v21  ;;  %v3468_v36 = vsel %vm3460_vm8, %v19606_v21, %v19610_v1  ;;  %v19619_v26 = vpop.permute.xlu2 %19618 }
 0x193   : > { %27526 = vst [vmem:[#allocation17_spill] sm:$0xff] %v22065_v59  ;;  %v19616_v19 = vunpack.i.h.bf16 %v19614_v52  ;;  %v19620_v17 = vunpack.i.l.bf16 %v19619_v26  ;;  %v19624_v52 = vpop.permute.xlu0 %19623 }
 0x194   : > { %v22069_v14 = vpop.f32.mrf.mxu0  ;;  %19863 = vrot.lane.b32.xlu0 %v21868_v46, %s27480_s10 }
 0x195   : > { %18613 = vmatmul.msk.f32.vlgmr.msrb.gmra.mxu1 %vm349_vm1, %v21966_v38 }
 0x196   : > { %18614 = vmatmul.msk.f32.vlgmr.msrb.gmra.mxu2 %vm349_vm1, %v21966_v38  ;;  %18615 = vmatmul.msk.f32.vlgmr.msrb.gmra.mxu3 %vm349_vm1, %v21966_v38 }
 0x197   : > { %18617 = vmatmul.msk.f32.vlgmr.msra.gmra.mxu0 %vm349_vm1, %v22074_v22  ;;  %3610 = vmatpush.msrb.mxu1 %v3466_v47  ;;  %v19621_v47 = vunpack.i.h.bf16 %v19619_v26 }
 0x198   : > { %3630 = vmatpush.msrb.mxu2 %v3467_v31  ;;  %3650 = vmatpush.msrb.mxu3 %v3468_v36  ;;  %v3470_v36 = vsel %vm3460_vm8, %v19611_v50, %v19615_v37 }
 0x199   : > { %v1767_v55 = vpop.f32.mrf.mxu2  ;;  %v1787_v8 = vpop.f32.mrf.mxu3  ;;  %3670 = vmatpush.msra.mxu0 %v3469_v10  ;;  %v3472_v10 = vsel %vm3460_vm8, %v19616_v19, %v19620_v17  ;;  %v3473_v63 = vsel %vm3460_vm8, %v19620_v17, %v19621_v47 }
 0x19a   : > { %v22091_v38 = vadd.f32 %v1767_v55, %v21983_v35  ;;  %v22094_v21 = vadd.f32 %v1787_v8, %v21986_v58  ;;  %v22096_v1 = vpop.f32.mrf.mxu1  ;;  %v3471_v35 = vsel %vm3460_vm8, %v19615_v37, %v19616_v19  ;;  %v19629_v58 = vpop.permute.xlu1 %19628  ;;  %v19626_v37 = vunpack.i.h.bf16 %v19624_v52 }
 0x19b   : > { %27527 = vst [vmem:[#allocation18_spill] sm:$0xff] %v22096_v1  ;;  %v19625_v55 = vunpack.i.l.bf16 %v19624_v52  ;;  %v19634_v52 = vpop.permute.xlu2 %19633  ;;  %v19639_v27 = vpop.permute.xlu0 %19638 }
 0x19c   : > { %v22100_v31 = vpop.f32.mrf.mxu0 }
 0x19d   : > { %27528 = vst [vmem:[#allocation19_spill] sm:$0xff] %v22100_v31  ;;  %18618 = vmatmul.msk.f32.vlgmr.msra.gmra.mxu1 %vm349_vm1, %v22074_v22  ;;  %v19630_v31 = vunpack.i.l.bf16 %v19629_v58 }
 0x19e   : > { %18619 = vmatmul.msk.f32.vlgmr.msra.gmra.mxu2 %vm349_vm1, %v22074_v22  ;;  %18620 = vmatmul.msk.f32.vlgmr.msra.gmra.mxu3 %vm349_vm1, %v22074_v22 }
 0x19f   : > { %18621 = vmatmul.msk.f32.vlgmr.msrb.gmra.mxu0 %vm349_vm1, %v22074_v22  ;;  %3690 = vmatpush.msra.mxu1 %v3470_v36  ;;  %v19631_v36 = vunpack.i.h.bf16 %v19629_v58 }
 0x1a0   : > { %3710 = vmatpush.msra.mxu2 %v3471_v35  ;;  %3730 = vmatpush.msra.mxu3 %v3472_v10 }
 0x1a1   : > { %v1932_v50 = vpop.f32.mrf.mxu2  ;;  %v1952_v26 = vpop.f32.mrf.mxu3  ;;  %3750 = vmatpush.msrb.mxu0 %v3473_v63  ;;  %v3898_v10 = vsel %vm3897_vm9, %v19630_v31, %v19631_v36  ;;  %v19635_v63 = vunpack.i.l.bf16 %v19634_v52 }
 0x1a2   : > { %v22117_v8 = vadd.f32 %v1932_v50, %v22009_v25  ;;  %v22120_v19 = vadd.f32 %v1952_v26, %v22012_v43  ;;  %v22122_v17 = vpop.f32.mrf.mxu1  ;;  %v3474_v25 = vsel %vm3460_vm8, %v19621_v47, %v19625_v55  ;;  %v3475_v43 = vsel %vm3460_vm8, %v19625_v55, %v19626_v37 }
 0x1a3   : > { %27529 = vst [vmem:[#allocation20_spill] sm:$0xff] %v22122_v17  ;;  %v19636_v50 = vunpack.i.h.bf16 %v19634_v52  ;;  %v19640_v26 = vunpack.i.l.bf16 %v19639_v27  ;;  %v3899_v52 = vsel %vm3897_vm9, %v19631_v36, %v19635_v63 }
 0x1a4   : > { %v22126_v35 = vpop.f32.mrf.mxu0 }
 0x1a5   : > { %27530 = vst [vmem:[#allocation21_spill] sm:$0xff] %v22126_v35  ;;  %18622 = vmatmul.msk.f32.vlgmr.msrb.gmra.mxu1 %vm349_vm1, %v22074_v22 }
 0x1a6   : > { %18623 = vmatmul.msk.f32.vlgmr.msrb.gmra.mxu2 %vm349_vm1, %v22074_v22  ;;  %18624 = vmatmul.msk.f32.vlgmr.msrb.gmra.mxu3 %vm349_vm1, %v22074_v22 }
 0x1a7   : > { %18625 = vmatmul.msk.f32.vlgmr.msra.gmra.mxu0 %vm349_vm1, %v22074_v22  ;;  %3810 = vmatpush.msrb.mxu3 %v19626_v37  ;;  %v19641_v37 = vunpack.i.h.bf16 %v19639_v27  ;;  %v19649_v27 = vpop.permute.xlu2 %19648 }
 0x1a8   : > { %3770 = vmatpush.msrb.mxu1 %v3474_v25  ;;  %3790 = vmatpush.msrb.mxu2 %v3475_v43  ;;  %v19644_v43 = vpop.permute.xlu1 %19643 }
 0x1a9   : > { %v2012_v58 = vpop.f32.mrf.mxu2  ;;  %v2032_v47 = vpop.f32.mrf.mxu3  ;;  %3947 = vmatpush.msra.mxu0 %v3898_v10  ;;  %v3901_v10 = vsel %vm3897_vm9, %v19636_v50, %v19640_v26  ;;  %v19645_v36 = vunpack.i.l.bf16 %v19644_v43 }
 0x1aa   : > { %v22142_v55 = vadd.f32 %v2012_v58, %v22034_v57  ;;  %v22145_v31 = vadd.f32 %v2032_v47, %v22037_v15  ;;  %v22147_v35 = vpop.f32.mrf.mxu1  ;;  %v3900_v57 = vsel %vm3897_vm9, %v19635_v63, %v19636_v50  ;;  %v3902_v15 = vsel %vm3897_vm9, %v19640_v26, %v19641_v37 }
 0x1ab   : > { %27531 = vst [vmem:[#allocation22_spill] sm:$0xff] %v22147_v35  ;;  %v19646_v47 = vunpack.i.h.bf16 %v19644_v43  ;;  %v19650_v50 = vunpack.i.l.bf16 %v19649_v27  ;;  %v22182_v43 = vld [vmem:[%s27468_s1 + $0x48] sm:$0xff] }
 0x1ac   : > { %v22151_v25 = vpop.f32.mrf.mxu0 }
 0x1ad   : > { %27532 = vst [vmem:[#allocation23_spill] sm:$0xff] %v22151_v25  ;;  %18626 = vmatmul.msk.f32.vlgmr.msra.gmra.mxu1 %vm349_vm1, %v22074_v22 }
 0x1ae   : > { %18627 = vmatmul.msk.f32.vlgmr.msra.gmra.mxu2 %vm349_vm1, %v22074_v22  ;;  %18628 = vmatmul.msk.f32.vlgmr.msra.gmra.mxu3 %vm349_vm1, %v22074_v22 }
 0x1af   : > { %18629 = vmatmul.msk.f32.vlgmr.msrb.gmra.mxu0 %vm349_vm1, %v22074_v22  ;;  %3967 = vmatpush.msra.mxu1 %v3899_v52  ;;  %v19651_v52 = vunpack.i.h.bf16 %v19649_v27 }
 0x1b0   : > { %3987 = vmatpush.msra.mxu2 %v3900_v57  ;;  %4007 = vmatpush.msra.mxu3 %v3901_v10  ;;  %v3903_v10 = vsel %vm3897_vm9, %v19641_v37, %v19645_v36  ;;  %v19659_v27 = vpop.permute.xlu1 %19658 }
 0x1b1   : > { %v2092_v58 = vpop.f32.mrf.mxu2  ;;  %v2112_v63 = vpop.f32.mrf.mxu3  ;;  %4027 = vmatpush.msrb.mxu0 %v3902_v15  ;;  %v3906_v42 = vsel %vm3897_vm9, %v19650_v50, %v19651_v52 }
 0x1b2   : > { %v22168_v25 = vadd.f32 %v2092_v58, %v22060_v11  ;;  %v22171_v26 = vadd.f32 %v2112_v63, %v22063_v29  ;;  %v22173_v35 = vpop.f32.mrf.mxu1  ;;  %v3904_v11 = vsel %vm3897_vm9, %v19645_v36, %v19646_v47  ;;  %v3905_v29 = vsel %vm3897_vm9, %v19646_v47, %v19650_v50  ;;  %v19654_v15 = vpop.permute.xlu0 %19653 }
 0x1b3   : > { %27533 = vst [vmem:[#allocation24_spill] sm:$0xff] %v22173_v35  ;;  %v19655_v37 = vunpack.i.l.bf16 %v19654_v15  ;;  %v19660_v63 = vunpack.i.l.bf16 %v19659_v27  ;;  %v19656_v47 = vunpack.i.h.bf16 %v19654_v15  ;;  %v19664_v15 = vpop.permute.xlu2 %19663 }
 0x1b4   : > { %v22177_v57 = vpop.f32.mrf.mxu0 }
 0x1b5   : > { %18630 = vmatmul.msk.f32.vlgmr.msrb.gmra.mxu1 %vm349_vm1, %v22074_v22 }
 0x1b6   : > { %18631 = vmatmul.msk.f32.vlgmr.msrb.gmra.mxu2 %vm349_vm1, %v22074_v22  ;;  %18632 = vmatmul.msk.f32.vlgmr.msrb.gmra.mxu3 %vm349_vm1, %v22074_v22 }
 0x1b7   : > { %18634 = vmatmul.msk.f32.vlgmr.msra.gmra.mxu0 %vm349_vm1, %v22182_v43  ;;  %4047 = vmatpush.msrb.mxu1 %v3903_v10  ;;  %v19661_v10 = vunpack.i.h.bf16 %v19659_v27  ;;  %v21001_v27 = vld [vmem:[%s21211_s13 + $0x38] sm:$0xff] }
 0x1b8   : > { %4067 = vmatpush.msrb.mxu2 %v3904_v11  ;;  %4087 = vmatpush.msrb.mxu3 %v3905_v29  ;;  %v3907_v29 = vsel %vm3897_vm9, %v19651_v52, %v19655_v37 }
 0x1b9   : > { %v2172_v36 = vpop.f32.mrf.mxu2  ;;  %v2192_v58 = vpop.f32.mrf.mxu3  ;;  %4107 = vmatpush.msra.mxu0 %v3906_v42  ;;  %v3910_v60 = vsel %vm3897_vm9, %v19660_v63, %v19661_v10  ;;  %v21000_v42 = vld [vmem:[%s21211_s13 + $0x30] sm:$0xff] }
 0x1ba   : > { %v22199_v22 = vadd.f32 %v2172_v36, %v22091_v38  ;;  %v22202_v50 = vadd.f32 %v2192_v58, %v22094_v21  ;;  %v22204_v35 = vpop.f32.mrf.mxu1  ;;  %v3908_v38 = vsel %vm3897_vm9, %v19655_v37, %v19656_v47  ;;  %v3909_v21 = vsel %vm3897_vm9, %v19656_v47, %v19660_v63  ;;  %v19669_v52 = vpop.permute.xlu0 %19668 }
 0x1bb   : > { %27534 = vst [vmem:[#allocation25_spill] sm:$0xff] %v22204_v35  ;;  %v22224_v36 = vpack.i.bf16 %v21001_v27, %v21000_v42  ;;  %v19666_v47 = vunpack.i.h.bf16 %v19664_v15  ;;  %v19671_v42 = vunpack.i.h.bf16 %v19669_v52  ;;  %v19670_v27 = vunpack.i.l.bf16 %v19669_v52 }
 0x1bc   : > { %v22208_v11 = vpop.f32.mrf.mxu0 }
 0x1bd   : > { %27535 = vst [vmem:[#allocation26_spill] sm:$0xff] %v22208_v11  ;;  %18635 = vmatmul.msk.f32.vlgmr.msra.gmra.mxu1 %vm349_vm1, %v22182_v43  ;;  %v19665_v11 = vunpack.i.l.bf16 %v19664_v15  ;;  %19798 = vrot.lane.b32.xlu2 %v22224_v36, %s27478_s12  ;;  %v19674_v15 = vpop.permute.xlu1 %19673 }
 0x1be   : > { %18636 = vmatmul.msk.f32.vlgmr.msra.gmra.mxu2 %vm349_vm1, %v22182_v43  ;;  %18637 = vmatmul.msk.f32.vlgmr.msra.gmra.mxu3 %vm349_vm1, %v22182_v43  ;;  %v19675_v52 = vunpack.i.l.bf16 %v19674_v15 }
 0x1bf   : > { %18638 = vmatmul.msk.f32.vlgmr.msrb.gmra.mxu0 %vm349_vm1, %v22182_v43  ;;  %4127 = vmatpush.msra.mxu1 %v3907_v29 }
 0x1c0   : > { %4147 = vmatpush.msra.mxu2 %v3908_v38  ;;  %4167 = vmatpush.msra.mxu3 %v3909_v21  ;;  %v3912_v21 = vsel %vm3897_vm9, %v19665_v11, %v19666_v47 }
 0x1c1   : > { %v2337_v37 = vpop.f32.mrf.mxu2  ;;  %v2357_v58 = vpop.f32.mrf.mxu3  ;;  %4187 = vmatpush.msrb.mxu0 %v3910_v60  ;;  %19838 = vrot.lane.b32.xlu1 %v22224_v36, %s27480_s10 }
 0x1c2   : > { %v22229_v63 = vadd.f32 %v2337_v37, %v22117_v8  ;;  %v22232_v29 = vadd.f32 %v2357_v58, %v22120_v19  ;;  %v22234_v35 = vpop.f32.mrf.mxu1  ;;  %v3911_v8 = vsel %vm3897_vm9, %v19661_v10, %v19665_v11  ;;  %v4303_v19 = vsel %vm4302_vm10, %v19670_v27, %v19671_v42  ;;  %v19679_v60 = vpop.permute.xlu2 %19678  ;;  %19878 = vrot.lane.b32.xlu0 %v22224_v36, %s27482_s28 }
 0x1c3   : > { %27536 = vst [vmem:[#allocation27_spill] sm:$0xff] %v22234_v35  ;;  %v19676_v11 = vunpack.i.h.bf16 %v19674_v15  ;;  %v19680_v58 = vunpack.i.l.bf16 %v19679_v60 }
 0x1c4   : > { %v22238_v38 = vpop.f32.mrf.mxu0 }
 0x1c5   : > { %27537 = vst [vmem:[#allocation28_spill] sm:$0xff] %v22238_v38  ;;  %18639 = vmatmul.msk.f32.vlgmr.msrb.gmra.mxu1 %vm349_vm1, %v22182_v43 }
 0x1c6   : > { %18640 = vmatmul.msk.f32.vlgmr.msrb.gmra.mxu2 %vm349_vm1, %v22182_v43  ;;  %18641 = vmatmul.msk.f32.vlgmr.msrb.gmra.mxu3 %vm349_vm1, %v22182_v43 }
 0x1c7   : > { %18642 = vmatmul.msk.f32.vlgmr.msra.gmra.mxu0 %vm349_vm1, %v22182_v43  ;;  %4247 = vmatpush.msrb.mxu3 %v19666_v47 }
 0x1c8   : > { %4207 = vmatpush.msrb.mxu1 %v3911_v8  ;;  %4227 = vmatpush.msrb.mxu2 %v3912_v21  ;;  %v19681_v8 = vunpack.i.h.bf16 %v19679_v60  ;;  %v4304_v21 = vsel %vm4302_vm10, %v19671_v42, %v19675_v52  ;;  %v21002_v60 = vld [vmem:[%s21211_s13 + $0x60] sm:$0xff] }
 0x1c9   : > { %v2417_v37 = vpop.f32.mrf.mxu2  ;;  %v2437_v10 = vpop.f32.mrf.mxu3  ;;  %4352 = vmatpush.msra.mxu0 %v4303_v19 }
 0x1ca   : > { %v22254_v27 = vadd.f32 %v2417_v37, %v22142_v55  ;;  %v22257_v38 = vadd.f32 %v2437_v10, %v22145_v31  ;;  %v22259_v47 = vpop.f32.mrf.mxu1  ;;  %v19684_v19 = vpop.permute.xlu0 %19683  ;;  %v4305_v55 = vsel %vm4302_vm10, %v19675_v52, %v19676_v11  ;;  %v4306_v37 = vsel %vm4302_vm10, %v19676_v11, %v19680_v58  ;;  %v21003_v10 = vld [vmem:[%s21211_s13 + $0x68] sm:$0xff] }
 0x1cb   : > { %27538 = vst [vmem:[#allocation29_spill] sm:$0xff] %v22259_v47  ;;  %v4307_v16 = vsel %vm4302_vm10, %v19680_v58, %v19681_v8  ;;  %v19689_v31 = vpop.permute.xlu1 %19688  ;;  %v22277_v42 = vpack.i.bf16 %v21003_v10, %v21002_v60  ;;  %v19685_v52 = vunpack.i.l.bf16 %v19684_v19  ;;  %v19686_v35 = vunpack.i.h.bf16 %v19684_v19  ;;  %v22298_v19 = vld [vmem:[%s27468_s1 + $0x50] sm:$0xff] }
 0x1cc   : > { %v22263_v15 = vpop.f32.mrf.mxu0  ;;  %v19690_v47 = vunpack.i.l.bf16 %v19689_v31 }
 0x1cd   : > { %27539 = vst [vmem:[#allocation30_spill] sm:$0xff] %v22263_v15  ;;  %18643 = vmatmul.msk.f32.vlgmr.msra.gmra.mxu1 %vm349_vm1, %v22182_v43  ;;  %19813 = vrot.lane.b32.xlu2 %v22277_v42, %s27478_s12  ;;  %s27484_s12 = smov 23  }
 0x1ce   : > { %18644 = vmatmul.msk.f32.vlgmr.msra.gmra.mxu2 %vm349_vm1, %v22182_v43  ;;  %18645 = vmatmul.msk.f32.vlgmr.msra.gmra.mxu3 %vm349_vm1, %v22182_v43 }
 0x1cf   : > { %18646 = vmatmul.msk.f32.vlgmr.msrb.gmra.mxu0 %vm349_vm1, %v22182_v43  ;;  %4372 = vmatpush.msra.mxu1 %v4304_v21  ;;  %v19691_v21 = vunpack.i.h.bf16 %v19689_v31  ;;  %v21005_v31 = vld [vmem:[%s21211_s13 + $0x18] sm:$0xff] }
 0x1d0   : > { %4392 = vmatpush.msra.mxu2 %v4305_v55  ;;  %4412 = vmatpush.msra.mxu3 %v4306_v37  ;;  %v19694_v37 = vpop.permute.xlu2 %19693 }
 0x1d1   : > { %v2497_v11 = vpop.f32.mrf.mxu2  ;;  %v2517_v15 = vpop.f32.mrf.mxu3  ;;  %4432 = vmatpush.msrb.mxu0 %v4307_v16  ;;  %v4311_v54 = vsel %vm4302_vm10, %v19690_v47, %v19691_v21  ;;  %v19696_v17 = vunpack.i.h.bf16 %v19694_v37  ;;  %19853 = vrot.lane.b32.xlu1 %v22277_v42, %s27480_s10 }
 0x1d2   : > { %v22284_v58 = vadd.f32 %v2497_v11, %v22168_v25  ;;  %v22287_v60 = vadd.f32 %v2517_v15, %v22171_v26  ;;  %v22289_v10 = vpop.f32.mrf.mxu1  ;;  %v4308_v25 = vsel %vm4302_vm10, %v19681_v8, %v19685_v52  ;;  %v4309_v26 = vsel %vm4302_vm10, %v19685_v52, %v19686_v35  ;;  %v19699_v16 = vpop.permute.xlu0 %19698  ;;  %v21004_v8 = vld [vmem:[%s21211_s13 + $0x10] sm:$0xff]  ;;  %19893 = vrot.lane.b32.xlu0 %v22277_v42, %s27482_s28 }
 0x1d3   : > { %27540 = vst [vmem:[#allocation31_spill] sm:$0xff] %v22289_v10  ;;  %v4310_v15 = vsel %vm4302_vm10, %v19686_v35, %v19690_v47  ;;  %v19827_v11 = vpack.i.bf16 %v21005_v31, %v21004_v8  ;;  %v19695_v35 = vunpack.i.l.bf16 %v19694_v37  ;;  %v19700_v59 = vunpack.i.l.bf16 %v19699_v16  ;;  %v19704_v37 = vpop.permute.xlu1 %19703 }
 0x1d4   : > { %v22293_v55 = vpop.f32.mrf.mxu0  ;;  %v19701_v8 = vunpack.i.h.bf16 %v19699_v16  ;;  %v19706_v31 = vunpack.i.h.bf16 %v19704_v37 }
 0x1d5   : > { %27541 = vst [vmem:[#allocation32_spill] sm:$0xff] %v22293_v55  ;;  %18647 = vmatmul.msk.f32.vlgmr.msrb.gmra.mxu1 %vm349_vm1, %v22182_v43  ;;  %19828 = vrot.lane.b32.xlu2 %v19827_v11, %s27480_s10 }
 0x1d6   : > { %18648 = vmatmul.msk.f32.vlgmr.msrb.gmra.mxu2 %vm349_vm1, %v22182_v43  ;;  %18649 = vmatmul.msk.f32.vlgmr.msrb.gmra.mxu3 %vm349_vm1, %v22182_v43 }
 0x1d7   : > { %18651 = vmatmul.msk.f32.vlgmr.msra.gmra.mxu0 %vm349_vm1, %v22298_v19  ;;  %4452 = vmatpush.msrb.mxu1 %v4308_v25 }
 0x1d8   : > { %4472 = vmatpush.msrb.mxu2 %v4309_v26  ;;  %4492 = vmatpush.msrb.mxu3 %v4310_v15  ;;  %v4312_v15 = vsel %vm4302_vm10, %v19691_v21, %v19695_v35 }
 0x1d9   : > { %v2577_v52 = vpop.f32.mrf.mxu2  ;;  %v2597_v10 = vpop.f32.mrf.mxu3  ;;  %4512 = vmatpush.msra.mxu0 %v4311_v54  ;;  %v4313_v54 = vsel %vm4302_vm10, %v19695_v35, %v19696_v17  ;;  %19868 = vrot.lane.b32.xlu1 %v19827_v11, %s27482_s28 }
 0x1da   : > { %v22317_v43 = vadd.f32 %v2577_v52, %v22199_v22  ;;  %v22320_v47 = vadd.f32 %v2597_v10, %v22202_v50  ;;  %v22322_v25 = vpop.f32.mrf.mxu1  ;;  %v4314_v22 = vsel %vm4302_vm10, %v19696_v17, %v19700_v59  ;;  %v4315_v50 = vsel %vm4302_vm10, %v19700_v59, %v19701_v8  ;;  %v19709_v10 = vpop.permute.xlu2 %19708 }
 0x1db   : > { %27542 = vst [vmem:[#allocation33_spill] sm:$0xff] %v22322_v25  ;;  %v19705_v17 = vunpack.i.l.bf16 %v19704_v37  ;;  %v19719_v46 = vpop.permute.xlu1 %19718 }
 0x1dc   : > { %v22325_v26 = vpop.f32.mrf.mxu0 }
 0x1dd   : > { %27543 = vst [vmem:[#allocation34_spill] sm:$0xff] %v22325_v26  ;;  %18652 = vmatmul.msk.f32.vlgmr.msra.gmra.mxu1 %vm349_vm1, %v22298_v19 }
 0x1de   : > { %18653 = vmatmul.msk.f32.vlgmr.msra.gmra.mxu2 %vm349_vm1, %v22298_v19  ;;  %18654 = vmatmul.msk.f32.vlgmr.msra.gmra.mxu3 %vm349_vm1, %v22298_v19 }
 0x1df   : > { %18655 = vmatmul.msk.f32.vlgmr.msrb.gmra.mxu0 %vm349_vm1, %v22298_v19  ;;  %4532 = vmatpush.msra.mxu1 %v4312_v15  ;;  %v19711_v15 = vunpack.i.h.bf16 %v19709_v10 }
 0x1e0   : > { %4552 = vmatpush.msra.mxu2 %v4313_v54  ;;  %4572 = vmatpush.msra.mxu3 %v4314_v22  ;;  %v19710_v54 = vunpack.i.l.bf16 %v19709_v10  ;;  %v19714_v22 = vpop.permute.xlu0 %19713  ;;  %v21007_v10 = vld [vmem:[%s21211_s13 + $0x48] sm:$0xff] }
 0x1e1   : > { %v2742_v21 = vpop.f32.mrf.mxu2  ;;  %v2762_v16 = vpop.f32.mrf.mxu3  ;;  %4592 = vmatpush.msrb.mxu0 %v4315_v50  ;;  %v21006_v50 = vld [vmem:[%s21211_s13 + $0x40] sm:$0xff] }
 0x1e2   : > { %v22341_v35 = vadd.f32 %v2742_v21, %v22229_v63  ;;  %v22344_v59 = vadd.f32 %v2762_v16, %v22232_v29  ;;  %v22346_v52 = vpop.f32.mrf.mxu1  ;;  %v4316_v63 = vsel %vm4302_vm10, %v19701_v8, %v19705_v17  ;;  %v4317_v29 = vsel %vm4302_vm10, %v19705_v17, %v19706_v31 }
 0x1e3   : > { %27544 = vst [vmem:[#allocation35_spill] sm:$0xff] %v22346_v52  ;;  %v4708_v11 = vsel %vm4707_vm11, %v19710_v54, %v19711_v15  ;;  %v19842_v21 = vpack.i.bf16 %v21007_v10, %v21006_v50  ;;  %v19715_v8 = vunpack.i.l.bf16 %v19714_v22  ;;  %v19716_v52 = vunpack.i.h.bf16 %v19714_v22 }
 0x1e4   : > { %v22350_v37 = vpop.f32.mrf.mxu0 }
 0x1e5   : > { %27545 = vst [vmem:[#allocation36_spill] sm:$0xff] %v22350_v37  ;;  %18656 = vmatmul.msk.f32.vlgmr.msrb.gmra.mxu1 %vm349_vm1, %v22298_v19  ;;  %v19720_v37 = vunpack.i.l.bf16 %v19719_v46  ;;  %19843 = vrot.lane.b32.xlu2 %v19842_v21, %s27480_s10  ;;  %v4709_v22 = vsel %vm4707_vm11, %v19711_v15, %v19715_v8  ;;  %v21008_v15 = vld [vmem:[%s21211_s13 + $0x70] sm:$0xff] }
 0x1e6   : > { %18657 = vmatmul.msk.f32.vlgmr.msrb.gmra.mxu2 %vm349_vm1, %v22298_v19  ;;  %18658 = vmatmul.msk.f32.vlgmr.msrb.gmra.mxu3 %vm349_vm1, %v22298_v19 }
 0x1e7   : > { %18659 = vmatmul.msk.f32.vlgmr.msra.gmra.mxu0 %vm349_vm1, %v22298_v19  ;;  %4652 = vmatpush.msrb.mxu3 %v19706_v31  ;;  %v19721_v31 = vunpack.i.h.bf16 %v19719_v46  ;;  %v21009_v46 = vld [vmem:[%s21211_s13 + $0x78] sm:$0xff] }
 0x1e8   : > { %4612 = vmatpush.msrb.mxu1 %v4316_v63  ;;  %4632 = vmatpush.msrb.mxu2 %v4317_v29  ;;  %v19724_v29 = vpop.permute.xlu2 %19723  ;;  %v19857_v10 = vpack.i.bf16 %v21009_v46, %v21008_v15 }
 0x1e9   : > { %v2822_v16 = vpop.f32.mrf.mxu2  ;;  %v2842_v17 = vpop.f32.mrf.mxu3  ;;  %4757 = vmatpush.msra.mxu0 %v4708_v11  ;;  %v4712_v36 = vsel %vm4707_vm11, %v19720_v37, %v19721_v31  ;;  %19883 = vrot.lane.b32.xlu1 %v19842_v21, %s27482_s28 }
 0x1ea   : > { %v22367_v54 = vadd.f32 %v2822_v16, %v22254_v27  ;;  %v22370_v26 = vadd.f32 %v2842_v17, %v22257_v38  ;;  %v22372_v50 = vpop.f32.mrf.mxu1  ;;  %v4710_v27 = vsel %vm4707_vm11, %v19715_v8, %v19716_v52  ;;  %v4711_v38 = vsel %vm4707_vm11, %v19716_v52, %v19720_v37  ;;  %v19729_v11 = vpop.permute.xlu0 %19728 }
 0x1eb   : > { %27546 = vst [vmem:[#allocation37_spill] sm:$0xff] %v22372_v50  ;;  %v19725_v8 = vunpack.i.l.bf16 %v19724_v29  ;;  %v19726_v17 = vunpack.i.h.bf16 %v19724_v29  ;;  %v19731_v25 = vunpack.i.h.bf16 %v19729_v11  ;;  %v22407_v29 = vld [vmem:[%s27468_s1 + $0x58] sm:$0xff] }
 0x1ec   : > { %v22376_v63 = vpop.f32.mrf.mxu0 }
 0x1ed   : > { %27547 = vst [vmem:[#allocation38_spill] sm:$0xff] %v22376_v63  ;;  %18660 = vmatmul.msk.f32.vlgmr.msra.gmra.mxu1 %vm349_vm1, %v22298_v19  ;;  %v19730_v63 = vunpack.i.l.bf16 %v19729_v11  ;;  %19858 = vrot.lane.b32.xlu2 %v19857_v10, %s27480_s10  ;;  %v4713_v21 = vsel %vm4707_vm11, %v19721_v31, %v19725_v8  ;;  %s27486_s10 = smov 22  }
 0x1ee   : > { %18661 = vmatmul.msk.f32.vlgmr.msra.gmra.mxu2 %vm349_vm1, %v22298_v19  ;;  %18662 = vmatmul.msk.f32.vlgmr.msra.gmra.mxu3 %vm349_vm1, %v22298_v19 }
 0x1ef   : > { %18663 = vmatmul.msk.f32.vlgmr.msrb.gmra.mxu0 %vm349_vm1, %v22298_v19  ;;  %4777 = vmatpush.msra.mxu1 %v4709_v22 }
 0x1f0   : > { %4797 = vmatpush.msra.mxu2 %v4710_v27  ;;  %4817 = vmatpush.msra.mxu3 %v4711_v38  ;;  %v19734_v38 = vpop.permute.xlu1 %19733  ;;  %v19739_v11 = vpop.permute.xlu2 %19738 }
 0x1f1   : > { %v2902_v52 = vpop.f32.mrf.mxu2  ;;  %v2922_v16 = vpop.f32.mrf.mxu3  ;;  %4837 = vmatpush.msrb.mxu0 %v4712_v36  ;;  %v4716_v36 = vsel %vm4707_vm11, %v19730_v63, %v19731_v25  ;;  %v19735_v31 = vunpack.i.l.bf16 %v19734_v38  ;;  %19898 = vrot.lane.b32.xlu1 %v19857_v10, %s27482_s28  ;;  %v6700_v10 = vld [vmem:[%s21211_s13 + $0x10] sm:$0xff] }
 0x1f2   : > { %v22394_v37 = vadd.f32 %v2902_v52, %v22284_v58  ;;  %v22397_v50 = vadd.f32 %v2922_v16, %v22287_v60  ;;  %v22399_v22 = vpop.f32.mrf.mxu1  ;;  %v4714_v58 = vsel %vm4707_vm11, %v19725_v8, %v19726_v17  ;;  %v4715_v60 = vsel %vm4707_vm11, %v19726_v17, %v19730_v63 }
 0x1f3   : > { %27548 = vst [vmem:[#allocation39_spill] sm:$0xff] %v22399_v22  ;;  %v19736_v8 = vunpack.i.h.bf16 %v19734_v38  ;;  %v19740_v52 = vunpack.i.l.bf16 %v19739_v11  ;;  %v19741_v17 = vunpack.i.h.bf16 %v19739_v11  ;;  %v6701_v38 = vld [vmem:[%s21211_s13 + $0x18] sm:$0xff] }
 0x1f4   : > { %v22402_v27 = vpop.f32.mrf.mxu0 }
 0x1f5   : > { %27549 = vst [vmem:[#allocation40_spill] sm:$0xff] %v22402_v27  ;;  %18664 = vmatmul.msk.f32.vlgmr.msrb.gmra.mxu1 %vm349_vm1, %v22298_v19  ;;  %v4720_v42 = vsel %vm4707_vm11, %v19740_v52, %v19741_v17 }
 0x1f6   : > { %18665 = vmatmul.msk.f32.vlgmr.msrb.gmra.mxu2 %vm349_vm1, %v22298_v19  ;;  %18666 = vmatmul.msk.f32.vlgmr.msrb.gmra.mxu3 %vm349_vm1, %v22298_v19 }
 0x1f7   : > { %18668 = vmatmul.msk.f32.vlgmr.msra.gmra.mxu0 %vm349_vm1, %v22407_v29  ;;  %4857 = vmatpush.msrb.mxu1 %v4713_v21 }
 0x1f8   : > { %4877 = vmatpush.msrb.mxu2 %v4714_v58  ;;  %4897 = vmatpush.msrb.mxu3 %v4715_v60  ;;  %v4717_v58 = vsel %vm4707_vm11, %v19731_v25, %v19735_v31  ;;  %v19744_v60 = vpop.permute.xlu0 %19743  ;;  %v21011_v25 = vld [vmem:[%s21211_s13 + $0x28] sm:$0xff] }
 0x1f9   : > { %v2982_v15 = vpop.f32.mrf.mxu2  ;;  %v3002_v46 = vpop.f32.mrf.mxu3  ;;  %4917 = vmatpush.msra.mxu0 %v4716_v36  ;;  %v21010_v36 = vld [vmem:[%s21211_s13 + $0x20] sm:$0xff]  ;;  %v19745_v22 = vunpack.i.l.bf16 %v19744_v60 }
 0x1fa   : > { %v22423_v19 = vadd.f32 %v2982_v15, %v22317_v43  ;;  %v22426_v63 = vadd.f32 %v3002_v46, %v22320_v47  ;;  %v22428_v16 = vpop.f32.mrf.mxu1  ;;  %v4718_v43 = vsel %vm4707_vm11, %v19735_v31, %v19736_v8  ;;  %v4719_v47 = vsel %vm4707_vm11, %v19736_v8, %v19740_v52  ;;  %v19749_v31 = vpop.permute.xlu1 %19748 }
 0x1fb   : > { %27550 = vst [vmem:[#allocation41_spill] sm:$0xff] %v22428_v16  ;;  %v19872_v11 = vpack.i.bf16 %v21011_v25, %v21010_v36  ;;  %v22450_v15 = vpack.i.bf16 %v6701_v38, %v6700_v10  ;;  %v19751_v10 = vunpack.i.h.bf16 %v19749_v31  ;;  %v6702_v38 = vld [vmem:[%s21211_s13 + $0x20] sm:$0xff] }
 0x1fc   : > { %v22432_v21 = vpop.f32.mrf.mxu0 }
 0x1fd   : > { %27551 = vst [vmem:[#allocation42_spill] sm:$0xff] %v22432_v21  ;;  %18669 = vmatmul.msk.f32.vlgmr.msra.gmra.mxu1 %vm349_vm1, %v22407_v29  ;;  %v19746_v21 = vunpack.i.h.bf16 %v19744_v60  ;;  %19873 = vrot.lane.b32.xlu2 %v19872_v11, %s27482_s28 }
 0x1fe   : > { %18670 = vmatmul.msk.f32.vlgmr.msra.gmra.mxu2 %vm349_vm1, %v22407_v29  ;;  %18671 = vmatmul.msk.f32.vlgmr.msra.gmra.mxu3 %vm349_vm1, %v22407_v29 }
 0x1ff   : > { %18672 = vmatmul.msk.f32.vlgmr.msrb.gmra.mxu0 %vm349_vm1, %v22407_v29  ;;  %4937 = vmatpush.msra.mxu1 %v4717_v58 }
 0x200   : > { %4957 = vmatpush.msra.mxu2 %v4718_v43  ;;  %4977 = vmatpush.msra.mxu3 %v4719_v47  ;;  %v19750_v43 = vunpack.i.l.bf16 %v19749_v31  ;;  %v19754_v47 = vpop.permute.xlu2 %19753  ;;  %v19759_v11 = vpop.permute.xlu0 %19758 }
 0x201   : > { %v3147_v46 = vpop.f32.mrf.mxu2  ;;  %v3167_v8 = vpop.f32.mrf.mxu3  ;;  %4997 = vmatpush.msrb.mxu0 %v4720_v42  ;;  %19908 = vrot.lane.b32.xlu0 %v22450_v15, %s27484_s12  ;;  %v22471_v42 = vld [vmem:[%s21211_s13 + $0x28] sm:$0xff]  ;;  %v19760_v16 = vunpack.i.l.bf16 %v19759_v11 }
 0x202   : > { %v22454_v52 = vadd.f32 %v3147_v46, %v22341_v35  ;;  %v22457_v36 = vadd.f32 %v3167_v8, %v22344_v59  ;;  %v22459_v58 = vpop.f32.mrf.mxu1  ;;  %v4721_v35 = vsel %vm4707_vm11, %v19741_v17, %v19745_v22  ;;  %v4722_v59 = vsel %vm4707_vm11, %v19745_v22, %v19746_v21  ;;  %v21012_v22 = vld [vmem:[%s21211_s13 + $0x50] sm:$0xff]  ;;  %v21013_v17 = vld [vmem:[%s21211_s13 + $0x58] sm:$0xff] }
 0x203   : > { %27552 = vst [vmem:[#allocation43_spill] sm:$0xff] %v22459_v58  ;;  %v5113_v25 = vsel %vm5112_vm12, %v19750_v43, %v19751_v10  ;;  %v22479_v31 = vpack.i.bf16 %v22471_v42, %v6702_v38  ;;  %v19887_v46 = vpack.i.bf16 %v21013_v17, %v21012_v22  ;;  %v19755_v8 = vunpack.i.l.bf16 %v19754_v47  ;;  %v19764_v22 = vpop.permute.xlu1 %19763 }
 0x204   : > { %v22463_v60 = vpop.f32.mrf.mxu0  ;;  %v19756_v43 = vunpack.i.h.bf16 %v19754_v47  ;;  %v19766_v40 = vunpack.i.h.bf16 %v19764_v22 }
 0x205   : > { %27553 = vst [vmem:[#allocation44_spill] sm:$0xff] %v22463_v60  ;;  %18673 = vmatmul.msk.f32.vlgmr.msrb.gmra.mxu1 %vm349_vm1, %v22407_v29  ;;  %19913 = vrot.lane.b32.xlu1 %v22479_v31, %s27484_s12  ;;  %v5114_v47 = vsel %vm5112_vm12, %v19751_v10, %v19755_v8 }
 0x206   : > { %18674 = vmatmul.msk.f32.vlgmr.msrb.gmra.mxu2 %vm349_vm1, %v22407_v29  ;;  %18675 = vmatmul.msk.f32.vlgmr.msrb.gmra.mxu3 %vm349_vm1, %v22407_v29 }
 0x207   : > { %18676 = vmatmul.msk.f32.vlgmr.msra.gmra.mxu0 %vm349_vm1, %v22407_v29  ;;  %5057 = vmatpush.msrb.mxu3 %v19746_v21 }
 0x208   : > { %5017 = vmatpush.msrb.mxu1 %v4721_v35  ;;  %5037 = vmatpush.msrb.mxu2 %v4722_v59  ;;  %v19761_v59 = vunpack.i.h.bf16 %v19759_v11  ;;  %v22510_v11 = vld [vmem:[%s21211_s13 + $0x40] sm:$0xff]  ;;  %v19769_v17 = vpop.permute.xlu2 %19768 }
 0x209   : > { %v3227_v60 = vpop.f32.mrf.mxu2  ;;  %v3247_v58 = vpop.f32.mrf.mxu3  ;;  %5162 = vmatpush.msra.mxu0 %v5113_v25  ;;  %19888 = vrot.lane.b32.xlu2 %v19887_v46, %s27482_s28  ;;  %v19770_v27 = vunpack.i.l.bf16 %v19769_v17 }
 0x20a   : > { %v22488_v38 = vadd.f32 %v3227_v60, %v22367_v54  ;;  %v22491_v21 = vadd.f32 %v3247_v58, %v22370_v26  ;;  %v22493_v35 = vpop.f32.mrf.mxu1  ;;  %v5115_v54 = vsel %vm5112_vm12, %v19755_v8, %v19756_v43  ;;  %v5116_v60 = vsel %vm5112_vm12, %v19756_v43, %v19760_v16  ;;  %v22504_v26 = vld [vmem:[%s21211_s13 + $0x50] sm:$0xff]  ;;  %v22507_v58 = vld [vmem:[%s21211_s13 + $0x58] sm:$0xff]  ;;  %v22522_v8 = vld [vmem:[%s21211_s13 + $0x48] sm:$0xff] }
 0x20b   : > { %27554 = vst [vmem:[#allocation45_spill] sm:$0xff] %v22493_v35  ;;  %v5117_v10 = vsel %vm5112_vm12, %v19760_v16, %v19761_v59  ;;  %v22519_v46 = vpack.i.bf16 %v22507_v58, %v22504_v26  ;;  %v19765_v43 = vunpack.i.l.bf16 %v19764_v22 }
 0x20c   : > { %v22496_v25 = vpop.f32.mrf.mxu0 }
 0x20d   : > { %27555 = vst [vmem:[#allocation46_spill] sm:$0xff] %v22496_v25  ;;  %18677 = vmatmul.msk.f32.vlgmr.msra.gmra.mxu1 %vm349_vm1, %v22407_v29  ;;  %v22528_v25 = vpack.i.bf16 %v22522_v8, %v22510_v11  ;;  %19928 = vrot.lane.b32.xlu1 %v22519_v46, %s27484_s12 }
 0x20e   : > { %18678 = vmatmul.msk.f32.vlgmr.msra.gmra.mxu2 %vm349_vm1, %v22407_v29  ;;  %18679 = vmatmul.msk.f32.vlgmr.msra.gmra.mxu3 %vm349_vm1, %v22407_v29 }
 0x20f   : > { %18680 = vmatmul.msk.f32.vlgmr.msrb.gmra.mxu0 %vm349_vm1, %v22407_v29  ;;  %5182 = vmatpush.msra.mxu1 %v5114_v47 }
 0x210   : > { %5202 = vmatpush.msra.mxu2 %v5115_v54  ;;  %5222 = vmatpush.msra.mxu3 %v5116_v60  ;;  %v19771_v60 = vunpack.i.h.bf16 %v19769_v17  ;;  %v19774_v17 = vpop.permute.xlu0 %19773 }
 0x211   : > { %v3307_v35 = vpop.f32.mrf.mxu2  ;;  %v3327_v16 = vpop.f32.mrf.mxu3  ;;  %5242 = vmatpush.msrb.mxu0 %v5117_v10  ;;  %19923 = vrot.lane.b32.xlu0 %v22528_v25, %s27484_s12  ;;  %v22547_v10 = vld [vmem:[%s27468_s1 + $0x60] sm:$0xff] }
 0x212   : > { %v22533_v1 = vadd.f32 %v3307_v35, %v22394_v37  ;;  %v22536_v47 = vadd.f32 %v3327_v16, %v22397_v50  ;;  %v22538_v54 = vpop.f32.mrf.mxu1  ;;  %v5118_v37 = vsel %vm5112_vm12, %v19761_v59, %v19765_v43  ;;  %v5119_v50 = vsel %vm5112_vm12, %v19765_v43, %v19766_v40  ;;  %v22555_v16 = vld [vmem:[%s21211_s13 + $0x70] sm:$0xff]  ;;  %19903 = vrot.lane.b32.xlu2 %v19902_v7, %s27482_s28  ;;  %v22592_v7 = vld [vmem:[%s21211_s13 + $0x80] sm:$0xff]  ;;  %s27491_s28 = smov 120  }
 0x213   : > { %27556 = vst [vmem:[#allocation47_spill] sm:$0xff] %v22538_v54  ;;  %v5120_v35 = vsel %vm5112_vm12, %v19766_v40, %v19770_v27  ;;  %v22558_v54 = vld [vmem:[%s21211_s13 + $0x78] sm:$0xff]  ;;  %v5121_v59 = vsel %vm5112_vm12, %v19770_v27, %v19771_v60  ;;  %v19775_v43 = vunpack.i.l.bf16 %v19774_v17 }
 0x214   : > { %v22542_v22 = vpop.f32.mrf.mxu0  ;;  %v22571_v40 = vpack.i.bf16 %v22558_v54, %v22555_v16 }
 0x215   : > { %27557 = vst [vmem:[#allocation48_spill] sm:$0xff] %v22542_v22  ;;  %18681 = vmatmul.msk.f32.vlgmr.msrb.gmra.mxu1 %vm349_vm1, %v22407_v29  ;;  %v19779_v22 = vpop.permute.xlu1 %19778 }
 0x216   : > { %18682 = vmatmul.msk.f32.vlgmr.msrb.gmra.mxu2 %vm349_vm1, %v22407_v29  ;;  %18683 = vmatmul.msk.f32.vlgmr.msrb.gmra.mxu3 %vm349_vm1, %v22407_v29  ;;  %v19780_v27 = vunpack.i.l.bf16 %v19779_v22  ;;  %v19776_v29 = vunpack.i.h.bf16 %v19774_v17  ;;  %v19784_v17 = vpop.permute.xlu2 %19783 }
 0x217   : > { %18685 = vmatmul.msk.f32.vlgmr.msra.gmra.mxu0 %vm349_vm1, %v22547_v10  ;;  %5262 = vmatpush.msrb.mxu1 %v5118_v37  ;;  %v19785_v55 = vunpack.i.l.bf16 %v19784_v17 }
 0x218   : > { %5282 = vmatpush.msrb.mxu2 %v5119_v50  ;;  %5302 = vmatpush.msrb.mxu3 %v5120_v35  ;;  %v19781_v50 = vunpack.i.h.bf16 %v19779_v22 }
 0x219   : > { %v3387_v53 = vpop.f32.mrf.mxu2  ;;  %v3407_v45 = vpop.f32.mrf.mxu3  ;;  %5322 = vmatpush.msra.mxu0 %v5121_v59  ;;  %19938 = vrot.lane.b32.xlu0 %v22571_v40, %s27484_s12  ;;  %v5122_v59 = vsel %vm5112_vm12, %v19771_v60, %v19775_v43 }
 0x21a   : > { %v22575_v48 = vadd.f32 %v3387_v53, %v22423_v19  ;;  %v22578_v18 = vadd.f32 %v3407_v45, %v22426_v63  ;;  %v22580_v37 = vpop.f32.mrf.mxu1  ;;  %v5123_v53 = vsel %vm5112_vm12, %v19775_v43, %v19776_v29  ;;  %v5124_v45 = vsel %vm5112_vm12, %v19776_v29, %v19780_v27  ;;  %v22595_v19 = vld [vmem:[%s21211_s13 + $0x88] sm:$0xff]  ;;  %v22598_v63 = vld [vmem:[%s21211_s13 + $0x30] sm:$0xff]  ;;  %v22610_v43 = vld [vmem:[%s21211_s13 + $0x38] sm:$0xff]  ;;  %v19789_v29 = vpop.permute.xlu0 %19788 }
 0x21b   : > { %27558 = vst [vmem:[#allocation49_spill] sm:$0xff] %v22580_v37  ;;  %v5125_v60 = vsel %vm5112_vm12, %v19780_v27, %v19781_v50  ;;  %v22607_v22 = vpack.i.bf16 %v22595_v19, %v22592_v7  ;;  %v19786_v27 = vunpack.i.h.bf16 %v19784_v17  ;;  %v19791_v44 = vunpack.i.h.bf16 %v19789_v29 }
 0x21c   : > { %v22584_v35 = vpop.f32.mrf.mxu0  ;;  %v19790_v24 = vunpack.i.l.bf16 %v19789_v29 }
 0x21d   : > { %27559 = vst [vmem:[#allocation50_spill] sm:$0xff] %v22584_v35  ;;  %18686 = vmatmul.msk.f32.vlgmr.msra.gmra.mxu1 %vm349_vm1, %v22547_v10  ;;  %v22616_v35 = vpack.i.bf16 %v22610_v43, %v22598_v63  ;;  %19943 = vrot.lane.b32.xlu1 %v22607_v22, %s27484_s12 }
 0x21e   : > { %18687 = vmatmul.msk.f32.vlgmr.msra.gmra.mxu2 %vm349_vm1, %v22547_v10  ;;  %18688 = vmatmul.msk.f32.vlgmr.msra.gmra.mxu3 %vm349_vm1, %v22547_v10 }
 0x21f   : > { %18689 = vmatmul.msk.f32.vlgmr.msrb.gmra.mxu0 %vm349_vm1, %v22547_v10  ;;  %5342 = vmatpush.msra.mxu1 %v5122_v59 }
 0x220   : > { %5362 = vmatpush.msra.mxu2 %v5123_v53  ;;  %5382 = vmatpush.msra.mxu3 %v5124_v45  ;;  %v19794_v53 = vpop.permute.xlu1 %19793 }
 0x221   : > { %v3552_v37 = vpop.f32.mrf.mxu2  ;;  %v3572_v6 = vpop.f32.mrf.mxu3  ;;  %5402 = vmatpush.msrb.mxu0 %v5125_v60  ;;  %19918 = vrot.lane.b32.xlu2 %v22616_v35, %s27484_s12 }
 0x222   : > { %v22621_v28 = vadd.f32 %v3552_v37, %v22454_v52  ;;  %v22624_v59 = vadd.f32 %v3572_v6, %v22457_v36  ;;  %v22626_v56 = vpop.f32.mrf.mxu1  ;;  %19948 = vrot.lane.b32.xlu0 %v22450_v15, %s27486_s10  ;;  %v5126_v6 = vsel %vm5112_vm12, %v19781_v50, %v19785_v55  ;;  %v5127_v52 = vsel %vm5112_vm12, %v19785_v55, %v19786_v27  ;;  %v19799_v15 = vpop.permute.xlu2 %19798 }
 0x223   : > { %27560 = vst [vmem:[#allocation51_spill] sm:$0xff] %v22626_v56  ;;  %v5518_v36 = vsel %vm27493_vm13, %v19790_v24, %v19791_v44  ;;  %v19795_v37 = vunpack.i.l.bf16 %v19794_v53  ;;  %v19796_v55 = vunpack.i.h.bf16 %v19794_v53  ;;  %v19800_v60 = vunpack.i.l.bf16 %v19799_v15 }
 0x224   : > { %v22632_v17 = vpop.f32.mrf.mxu0 }
 0x225   : > { %27561 = vst [vmem:[#allocation52_spill] sm:$0xff] %v22632_v17  ;;  %18690 = vmatmul.msk.f32.vlgmr.msrb.gmra.mxu1 %vm349_vm1, %v22547_v10  ;;  %19953 = vrot.lane.b32.xlu1 %v22479_v31, %s27486_s10  ;;  %v5519_v53 = vsel %vm27493_vm13, %v19791_v44, %v19795_v37  ;;  %v5520_v31 = vsel %vm27493_vm13, %v19795_v37, %v19796_v55 }
 0x226   : > { %18691 = vmatmul.msk.f32.vlgmr.msrb.gmra.mxu2 %vm349_vm1, %v22547_v10  ;;  %18692 = vmatmul.msk.f32.vlgmr.msrb.gmra.mxu3 %vm349_vm1, %v22547_v10 }
 0x227   : > { %18693 = vmatmul.msk.f32.vlgmr.msra.gmra.mxu0 %vm349_vm1, %v22547_v10  ;;  %5462 = vmatpush.msrb.mxu3 %v19786_v27 }
 0x228   : > { %5422 = vmatpush.msrb.mxu1 %v5126_v6  ;;  %5442 = vmatpush.msrb.mxu2 %v5127_v52  ;;  %v19801_v6 = vunpack.i.h.bf16 %v19799_v15 }
 0x229   : > { %v3632_v45 = vpop.f32.mrf.mxu2  ;;  %v3652_v50 = vpop.f32.mrf.mxu3  ;;  %5567 = vmatpush.msra.mxu0 %v5518_v36 }
 0x22a   : > { %v22648_v24 = vadd.f32 %v3632_v45, %v22488_v38  ;;  %v22651_v29 = vadd.f32 %v3652_v50, %v22491_v21  ;;  %v22653_v27 = vpop.f32.mrf.mxu1  ;;  %19963 = vrot.lane.b32.xlu0 %v22528_v25, %s27486_s10  ;;  %v19804_v36 = vpop.permute.xlu0 %19803  ;;  %v5521_v38 = vsel %vm27493_vm13, %v19796_v55, %v19800_v60  ;;  %v22665_v21 = vld [vmem:[%s21211_s13 + $0x60] sm:$0xff]  ;;  %v22668_v45 = vld [vmem:[%s21211_s13 + $0x68] sm:$0xff]  ;;  %v5522_v44 = vsel %vm27493_vm13, %v19800_v60, %v19801_v6 }
 0x22b   : > { %27562 = vst [vmem:[#allocation53_spill] sm:$0xff] %v22653_v27  ;;  %v19809_v25 = vpop.permute.xlu1 %19808  ;;  %v22677_v15 = vpack.i.bf16 %v22668_v45, %v22665_v21  ;;  %v19805_v37 = vunpack.i.l.bf16 %v19804_v36  ;;  %v19806_v27 = vunpack.i.h.bf16 %v19804_v36 }
 0x22c   : > { %v22657_v52 = vpop.f32.mrf.mxu0 }
 0x22d   : > { %27563 = vst [vmem:[#allocation54_spill] sm:$0xff] %v22657_v52  ;;  %18694 = vmatmul.msk.f32.vlgmr.msra.gmra.mxu1 %vm349_vm1, %v22547_v10  ;;  %v19810_v52 = vunpack.i.l.bf16 %v19809_v25  ;;  %19968 = vrot.lane.b32.xlu1 %v22519_v46, %s27486_s10  ;;  %v5523_v46 = vsel %vm27493_vm13, %v19801_v6, %v19805_v37  ;;  %v22715_v6 = vld [vmem:[%s21211_s13 + $0x90] sm:$0xff] }
 0x22e   : > { %18695 = vmatmul.msk.f32.vlgmr.msra.gmra.mxu2 %vm349_vm1, %v22547_v10  ;;  %18696 = vmatmul.msk.f32.vlgmr.msra.gmra.mxu3 %vm349_vm1, %v22547_v10 }
 0x22f   : > { %18697 = vmatmul.msk.f32.vlgmr.msrb.gmra.mxu0 %vm349_vm1, %v22547_v10  ;;  %5587 = vmatpush.msra.mxu1 %v5519_v53  ;;  %v19811_v53 = vunpack.i.h.bf16 %v19809_v25 }
 0x230   : > { %5607 = vmatpush.msra.mxu2 %v5520_v31  ;;  %5627 = vmatpush.msra.mxu3 %v5521_v38  ;;  %v5525_v31 = vsel %vm27493_vm13, %v19806_v27, %v19810_v52  ;;  %v19814_v38 = vpop.permute.xlu2 %19813 }
 0x231   : > { %v3712_v50 = vpop.f32.mrf.mxu2  ;;  %v3732_v55 = vpop.f32.mrf.mxu3  ;;  %5647 = vmatpush.msrb.mxu0 %v5522_v44  ;;  %19933 = vrot.lane.b32.xlu2 %v22677_v15, %s27484_s12  ;;  %v19815_v25 = vunpack.i.l.bf16 %v19814_v38 }
 0x232   : > { %v22684_v60 = vadd.f32 %v3712_v50, %v22533_v1  ;;  %v22687_v17 = vadd.f32 %v3732_v55, %v22536_v47  ;;  %v22689_v56 = vpop.f32.mrf.mxu1  ;;  %19978 = vrot.lane.b32.xlu0 %v22571_v40, %s27486_s10  ;;  %v22700_v1 = vld [vmem:[%s27468_s1 + $0x68] sm:$0xff]  ;;  %v5524_v47 = vsel %vm27493_vm13, %v19805_v37, %v19806_v27  ;;  %v5526_v40 = vsel %vm27493_vm13, %v19810_v52, %v19811_v53  ;;  %v19819_v44 = vpop.permute.xlu0 %19818 }
 0x233   : > { %27564 = vst [vmem:[#allocation55_spill] sm:$0xff] %v22689_v56  ;;  %v19816_v50 = vunpack.i.h.bf16 %v19814_v38  ;;  %v19820_v55 = vunpack.i.l.bf16 %v19819_v44  ;;  %v19821_v56 = vunpack.i.h.bf16 %v19819_v44  ;;  %v19824_v38 = vpop.permute.xlu1 %19823 }
 0x234   : > { %v22695_v36 = vpop.f32.mrf.mxu0 }
 0x235   : > { %18698 = vmatmul.msk.f32.vlgmr.msrb.gmra.mxu1 %vm349_vm1, %v22547_v10  ;;  %19983 = vrot.lane.b32.xlu1 %v22607_v22, %s27486_s10  ;;  %v5529_v22 = vsel %vm27493_vm13, %v19816_v50, %v19820_v55 }
 0x236   : > { %18699 = vmatmul.msk.f32.vlgmr.msrb.gmra.mxu2 %vm349_vm1, %v22547_v10  ;;  %18700 = vmatmul.msk.f32.vlgmr.msrb.gmra.mxu3 %vm349_vm1, %v22547_v10 }
 0x237   : > { %18702 = vmatmul.msk.f32.vlgmr.msra.gmra.mxu0 %vm349_vm1, %v22700_v1  ;;  %5667 = vmatpush.msrb.mxu1 %v5523_v46 }
 0x238   : > { %5687 = vmatpush.msrb.mxu2 %v5524_v47  ;;  %5707 = vmatpush.msrb.mxu3 %v5525_v31  ;;  %v5527_v31 = vsel %vm27493_vm13, %v19811_v53, %v19815_v25  ;;  %v19829_v53 = vpop.permute.xlu2 %19828 }
 0x239   : > { %v3792_v27 = vpop.f32.mrf.mxu2  ;;  %v3812_v37 = vpop.f32.mrf.mxu3  ;;  %5727 = vmatpush.msra.mxu0 %v5526_v40  ;;  %6766 = vrot.lane.b32.xlu2 %v22715_v6, %s27484_s12  ;;  %v22743_v40 = vpack.i.bf16 %v22598_v63, %v22471_v42  ;;  %s27489_s12 = smov 119  }
 0x23a   : > { %v22720_v10 = vadd.f32 %v3792_v27, %v22575_v48  ;;  %v22723_v52 = vadd.f32 %v3812_v37, %v22578_v18  ;;  %v22725_v46 = vpop.f32.mrf.mxu1  ;;  %v5528_v48 = vsel %vm27493_vm13, %v19815_v25, %v19816_v50  ;;  %v5530_v18 = vsel %vm27493_vm13, %v19820_v55, %v19821_v56 }
 0x23b   : > { %v19826_v27 = vunpack.i.h.bf16 %v19824_v38  ;;  %v19825_v37 = vunpack.i.l.bf16 %v19824_v38  ;;  %19988 = vrot.lane.b32.xlu0 %v22743_v40, %s27491_s28  ;;  %v19831_v55 = vunpack.i.h.bf16 %v19829_v53  ;;  %v19834_v38 = vpop.permute.xlu0 %19833 }
 0x23c   : > { %v22729_v47 = vpop.f32.mrf.mxu0 }
 0x23d   : > { %18703 = vmatmul.msk.f32.vlgmr.msra.gmra.mxu1 %vm349_vm1, %v22700_v1 }
 0x23e   : > { %18704 = vmatmul.msk.f32.vlgmr.msra.gmra.mxu2 %vm349_vm1, %v22700_v1  ;;  %18705 = vmatmul.msk.f32.vlgmr.msra.gmra.mxu3 %vm349_vm1, %v22700_v1 }
 0x23f   : > { %18706 = vmatmul.msk.f32.vlgmr.msrb.gmra.mxu0 %vm349_vm1, %v22700_v1  ;;  %5747 = vmatpush.msra.mxu1 %v5527_v31  ;;  %v19830_v31 = vunpack.i.l.bf16 %v19829_v53 }
 0x240   : > { %5767 = vmatpush.msra.mxu2 %v5528_v48  ;;  %5787 = vmatpush.msra.mxu3 %v5529_v22  ;;  %v5532_v22 = vsel %vm27493_vm13, %v19825_v37, %v19826_v27 }
 0x241   : > { %v3989_v44 = vpop.f32.mrf.mxu2  ;;  %v4009_v25 = vpop.f32.mrf.mxu3  ;;  %5807 = vmatpush.msrb.mxu0 %v5530_v18  ;;  %19958 = vrot.lane.b32.xlu2 %v22616_v35, %s27486_s10  ;;  %v22772_v18 = vpack.i.bf16 %v22510_v11, %v22610_v43 }
 0x242   : > { %v22750_v50 = vadd.f32 %v3989_v44, %v22621_v28  ;;  %v22753_v42 = vadd.f32 %v4009_v25, %v22624_v59  ;;  %v22755_v63 = vpop.f32.mrf.mxu1  ;;  %v5531_v28 = vsel %vm27493_vm13, %v19821_v56, %v19825_v37  ;;  %v5923_v59 = vsel %vm27488_vm14, %v19830_v31, %v19831_v55  ;;  %v19839_v35 = vpop.permute.xlu1 %19838 }
 0x243   : > { %v19835_v56 = vunpack.i.l.bf16 %v19834_v38  ;;  %v19840_v25 = vunpack.i.l.bf16 %v19839_v35  ;;  %v19836_v37 = vunpack.i.h.bf16 %v19834_v38  ;;  %19993 = vrot.lane.b32.xlu1 %v22772_v18, %s27491_s28  ;;  %v19844_v38 = vpop.permute.xlu2 %19843  ;;  %vm27497_vm13 = vcmask 179200  }
 0x244   : > { %v22759_v48 = vpop.f32.mrf.mxu0 }
 0x245   : > { %18707 = vmatmul.msk.f32.vlgmr.msrb.gmra.mxu1 %vm349_vm1, %v22700_v1 }
 0x246   : > { %18708 = vmatmul.msk.f32.vlgmr.msrb.gmra.mxu2 %vm349_vm1, %v22700_v1  ;;  %18709 = vmatmul.msk.f32.vlgmr.msrb.gmra.mxu3 %vm349_vm1, %v22700_v1 }
 0x247   : > { %18710 = vmatmul.msk.f32.vlgmr.msra.gmra.mxu0 %vm349_vm1, %v22700_v1  ;;  %5867 = vmatpush.msrb.mxu3 %v19826_v27  ;;  %v19841_v27 = vunpack.i.h.bf16 %v19839_v35  ;;  %v22808_v35 = vpack.i.bf16 %v22665_v21, %v22507_v58 }
 0x248   : > { %5827 = vmatpush.msrb.mxu1 %v5531_v28  ;;  %5847 = vmatpush.msrb.mxu2 %v5532_v22  ;;  %v5924_v22 = vsel %vm27488_vm14, %v19831_v55, %v19835_v56  ;;  %v22802_v55 = vpack.i.bf16 %v22555_v16, %v22668_v45 }
 0x249   : > { %v4069_v53 = vpop.f32.mrf.mxu2  ;;  %v4089_v44 = vpop.f32.mrf.mxu3  ;;  %5972 = vmatpush.msra.mxu0 %v5923_v59  ;;  %19973 = vrot.lane.b32.xlu2 %v22677_v15, %s27486_s10  ;;  %v5926_v59 = vsel %vm27488_vm14, %v19836_v37, %v19840_v25 }
 0x24a   : > { %v22779_v31 = vadd.f32 %v4069_v53, %v22648_v24  ;;  %v22782_v11 = vadd.f32 %v4089_v44, %v22651_v29  ;;  %v22784_v43 = vpop.f32.mrf.mxu1  ;;  %v5925_v24 = vsel %vm27488_vm14, %v19835_v56, %v19836_v37  ;;  %v5927_v29 = vsel %vm27488_vm14, %v19840_v25, %v19841_v27  ;;  %v19849_v15 = vpop.permute.xlu0 %19848  ;;  %20003 = vrot.lane.b32.xlu0 %v22808_v35, %s27491_s28 }
 0x24b   : > { %v19845_v56 = vunpack.i.l.bf16 %v19844_v38  ;;  %v19846_v25 = vunpack.i.h.bf16 %v19844_v38  ;;  %v19850_v37 = vunpack.i.l.bf16 %v19849_v15  ;;  %20008 = vrot.lane.b32.xlu1 %v22802_v55, %s27491_s28  ;;  %v19851_v58 = vunpack.i.h.bf16 %v19849_v15  ;;  %v22829_v38 = vld [vmem:[%s27468_s1 + $0x70] sm:$0xff]  ;;  %v19859_v15 = vpop.permute.xlu2 %19858 }
 0x24c   : > { %v22788_v28 = vpop.f32.mrf.mxu0 }
 0x24d   : > { %27565 = vst [vmem:[#allocation56_spill] sm:$0xff] %v22788_v28  ;;  %18711 = vmatmul.msk.f32.vlgmr.msra.gmra.mxu1 %vm349_vm1, %v22700_v1 }
 0x24e   : > { %18712 = vmatmul.msk.f32.vlgmr.msra.gmra.mxu2 %vm349_vm1, %v22700_v1  ;;  %18713 = vmatmul.msk.f32.vlgmr.msra.gmra.mxu3 %vm349_vm1, %v22700_v1 }
 0x24f   : > { %18714 = vmatmul.msk.f32.vlgmr.msrb.gmra.mxu0 %vm349_vm1, %v22700_v1  ;;  %5992 = vmatpush.msra.mxu1 %v5924_v22 }
 0x250   : > { %6012 = vmatpush.msra.mxu2 %v5925_v24  ;;  %6032 = vmatpush.msra.mxu3 %v5926_v59  ;;  %v5930_v24 = vsel %vm27488_vm14, %v19846_v25, %v19850_v37  ;;  %v19854_v59 = vpop.permute.xlu1 %19853 }
 0x251   : > { %v4149_v53 = vpop.f32.mrf.mxu2  ;;  %v4169_v44 = vpop.f32.mrf.mxu3  ;;  %6052 = vmatpush.msrb.mxu0 %v5927_v29  ;;  %7174 = vrot.lane.b32.xlu2 %v22715_v6, %s27486_s10  ;;  %v5931_v29 = vsel %vm27488_vm14, %v19850_v37, %v19851_v58  ;;  %s21115_s10 = smov 118  }
 0x252   : > { %v22813_v16 = vadd.f32 %v4149_v53, %v22684_v60  ;;  %v22816_v45 = vadd.f32 %v4169_v44, %v22687_v17  ;;  %v22818_v22 = vpop.f32.mrf.mxu1  ;;  %v5928_v60 = vsel %vm27488_vm14, %v19841_v27, %v19845_v56  ;;  %v5929_v17 = vsel %vm27488_vm14, %v19845_v56, %v19846_v25 }
 0x253   : > { %27566 = vst [vmem:[#allocation57_spill] sm:$0xff] %v22818_v22  ;;  %v22843_v27 = vpack.i.bf16 %v22715_v6, %v22595_v19  ;;  %v19855_v56 = vunpack.i.l.bf16 %v19854_v59  ;;  %v19860_v25 = vunpack.i.l.bf16 %v19859_v15  ;;  %v19861_v22 = vunpack.i.h.bf16 %v19859_v15 }
 0x254   : > { %v22824_v21 = vpop.f32.mrf.mxu0 }
 0x255   : > { %18715 = vmatmul.msk.f32.vlgmr.msrb.gmra.mxu1 %vm349_vm1, %v22700_v1  ;;  %20018 = vrot.lane.b32.xlu0 %v22843_v27, %s27491_s28  ;;  %v5935_v15 = vsel %vm27488_vm14, %v19860_v25, %v19861_v22 }
 0x256   : > { %18716 = vmatmul.msk.f32.vlgmr.msrb.gmra.mxu2 %vm349_vm1, %v22700_v1  ;;  %18717 = vmatmul.msk.f32.vlgmr.msrb.gmra.mxu3 %vm349_vm1, %v22700_v1  ;;  %v19856_v1 = vunpack.i.h.bf16 %v19854_v59 }
 0x257   : > { %18719 = vmatmul.msk.f32.vlgmr.msra.gmra.mxu0 %vm349_vm1, %v22829_v38  ;;  %6072 = vmatpush.msrb.mxu1 %v5928_v60 }
 0x258   : > { %6092 = vmatpush.msrb.mxu2 %v5929_v17  ;;  %6112 = vmatpush.msrb.mxu3 %v5930_v24  ;;  %v5932_v17 = vsel %vm27488_vm14, %v19851_v58, %v19855_v56  ;;  %v19864_v24 = vpop.permute.xlu0 %19863  ;;  %v5934_v59 = vsel %vm27488_vm14, %v19856_v1, %v19860_v25  ;;  %v19869_v58 = vpop.permute.xlu1 %19868 }
 0x259   : > { %v4229_v53 = vpop.f32.mrf.mxu2  ;;  %v4249_v44 = vpop.f32.mrf.mxu3  ;;  %6132 = vmatpush.msra.mxu0 %v5931_v29  ;;  %v7565_v29 = vld [vmem:[%s21211_s13 + $0xa0] sm:$0xff]  ;;  %v19865_v28 = vunpack.i.l.bf16 %v19864_v24 }
 0x25a   : > { %v22848_v37 = vadd.f32 %v4229_v53, %v22720_v10  ;;  %v22851_v19 = vadd.f32 %v4249_v44, %v22723_v52  ;;  %v22853_v6 = vpop.f32.mrf.mxu1  ;;  %v5933_v10 = vsel %vm27488_vm14, %v19855_v56, %v19856_v1  ;;  %v7564_v52 = vld [vmem:[%s21211_s13 + $0x98] sm:$0xff]  ;;  %v22877_v56 = vpack.i.bf16 %v22504_v26, %v22522_v8 }
 0x25b   : > { %27567 = vst [vmem:[#allocation58_spill] sm:$0xff] %v22853_v6  ;;  %v22871_v53 = vpack.i.bf16 %v7565_v29, %v7564_v52  ;;  %v19871_v26 = vunpack.i.h.bf16 %v19869_v58  ;;  %v19870_v8 = vunpack.i.l.bf16 %v19869_v58 }
 0x25c   : > { %v22857_v60 = vpop.f32.mrf.mxu0  ;;  %19998 = vrot.lane.b32.xlu2 %v22877_v56, %s27491_s28 }
 0x25d   : > { %27568 = vst [vmem:[#allocation59_spill] sm:$0xff] %v22857_v60  ;;  %18720 = vmatmul.msk.f32.vlgmr.msra.gmra.mxu1 %vm349_vm1, %v22829_v38  ;;  %v19866_v60 = vunpack.i.h.bf16 %v19864_v24  ;;  %20023 = vrot.lane.b32.xlu1 %v22871_v53, %s27491_s28 }
 0x25e   : > { %18721 = vmatmul.msk.f32.vlgmr.msra.gmra.mxu2 %vm349_vm1, %v22829_v38  ;;  %18722 = vmatmul.msk.f32.vlgmr.msra.gmra.mxu3 %vm349_vm1, %v22829_v38 }
 0x25f   : > { %18723 = vmatmul.msk.f32.vlgmr.msrb.gmra.mxu0 %vm349_vm1, %v22829_v38  ;;  %6152 = vmatpush.msra.mxu1 %v5932_v17 }
 0x260   : > { %6172 = vmatpush.msra.mxu2 %v5933_v10  ;;  %6192 = vmatpush.msra.mxu3 %v5934_v59  ;;  %v19874_v10 = vpop.permute.xlu2 %19873  ;;  %v6328_v59 = vsel %vm6327_vm15, %v19870_v8, %v19871_v26  ;;  %v19879_v29 = vpop.permute.xlu0 %19878 }
 0x261   : > { %v4394_v44 = vpop.f32.mrf.mxu2  ;;  %v4414_v1 = vpop.f32.mrf.mxu3  ;;  %6212 = vmatpush.msrb.mxu0 %v5935_v15  ;;  %20033 = vrot.lane.b32.xlu0 %v22772_v18, %s27489_s12  ;;  %v19875_v15 = vunpack.i.l.bf16 %v19874_v10 }
 0x262   : > { %v22882_v25 = vadd.f32 %v4394_v44, %v22750_v50  ;;  %v22885_v17 = vadd.f32 %v4414_v1, %v22753_v42  ;;  %v22887_v52 = vpop.f32.mrf.mxu1  ;;  %v5936_v50 = vsel %vm27488_vm14, %v19861_v22, %v19865_v28  ;;  %v5937_v42 = vsel %vm27488_vm14, %v19865_v28, %v19866_v60 }
 0x263   : > { %27569 = vst [vmem:[#allocation60_spill] sm:$0xff] %v22887_v52  ;;  %v19876_v28 = vunpack.i.h.bf16 %v19874_v10  ;;  %v19880_v44 = vunpack.i.l.bf16 %v19879_v29  ;;  %v6329_v10 = vsel %vm6327_vm15, %v19871_v26, %v19875_v15  ;;  %v22932_v26 = vpack.i.bf16 %v22592_v7, %v22558_v54 }
 0x264   : > { %v22893_v24 = vpop.f32.mrf.mxu0  ;;  %vm27496_vm14 = vcmask 187392  }
 0x265   : > { %27570 = vst [vmem:[#allocation61_spill] sm:$0xff] %v22893_v24  ;;  %18724 = vmatmul.msk.f32.vlgmr.msrb.gmra.mxu1 %vm349_vm1, %v22829_v38  ;;  %20038 = vrot.lane.b32.xlu1 %v22877_v56, %s27489_s12 }
 0x266   : > { %18725 = vmatmul.msk.f32.vlgmr.msrb.gmra.mxu2 %vm349_vm1, %v22829_v38  ;;  %18726 = vmatmul.msk.f32.vlgmr.msrb.gmra.mxu3 %vm349_vm1, %v22829_v38 }
 0x267   : > { %18727 = vmatmul.msk.f32.vlgmr.msra.gmra.mxu0 %vm349_vm1, %v22829_v38  ;;  %6272 = vmatpush.msrb.mxu3 %v19866_v60  ;;  %v19881_v60 = vunpack.i.h.bf16 %v19879_v29 }
 0x268   : > { %6232 = vmatpush.msrb.mxu1 %v5936_v50  ;;  %6252 = vmatpush.msrb.mxu2 %v5937_v42  ;;  %v19884_v42 = vpop.permute.xlu1 %19883  ;;  %v19889_v29 = vpop.permute.xlu2 %19888 }
 0x269   : > { %v4474_v58 = vpop.f32.mrf.mxu2  ;;  %v4494_v22 = vpop.f32.mrf.mxu3  ;;  %6377 = vmatpush.msra.mxu0 %v6328_v59  ;;  %20048 = vrot.lane.b32.xlu0 %v22802_v55, %s27489_s12  ;;  %v6331_v59 = vsel %vm6327_vm15, %v19876_v28, %v19880_v44 }
 0x26a   : > { %v22909_v1 = vadd.f32 %v4474_v58, %v22779_v31  ;;  %v22912_v8 = vadd.f32 %v4494_v22, %v22782_v11  ;;  %v22914_v24 = vpop.f32.mrf.mxu1  ;;  %v6330_v31 = vsel %vm6327_vm15, %v19875_v15, %v19876_v28  ;;  %v6332_v11 = vsel %vm6327_vm15, %v19880_v44, %v19881_v60  ;;  %20013 = vrot.lane.b32.xlu2 %v22932_v26, %s27491_s28  ;;  %s27501_s28 = smov 101  }
 0x26b   : > { %27571 = vst [vmem:[#allocation62_spill] sm:$0xff] %v22914_v24  ;;  %v19885_v15 = vunpack.i.l.bf16 %v19884_v42  ;;  %v19886_v28 = vunpack.i.h.bf16 %v19884_v42  ;;  %v22953_v42 = vld [vmem:[%s27468_s1 + $0x78] sm:$0xff] }
 0x26c   : > { %v22918_v50 = vpop.f32.mrf.mxu0 }
 0x26d   : > { %27572 = vst [vmem:[#allocation63_spill] sm:$0xff] %v22918_v50  ;;  %18728 = vmatmul.msk.f32.vlgmr.msra.gmra.mxu1 %vm349_vm1, %v22829_v38  ;;  %v19890_v50 = vunpack.i.l.bf16 %v19889_v29  ;;  %20053 = vrot.lane.b32.xlu1 %v22932_v26, %s27489_s12 }
 0x26e   : > { %18729 = vmatmul.msk.f32.vlgmr.msra.gmra.mxu2 %vm349_vm1, %v22829_v38  ;;  %18730 = vmatmul.msk.f32.vlgmr.msra.gmra.mxu3 %vm349_vm1, %v22829_v38 }
 0x26f   : > { %18731 = vmatmul.msk.f32.vlgmr.msrb.gmra.mxu0 %vm349_vm1, %v22829_v38  ;;  %6397 = vmatpush.msra.mxu1 %v6329_v10  ;;  %v19891_v10 = vunpack.i.h.bf16 %v19889_v29 }
 0x270   : > { %6417 = vmatpush.msra.mxu2 %v6330_v31  ;;  %6437 = vmatpush.msra.mxu3 %v6331_v59  ;;  %v6333_v59 = vsel %vm6327_vm15, %v19881_v60, %v19885_v15 }
 0x271   : > { %v4554_v58 = vpop.f32.mrf.mxu2  ;;  %v4574_v22 = vpop.f32.mrf.mxu3  ;;  %6457 = vmatpush.msrb.mxu0 %v6332_v11  ;;  %v6336_v29 = vsel %vm6327_vm15, %v19890_v50, %v19891_v10  ;;  %20063 = vrot.lane.b32.xlu0 %v22871_v53, %s27489_s12 }
 0x272   : > { %v22939_v44 = vadd.f32 %v4554_v58, %v22813_v16  ;;  %v22942_v54 = vadd.f32 %v4574_v22, %v22816_v45  ;;  %v22944_v7 = vpop.f32.mrf.mxu1  ;;  %v6334_v16 = vsel %vm6327_vm15, %v19885_v15, %v19886_v28  ;;  %v6335_v45 = vsel %vm6327_vm15, %v19886_v28, %v19890_v50  ;;  %v19894_v11 = vpop.permute.xlu0 %19893  ;;  %20028 = vrot.lane.b32.xlu2 %v22743_v40, %s27489_s12 }
 0x273   : > { %27573 = vst [vmem:[#allocation64_spill] sm:$0xff] %v22944_v7  ;;  %v19899_v58 = vpop.permute.xlu1 %19898  ;;  %v19895_v60 = vunpack.i.l.bf16 %v19894_v11  ;;  %v19896_v7 = vunpack.i.h.bf16 %v19894_v11  ;;  %v19904_v11 = vpop.permute.xlu2 %19903 }
 0x274   : > { %v22948_v31 = vpop.f32.mrf.mxu0  ;;  %v19900_v28 = vunpack.i.l.bf16 %v19899_v58 }
 0x275   : > { %18732 = vmatmul.msk.f32.vlgmr.msrb.gmra.mxu1 %vm349_vm1, %v22829_v38  ;;  %20068 = vrot.lane.b32.xlu1 %v22743_v40, %s21115_s10 }
 0x276   : > { %18733 = vmatmul.msk.f32.vlgmr.msrb.gmra.mxu2 %vm349_vm1, %v22829_v38  ;;  %18734 = vmatmul.msk.f32.vlgmr.msrb.gmra.mxu3 %vm349_vm1, %v22829_v38 }
 0x277   : > { %18736 = vmatmul.msk.f32.vlgmr.msra.gmra.mxu0 %vm349_vm1, %v22953_v42  ;;  %6477 = vmatpush.msrb.mxu1 %v6333_v59  ;;  %v19901_v59 = vunpack.i.h.bf16 %v19899_v58 }
 0x278   : > { %6497 = vmatpush.msrb.mxu2 %v6334_v16  ;;  %6517 = vmatpush.msrb.mxu3 %v6335_v45  ;;  %v6337_v45 = vsel %vm6327_vm15, %v19891_v10, %v19895_v60 }
 0x279   : > { %v4634_v15 = vpop.f32.mrf.mxu2  ;;  %v4654_v22 = vpop.f32.mrf.mxu3  ;;  %6537 = vmatpush.msra.mxu0 %v6336_v29  ;;  %v6340_v29 = vsel %vm6327_vm15, %v19900_v28, %v19901_v59  ;;  %20078 = vrot.lane.b32.xlu0 %v22877_v56, %s21115_s10 }
 0x27a   : > { %v22970_v38 = vadd.f32 %v4634_v15, %v22848_v37  ;;  %v22973_v50 = vadd.f32 %v4654_v22, %v22851_v19  ;;  %v22975_v24 = vpop.f32.mrf.mxu1  ;;  %v6338_v37 = vsel %vm6327_vm15, %v19895_v60, %v19896_v7  ;;  %v6339_v19 = vsel %vm6327_vm15, %v19896_v7, %v19900_v28  ;;  %v19909_v10 = vpop.permute.xlu0 %19908  ;;  %20043 = vrot.lane.b32.xlu2 %v22808_v35, %s27489_s12 }
 0x27b   : > { %27574 = vst [vmem:[#allocation65_spill] sm:$0xff] %v22975_v24  ;;  %v19906_v60 = vunpack.i.h.bf16 %v19904_v11  ;;  %v19905_v7 = vunpack.i.l.bf16 %v19904_v11  ;;  %v19910_v24 = vunpack.i.l.bf16 %v19909_v10 }
 0x27c   : > { %v22979_v16 = vpop.f32.mrf.mxu0 }
 0x27d   : > { %27575 = vst [vmem:[#allocation66_spill] sm:$0xff] %v22979_v16  ;;  %18737 = vmatmul.msk.f32.vlgmr.msra.gmra.mxu1 %vm349_vm1, %v22953_v42  ;;  %20083 = vrot.lane.b32.xlu1 %v22808_v35, %s21115_s10 }
 0x27e   : > { %18738 = vmatmul.msk.f32.vlgmr.msra.gmra.mxu2 %vm349_vm1, %v22953_v42  ;;  %18739 = vmatmul.msk.f32.vlgmr.msra.gmra.mxu3 %vm349_vm1, %v22953_v42 }
 0x27f   : > { %18740 = vmatmul.msk.f32.vlgmr.msrb.gmra.mxu0 %vm349_vm1, %v22953_v42  ;;  %6557 = vmatpush.msra.mxu1 %v6337_v45  ;;  %v19911_v45 = vunpack.i.h.bf16 %v19909_v10 }
 0x280   : > { %6577 = vmatpush.msra.mxu2 %v6338_v37  ;;  %6597 = vmatpush.msra.mxu3 %v6339_v19  ;;  %v19914_v37 = vpop.permute.xlu1 %19913 }
 0x281   : > { %v4799_v58 = vpop.f32.mrf.mxu2  ;;  %v4819_v15 = vpop.f32.mrf.mxu3  ;;  %6617 = vmatpush.msrb.mxu0 %v6340_v29  ;;  %v6769_v19 = vsel %vm27496_vm14, %v19910_v24, %v19911_v45  ;;  %v19915_v10 = vunpack.i.l.bf16 %v19914_v37  ;;  %20093 = vrot.lane.b32.xlu0 %v22932_v26, %s21115_s10 }
 0x282   : > { %v22996_v22 = vadd.f32 %v4799_v58, %v22882_v25  ;;  %v22999_v28 = vadd.f32 %v4819_v15, %v22885_v17  ;;  %v23001_v16 = vpop.f32.mrf.mxu1  ;;  %v6341_v25 = vsel %vm6327_vm15, %v19901_v59, %v19905_v7  ;;  %v6342_v17 = vsel %vm6327_vm15, %v19905_v7, %v19906_v60  ;;  %v19919_v29 = vpop.permute.xlu2 %19918  ;;  %20058 = vrot.lane.b32.xlu2 %v22843_v27, %s27489_s12  ;;  %s27877_s12 = smov 42  }
 0x283   : > { %27576 = vst [vmem:[#allocation67_spill] sm:$0xff] %v23001_v16  ;;  %v19916_v15 = vunpack.i.h.bf16 %v19914_v37  ;;  %v19920_v7 = vunpack.i.l.bf16 %v19919_v29  ;;  %v19924_v37 = vpop.permute.xlu0 %19923 }
 0x284   : > { %v23007_v11 = vpop.f32.mrf.mxu0 }
 0x285   : > { %27577 = vst [vmem:[#allocation68_spill] sm:$0xff] %v23007_v11  ;;  %18741 = vmatmul.msk.f32.vlgmr.msrb.gmra.mxu1 %vm349_vm1, %v22953_v42  ;;  %20098 = vrot.lane.b32.xlu1 %v22843_v27, %s21115_s10 }
 0x286   : > { %18742 = vmatmul.msk.f32.vlgmr.msrb.gmra.mxu2 %vm349_vm1, %v22953_v42  ;;  %18743 = vmatmul.msk.f32.vlgmr.msrb.gmra.mxu3 %vm349_vm1, %v22953_v42 }
 0x287   : > { %18744 = vmatmul.msk.f32.vlgmr.msra.gmra.mxu0 %vm349_vm1, %v22953_v42  ;;  %6677 = vmatpush.msrb.mxu3 %v19906_v60  ;;  %v19921_v60 = vunpack.i.h.bf16 %v19919_v29 }
 0x288   : > { %6637 = vmatpush.msrb.mxu1 %v6341_v25  ;;  %6657 = vmatpush.msrb.mxu2 %v6342_v17  ;;  %v6770_v17 = vsel %vm27496_vm14, %v19911_v45, %v19915_v10  ;;  %v19929_v29 = vpop.permute.xlu1 %19928  ;;  %v19925_v45 = vunpack.i.l.bf16 %v19924_v37 }
 0x289   : > { %v4879_v58 = vpop.f32.mrf.mxu2  ;;  %v4899_v59 = vpop.f32.mrf.mxu3  ;;  %6819 = vmatpush.msra.mxu0 %v6769_v19  ;;  %v6773_v19 = vsel %vm27496_vm14, %v19920_v7, %v19921_v60  ;;  %20108 = vrot.lane.b32.xlu0 %v22743_v40, %s27498_s26 }
 0x28a   : > { %v23023_v11 = vadd.f32 %v4879_v58, %v22909_v1  ;;  %v23026_v24 = vadd.f32 %v4899_v59, %v22912_v8  ;;  %v23028_v16 = vpop.f32.mrf.mxu1  ;;  %v6771_v1 = vsel %vm27496_vm14, %v19915_v10, %v19916_v15  ;;  %v6772_v8 = vsel %vm27496_vm14, %v19916_v15, %v19920_v7  ;;  %20073 = vrot.lane.b32.xlu2 %v22772_v18, %s21115_s10 }
 0x28b   : > { %27578 = vst [vmem:[#allocation69_spill] sm:$0xff] %v23028_v16  ;;  %v19930_v59 = vunpack.i.l.bf16 %v19929_v29  ;;  %v19926_v15 = vunpack.i.h.bf16 %v19924_v37 }
 0x28c   : > { %v23034_v25 = vpop.f32.mrf.mxu0 }
 0x28d   : > { %27579 = vst [vmem:[#allocation70_spill] sm:$0xff] %v23034_v25  ;;  %18745 = vmatmul.msk.f32.vlgmr.msra.gmra.mxu1 %vm349_vm1, %v22953_v42  ;;  %20113 = vrot.lane.b32.xlu1 %v22772_v18, %s27498_s26 }
 0x28e   : > { %18746 = vmatmul.msk.f32.vlgmr.msra.gmra.mxu2 %vm349_vm1, %v22953_v42  ;;  %18747 = vmatmul.msk.f32.vlgmr.msra.gmra.mxu3 %vm349_vm1, %v22953_v42 }
 0x28f   : > { %18748 = vmatmul.msk.f32.vlgmr.msrb.gmra.mxu0 %vm349_vm1, %v22953_v42  ;;  %6839 = vmatpush.msra.mxu1 %v6770_v17  ;;  %v19931_v17 = vunpack.i.h.bf16 %v19929_v29  ;;  %v19939_v29 = vpop.permute.xlu0 %19938 }
 0x290   : > { %6859 = vmatpush.msra.mxu2 %v6771_v1  ;;  %6879 = vmatpush.msra.mxu3 %v6772_v8  ;;  %v19934_v1 = vpop.permute.xlu2 %19933  ;;  %v6775_v8 = vsel %vm27496_vm14, %v19925_v45, %v19926_v15 }
 0x291   : > { %v4959_v58 = vpop.f32.mrf.mxu2  ;;  %v4979_v10 = vpop.f32.mrf.mxu3  ;;  %6899 = vmatpush.msrb.mxu0 %v6773_v19  ;;  %v6776_v19 = vsel %vm27496_vm14, %v19926_v15, %v19930_v59  ;;  %v19936_v15 = vunpack.i.h.bf16 %v19934_v1  ;;  %20123 = vrot.lane.b32.xlu0 %v22808_v35, %s27498_s26 }
 0x292   : > { %v23051_v25 = vadd.f32 %v4959_v58, %v22939_v44  ;;  %v23054_v7 = vadd.f32 %v4979_v10, %v22942_v54  ;;  %v23056_v16 = vpop.f32.mrf.mxu1  ;;  %v23067_v44 = vld [vmem:[%s27468_s1 + $0x80] sm:$0xff]  ;;  %v6774_v54 = vsel %vm27496_vm14, %v19921_v60, %v19925_v45  ;;  %v6777_v58 = vsel %vm27496_vm14, %v19930_v59, %v19931_v17  ;;  %20088 = vrot.lane.b32.xlu2 %v22802_v55, %s21115_s10 }
 0x293   : > { %27580 = vst [vmem:[#allocation71_spill] sm:$0xff] %v23056_v16  ;;  %v19935_v60 = vunpack.i.l.bf16 %v19934_v1  ;;  %v19940_v16 = vunpack.i.l.bf16 %v19939_v29 }
 0x294   : > { %v23062_v37 = vpop.f32.mrf.mxu0 }
 0x295   : > { %18749 = vmatmul.msk.f32.vlgmr.msrb.gmra.mxu1 %vm349_vm1, %v22953_v42  ;;  %20128 = vrot.lane.b32.xlu1 %v22802_v55, %s27498_s26  ;;  %v6778_v40 = vsel %vm27496_vm14, %v19931_v17, %v19935_v60 }
 0x296   : > { %18750 = vmatmul.msk.f32.vlgmr.msrb.gmra.mxu2 %vm349_vm1, %v22953_v42  ;;  %18751 = vmatmul.msk.f32.vlgmr.msrb.gmra.mxu3 %vm349_vm1, %v22953_v42 }
 0x297   : > { %18753 = vmatmul.msk.f32.vlgmr.msra.gmra.mxu0 %vm349_vm1, %v23067_v44  ;;  %6919 = vmatpush.msrb.mxu1 %v6774_v54  ;;  %v19941_v54 = vunpack.i.h.bf16 %v19939_v29  ;;  %v19949_v17 = vpop.permute.xlu0 %19948 }
 0x298   : > { %6939 = vmatpush.msrb.mxu2 %v6775_v8  ;;  %6959 = vmatpush.msrb.mxu3 %v6776_v19  ;;  %v19944_v8 = vpop.permute.xlu1 %19943  ;;  %v6767_v19 = vpop.permute.xlu2 %6766 }
 0x299   : > { %v5039_v10 = vpop.f32.mrf.mxu2  ;;  %v5059_v45 = vpop.f32.mrf.mxu3  ;;  %6979 = vmatpush.msra.mxu0 %v6777_v58  ;;  %v6781_v29 = vsel %vm27496_vm14, %v19940_v16, %v19941_v54  ;;  %v19945_v58 = vunpack.i.l.bf16 %v19944_v8  ;;  %20138 = vrot.lane.b32.xlu0 %v22843_v27, %s27498_s26 }
 0x29a   : > { %v23084_v52 = vadd.f32 %v5039_v10, %v22970_v38  ;;  %v23087_v42 = vadd.f32 %v5059_v45, %v22973_v50  ;;  %v23089_v59 = vpop.f32.mrf.mxu1  ;;  %v6779_v38 = vsel %vm27496_vm14, %v19935_v60, %v19936_v15  ;;  %v6780_v50 = vsel %vm27496_vm14, %v19936_v15, %v19940_v16  ;;  %20103 = vrot.lane.b32.xlu2 %v22871_v53, %s21115_s10 }
 0x29b   : > { %27581 = vst [vmem:[#allocation72_spill] sm:$0xff] %v23089_v59  ;;  %v19946_v45 = vunpack.i.h.bf16 %v19944_v8  ;;  %v19950_v59 = vunpack.i.l.bf16 %v19949_v17 }
 0x29c   : > { %v23095_v1 = vpop.f32.mrf.mxu0 }
 0x29d   : > { %27582 = vst [vmem:[#allocation73_spill] sm:$0xff] %v23095_v1  ;;  %18754 = vmatmul.msk.f32.vlgmr.msra.gmra.mxu1 %vm349_vm1, %v23067_v44  ;;  %v6784_v35 = vsel %vm27496_vm14, %v19946_v45, %v6767_v19  ;;  %20143 = vrot.lane.b32.xlu1 %v22871_v53, %s27498_s26 }
 0x29e   : > { %18755 = vmatmul.msk.f32.vlgmr.msra.gmra.mxu2 %vm349_vm1, %v23067_v44  ;;  %18756 = vmatmul.msk.f32.vlgmr.msra.gmra.mxu3 %vm349_vm1, %v23067_v44 }
 0x29f   : > { %18757 = vmatmul.msk.f32.vlgmr.msrb.gmra.mxu0 %vm349_vm1, %v23067_v44  ;;  %6999 = vmatpush.msra.mxu1 %v6778_v40  ;;  %v19951_v40 = vunpack.i.h.bf16 %v19949_v17 }
 0x2a0   : > { %7019 = vmatpush.msra.mxu2 %v6779_v38  ;;  %7039 = vmatpush.msra.mxu3 %v6780_v50  ;;  %v6782_v50 = vsel %vm27496_vm14, %v19941_v54, %v19945_v58  ;;  %v19959_v8 = vpop.permute.xlu2 %19958 }
 0x2a1   : > { %v5204_v10 = vpop.f32.mrf.mxu2  ;;  %v5224_v60 = vpop.f32.mrf.mxu3  ;;  %7059 = vmatpush.msrb.mxu0 %v6781_v29  ;;  %20153 = vrot.lane.b32.xlu0 %v22772_v18, %s27501_s28 }
 0x2a2   : > { %v23112_v15 = vadd.f32 %v5204_v10, %v22996_v22  ;;  %v23115_v16 = vadd.f32 %v5224_v60, %v22999_v28  ;;  %v23117_v1 = vpop.f32.mrf.mxu1  ;;  %v19954_v29 = vpop.permute.xlu1 %19953  ;;  %v6783_v22 = vsel %vm27496_vm14, %v19945_v58, %v19946_v45  ;;  %v7177_v28 = vsel %vm27497_vm13, %v19950_v59, %v19951_v40  ;;  %20118 = vrot.lane.b32.xlu2 %v22877_v56, %s27498_s26 }
 0x2a3   : > { %27583 = vst [vmem:[#allocation74_spill] sm:$0xff] %v23117_v1  ;;  %v19955_v54 = vunpack.i.l.bf16 %v19954_v29  ;;  %v19956_v58 = vunpack.i.h.bf16 %v19954_v29  ;;  %v19960_v10 = vunpack.i.l.bf16 %v19959_v8  ;;  %vm27500_vm14 = vcmask 982016  }
 0x2a4   : > { %v23119_v38 = vpop.f32.mrf.mxu0 }
 0x2a5   : > { %27584 = vst [vmem:[#allocation75_spill] sm:$0xff] %v23119_v38  ;;  %18758 = vmatmul.msk.f32.vlgmr.msrb.gmra.mxu1 %vm349_vm1, %v23067_v44  ;;  %v7178_v38 = vsel %vm27497_vm13, %v19951_v40, %v19955_v54  ;;  %v7179_v29 = vsel %vm27497_vm13, %v19955_v54, %v19956_v58  ;;  %v7180_v27 = vsel %vm27497_vm13, %v19956_v58, %v19960_v10 }
 0x2a6   : > { %18759 = vmatmul.msk.f32.vlgmr.msrb.gmra.mxu2 %vm349_vm1, %v23067_v44  ;;  %18760 = vmatmul.msk.f32.vlgmr.msrb.gmra.mxu3 %vm349_vm1, %v23067_v44 }
 0x2a7   : > { %18761 = vmatmul.msk.f32.vlgmr.msra.gmra.mxu0 %vm349_vm1, %v23067_v44  ;;  %7079 = vmatpush.msrb.mxu1 %v6782_v50  ;;  %v19961_v50 = vunpack.i.h.bf16 %v19959_v8 }
 0x2a8   : > { %7099 = vmatpush.msrb.mxu2 %v6783_v22  ;;  %7119 = vmatpush.msrb.mxu3 %v6784_v35  ;;  %v19964_v22 = vpop.permute.xlu0 %19963 }
 0x2a9   : > { %v5284_v17 = vpop.f32.mrf.mxu2  ;;  %v5304_v19 = vpop.f32.mrf.mxu3  ;;  %7227 = vmatpush.msra.mxu0 %v7177_v28  ;;  %v19965_v40 = vunpack.i.l.bf16 %v19964_v22  ;;  %20168 = vrot.lane.b32.xlu0 %v22802_v55, %s27501_s28 }
 0x2aa   : > { %v23136_v60 = vadd.f32 %v5284_v17, %v23023_v11  ;;  %v23139_v59 = vadd.f32 %v5304_v19, %v23026_v24  ;;  %v23141_v45 = vpop.f32.mrf.mxu1  ;;  %v7181_v11 = vsel %vm27497_vm13, %v19960_v10, %v19961_v50  ;;  %v19969_v24 = vpop.permute.xlu1 %19968  ;;  %v19966_v17 = vunpack.i.h.bf16 %v19964_v22  ;;  %v23172_v22 = vld [vmem:[%s27468_s1 + $0x88] sm:$0xff]  ;;  %20158 = vrot.lane.b32.xlu1 %v22877_v56, %s27501_s28  ;;  %20133 = vrot.lane.b32.xlu2 %v22932_v26, %s27498_s26  ;;  %s27504_s26 = smov 84  }
 0x2ab   : > { %27585 = vst [vmem:[#allocation76_spill] sm:$0xff] %v23141_v45  ;;  %v19970_v54 = vunpack.i.l.bf16 %v19969_v24 }
 0x2ac   : > { %v23143_v35 = vpop.f32.mrf.mxu0  ;;  %v7183_v18 = vsel %vm27497_vm13, %v19965_v40, %v19966_v17 }
 0x2ad   : > { %27586 = vst [vmem:[#allocation77_spill] sm:$0xff] %v23143_v35  ;;  %18762 = vmatmul.msk.f32.vlgmr.msra.gmra.mxu1 %vm349_vm1, %v23067_v44 }
 0x2ae   : > { %18763 = vmatmul.msk.f32.vlgmr.msra.gmra.mxu2 %vm349_vm1, %v23067_v44  ;;  %18764 = vmatmul.msk.f32.vlgmr.msra.gmra.mxu3 %vm349_vm1, %v23067_v44 }
 0x2af   : > { %18765 = vmatmul.msk.f32.vlgmr.msrb.gmra.mxu0 %vm349_vm1, %v23067_v44  ;;  %7247 = vmatpush.msra.mxu1 %v7178_v38  ;;  %v19971_v38 = vunpack.i.h.bf16 %v19969_v24 }
 0x2b0   : > { %7267 = vmatpush.msra.mxu2 %v7179_v29  ;;  %7287 = vmatpush.msra.mxu3 %v7180_v27  ;;  %v19974_v29 = vpop.permute.xlu2 %19973 }
 0x2b1   : > { %v5364_v28 = vpop.f32.mrf.mxu2  ;;  %v5384_v8 = vpop.f32.mrf.mxu3  ;;  %7307 = vmatpush.msrb.mxu0 %v7181_v11  ;;  %v7182_v11 = vsel %vm27497_vm13, %v19961_v50, %v19965_v40  ;;  %v7185_v24 = vsel %vm27497_vm13, %v19970_v54, %v19971_v38  ;;  %v19975_v50 = vunpack.i.l.bf16 %v19974_v29  ;;  %20183 = vrot.lane.b32.xlu0 %v22871_v53, %s27501_s28 }
 0x2b2   : > { %v23160_v19 = vadd.f32 %v5364_v28, %v23051_v25  ;;  %v23163_v58 = vadd.f32 %v5384_v8, %v23054_v7  ;;  %v23165_v10 = vpop.f32.mrf.mxu1  ;;  %v7184_v25 = vsel %vm27497_vm13, %v19966_v17, %v19970_v54  ;;  %v19979_v7 = vpop.permute.xlu0 %19978  ;;  %v19976_v8 = vunpack.i.h.bf16 %v19974_v29  ;;  %20173 = vrot.lane.b32.xlu1 %v22932_v26, %s27501_s28 }
 0x2b3   : > { %27587 = vst [vmem:[#allocation78_spill] sm:$0xff] %v23165_v10  ;;  %v19980_v17 = vunpack.i.l.bf16 %v19979_v7  ;;  %v7186_v29 = vsel %vm27497_vm13, %v19971_v38, %v19975_v50 }
 0x2b4   : > { %v23167_v27 = vpop.f32.mrf.mxu0 }
 0x2b5   : > { %27588 = vst [vmem:[#allocation79_spill] sm:$0xff] %v23167_v27  ;;  %18766 = vmatmul.msk.f32.vlgmr.msrb.gmra.mxu1 %vm349_vm1, %v23067_v44 }
 0x2b6   : > { %18767 = vmatmul.msk.f32.vlgmr.msrb.gmra.mxu2 %vm349_vm1, %v23067_v44  ;;  %18768 = vmatmul.msk.f32.vlgmr.msrb.gmra.mxu3 %vm349_vm1, %v23067_v44 }
 0x2b7   : > { %18770 = vmatmul.msk.f32.vlgmr.msra.gmra.mxu0 %vm349_vm1, %v23172_v22  ;;  %7327 = vmatpush.msrb.mxu1 %v7182_v11  ;;  %v19981_v11 = vunpack.i.h.bf16 %v19979_v7 }
 0x2b8   : > { %7347 = vmatpush.msrb.mxu2 %v7183_v18  ;;  %7367 = vmatpush.msrb.mxu3 %v7184_v25  ;;  %v19984_v18 = vpop.permute.xlu1 %19983 }
 0x2b9   : > { %v5444_v28 = vpop.f32.mrf.mxu2  ;;  %v5464_v40 = vpop.f32.mrf.mxu3  ;;  %7387 = vmatpush.msra.mxu0 %v7185_v24  ;;  %v7189_v55 = vsel %vm27497_vm13, %v19980_v17, %v19981_v11  ;;  %v19985_v7 = vunpack.i.l.bf16 %v19984_v18 }
 0x2ba   : > { %v23189_v10 = vadd.f32 %v5444_v28, %v23084_v52  ;;  %v23192_v44 = vadd.f32 %v5464_v40, %v23087_v42  ;;  %v23194_v54 = vpop.f32.mrf.mxu1  ;;  %v7175_v24 = vpop.permute.xlu2 %7174  ;;  %v7187_v52 = vsel %vm27497_vm13, %v19975_v50, %v19976_v8  ;;  %v7188_v42 = vsel %vm27497_vm13, %v19976_v8, %v19980_v17 }
 0x2bb   : > { %27589 = vst [vmem:[#allocation80_spill] sm:$0xff] %v23194_v54  ;;  %v19989_v38 = vpop.permute.xlu0 %19988  ;;  %v19986_v40 = vunpack.i.h.bf16 %v19984_v18  ;;  %v7190_v18 = vsel %vm27497_vm13, %v19981_v11, %v19985_v7 }
 0x2bc   : > { %v23198_v25 = vpop.f32.mrf.mxu0  ;;  %v19990_v35 = vunpack.i.l.bf16 %v19989_v38 }
 0x2bd   : > { %27590 = vst [vmem:[#allocation81_spill] sm:$0xff] %v23198_v25  ;;  %18771 = vmatmul.msk.f32.vlgmr.msra.gmra.mxu1 %vm349_vm1, %v23172_v22 }
 0x2be   : > { %18772 = vmatmul.msk.f32.vlgmr.msra.gmra.mxu2 %vm349_vm1, %v23172_v22  ;;  %18773 = vmatmul.msk.f32.vlgmr.msra.gmra.mxu3 %vm349_vm1, %v23172_v22 }
 0x2bf   : > { %18774 = vmatmul.msk.f32.vlgmr.msrb.gmra.mxu0 %vm349_vm1, %v23172_v22  ;;  %7407 = vmatpush.msra.mxu1 %v7186_v29  ;;  %v19991_v29 = vunpack.i.h.bf16 %v19989_v38 }
 0x2c0   : > { %7427 = vmatpush.msra.mxu2 %v7187_v52  ;;  %7447 = vmatpush.msra.mxu3 %v7188_v42  ;;  %v19994_v42 = vpop.permute.xlu1 %19993 }
 0x2c1   : > { %v5609_v28 = vpop.f32.mrf.mxu2  ;;  %v5629_v50 = vpop.f32.mrf.mxu3  ;;  %7467 = vmatpush.msrb.mxu0 %v7189_v55  ;;  %v7615_v55 = vsel %vm27500_vm14, %v19990_v35, %v19991_v29  ;;  %v19995_v11 = vunpack.i.l.bf16 %v19994_v42 }
 0x2c2   : > { %v23215_v8 = vadd.f32 %v5609_v28, %v23112_v15  ;;  %v23218_v17 = vadd.f32 %v5629_v50, %v23115_v16  ;;  %v23220_v25 = vpop.f32.mrf.mxu1  ;;  %v7192_v15 = vsel %vm27497_vm13, %v19986_v40, %v7175_v24  ;;  %v7191_v16 = vsel %vm27497_vm13, %v19985_v7, %v19986_v40  ;;  %v19999_v38 = vpop.permute.xlu2 %19998 }
 0x2c3   : > { %27591 = vst [vmem:[#allocation82_spill] sm:$0xff] %v23220_v25  ;;  %v19996_v7 = vunpack.i.h.bf16 %v19994_v42  ;;  %v20000_v50 = vunpack.i.l.bf16 %v19999_v38  ;;  %v7616_v42 = vsel %vm27500_vm14, %v19991_v29, %v19995_v11  ;;  %vm27503_vm13 = vcmask 973824  }
 0x2c4   : > { %v23224_v52 = vpop.f32.mrf.mxu0 }
 0x2c5   : > { %27592 = vst [vmem:[#allocation83_spill] sm:$0xff] %v23224_v52  ;;  %18775 = vmatmul.msk.f32.vlgmr.msrb.gmra.mxu1 %vm349_vm1, %v23172_v22  ;;  %v7617_v56 = vsel %vm27500_vm14, %v19995_v11, %v19996_v7 }
 0x2c6   : > { %18776 = vmatmul.msk.f32.vlgmr.msrb.gmra.mxu2 %vm349_vm1, %v23172_v22  ;;  %18777 = vmatmul.msk.f32.vlgmr.msrb.gmra.mxu3 %vm349_vm1, %v23172_v22 }
 0x2c7   : > { %18778 = vmatmul.msk.f32.vlgmr.msra.gmra.mxu0 %vm349_vm1, %v23172_v22  ;;  %7487 = vmatpush.msrb.mxu1 %v7190_v18  ;;  %v20001_v18 = vunpack.i.h.bf16 %v19999_v38 }
 0x2c8   : > { %7507 = vmatpush.msrb.mxu2 %v7191_v16  ;;  %7527 = vmatpush.msrb.mxu3 %v7192_v15  ;;  %v20004_v16 = vpop.permute.xlu0 %20003 }
 0x2c9   : > { %v5689_v28 = vpop.f32.mrf.mxu2  ;;  %v5709_v24 = vpop.f32.mrf.mxu3  ;;  %7664 = vmatpush.msra.mxu0 %v7615_v55  ;;  %v20005_v29 = vunpack.i.l.bf16 %v20004_v16 }
 0x2ca   : > { %v23241_v40 = vadd.f32 %v5689_v28, %v23136_v60  ;;  %v23244_v35 = vadd.f32 %v5709_v24, %v23139_v59  ;;  %v23246_v52 = vpop.f32.mrf.mxu1  ;;  %v7618_v60 = vsel %vm27500_vm14, %v19996_v7, %v20000_v50  ;;  %v7619_v59 = vsel %vm27500_vm14, %v20000_v50, %v20001_v18  ;;  %v20009_v55 = vpop.permute.xlu1 %20008 }
 0x2cb   : > { %27593 = vst [vmem:[#allocation84_spill] sm:$0xff] %v23246_v52  ;;  %v20010_v28 = vunpack.i.l.bf16 %v20009_v55  ;;  %v20006_v24 = vunpack.i.h.bf16 %v20004_v16  ;;  %v23279_v16 = vld [vmem:[%s27468_s1 + $0x90] sm:$0xff]  ;;  %v7620_v26 = vsel %vm27500_vm14, %v20001_v18, %v20005_v29  ;;  %v21016_v18 = vld [vmem:[%s21211_s13 + $0x28] sm:$0xff] }
 0x2cc   : > { %v23250_v15 = vpop.f32.mrf.mxu0 }
 0x2cd   : > { %27594 = vst [vmem:[#allocation85_spill] sm:$0xff] %v23250_v15  ;;  %18779 = vmatmul.msk.f32.vlgmr.msra.gmra.mxu1 %vm349_vm1, %v23172_v22 }
 0x2ce   : > { %18780 = vmatmul.msk.f32.vlgmr.msra.gmra.mxu2 %vm349_vm1, %v23172_v22  ;;  %18781 = vmatmul.msk.f32.vlgmr.msra.gmra.mxu3 %vm349_vm1, %v23172_v22 }
 0x2cf   : > { %18782 = vmatmul.msk.f32.vlgmr.msrb.gmra.mxu0 %vm349_vm1, %v23172_v22  ;;  %7684 = vmatpush.msra.mxu1 %v7616_v42  ;;  %v20011_v42 = vunpack.i.h.bf16 %v20009_v55 }
 0x2d0   : > { %7704 = vmatpush.msra.mxu2 %v7617_v56  ;;  %7724 = vmatpush.msra.mxu3 %v7618_v60  ;;  %v20014_v60 = vpop.permute.xlu2 %20013  ;;  %v20019_v55 = vpop.permute.xlu0 %20018 }
 0x2d1   : > { %v5769_v38 = vpop.f32.mrf.mxu2  ;;  %v5789_v11 = vpop.f32.mrf.mxu3  ;;  %7744 = vmatpush.msrb.mxu0 %v7619_v59  ;;  %v7623_v59 = vsel %vm27500_vm14, %v20010_v28, %v20011_v42  ;;  %v20016_v52 = vunpack.i.h.bf16 %v20014_v60  ;;  %v20020_v25 = vunpack.i.l.bf16 %v20019_v55 }
 0x2d2   : > { %v23267_v7 = vadd.f32 %v5769_v38, %v23160_v19  ;;  %v23270_v50 = vadd.f32 %v5789_v11, %v23163_v58  ;;  %v23272_v15 = vpop.f32.mrf.mxu1  ;;  %v7621_v19 = vsel %vm27500_vm14, %v20005_v29, %v20006_v24  ;;  %v7622_v58 = vsel %vm27500_vm14, %v20006_v24, %v20010_v28  ;;  %v21017_v38 = vld [vmem:[%s21211_s13 + $0x30] sm:$0xff] }
 0x2d3   : > { %27595 = vst [vmem:[#allocation86_spill] sm:$0xff] %v23272_v15  ;;  %v23295_v11 = vpack.i.bf16 %v21017_v38, %v21016_v18  ;;  %v20015_v29 = vunpack.i.l.bf16 %v20014_v60  ;;  %v20021_v18 = vunpack.i.h.bf16 %v20019_v55  ;;  %v20024_v60 = vpop.permute.xlu1 %20023 }
 0x2d4   : > { %v23274_v56 = vpop.f32.mrf.mxu0  ;;  %v20026_v38 = vunpack.i.h.bf16 %v20024_v60 }
 0x2d5   : > { %27596 = vst [vmem:[#allocation87_spill] sm:$0xff] %v23274_v56  ;;  %18783 = vmatmul.msk.f32.vlgmr.msrb.gmra.mxu1 %vm349_vm1, %v23172_v22  ;;  %20148 = vrot.lane.b32.xlu2 %v23295_v11, %s27501_s28 }
 0x2d6   : > { %18784 = vmatmul.msk.f32.vlgmr.msrb.gmra.mxu2 %vm349_vm1, %v23172_v22  ;;  %18785 = vmatmul.msk.f32.vlgmr.msrb.gmra.mxu3 %vm349_vm1, %v23172_v22 }
 0x2d7   : > { %18787 = vmatmul.msk.f32.vlgmr.msra.gmra.mxu0 %vm349_vm1, %v23279_v16  ;;  %7764 = vmatpush.msrb.mxu1 %v7620_v26 }
 0x2d8   : > { %7784 = vmatpush.msrb.mxu2 %v7621_v19  ;;  %7804 = vmatpush.msrb.mxu3 %v7622_v58  ;;  %v7624_v58 = vsel %vm27500_vm14, %v20011_v42, %v20015_v29  ;;  %v20029_v42 = vpop.permute.xlu2 %20028 }
 0x2d9   : > { %v5849_v24 = vpop.f32.mrf.mxu2  ;;  %v5869_v15 = vpop.f32.mrf.mxu3  ;;  %7824 = vmatpush.msra.mxu0 %v7623_v59  ;;  %20188 = vrot.lane.b32.xlu1 %v23295_v11, %s21118_s18 }
 0x2da   : > { %v23300_v22 = vadd.f32 %v5849_v24, %v23189_v10  ;;  %v23303_v28 = vadd.f32 %v5869_v15, %v23192_v44  ;;  %v23305_v26 = vpop.f32.mrf.mxu1  ;;  %v7625_v10 = vsel %vm27500_vm14, %v20015_v29, %v20016_v52  ;;  %v7626_v44 = vsel %vm27500_vm14, %v20016_v52, %v20020_v25 }
 0x2db   : > { %27597 = vst [vmem:[#allocation88_spill] sm:$0xff] %v23305_v26  ;;  %v7627_v15 = vsel %vm27500_vm14, %v20020_v25, %v20021_v18  ;;  %v20025_v52 = vunpack.i.l.bf16 %v20024_v60  ;;  %v20034_v60 = vpop.permute.xlu0 %20033 }
 0x2dc   : > { %v23309_v19 = vpop.f32.mrf.mxu0  ;;  %v20036_v54 = vunpack.i.h.bf16 %v20034_v60 }
 0x2dd   : > { %27598 = vst [vmem:[#allocation89_spill] sm:$0xff] %v23309_v19  ;;  %18788 = vmatmul.msk.f32.vlgmr.msra.gmra.mxu1 %vm349_vm1, %v23279_v16  ;;  %v7628_v53 = vsel %vm27500_vm14, %v20021_v18, %v20025_v52  ;;  %v20035_v18 = vunpack.i.l.bf16 %v20034_v60 }
 0x2de   : > { %18789 = vmatmul.msk.f32.vlgmr.msra.gmra.mxu2 %vm349_vm1, %v23279_v16  ;;  %18790 = vmatmul.msk.f32.vlgmr.msra.gmra.mxu3 %vm349_vm1, %v23279_v16 }
 0x2df   : > { %18791 = vmatmul.msk.f32.vlgmr.msrb.gmra.mxu0 %vm349_vm1, %v23279_v16  ;;  %7844 = vmatpush.msra.mxu1 %v7624_v58  ;;  %v20031_v58 = vunpack.i.h.bf16 %v20029_v42 }
 0x2e0   : > { %7864 = vmatpush.msra.mxu2 %v7625_v10  ;;  %7884 = vmatpush.msra.mxu3 %v7626_v44  ;;  %v20030_v10 = vunpack.i.l.bf16 %v20029_v42  ;;  %v21018_v42 = vld [vmem:[%s21211_s13 + $0x58] sm:$0xff] }
 0x2e1   : > { %v6014_v59 = vpop.f32.mrf.mxu2  ;;  %v6034_v55 = vpop.f32.mrf.mxu3  ;;  %7904 = vmatpush.msrb.mxu0 %v7627_v15 }
 0x2e2   : > { %v23326_v29 = vadd.f32 %v6014_v59, %v23215_v8  ;;  %v23329_v25 = vadd.f32 %v6034_v55, %v23218_v17  ;;  %v23331_v24 = vpop.f32.mrf.mxu1  ;;  %v7629_v8 = vsel %vm27500_vm14, %v20025_v52, %v20026_v38  ;;  %v8020_v17 = vsel %vm27503_vm13, %v20030_v10, %v20031_v58  ;;  %v20039_v15 = vpop.permute.xlu1 %20038  ;;  %v21019_v59 = vld [vmem:[%s21211_s13 + $0x60] sm:$0xff] }
 0x2e3   : > { %27599 = vst [vmem:[#allocation90_spill] sm:$0xff] %v23331_v24  ;;  %v23346_v55 = vpack.i.bf16 %v21019_v59, %v21018_v42  ;;  %v21021_v24 = vld [vmem:[%s21211_s13 + $0x48] sm:$0xff]  ;;  %v20040_v10 = vunpack.i.l.bf16 %v20039_v15  ;;  %v21023_v59 = vld [vmem:[%s21211_s13 + $0x90] sm:$0xff]  ;;  %vm27506_vm14 = vcmask 965632  }
 0x2e4   : > { %v23333_v44 = vpop.f32.mrf.mxu0 }
 0x2e5   : > { %27600 = vst [vmem:[#allocation91_spill] sm:$0xff] %v23333_v44  ;;  %18792 = vmatmul.msk.f32.vlgmr.msrb.gmra.mxu1 %vm349_vm1, %v23279_v16  ;;  %v21020_v44 = vld [vmem:[%s21211_s13 + $0x50] sm:$0xff]  ;;  %20163 = vrot.lane.b32.xlu2 %v23346_v55, %s27501_s28 }
 0x2e6   : > { %18793 = vmatmul.msk.f32.vlgmr.msrb.gmra.mxu2 %vm349_vm1, %v23279_v16  ;;  %18794 = vmatmul.msk.f32.vlgmr.msrb.gmra.mxu3 %vm349_vm1, %v23279_v16  ;;  %v23350_v19 = vpack.i.bf16 %v21020_v44, %v21021_v24  ;;  %v20041_v44 = vunpack.i.h.bf16 %v20039_v15  ;;  %v21022_v15 = vld [vmem:[%s21211_s13 + $0x88] sm:$0xff] }
 0x2e7   : > { %18795 = vmatmul.msk.f32.vlgmr.msra.gmra.mxu0 %vm349_vm1, %v23279_v16  ;;  %7964 = vmatpush.msrb.mxu3 %v20026_v38 }
 0x2e8   : > { %7924 = vmatpush.msrb.mxu1 %v7628_v53  ;;  %7944 = vmatpush.msrb.mxu2 %v7629_v8  ;;  %v8021_v53 = vsel %vm27503_vm13, %v20031_v58, %v20035_v18  ;;  %v8024_v8 = vsel %vm27503_vm13, %v20040_v10, %v20041_v44  ;;  %v23382_v58 = vpack.i.bf16 %v21023_v59, %v21022_v15 }
 0x2e9   : > { %v6094_v52 = vpop.f32.mrf.mxu2  ;;  %v6114_v26 = vpop.f32.mrf.mxu3  ;;  %8069 = vmatpush.msra.mxu0 %v8020_v17  ;;  %20198 = vrot.lane.b32.xlu0 %v23350_v19, %s21118_s18 }
 0x2ea   : > { %v23357_v42 = vadd.f32 %v6094_v52, %v23241_v40  ;;  %v23360_v24 = vadd.f32 %v6114_v26, %v23244_v35  ;;  %v23362_v38 = vpop.f32.mrf.mxu1  ;;  %20203 = vrot.lane.b32.xlu1 %v23346_v55, %s21118_s18  ;;  %v20044_v40 = vpop.permute.xlu2 %20043  ;;  %v8022_v35 = vsel %vm27503_vm13, %v20035_v18, %v20036_v54  ;;  %v8023_v26 = vsel %vm27503_vm13, %v20036_v54, %v20040_v10 }
 0x2eb   : > { %27601 = vst [vmem:[#allocation92_spill] sm:$0xff] %v23362_v38  ;;  %v20049_v17 = vpop.permute.xlu0 %20048  ;;  %v20045_v54 = vunpack.i.l.bf16 %v20044_v40 }
 0x2ec   : > { %v23368_v60 = vpop.f32.mrf.mxu0  ;;  %v20050_v38 = vunpack.i.l.bf16 %v20049_v17 }
 0x2ed   : > { %27602 = vst [vmem:[#allocation93_spill] sm:$0xff] %v23368_v60  ;;  %18796 = vmatmul.msk.f32.vlgmr.msra.gmra.mxu1 %vm349_vm1, %v23279_v16  ;;  %v20046_v60 = vunpack.i.h.bf16 %v20044_v40  ;;  %20178 = vrot.lane.b32.xlu2 %v23382_v58, %s27501_s28  ;;  %v23403_v40 = vld [vmem:[%s27468_s1 + $0x98] sm:$0xff]  ;;  %s27507_s28 = smov 83  }
 0x2ee   : > { %18797 = vmatmul.msk.f32.vlgmr.msra.gmra.mxu2 %vm349_vm1, %v23279_v16  ;;  %18798 = vmatmul.msk.f32.vlgmr.msra.gmra.mxu3 %vm349_vm1, %v23279_v16 }
 0x2ef   : > { %18799 = vmatmul.msk.f32.vlgmr.msrb.gmra.mxu0 %vm349_vm1, %v23279_v16  ;;  %8089 = vmatpush.msra.mxu1 %v8021_v53 }
 0x2f0   : > { %8109 = vmatpush.msra.mxu2 %v8022_v35  ;;  %8129 = vmatpush.msra.mxu3 %v8023_v26  ;;  %v20051_v35 = vunpack.i.h.bf16 %v20049_v17  ;;  %v20054_v17 = vpop.permute.xlu1 %20053 }
 0x2f1   : > { %v6174_v18 = vpop.f32.mrf.mxu2  ;;  %v6194_v52 = vpop.f32.mrf.mxu3  ;;  %8149 = vmatpush.msrb.mxu0 %v8024_v8  ;;  %v8027_v8 = vsel %vm27503_vm13, %v20046_v60, %v20050_v38  ;;  %v20056_v1 = vunpack.i.h.bf16 %v20054_v17 }
 0x2f2   : > { %v23389_v10 = vadd.f32 %v6174_v18, %v23267_v7  ;;  %v23392_v15 = vadd.f32 %v6194_v52, %v23270_v50  ;;  %v23394_v53 = vpop.f32.mrf.mxu1  ;;  %20218 = vrot.lane.b32.xlu1 %v23382_v58, %s21118_s18  ;;  %v8025_v7 = vsel %vm27503_vm13, %v20041_v44, %v20045_v54  ;;  %v8026_v50 = vsel %vm27503_vm13, %v20045_v54, %v20046_v60  ;;  %v20059_v18 = vpop.permute.xlu2 %20058  ;;  %v21024_v52 = vld [vmem:[%s21211_s13 + $0x78] sm:$0xff] }
 0x2f3   : > { %27603 = vst [vmem:[#allocation94_spill] sm:$0xff] %v23394_v53  ;;  %v8028_v59 = vsel %vm27503_vm13, %v20050_v38, %v20051_v35  ;;  %v21025_v53 = vld [vmem:[%s21211_s13 + $0x80] sm:$0xff]  ;;  %v20055_v60 = vunpack.i.l.bf16 %v20054_v17  ;;  %v20064_v17 = vpop.permute.xlu0 %20063 }
 0x2f4   : > { %v23398_v26 = vpop.f32.mrf.mxu0  ;;  %v23417_v44 = vpack.i.bf16 %v21025_v53, %v21024_v52 }
 0x2f5   : > { %27604 = vst [vmem:[#allocation95_spill] sm:$0xff] %v23398_v26  ;;  %18800 = vmatmul.msk.f32.vlgmr.msrb.gmra.mxu1 %vm349_vm1, %v23279_v16  ;;  %v8030_v52 = vsel %vm27503_vm13, %v20055_v60, %v20056_v1 }
 0x2f6   : > { %18801 = vmatmul.msk.f32.vlgmr.msrb.gmra.mxu2 %vm349_vm1, %v23279_v16  ;;  %18802 = vmatmul.msk.f32.vlgmr.msrb.gmra.mxu3 %vm349_vm1, %v23279_v16  ;;  %v20060_v16 = vunpack.i.l.bf16 %v20059_v18 }
 0x2f7   : > { %18804 = vmatmul.msk.f32.vlgmr.msra.gmra.mxu0 %vm349_vm1, %v23403_v40  ;;  %8169 = vmatpush.msrb.mxu1 %v8025_v7 }
 0x2f8   : > { %8189 = vmatpush.msrb.mxu2 %v8026_v50  ;;  %8209 = vmatpush.msrb.mxu3 %v8027_v8  ;;  %v20061_v50 = vunpack.i.h.bf16 %v20059_v18  ;;  %v8031_v26 = vsel %vm27503_vm13, %v20056_v1, %v20060_v16 }
 0x2f9   : > { %v6254_v54 = vpop.f32.mrf.mxu2  ;;  %v6274_v45 = vpop.f32.mrf.mxu3  ;;  %8229 = vmatpush.msra.mxu0 %v8028_v59  ;;  %20213 = vrot.lane.b32.xlu0 %v23417_v44, %s21118_s18  ;;  %v8029_v59 = vsel %vm27503_vm13, %v20051_v35, %v20055_v60 }
 0x2fa   : > { %v23424_v38 = vadd.f32 %v6254_v54, %v23300_v22  ;;  %v23427_v53 = vadd.f32 %v6274_v45, %v23303_v28  ;;  %v23429_v7 = vpop.f32.mrf.mxu1  ;;  %v8032_v45 = vsel %vm27503_vm13, %v20060_v16, %v20061_v50  ;;  %v21026_v22 = vld [vmem:[%s21211_s13 + $0x40] sm:$0xff]  ;;  %v21027_v28 = vld [vmem:[%s21211_s13 + $0x38] sm:$0xff]  ;;  %v20069_v35 = vpop.permute.xlu1 %20068  ;;  %v20066_v54 = vunpack.i.h.bf16 %v20064_v17 }
 0x2fb   : > { %27605 = vst [vmem:[#allocation96_spill] sm:$0xff] %v23429_v7  ;;  %v23445_v18 = vpack.i.bf16 %v21026_v22, %v21027_v28 }
 0x2fc   : > { %v23431_v8 = vpop.f32.mrf.mxu0 }
 0x2fd   : > { %27606 = vst [vmem:[#allocation97_spill] sm:$0xff] %v23431_v8  ;;  %18805 = vmatmul.msk.f32.vlgmr.msra.gmra.mxu1 %vm349_vm1, %v23403_v40  ;;  %v20065_v8 = vunpack.i.l.bf16 %v20064_v17  ;;  %20193 = vrot.lane.b32.xlu2 %v23445_v18, %s21118_s18 }
 0x2fe   : > { %18806 = vmatmul.msk.f32.vlgmr.msra.gmra.mxu2 %vm349_vm1, %v23403_v40  ;;  %18807 = vmatmul.msk.f32.vlgmr.msra.gmra.mxu3 %vm349_vm1, %v23403_v40 }
 0x2ff   : > { %18808 = vmatmul.msk.f32.vlgmr.msrb.gmra.mxu0 %vm349_vm1, %v23403_v40  ;;  %8249 = vmatpush.msra.mxu1 %v8029_v59  ;;  %v20071_v59 = vunpack.i.h.bf16 %v20069_v35 }
 0x300   : > { %8269 = vmatpush.msra.mxu2 %v8030_v52  ;;  %8289 = vmatpush.msra.mxu3 %v8031_v26  ;;  %v20070_v26 = vunpack.i.l.bf16 %v20069_v35  ;;  %v8034_v52 = vsel %vm27503_vm13, %v20065_v8, %v20066_v54  ;;  %v20079_v35 = vpop.permute.xlu0 %20078 }
 0x301   : > { %v6419_v1 = vpop.f32.mrf.mxu2  ;;  %v6439_v60 = vpop.f32.mrf.mxu3  ;;  %8309 = vmatpush.msrb.mxu0 %v8032_v45  ;;  %20228 = vrot.lane.b32.xlu0 %v23295_v11, %s27504_s26  ;;  %v20080_v56 = vunpack.i.l.bf16 %v20079_v35 }
 0x302   : > { %v23452_v16 = vadd.f32 %v6419_v1, %v23326_v29  ;;  %v23455_v22 = vadd.f32 %v6439_v60, %v23329_v25  ;;  %v23457_v28 = vpop.f32.mrf.mxu1  ;;  %20233 = vrot.lane.b32.xlu1 %v23445_v18, %s27504_s26  ;;  %v20074_v29 = vpop.permute.xlu2 %20073  ;;  %v8033_v25 = vsel %vm27503_vm13, %v20061_v50, %v20065_v8  ;;  %v8425_v45 = vsel %vm27506_vm14, %v20070_v26, %v20071_v59  ;;  %v21028_v1 = vld [vmem:[%s21211_s13 + $0x70] sm:$0xff]  ;;  %v21029_v60 = vld [vmem:[%s21211_s13 + $0x68] sm:$0xff] }
 0x303   : > { %27607 = vst [vmem:[#allocation98_spill] sm:$0xff] %v23457_v28  ;;  %v20075_v50 = vunpack.i.l.bf16 %v20074_v29  ;;  %v20076_v7 = vunpack.i.h.bf16 %v20074_v29  ;;  %vm27509_vm13 = vcmask 834560  }
 0x304   : > { %v23463_v17 = vpop.f32.mrf.mxu0 }
 0x305   : > { %27608 = vst [vmem:[#allocation99_spill] sm:$0xff] %v23463_v17  ;;  %18809 = vmatmul.msk.f32.vlgmr.msrb.gmra.mxu1 %vm349_vm1, %v23403_v40  ;;  %v23476_v17 = vpack.i.bf16 %v21028_v1, %v21029_v60 }
 0x306   : > { %18810 = vmatmul.msk.f32.vlgmr.msrb.gmra.mxu2 %vm349_vm1, %v23403_v40  ;;  %18811 = vmatmul.msk.f32.vlgmr.msrb.gmra.mxu3 %vm349_vm1, %v23403_v40 }
 0x307   : > { %18812 = vmatmul.msk.f32.vlgmr.msra.gmra.mxu0 %vm349_vm1, %v23403_v40  ;;  %8369 = vmatpush.msrb.mxu3 %v20066_v54  ;;  %v20081_v54 = vunpack.i.h.bf16 %v20079_v35 }
 0x308   : > { %8329 = vmatpush.msrb.mxu1 %v8033_v25  ;;  %8349 = vmatpush.msrb.mxu2 %v8034_v52  ;;  %v8426_v25 = vsel %vm27506_vm14, %v20071_v59, %v20075_v50  ;;  %v20084_v52 = vpop.permute.xlu1 %20083 }
 0x309   : > { %v6499_v8 = vpop.f32.mrf.mxu2  ;;  %v6519_v28 = vpop.f32.mrf.mxu3  ;;  %8474 = vmatpush.msra.mxu0 %v8425_v45  ;;  %20208 = vrot.lane.b32.xlu2 %v23476_v17, %s21118_s18  ;;  %v20085_v59 = vunpack.i.l.bf16 %v20084_v52 }
 0x30a   : > { %v23483_v26 = vadd.f32 %v6499_v8, %v23357_v42  ;;  %v23486_v1 = vadd.f32 %v6519_v28, %v23360_v24  ;;  %v23488_v60 = vpop.f32.mrf.mxu1  ;;  %20248 = vrot.lane.b32.xlu1 %v23476_v17, %s27504_s26  ;;  %20243 = vrot.lane.b32.xlu0 %v23346_v55, %s27504_s26  ;;  %v8427_v42 = vsel %vm27506_vm14, %v20075_v50, %v20076_v7  ;;  %v20089_v45 = vpop.permute.xlu2 %20088 }
 0x30b   : > { %27609 = vst [vmem:[#allocation100_spill] sm:$0xff] %v23488_v60  ;;  %v8428_v24 = vsel %vm27506_vm14, %v20076_v7, %v20080_v56  ;;  %v8429_v28 = vsel %vm27506_vm14, %v20080_v56, %v20081_v54  ;;  %v20086_v7 = vunpack.i.h.bf16 %v20084_v52  ;;  %v20090_v8 = vunpack.i.l.bf16 %v20089_v45  ;;  %v23523_v52 = vld [vmem:[%s27468_s1 + $0xa0] sm:$0xff] }
 0x30c   : > { %v23494_v29 = vpop.f32.mrf.mxu0  ;;  %v20091_v27 = vunpack.i.h.bf16 %v20089_v45 }
 0x30d   : > { %27610 = vst [vmem:[#allocation101_spill] sm:$0xff] %v23494_v29  ;;  %18813 = vmatmul.msk.f32.vlgmr.msra.gmra.mxu1 %vm349_vm1, %v23403_v40 }
 0x30e   : > { %18814 = vmatmul.msk.f32.vlgmr.msra.gmra.mxu2 %vm349_vm1, %v23403_v40  ;;  %18815 = vmatmul.msk.f32.vlgmr.msra.gmra.mxu3 %vm349_vm1, %v23403_v40 }
 0x30f   : > { %18816 = vmatmul.msk.f32.vlgmr.msrb.gmra.mxu0 %vm349_vm1, %v23403_v40  ;;  %8494 = vmatpush.msra.mxu1 %v8426_v25 }
 0x310   : > { %8514 = vmatpush.msra.mxu2 %v8427_v42  ;;  %8534 = vmatpush.msra.mxu3 %v8428_v24  ;;  %v8432_v42 = vsel %vm27506_vm14, %v20086_v7, %v20090_v8  ;;  %v20094_v24 = vpop.permute.xlu0 %20093  ;;  %v20099_v45 = vpop.permute.xlu1 %20098 }
 0x311   : > { %v6579_v35 = vpop.f32.mrf.mxu2  ;;  %v6599_v50 = vpop.f32.mrf.mxu3  ;;  %8554 = vmatpush.msrb.mxu0 %v8429_v28  ;;  %v8433_v28 = vsel %vm27506_vm14, %v20090_v8, %v20091_v27  ;;  %v20096_v6 = vunpack.i.h.bf16 %v20094_v24 }
 0x312   : > { %v23509_v29 = vadd.f32 %v6579_v35, %v23389_v10  ;;  %v23512_v60 = vadd.f32 %v6599_v50, %v23392_v15  ;;  %v23514_v56 = vpop.f32.mrf.mxu1  ;;  %20258 = vrot.lane.b32.xlu0 %v23382_v58, %s27504_s26  ;;  %v8430_v10 = vsel %vm27506_vm14, %v20081_v54, %v20085_v59  ;;  %v8431_v15 = vsel %vm27506_vm14, %v20085_v59, %v20086_v7  ;;  %v21030_v35 = vld [vmem:[%s21211_s13 + $0x98] sm:$0xff]  ;;  %v21031_v50 = vld [vmem:[%s21211_s13 + $0xa0] sm:$0xff] }
 0x313   : > { %27611 = vst [vmem:[#allocation102_spill] sm:$0xff] %v23514_v56  ;;  %v23537_v54 = vpack.i.bf16 %v21031_v50, %v21030_v35  ;;  %v20095_v59 = vunpack.i.l.bf16 %v20094_v24  ;;  %v20104_v24 = vpop.permute.xlu2 %20103 }
 0x314   : > { %v23518_v25 = vpop.f32.mrf.mxu0  ;;  %v20106_v50 = vunpack.i.h.bf16 %v20104_v24 }
 0x315   : > { %27612 = vst [vmem:[#allocation103_spill] sm:$0xff] %v23518_v25  ;;  %18817 = vmatmul.msk.f32.vlgmr.msrb.gmra.mxu1 %vm349_vm1, %v23403_v40  ;;  %v20100_v25 = vunpack.i.l.bf16 %v20099_v45  ;;  %20223 = vrot.lane.b32.xlu2 %v23537_v54, %s21118_s18 }
 0x316   : > { %18818 = vmatmul.msk.f32.vlgmr.msrb.gmra.mxu2 %vm349_vm1, %v23403_v40  ;;  %18819 = vmatmul.msk.f32.vlgmr.msrb.gmra.mxu3 %vm349_vm1, %v23403_v40 }
 0x317   : > { %18821 = vmatmul.msk.f32.vlgmr.msra.gmra.mxu0 %vm349_vm1, %v23523_v52  ;;  %8574 = vmatpush.msrb.mxu1 %v8430_v10  ;;  %v20101_v10 = vunpack.i.h.bf16 %v20099_v45 }
 0x318   : > { %8594 = vmatpush.msrb.mxu2 %v8431_v15  ;;  %8614 = vmatpush.msrb.mxu3 %v8432_v42  ;;  %v8434_v42 = vsel %vm27506_vm14, %v20091_v27, %v20095_v59  ;;  %v20109_v27 = vpop.permute.xlu0 %20108 }
 0x319   : > { %v6659_v7 = vpop.f32.mrf.mxu2  ;;  %v6679_v56 = vpop.f32.mrf.mxu3  ;;  %8634 = vmatpush.msra.mxu0 %v8433_v28  ;;  %20263 = vrot.lane.b32.xlu1 %v23537_v54, %s27504_s26 }
 0x31a   : > { %v23544_v40 = vadd.f32 %v6659_v7, %v23424_v38  ;;  %v23547_v8 = vadd.f32 %v6679_v56, %v23427_v53  ;;  %v23549_v35 = vpop.f32.mrf.mxu1  ;;  %20273 = vrot.lane.b32.xlu0 %v23445_v18, %s27507_s28  ;;  %v8435_v38 = vsel %vm27506_vm14, %v20095_v59, %v20096_v6  ;;  %v8436_v53 = vsel %vm27506_vm14, %v20096_v6, %v20100_v25 }
 0x31b   : > { %27613 = vst [vmem:[#allocation104_spill] sm:$0xff] %v23549_v35  ;;  %v8437_v56 = vsel %vm27506_vm14, %v20100_v25, %v20101_v10  ;;  %v20105_v6 = vunpack.i.l.bf16 %v20104_v24 }
 0x31c   : > { %v23553_v15 = vpop.f32.mrf.mxu0 }
 0x31d   : > { %27614 = vst [vmem:[#allocation105_spill] sm:$0xff] %v23553_v15  ;;  %18822 = vmatmul.msk.f32.vlgmr.msra.gmra.mxu1 %vm349_vm1, %v23523_v52  ;;  %v20110_v15 = vunpack.i.l.bf16 %v20109_v27  ;;  %20238 = vrot.lane.b32.xlu2 %v23350_v19, %s27504_s26 }
 0x31e   : > { %18823 = vmatmul.msk.f32.vlgmr.msra.gmra.mxu2 %vm349_vm1, %v23523_v52  ;;  %18824 = vmatmul.msk.f32.vlgmr.msra.gmra.mxu3 %vm349_vm1, %v23523_v52 }
 0x31f   : > { %18825 = vmatmul.msk.f32.vlgmr.msrb.gmra.mxu0 %vm349_vm1, %v23523_v52  ;;  %8654 = vmatpush.msra.mxu1 %v8434_v42  ;;  %v20111_v42 = vunpack.i.h.bf16 %v20109_v27 }
 0x320   : > { %8674 = vmatpush.msra.mxu2 %v8435_v38  ;;  %8694 = vmatpush.msra.mxu3 %v8436_v53  ;;  %v20114_v38 = vpop.permute.xlu1 %20113 }
 0x321   : > { %v6861_v28 = vpop.f32.mrf.mxu2  ;;  %v6881_v45 = vpop.f32.mrf.mxu3  ;;  %8714 = vmatpush.msrb.mxu0 %v8437_v56  ;;  %v8830_v53 = vsel %vm27509_vm13, %v20110_v15, %v20111_v42  ;;  %v20115_v27 = vunpack.i.l.bf16 %v20114_v38  ;;  %20278 = vrot.lane.b32.xlu1 %v23350_v19, %s27507_s28 }
 0x322   : > { %v23570_v59 = vadd.f32 %v6861_v28, %v23452_v16  ;;  %v23573_v25 = vadd.f32 %v6881_v45, %v23455_v22  ;;  %v23575_v7 = vpop.f32.mrf.mxu1  ;;  %20288 = vrot.lane.b32.xlu0 %v23476_v17, %s27507_s28  ;;  %v8438_v16 = vsel %vm27506_vm14, %v20101_v10, %v20105_v6  ;;  %v8439_v22 = vsel %vm27506_vm14, %v20105_v6, %v20106_v50  ;;  %v20119_v56 = vpop.permute.xlu2 %20118 }
 0x323   : > { %27615 = vst [vmem:[#allocation106_spill] sm:$0xff] %v23575_v7  ;;  %v20116_v45 = vunpack.i.h.bf16 %v20114_v38  ;;  %v20120_v6 = vunpack.i.l.bf16 %v20119_v56  ;;  %v8831_v38 = vsel %vm27509_vm13, %v20111_v42, %v20115_v27  ;;  %vm27510_vm14 = vcmask 826368  }
 0x324   : > { %v23581_v24 = vpop.f32.mrf.mxu0 }
 0x325   : > { %27616 = vst [vmem:[#allocation107_spill] sm:$0xff] %v23581_v24  ;;  %18826 = vmatmul.msk.f32.vlgmr.msrb.gmra.mxu1 %vm349_vm1, %v23523_v52  ;;  %20253 = vrot.lane.b32.xlu2 %v23417_v44, %s27504_s26  ;;  %s21121_s26 = smov 82  }
 0x326   : > { %18827 = vmatmul.msk.f32.vlgmr.msrb.gmra.mxu2 %vm349_vm1, %v23523_v52  ;;  %18828 = vmatmul.msk.f32.vlgmr.msrb.gmra.mxu3 %vm349_vm1, %v23523_v52 }
 0x327   : > { %18829 = vmatmul.msk.f32.vlgmr.msra.gmra.mxu0 %vm349_vm1, %v23523_v52  ;;  %8774 = vmatpush.msrb.mxu3 %v20106_v50  ;;  %v20121_v50 = vunpack.i.h.bf16 %v20119_v56 }
 0x328   : > { %8734 = vmatpush.msrb.mxu1 %v8438_v16  ;;  %8754 = vmatpush.msrb.mxu2 %v8439_v22  ;;  %v20124_v22 = vpop.permute.xlu0 %20123  ;;  %v20129_v56 = vpop.permute.xlu1 %20128 }
 0x329   : > { %v6941_v28 = vpop.f32.mrf.mxu2  ;;  %v6961_v10 = vpop.f32.mrf.mxu3  ;;  %8879 = vmatpush.msra.mxu0 %v8830_v53  ;;  %v8833_v53 = vsel %vm27509_vm13, %v20116_v45, %v20120_v6  ;;  %v20125_v42 = vunpack.i.l.bf16 %v20124_v22  ;;  %20293 = vrot.lane.b32.xlu1 %v23417_v44, %s27507_s28 }
 0x32a   : > { %v23597_v24 = vadd.f32 %v6941_v28, %v23483_v26  ;;  %v23600_v15 = vadd.f32 %v6961_v10, %v23486_v1  ;;  %v23602_v7 = vpop.f32.mrf.mxu1  ;;  %v8832_v26 = vsel %vm27509_vm13, %v20115_v27, %v20116_v45  ;;  %v8834_v1 = vsel %vm27509_vm13, %v20120_v6, %v20121_v50  ;;  %20303 = vrot.lane.b32.xlu0 %v23537_v54, %s27507_s28 }
 0x32b   : > { %27617 = vst [vmem:[#allocation108_spill] sm:$0xff] %v23602_v7  ;;  %v20130_v10 = vunpack.i.l.bf16 %v20129_v56  ;;  %v20126_v45 = vunpack.i.h.bf16 %v20124_v22  ;;  %v23637_v22 = vld [vmem:[%s27468_s1 + $0xa8] sm:$0xff] }
 0x32c   : > { %v23606_v16 = vpop.f32.mrf.mxu0 }
 0x32d   : > { %27618 = vst [vmem:[#allocation109_spill] sm:$0xff] %v23606_v16  ;;  %18830 = vmatmul.msk.f32.vlgmr.msra.gmra.mxu1 %vm349_vm1, %v23523_v52  ;;  %20268 = vrot.lane.b32.xlu2 %v23295_v11, %s27507_s28 }
 0x32e   : > { %18831 = vmatmul.msk.f32.vlgmr.msra.gmra.mxu2 %vm349_vm1, %v23523_v52  ;;  %18832 = vmatmul.msk.f32.vlgmr.msra.gmra.mxu3 %vm349_vm1, %v23523_v52 }
 0x32f   : > { %18833 = vmatmul.msk.f32.vlgmr.msrb.gmra.mxu0 %vm349_vm1, %v23523_v52  ;;  %8899 = vmatpush.msra.mxu1 %v8831_v38  ;;  %v20131_v38 = vunpack.i.h.bf16 %v20129_v56 }
 0x330   : > { %8919 = vmatpush.msra.mxu2 %v8832_v26  ;;  %8939 = vmatpush.msra.mxu3 %v8833_v53  ;;  %v8835_v53 = vsel %vm27509_vm13, %v20121_v50, %v20125_v42 }
 0x331   : > { %v7021_v28 = vpop.f32.mrf.mxu2  ;;  %v7041_v27 = vpop.f32.mrf.mxu3  ;;  %8959 = vmatpush.msrb.mxu0 %v8834_v1  ;;  %v8838_v56 = vsel %vm27509_vm13, %v20130_v10, %v20131_v38  ;;  %20308 = vrot.lane.b32.xlu1 %v23295_v11, %s21121_s26 }
 0x332   : > { %v23623_v16 = vadd.f32 %v7021_v28, %v23509_v29  ;;  %v23626_v6 = vadd.f32 %v7041_v27, %v23512_v60  ;;  %v23628_v7 = vpop.f32.mrf.mxu1  ;;  %v8836_v60 = vsel %vm27509_vm13, %v20125_v42, %v20126_v45  ;;  %v8837_v29 = vsel %vm27509_vm13, %v20126_v45, %v20130_v10  ;;  %v20134_v1 = vpop.permute.xlu2 %20133  ;;  %20318 = vrot.lane.b32.xlu0 %v23350_v19, %s21121_s26 }
 0x333   : > { %27619 = vst [vmem:[#allocation110_spill] sm:$0xff] %v23628_v7  ;;  %v20139_v28 = vpop.permute.xlu0 %20138  ;;  %v20135_v50 = vunpack.i.l.bf16 %v20134_v1  ;;  %v20136_v45 = vunpack.i.h.bf16 %v20134_v1  ;;  %v20144_v1 = vpop.permute.xlu1 %20143 }
 0x334   : > { %v23632_v26 = vpop.f32.mrf.mxu0  ;;  %v20140_v7 = vunpack.i.l.bf16 %v20139_v28 }
 0x335   : > { %18834 = vmatmul.msk.f32.vlgmr.msrb.gmra.mxu1 %vm349_vm1, %v23523_v52  ;;  %20283 = vrot.lane.b32.xlu2 %v23346_v55, %s27507_s28  ;;  %v8840_v11 = vsel %vm27509_vm13, %v20135_v50, %v20136_v45 }
 0x336   : > { %18835 = vmatmul.msk.f32.vlgmr.msrb.gmra.mxu2 %vm349_vm1, %v23523_v52  ;;  %18836 = vmatmul.msk.f32.vlgmr.msrb.gmra.mxu3 %vm349_vm1, %v23523_v52 }
 0x337   : > { %18838 = vmatmul.msk.f32.vlgmr.msra.gmra.mxu0 %vm349_vm1, %v23637_v22  ;;  %8979 = vmatpush.msrb.mxu1 %v8835_v53  ;;  %v20141_v53 = vunpack.i.h.bf16 %v20139_v28 }
 0x338   : > { %8999 = vmatpush.msrb.mxu2 %v8836_v60  ;;  %9019 = vmatpush.msrb.mxu3 %v8837_v29  ;;  %v8839_v29 = vsel %vm27509_vm13, %v20131_v38, %v20135_v50  ;;  %v20146_v50 = vunpack.i.h.bf16 %v20144_v1 }
 0x339   : > { %v7101_v42 = vpop.f32.mrf.mxu2  ;;  %v7121_v27 = vpop.f32.mrf.mxu3  ;;  %9039 = vmatpush.msra.mxu0 %v8838_v56  ;;  %20323 = vrot.lane.b32.xlu1 %v23346_v55, %s21121_s26 }
 0x33a   : > { %v23654_v52 = vadd.f32 %v7101_v42, %v23544_v40  ;;  %v23657_v10 = vadd.f32 %v7121_v27, %v23547_v8  ;;  %v23659_v35 = vpop.f32.mrf.mxu1  ;;  %v8841_v40 = vsel %vm27509_vm13, %v20136_v45, %v20140_v7  ;;  %v8842_v8 = vsel %vm27509_vm13, %v20140_v7, %v20141_v53  ;;  %v20149_v38 = vpop.permute.xlu2 %20148  ;;  %20333 = vrot.lane.b32.xlu0 %v23417_v44, %s21121_s26 }
 0x33b   : > { %v20145_v42 = vunpack.i.l.bf16 %v20144_v1 }
 0x33c   : > { %v23663_v60 = vpop.f32.mrf.mxu0 }
 0x33d   : > { %27620 = vst [vmem:[#allocation111_spill] sm:$0xff] %v23663_v60  ;;  %18839 = vmatmul.msk.f32.vlgmr.msra.gmra.mxu1 %vm349_vm1, %v23637_v22  ;;  %v20150_v60 = vunpack.i.l.bf16 %v20149_v38  ;;  %20298 = vrot.lane.b32.xlu2 %v23382_v58, %s27507_s28  ;;  %s27876_s28 = smov 58  }
 0x33e   : > { %18840 = vmatmul.msk.f32.vlgmr.msra.gmra.mxu2 %vm349_vm1, %v23637_v22  ;;  %18841 = vmatmul.msk.f32.vlgmr.msra.gmra.mxu3 %vm349_vm1, %v23637_v22 }
 0x33f   : > { %18842 = vmatmul.msk.f32.vlgmr.msrb.gmra.mxu0 %vm349_vm1, %v23637_v22  ;;  %9059 = vmatpush.msra.mxu1 %v8839_v29  ;;  %v20151_v29 = vunpack.i.h.bf16 %v20149_v38 }
 0x340   : > { %9079 = vmatpush.msra.mxu2 %v8840_v11  ;;  %9099 = vmatpush.msra.mxu3 %v8841_v40  ;;  %v20154_v11 = vpop.permute.xlu0 %20153  ;;  %v20159_v40 = vpop.permute.xlu1 %20158 }
 0x341   : > { %v7269_v56 = vpop.f32.mrf.mxu2  ;;  %v7289_v28 = vpop.f32.mrf.mxu3  ;;  %9119 = vmatpush.msrb.mxu0 %v8842_v8  ;;  %v9235_v55 = vsel %vm27510_vm14, %v20150_v60, %v20151_v29  ;;  %v20155_v8 = vunpack.i.l.bf16 %v20154_v11  ;;  %20338 = vrot.lane.b32.xlu1 %v23382_v58, %s21121_s26 }
 0x342   : > { %v23680_v27 = vadd.f32 %v7269_v56, %v23570_v59  ;;  %v23683_v7 = vadd.f32 %v7289_v28, %v23573_v25  ;;  %v23685_v45 = vpop.f32.mrf.mxu1  ;;  %v8843_v59 = vsel %vm27509_vm13, %v20141_v53, %v20145_v42  ;;  %v8844_v25 = vsel %vm27509_vm13, %v20145_v42, %v20146_v50  ;;  %v20164_v19 = vpop.permute.xlu2 %20163 }
 0x343   : > { %v20160_v56 = vunpack.i.l.bf16 %v20159_v40  ;;  %v20156_v28 = vunpack.i.h.bf16 %v20154_v11  ;;  %v9236_v11 = vsel %vm27510_vm14, %v20151_v29, %v20155_v8  ;;  %v20165_v29 = vunpack.i.l.bf16 %v20164_v19 }
 0x344   : > { %v23691_v1 = vpop.f32.mrf.mxu0  ;;  %vm27511_vm13 = vcmask 818176  }
 0x345   : > { %27621 = vst [vmem:[#allocation112_spill] sm:$0xff] %v23691_v1  ;;  %18843 = vmatmul.msk.f32.vlgmr.msrb.gmra.mxu1 %vm349_vm1, %v23637_v22  ;;  %20313 = vrot.lane.b32.xlu2 %v23445_v18, %s21121_s26 }
 0x346   : > { %18844 = vmatmul.msk.f32.vlgmr.msrb.gmra.mxu2 %vm349_vm1, %v23637_v22  ;;  %18845 = vmatmul.msk.f32.vlgmr.msrb.gmra.mxu3 %vm349_vm1, %v23637_v22 }
 0x347   : > { %18846 = vmatmul.msk.f32.vlgmr.msra.gmra.mxu0 %vm349_vm1, %v23637_v22  ;;  %9179 = vmatpush.msrb.mxu3 %v20146_v50  ;;  %v20161_v50 = vunpack.i.h.bf16 %v20159_v40  ;;  %v20166_v40 = vunpack.i.h.bf16 %v20164_v19  ;;  %v23749_v19 = vld [vmem:[%s27468_s1 + $0xb0] sm:$0xff] }
 0x348   : > { %9139 = vmatpush.msrb.mxu1 %v8843_v59  ;;  %9159 = vmatpush.msrb.mxu2 %v8844_v25  ;;  %v20169_v18 = vpop.permute.xlu0 %20168 }
 0x349   : > { %v7349_v38 = vpop.f32.mrf.mxu2  ;;  %v7369_v53 = vpop.f32.mrf.mxu3  ;;  %9284 = vmatpush.msra.mxu0 %v9235_v55  ;;  %v9239_v58 = vsel %vm27510_vm14, %v20160_v56, %v20161_v50  ;;  %v9240_v44 = vsel %vm27510_vm14, %v20161_v50, %v20165_v29 }
 0x34a   : > { %v23707_v42 = vadd.f32 %v7349_v38, %v23597_v24  ;;  %v23710_v60 = vadd.f32 %v7369_v53, %v23600_v15  ;;  %v23712_v1 = vpop.f32.mrf.mxu1  ;;  %v9237_v24 = vsel %vm27510_vm14, %v20155_v8, %v20156_v28  ;;  %v9238_v15 = vsel %vm27510_vm14, %v20156_v28, %v20160_v56 }
 0x34b   : > { %v20170_v8 = vunpack.i.l.bf16 %v20169_v18  ;;  %v20171_v28 = vunpack.i.h.bf16 %v20169_v18 }
 0x34c   : > { %v23718_v59 = vpop.f32.mrf.mxu0 }
 0x34d   : > { %27622 = vst [vmem:[#allocation113_spill] sm:$0xff] %v23718_v59  ;;  %18847 = vmatmul.msk.f32.vlgmr.msra.gmra.mxu1 %vm349_vm1, %v23637_v22  ;;  %20328 = vrot.lane.b32.xlu2 %v23476_v17, %s21121_s26  ;;  %v9243_v17 = vsel %vm27510_vm14, %v20170_v8, %v20171_v28 }
 0x34e   : > { %18848 = vmatmul.msk.f32.vlgmr.msra.gmra.mxu2 %vm349_vm1, %v23637_v22  ;;  %18849 = vmatmul.msk.f32.vlgmr.msra.gmra.mxu3 %vm349_vm1, %v23637_v22 }
 0x34f   : > { %18850 = vmatmul.msk.f32.vlgmr.msrb.gmra.mxu0 %vm349_vm1, %v23637_v22  ;;  %9304 = vmatpush.msra.mxu1 %v9236_v11 }
 0x350   : > { %9324 = vmatpush.msra.mxu2 %v9237_v24  ;;  %9344 = vmatpush.msra.mxu3 %v9238_v15  ;;  %v20174_v24 = vpop.permute.xlu1 %20173  ;;  %v20179_v15 = vpop.permute.xlu2 %20178 }
 0x351   : > { %v7429_v25 = vpop.f32.mrf.mxu2  ;;  %v7449_v55 = vpop.f32.mrf.mxu3  ;;  %9364 = vmatpush.msrb.mxu0 %v9239_v58  ;;  %v20175_v50 = vunpack.i.l.bf16 %v20174_v24 }
 0x352   : > { %v23735_v38 = vadd.f32 %v7429_v25, %v23623_v16  ;;  %v23738_v53 = vadd.f32 %v7449_v55, %v23626_v6  ;;  %v23740_v56 = vpop.f32.mrf.mxu1  ;;  %v9241_v16 = vsel %vm27510_vm14, %v20165_v29, %v20166_v40  ;;  %v9242_v6 = vsel %vm27510_vm14, %v20166_v40, %v20170_v8 }
 0x353   : > { %27623 = vst [vmem:[#allocation114_spill] sm:$0xff] %v23740_v56  ;;  %v20176_v29 = vunpack.i.h.bf16 %v20174_v24  ;;  %v20180_v25 = vunpack.i.l.bf16 %v20179_v15  ;;  %v20181_v8 = vunpack.i.h.bf16 %v20179_v15 }
 0x354   : > { %v23744_v11 = vpop.f32.mrf.mxu0 }
 0x355   : > { %18851 = vmatmul.msk.f32.vlgmr.msrb.gmra.mxu1 %vm349_vm1, %v23637_v22  ;;  %v9246_v24 = vsel %vm27510_vm14, %v20176_v29, %v20180_v25  ;;  %20343 = vrot.lane.b32.xlu2 %v23537_v54, %s21121_s26 }
 0x356   : > { %18852 = vmatmul.msk.f32.vlgmr.msrb.gmra.mxu2 %vm349_vm1, %v23637_v22  ;;  %18853 = vmatmul.msk.f32.vlgmr.msrb.gmra.mxu3 %vm349_vm1, %v23637_v22 }
 0x357   : > { %18855 = vmatmul.msk.f32.vlgmr.msra.gmra.mxu0 %vm349_vm1, %v23749_v19  ;;  %9384 = vmatpush.msrb.mxu1 %v9240_v44  ;;  %v9244_v44 = vsel %vm27510_vm14, %v20171_v28, %v20175_v50 }
 0x358   : > { %9404 = vmatpush.msrb.mxu2 %v9241_v16  ;;  %9424 = vmatpush.msrb.mxu3 %v9242_v6  ;;  %v20184_v16 = vpop.permute.xlu0 %20183  ;;  %v9245_v6 = vsel %vm27510_vm14, %v20175_v50, %v20176_v29 }
 0x359   : > { %v7509_v58 = vpop.f32.mrf.mxu2  ;;  %v7529_v18 = vpop.f32.mrf.mxu3  ;;  %9444 = vmatpush.msra.mxu0 %v9243_v17  ;;  %v20186_v15 = vunpack.i.h.bf16 %v20184_v16  ;;  %v20185_v50 = vunpack.i.l.bf16 %v20184_v16 }
 0x35a   : > { %v23764_v55 = vadd.f32 %v7509_v58, %v23654_v52  ;;  %v23767_v22 = vadd.f32 %v7529_v18, %v23657_v10  ;;  %v23769_v40 = vpop.f32.mrf.mxu1  ;;  %v9247_v52 = vsel %vm27510_vm14, %v20180_v25, %v20181_v8  ;;  %v20189_v10 = vpop.permute.xlu1 %20188 }
 0x35b   : > { %27624 = vst [vmem:[#allocation115_spill] sm:$0xff] %v23769_v40  ;;  %v20191_v25 = vunpack.i.h.bf16 %v20189_v10  ;;  %v9249_v16 = vsel %vm27510_vm14, %v20185_v50, %v20186_v15 }
 0x35c   : > { %v23771_v56 = vpop.f32.mrf.mxu0 }
 0x35d   : > { %27625 = vst [vmem:[#allocation116_spill] sm:$0xff] %v23771_v56  ;;  %18856 = vmatmul.msk.f32.vlgmr.msra.gmra.mxu1 %vm349_vm1, %v23749_v19  ;;  %v20190_v56 = vunpack.i.l.bf16 %v20189_v10 }
 0x35e   : > { %18857 = vmatmul.msk.f32.vlgmr.msra.gmra.mxu2 %vm349_vm1, %v23749_v19  ;;  %18858 = vmatmul.msk.f32.vlgmr.msra.gmra.mxu3 %vm349_vm1, %v23749_v19 }
 0x35f   : > { %18859 = vmatmul.msk.f32.vlgmr.msrb.gmra.mxu0 %vm349_vm1, %v23749_v19  ;;  %9464 = vmatpush.msra.mxu1 %v9244_v44 }
 0x360   : > { %9484 = vmatpush.msra.mxu2 %v9245_v6  ;;  %9504 = vmatpush.msra.mxu3 %v9246_v24  ;;  %v20194_v6 = vpop.permute.xlu2 %20193  ;;  %v9248_v24 = vsel %vm27510_vm14, %v20181_v8, %v20185_v50  ;;  %vm27512_vm14 = vcmask 687104  }
 0x361   : > { %v7706_v28 = vpop.f32.mrf.mxu2  ;;  %v7726_v17 = vpop.f32.mrf.mxu3  ;;  %9524 = vmatpush.msrb.mxu0 %v9247_v52  ;;  %v20195_v52 = vunpack.i.l.bf16 %v20194_v6 }
 0x362   : > { %v23786_v58 = vadd.f32 %v7706_v28, %v23680_v27  ;;  %v23789_v18 = vadd.f32 %v7726_v17, %v23683_v7  ;;  %v23791_v29 = vpop.f32.mrf.mxu1  ;;  %v9640_v27 = vsel %vm27511_vm13, %v20190_v56, %v20191_v25  ;;  %v20199_v7 = vpop.permute.xlu0 %20198  ;;  %v20196_v28 = vunpack.i.h.bf16 %v20194_v6 }
 0x363   : > { %27626 = vst [vmem:[#allocation117_spill] sm:$0xff] %v23791_v29  ;;  %v20200_v17 = vunpack.i.l.bf16 %v20199_v7  ;;  %v20201_v29 = vunpack.i.h.bf16 %v20199_v7 }
 0x364   : > { %v23793_v44 = vpop.f32.mrf.mxu0  ;;  %v9642_v6 = vsel %vm27511_vm13, %v20195_v52, %v20196_v28 }
 0x365   : > { %27627 = vst [vmem:[#allocation118_spill] sm:$0xff] %v23793_v44  ;;  %18860 = vmatmul.msk.f32.vlgmr.msrb.gmra.mxu1 %vm349_vm1, %v23749_v19 }
 0x366   : > { %18861 = vmatmul.msk.f32.vlgmr.msrb.gmra.mxu2 %vm349_vm1, %v23749_v19  ;;  %18862 = vmatmul.msk.f32.vlgmr.msrb.gmra.mxu3 %vm349_vm1, %v23749_v19 }
 0x367   : > { %18863 = vmatmul.msk.f32.vlgmr.msra.gmra.mxu0 %vm349_vm1, %v23749_v19  ;;  %9584 = vmatpush.msrb.mxu3 %v20186_v15  ;;  %v9641_v15 = vsel %vm27511_vm13, %v20191_v25, %v20195_v52 }
 0x368   : > { %9544 = vmatpush.msrb.mxu1 %v9248_v24  ;;  %9564 = vmatpush.msrb.mxu2 %v9249_v16  ;;  %v20204_v24 = vpop.permute.xlu1 %20203  ;;  %v9643_v16 = vsel %vm27511_vm13, %v20196_v28, %v20200_v17 }
 0x369   : > { %v7786_v10 = vpop.f32.mrf.mxu2  ;;  %v7806_v8 = vpop.f32.mrf.mxu3  ;;  %9689 = vmatpush.msra.mxu0 %v9640_v27  ;;  %v20205_v25 = vunpack.i.l.bf16 %v20204_v24  ;;  %v20206_v52 = vunpack.i.h.bf16 %v20204_v24 }
 0x36a   : > { %v23807_v50 = vadd.f32 %v7786_v10, %v23707_v42  ;;  %v23810_v44 = vadd.f32 %v7806_v8, %v23710_v60  ;;  %v23812_v56 = vpop.f32.mrf.mxu1  ;;  %v9644_v42 = vsel %vm27511_vm13, %v20200_v17, %v20201_v29  ;;  %v20209_v60 = vpop.permute.xlu2 %20208 }
 0x36b   : > { %27628 = vst [vmem:[#allocation119_spill] sm:$0xff] %v23812_v56  ;;  %v20210_v10 = vunpack.i.l.bf16 %v20209_v60  ;;  %v20214_v24 = vpop.permute.xlu0 %20213 }
 0x36c   : > { %v23814_v59 = vpop.f32.mrf.mxu0 }
 0x36d   : > { %27629 = vst [vmem:[#allocation120_spill] sm:$0xff] %v23814_v59  ;;  %18864 = vmatmul.msk.f32.vlgmr.msra.gmra.mxu1 %vm349_vm1, %v23749_v19  ;;  %v20211_v59 = vunpack.i.h.bf16 %v20209_v60 }
 0x36e   : > { %18865 = vmatmul.msk.f32.vlgmr.msra.gmra.mxu2 %vm349_vm1, %v23749_v19  ;;  %18866 = vmatmul.msk.f32.vlgmr.msra.gmra.mxu3 %vm349_vm1, %v23749_v19 }
 0x36f   : > { %18867 = vmatmul.msk.f32.vlgmr.msrb.gmra.mxu0 %vm349_vm1, %v23749_v19  ;;  %9709 = vmatpush.msra.mxu1 %v9641_v15  ;;  %v23841_v15 = vld [vmem:[%s27468_s1 + $0xb8] sm:$0xff] }
 0x370   : > { %9729 = vmatpush.msra.mxu2 %v9642_v6  ;;  %9749 = vmatpush.msra.mxu3 %v9643_v16  ;;  %v9645_v6 = vsel %vm27511_vm13, %v20201_v29, %v20205_v25  ;;  %v9648_v16 = vsel %vm27511_vm13, %v20210_v10, %v20211_v59  ;;  %v20215_v29 = vunpack.i.l.bf16 %v20214_v24 }
 0x371   : > { %v7866_v27 = vpop.f32.mrf.mxu2  ;;  %v7886_v7 = vpop.f32.mrf.mxu3  ;;  %9769 = vmatpush.msrb.mxu0 %v9644_v42 }
 0x372   : > { %v23829_v8 = vadd.f32 %v7866_v27, %v23735_v38  ;;  %v23832_v28 = vadd.f32 %v7886_v7, %v23738_v53  ;;  %v23834_v17 = vpop.f32.mrf.mxu1  ;;  %v9646_v38 = vsel %vm27511_vm13, %v20205_v25, %v20206_v52  ;;  %v9647_v53 = vsel %vm27511_vm13, %v20206_v52, %v20210_v10  ;;  %v20219_v42 = vpop.permute.xlu1 %20218 }
 0x373   : > { %27630 = vst [vmem:[#allocation121_spill] sm:$0xff] %v23834_v17  ;;  %v20220_v27 = vunpack.i.l.bf16 %v20219_v42  ;;  %v20216_v7 = vunpack.i.h.bf16 %v20214_v24  ;;  %v20224_v17 = vpop.permute.xlu2 %20223 }
 0x374   : > { %v23836_v56 = vpop.f32.mrf.mxu0 }
 0x375   : > { %18868 = vmatmul.msk.f32.vlgmr.msrb.gmra.mxu1 %vm349_vm1, %v23749_v19  ;;  %v9650_v24 = vsel %vm27511_vm13, %v20215_v29, %v20216_v7  ;;  %v9651_v54 = vsel %vm27511_vm13, %v20216_v7, %v20220_v27 }
 0x376   : > { %18869 = vmatmul.msk.f32.vlgmr.msrb.gmra.mxu2 %vm349_vm1, %v23749_v19  ;;  %18870 = vmatmul.msk.f32.vlgmr.msrb.gmra.mxu3 %vm349_vm1, %v23749_v19 }
 0x377   : > { %18872 = vmatmul.msk.f32.vlgmr.msra.gmra.mxu0 %vm349_vm1, %v23841_v15  ;;  %9789 = vmatpush.msrb.mxu1 %v9645_v6  ;;  %v20221_v6 = vunpack.i.h.bf16 %v20219_v42  ;;  %v20226_v42 = vunpack.i.h.bf16 %v20224_v17 }
 0x378   : > { %9809 = vmatpush.msrb.mxu2 %v9646_v38  ;;  %9829 = vmatpush.msrb.mxu3 %v9647_v53  ;;  %v9649_v53 = vsel %vm27511_vm13, %v20211_v59, %v20215_v29  ;;  %v20229_v59 = vpop.permute.xlu0 %20228  ;;  %v20225_v29 = vunpack.i.l.bf16 %v20224_v17 }
 0x379   : > { %v7946_v60 = vpop.f32.mrf.mxu2  ;;  %v7966_v25 = vpop.f32.mrf.mxu3  ;;  %9849 = vmatpush.msra.mxu0 %v9648_v16 }
 0x37a   : > { %v23858_v19 = vadd.f32 %v7946_v60, %v23764_v55  ;;  %v23861_v52 = vadd.f32 %v7966_v25, %v23767_v22  ;;  %v23863_v10 = vpop.f32.mrf.mxu1  ;;  %v9652_v55 = vsel %vm27511_vm13, %v20220_v27, %v20221_v6  ;;  %v20231_v27 = vunpack.i.h.bf16 %v20229_v59 }
 0x37b   : > { %27631 = vst [vmem:[#allocation122_spill] sm:$0xff] %v23863_v10  ;;  %v9654_v17 = vsel %vm27511_vm13, %v20225_v29, %v20226_v42 }
 0x37c   : > { %v23865_v38 = vpop.f32.mrf.mxu0 }
 0x37d   : > { %27632 = vst [vmem:[#allocation123_spill] sm:$0xff] %v23865_v38  ;;  %18873 = vmatmul.msk.f32.vlgmr.msra.gmra.mxu1 %vm349_vm1, %v23841_v15  ;;  %v20230_v38 = vunpack.i.l.bf16 %v20229_v59 }
 0x37e   : > { %18874 = vmatmul.msk.f32.vlgmr.msra.gmra.mxu2 %vm349_vm1, %v23841_v15  ;;  %18875 = vmatmul.msk.f32.vlgmr.msra.gmra.mxu3 %vm349_vm1, %v23841_v15 }
 0x37f   : > { %18876 = vmatmul.msk.f32.vlgmr.msrb.gmra.mxu0 %vm349_vm1, %v23841_v15  ;;  %9869 = vmatpush.msra.mxu1 %v9649_v53 }
 0x380   : > { %9889 = vmatpush.msra.mxu2 %v9650_v24  ;;  %9909 = vmatpush.msra.mxu3 %v9651_v54  ;;  %v20234_v24 = vpop.permute.xlu1 %20233  ;;  %v9653_v54 = vsel %vm27511_vm13, %v20221_v6, %v20225_v29  ;;  %vm10449_vm13 = vcmask 678912  }
 0x381   : > { %v8111_v22 = vpop.f32.mrf.mxu2  ;;  %v8131_v16 = vpop.f32.mrf.mxu3  ;;  %9929 = vmatpush.msrb.mxu0 %v9652_v55  ;;  %v20235_v55 = vunpack.i.l.bf16 %v20234_v24 }
 0x382   : > { %v23880_v60 = vadd.f32 %v8111_v22, %v23786_v58  ;;  %v23883_v25 = vadd.f32 %v8131_v16, %v23789_v18  ;;  %v23885_v7 = vpop.f32.mrf.mxu1  ;;  %v10045_v58 = vsel %vm27512_vm14, %v20230_v38, %v20231_v27  ;;  %v20239_v18 = vpop.permute.xlu2 %20238  ;;  %v20236_v22 = vunpack.i.h.bf16 %v20234_v24 }
 0x383   : > { %27633 = vst [vmem:[#allocation124_spill] sm:$0xff] %v23885_v7  ;;  %v20240_v16 = vunpack.i.l.bf16 %v20239_v18  ;;  %v20241_v7 = vunpack.i.h.bf16 %v20239_v18 }
 0x384   : > { %v23887_v53 = vpop.f32.mrf.mxu0  ;;  %v10047_v24 = vsel %vm27512_vm14, %v20235_v55, %v20236_v22 }
 0x385   : > { %27634 = vst [vmem:[#allocation125_spill] sm:$0xff] %v23887_v53  ;;  %18877 = vmatmul.msk.f32.vlgmr.msrb.gmra.mxu1 %vm349_vm1, %v23841_v15 }
 0x386   : > { %18878 = vmatmul.msk.f32.vlgmr.msrb.gmra.mxu2 %vm349_vm1, %v23841_v15  ;;  %18879 = vmatmul.msk.f32.vlgmr.msrb.gmra.mxu3 %vm349_vm1, %v23841_v15 }
 0x387   : > { %18880 = vmatmul.msk.f32.vlgmr.msra.gmra.mxu0 %vm349_vm1, %v23841_v15  ;;  %9989 = vmatpush.msrb.mxu3 %v20226_v42  ;;  %v10046_v42 = vsel %vm27512_vm14, %v20231_v27, %v20235_v55 }
 0x388   : > { %9949 = vmatpush.msrb.mxu1 %v9653_v54  ;;  %9969 = vmatpush.msrb.mxu2 %v9654_v17  ;;  %v20244_v54 = vpop.permute.xlu0 %20243  ;;  %v10048_v17 = vsel %vm27512_vm14, %v20236_v22, %v20240_v16 }
 0x389   : > { %v8191_v59 = vpop.f32.mrf.mxu2  ;;  %v8211_v6 = vpop.f32.mrf.mxu3  ;;  %10094 = vmatpush.msra.mxu0 %v10045_v58  ;;  %v20245_v27 = vunpack.i.l.bf16 %v20244_v54 }
 0x38a   : > { %v23901_v29 = vadd.f32 %v8191_v59, %v23807_v50  ;;  %v23904_v53 = vadd.f32 %v8211_v6, %v23810_v44  ;;  %v23906_v38 = vpop.f32.mrf.mxu1  ;;  %v10049_v44 = vsel %vm27512_vm14, %v20240_v16, %v20241_v7  ;;  %v20249_v50 = vpop.permute.xlu1 %20248  ;;  %v20246_v59 = vunpack.i.h.bf16 %v20244_v54 }
 0x38b   : > { %27635 = vst [vmem:[#allocation126_spill] sm:$0xff] %v23906_v38  ;;  %v20250_v55 = vunpack.i.l.bf16 %v20249_v50  ;;  %v20254_v54 = vpop.permute.xlu2 %20253 }
 0x38c   : > { %v23908_v10 = vpop.f32.mrf.mxu0 }
 0x38d   : > { %27636 = vst [vmem:[#allocation127_spill] sm:$0xff] %v23908_v10  ;;  %18881 = vmatmul.msk.f32.vlgmr.msra.gmra.mxu1 %vm349_vm1, %v23841_v15  ;;  %v20251_v10 = vunpack.i.h.bf16 %v20249_v50 }
 0x38e   : > { %18882 = vmatmul.msk.f32.vlgmr.msra.gmra.mxu2 %vm349_vm1, %v23841_v15  ;;  %18883 = vmatmul.msk.f32.vlgmr.msra.gmra.mxu3 %vm349_vm1, %v23841_v15 }
 0x38f   : > { %18884 = vmatmul.msk.f32.vlgmr.msrb.gmra.mxu0 %vm349_vm1, %v23841_v15  ;;  %10114 = vmatpush.msra.mxu1 %v10046_v42  ;;  %v23935_v42 = vld [vmem:[%s27468_s1 + $0xc0] sm:$0xff] }
 0x390   : > { %10134 = vmatpush.msra.mxu2 %v10047_v24  ;;  %10154 = vmatpush.msra.mxu3 %v10048_v17  ;;  %v10050_v24 = vsel %vm27512_vm14, %v20241_v7, %v20245_v27  ;;  %v10053_v17 = vsel %vm27512_vm14, %v20250_v55, %v20251_v10  ;;  %v20255_v7 = vunpack.i.l.bf16 %v20254_v54 }
 0x391   : > { %v8271_v58 = vpop.f32.mrf.mxu2  ;;  %v8291_v18 = vpop.f32.mrf.mxu3  ;;  %10174 = vmatpush.msrb.mxu0 %v10049_v44 }
 0x392   : > { %v23923_v6 = vadd.f32 %v8271_v58, %v23829_v8  ;;  %v23926_v22 = vadd.f32 %v8291_v18, %v23832_v28  ;;  %v23928_v16 = vpop.f32.mrf.mxu1  ;;  %v10051_v8 = vsel %vm27512_vm14, %v20245_v27, %v20246_v59  ;;  %v10052_v28 = vsel %vm27512_vm14, %v20246_v59, %v20250_v55  ;;  %v20259_v44 = vpop.permute.xlu0 %20258 }
 0x393   : > { %27637 = vst [vmem:[#allocation128_spill] sm:$0xff] %v23928_v16  ;;  %v20256_v58 = vunpack.i.h.bf16 %v20254_v54  ;;  %v20260_v18 = vunpack.i.l.bf16 %v20259_v44  ;;  %v20261_v16 = vunpack.i.h.bf16 %v20259_v44 }
 0x394   : > { %v23930_v38 = vpop.f32.mrf.mxu0 }
 0x395   : > { %18885 = vmatmul.msk.f32.vlgmr.msrb.gmra.mxu1 %vm349_vm1, %v23841_v15  ;;  %v10056_v54 = vsel %vm27512_vm14, %v20256_v58, %v20260_v18 }
 0x396   : > { %18886 = vmatmul.msk.f32.vlgmr.msrb.gmra.mxu2 %vm349_vm1, %v23841_v15  ;;  %18887 = vmatmul.msk.f32.vlgmr.msrb.gmra.mxu3 %vm349_vm1, %v23841_v15 }
 0x397   : > { %18889 = vmatmul.msk.f32.vlgmr.msra.gmra.mxu0 %vm349_vm1, %v23935_v42  ;;  %10194 = vmatpush.msrb.mxu1 %v10050_v24  ;;  %v10054_v24 = vsel %vm27512_vm14, %v20251_v10, %v20255_v7 }
 0x398   : > { %10214 = vmatpush.msrb.mxu2 %v10051_v8  ;;  %10234 = vmatpush.msrb.mxu3 %v10052_v28  ;;  %v20264_v8 = vpop.permute.xlu1 %20263  ;;  %v10055_v28 = vsel %vm27512_vm14, %v20255_v7, %v20256_v58 }
 0x399   : > { %v8351_v50 = vpop.f32.mrf.mxu2  ;;  %v8371_v27 = vpop.f32.mrf.mxu3  ;;  %10254 = vmatpush.msra.mxu0 %v10053_v17  ;;  %v20266_v44 = vunpack.i.h.bf16 %v20264_v8  ;;  %v20265_v7 = vunpack.i.l.bf16 %v20264_v8 }
 0x39a   : > { %v23950_v59 = vadd.f32 %v8351_v50, %v23858_v19  ;;  %v23953_v15 = vadd.f32 %v8371_v27, %v23861_v52  ;;  %v23955_v55 = vpop.f32.mrf.mxu1  ;;  %v10057_v19 = vsel %vm27512_vm14, %v20260_v18, %v20261_v16  ;;  %v20269_v52 = vpop.permute.xlu2 %20268 }
 0x39b   : > { %v20271_v18 = vunpack.i.h.bf16 %v20269_v52  ;;  %v10059_v8 = vsel %vm27512_vm14, %v20265_v7, %v20266_v44 }
 0x39c   : > { %v23957_v40 = vpop.f32.mrf.mxu0 }
 0x39d   : > { %27638 = vst [vmem:[#allocation129_spill] sm:$0xff] %v23957_v40  ;;  %18890 = vmatmul.msk.f32.vlgmr.msra.gmra.mxu1 %vm349_vm1, %v23935_v42  ;;  %v20270_v40 = vunpack.i.l.bf16 %v20269_v52 }
 0x39e   : > { %18891 = vmatmul.msk.f32.vlgmr.msra.gmra.mxu2 %vm349_vm1, %v23935_v42  ;;  %18892 = vmatmul.msk.f32.vlgmr.msra.gmra.mxu3 %vm349_vm1, %v23935_v42 }
 0x39f   : > { %18893 = vmatmul.msk.f32.vlgmr.msrb.gmra.mxu0 %vm349_vm1, %v23935_v42  ;;  %10274 = vmatpush.msra.mxu1 %v10054_v24 }
 0x3a0   : > { %10294 = vmatpush.msra.mxu2 %v10055_v28  ;;  %10314 = vmatpush.msra.mxu3 %v10056_v54  ;;  %v20274_v28 = vpop.permute.xlu0 %20273  ;;  %v10058_v54 = vsel %vm27512_vm14, %v20261_v16, %v20265_v7  ;;  %vm10854_vm14 = vcmask 670720  }
 0x3a1   : > { %v8516_v10 = vpop.f32.mrf.mxu2  ;;  %v8536_v17 = vpop.f32.mrf.mxu3  ;;  %10334 = vmatpush.msrb.mxu0 %v10057_v19  ;;  %v20275_v19 = vunpack.i.l.bf16 %v20274_v28 }
 0x3a2   : > { %v23972_v50 = vadd.f32 %v8516_v10, %v23880_v60  ;;  %v23975_v27 = vadd.f32 %v8536_v17, %v23883_v25  ;;  %v23977_v58 = vpop.f32.mrf.mxu1  ;;  %v10450_v60 = vsel %vm10449_vm13, %v20270_v40, %v20271_v18  ;;  %v20279_v25 = vpop.permute.xlu1 %20278  ;;  %v20276_v17 = vunpack.i.h.bf16 %v20274_v28 }
 0x3a3   : > { %v20280_v10 = vunpack.i.l.bf16 %v20279_v25 }
 0x3a4   : > { %27639 = vst [vmem:[#allocation130_spill] sm:$0xff] %v23972_v50  ;;  %v23979_v24 = vpop.f32.mrf.mxu0  ;;  %v20281_v50 = vunpack.i.h.bf16 %v20279_v25 }
 0x3a5   : > { %27640 = vst [vmem:[#allocation131_spill] sm:$0xff] %v23975_v27  ;;  %18894 = vmatmul.msk.f32.vlgmr.msrb.gmra.mxu1 %vm349_vm1, %v23935_v42  ;;  %v10453_v28 = vsel %vm10449_vm13, %v20276_v17, %v20280_v10 }
 0x3a6   : > { %27641 = vst [vmem:[#allocation132_spill] sm:$0xff] %v23979_v24  ;;  %18895 = vmatmul.msk.f32.vlgmr.msrb.gmra.mxu2 %vm349_vm1, %v23935_v42  ;;  %18896 = vmatmul.msk.f32.vlgmr.msrb.gmra.mxu3 %vm349_vm1, %v23935_v42 }
 0x3a7   : > { %18897 = vmatmul.msk.f32.vlgmr.msra.gmra.mxu0 %vm349_vm1, %v23935_v42  ;;  %10394 = vmatpush.msrb.mxu3 %v20266_v44  ;;  %v10451_v44 = vsel %vm10449_vm13, %v20271_v18, %v20275_v19 }
 0x3a8   : > { %10354 = vmatpush.msrb.mxu1 %v10058_v54  ;;  %10374 = vmatpush.msrb.mxu2 %v10059_v8  ;;  %v20284_v54 = vpop.permute.xlu2 %20283  ;;  %v10452_v8 = vsel %vm10449_vm13, %v20275_v19, %v20276_v17 }
 0x3a9   : > { %v8596_v52 = vpop.f32.mrf.mxu2  ;;  %v8616_v16 = vpop.f32.mrf.mxu3  ;;  %10499 = vmatpush.msra.mxu0 %v10450_v60  ;;  %v20285_v18 = vunpack.i.l.bf16 %v20284_v54  ;;  %v20286_v19 = vunpack.i.h.bf16 %v20284_v54 }
 0x3aa   : > { %v23993_v7 = vadd.f32 %v8596_v52, %v23901_v29  ;;  %v23996_v27 = vadd.f32 %v8616_v16, %v23904_v53  ;;  %v23998_v40 = vpop.f32.mrf.mxu1  ;;  %v10454_v53 = vsel %vm10449_vm13, %v20280_v10, %v20281_v50  ;;  %v20289_v29 = vpop.permute.xlu0 %20288 }
 0x3ab   : > { %v20290_v52 = vunpack.i.l.bf16 %v20289_v29  ;;  %v20294_v54 = vpop.permute.xlu1 %20293 }
 0x3ac   : > { %27642 = vst [vmem:[#allocation133_spill] sm:$0xff] %v23993_v7  ;;  %v24000_v24 = vpop.f32.mrf.mxu0 }
 0x3ad   : > { %27643 = vst [vmem:[#allocation134_spill] sm:$0xff] %v23996_v27  ;;  %18898 = vmatmul.msk.f32.vlgmr.msra.gmra.mxu1 %vm349_vm1, %v23935_v42  ;;  %v20291_v27 = vunpack.i.h.bf16 %v20289_v29 }
 0x3ae   : > { %18899 = vmatmul.msk.f32.vlgmr.msra.gmra.mxu2 %vm349_vm1, %v23935_v42  ;;  %18900 = vmatmul.msk.f32.vlgmr.msra.gmra.mxu3 %vm349_vm1, %v23935_v42 }
 0x3af   : > { %18901 = vmatmul.msk.f32.vlgmr.msrb.gmra.mxu0 %vm349_vm1, %v23935_v42  ;;  %10519 = vmatpush.msra.mxu1 %v10451_v44  ;;  %v24027_v44 = vld [vmem:[%s27468_s1 + $0xc8] sm:$0xff] }
 0x3b0   : > { %10539 = vmatpush.msra.mxu2 %v10452_v8  ;;  %10559 = vmatpush.msra.mxu3 %v10453_v28  ;;  %v10455_v8 = vsel %vm10449_vm13, %v20281_v50, %v20285_v18  ;;  %v10458_v28 = vsel %vm10449_vm13, %v20290_v52, %v20291_v27  ;;  %v20295_v50 = vunpack.i.l.bf16 %v20294_v54 }
 0x3b1   : > { %v8676_v60 = vpop.f32.mrf.mxu2  ;;  %v8696_v25 = vpop.f32.mrf.mxu3  ;;  %10579 = vmatpush.msrb.mxu0 %v10454_v53 }
 0x3b2   : > { %v24015_v16 = vadd.f32 %v8676_v60, %v23923_v6  ;;  %v24018_v17 = vadd.f32 %v8696_v25, %v23926_v22  ;;  %v24020_v10 = vpop.f32.mrf.mxu1  ;;  %v10456_v6 = vsel %vm10449_vm13, %v20285_v18, %v20286_v19  ;;  %v10457_v22 = vsel %vm10449_vm13, %v20286_v19, %v20290_v52  ;;  %v20299_v53 = vpop.permute.xlu2 %20298 }
 0x3b3   : > { %v20296_v60 = vunpack.i.h.bf16 %v20294_v54  ;;  %v20300_v25 = vunpack.i.l.bf16 %v20299_v53 }
 0x3b4   : > { %27644 = vst [vmem:[#allocation135_spill] sm:$0xff] %v24015_v16  ;;  %v24022_v7 = vpop.f32.mrf.mxu0 }
 0x3b5   : > { %27645 = vst [vmem:[#allocation136_spill] sm:$0xff] %v24018_v17  ;;  %18902 = vmatmul.msk.f32.vlgmr.msrb.gmra.mxu1 %vm349_vm1, %v23935_v42  ;;  %v20301_v17 = vunpack.i.h.bf16 %v20299_v53  ;;  %v10461_v54 = vsel %vm10449_vm13, %v20296_v60, %v20300_v25 }
 0x3b6   : > { %18903 = vmatmul.msk.f32.vlgmr.msrb.gmra.mxu2 %vm349_vm1, %v23935_v42  ;;  %18904 = vmatmul.msk.f32.vlgmr.msrb.gmra.mxu3 %vm349_vm1, %v23935_v42 }
 0x3b7   : > { %18906 = vmatmul.msk.f32.vlgmr.msra.gmra.mxu0 %vm349_vm1, %v24027_v44  ;;  %10599 = vmatpush.msrb.mxu1 %v10455_v8  ;;  %v10459_v8 = vsel %vm10449_vm13, %v20291_v27, %v20295_v50 }
 0x3b8   : > { %10619 = vmatpush.msrb.mxu2 %v10456_v6  ;;  %10639 = vmatpush.msrb.mxu3 %v10457_v22  ;;  %v20304_v6 = vpop.permute.xlu0 %20303  ;;  %v10460_v22 = vsel %vm10449_vm13, %v20295_v50, %v20296_v60 }
 0x3b9   : > { %v8756_v29 = vpop.f32.mrf.mxu2  ;;  %v8776_v18 = vpop.f32.mrf.mxu3  ;;  %10659 = vmatpush.msra.mxu0 %v10458_v28  ;;  %v20306_v53 = vunpack.i.h.bf16 %v20304_v6  ;;  %v20305_v50 = vunpack.i.l.bf16 %v20304_v6 }
 0x3ba   : > { %v24042_v19 = vadd.f32 %v8756_v29, %v23950_v59  ;;  %v24045_v42 = vadd.f32 %v8776_v18, %v23953_v15  ;;  %v24047_v52 = vpop.f32.mrf.mxu1  ;;  %v10462_v59 = vsel %vm10449_vm13, %v20300_v25, %v20301_v17  ;;  %v20309_v15 = vpop.permute.xlu1 %20308  ;;  %v11225_v25 = vld [vmem:[%s27469_s2] sm:$0xff] }
 0x3bb   : > { %v20311_v18 = vunpack.i.h.bf16 %v20309_v15  ;;  %v20310_v60 = vunpack.i.l.bf16 %v20309_v15  ;;  %v10463_v6 = vsel %vm10449_vm13, %v20301_v17, %v20305_v50 }
 0x3bc   : > { %27646 = vst [vmem:[#allocation137_spill] sm:$0xff] %v24042_v19  ;;  %v24049_v16 = vpop.f32.mrf.mxu0 }
 0x3bd   : > { %27647 = vst [vmem:[#allocation138_spill] sm:$0xff] %v24045_v42  ;;  %18907 = vmatmul.msk.f32.vlgmr.msra.gmra.mxu1 %vm349_vm1, %v24027_v44  ;;  %v10855_v15 = vsel %vm10854_vm14, %v20310_v60, %v20311_v18 }
 0x3be   : > { %18908 = vmatmul.msk.f32.vlgmr.msra.gmra.mxu2 %vm349_vm1, %v24027_v44  ;;  %18909 = vmatmul.msk.f32.vlgmr.msra.gmra.mxu3 %vm349_vm1, %v24027_v44 }
 0x3bf   : > { %18910 = vmatmul.msk.f32.vlgmr.msrb.gmra.mxu0 %vm349_vm1, %v24027_v44  ;;  %10679 = vmatpush.msra.mxu1 %v10459_v8  ;;  %v21122_v8 = vmov 0  }
 0x3c0   : > { %10699 = vmatpush.msra.mxu2 %v10460_v22  ;;  %10719 = vmatpush.msra.mxu3 %v10461_v54  ;;  %v20314_v54 = vpop.permute.xlu2 %20313 }
 0x3c1   : > { %v24063_v27 = vpop.f32.mrf.mxu2  ;;  %v24065_v28 = vpop.f32.mrf.mxu3  ;;  %10739 = vmatpush.msrb.mxu0 %v10462_v59  ;;  %20347 = vset.pattern.permute.xlu0 %v21122_v8  ;;  %v10464_v59 = vsel %vm10449_vm13, %v20305_v50, %v20306_v53  ;;  %v20316_v50 = vunpack.i.h.bf16 %v20314_v54 }
 0x3c2   : > { %27648 = vst [vmem:[#allocation139_spill] sm:$0xff] %v24063_v27  ;;  %v24067_v29 = vpop.f32.mrf.mxu1  ;;  %11228 = vperm.xlu0 %20347, %v11225_v25   ;;  %v20319_v8 = vpop.permute.xlu0 %20318  ;;  %v20315_v25 = vunpack.i.l.bf16 %v20314_v54 }
 0x3c3   : > { %27649 = vst [vmem:[#allocation140_spill] sm:$0xff] %v24065_v28  ;;  %v20320_v19 = vunpack.i.l.bf16 %v20319_v8  ;;  %v20324_v27 = vpop.permute.xlu1 %20323 }
 0x3c4   : > { %27650 = vst [vmem:[#allocation141_spill] sm:$0xff] %v24067_v29  ;;  %v24072_v22 = vpop.f32.mrf.mxu0  ;;  %v20321_v29 = vunpack.i.h.bf16 %v20319_v8  ;;  %v10856_v60 = vsel %vm10854_vm14, %v20311_v18, %v20315_v25  ;;  %v20325_v18 = vunpack.i.l.bf16 %v20324_v27 }
 0x3c5   : > { %27651 = vst [vmem:[#allocation142_spill] sm:$0xff] %v24072_v22  ;;  %18911 = vmatmul.msk.f32.vlgmr.msrb.gmra.mxu1 %vm349_vm1, %v24027_v44 }
 0x3c6   : > { %18912 = vmatmul.msk.f32.vlgmr.msrb.gmra.mxu2 %vm349_vm1, %v24027_v44  ;;  %18913 = vmatmul.msk.f32.vlgmr.msrb.gmra.mxu3 %vm349_vm1, %v24027_v44  ;;  %v10859_v54 = vsel %vm10854_vm14, %v20320_v19, %v20321_v29 }
 0x3c7   : > { %18914 = vmatmul.msk.f32.vlgmr.msra.gmra.mxu0 %vm349_vm1, %v24027_v44  ;;  %10799 = vmatpush.msrb.mxu3 %v20306_v53  ;;  %v10857_v53 = vsel %vm10854_vm14, %v20315_v25, %v20316_v50  ;;  %v20326_v25 = vunpack.i.h.bf16 %v20324_v27 }
 0x3c8   : > { %10759 = vmatpush.msrb.mxu1 %v10463_v6  ;;  %10779 = vmatpush.msrb.mxu2 %v10464_v59  ;;  %v10858_v6 = vsel %vm10854_vm14, %v20316_v50, %v20320_v19  ;;  %v20329_v59 = vpop.permute.xlu2 %20328  ;;  %v24116_v19 = vld [vmem:[%s27468_s1 + $0xd0] sm:$0xff] }
 0x3c9   : > { %v24085_v42 = vpop.f32.mrf.mxu2  ;;  %v24087_v17 = vpop.f32.mrf.mxu3  ;;  %10904 = vmatpush.msra.mxu0 %v10855_v15  ;;  %v20330_v50 = vunpack.i.l.bf16 %v20329_v59 }
 0x3ca   : > { %27652 = vst [vmem:[#allocation143_spill] sm:$0xff] %v24085_v42  ;;  %v24089_v22 = vpop.f32.mrf.mxu1 }
 0x3cb   : > { %27653 = vst [vmem:[#allocation144_spill] sm:$0xff] %v24087_v17  ;;  %v10862_v27 = vsel %vm10854_vm14, %v20326_v25, %v20330_v50 }
 0x3cc   : > { %27654 = vst [vmem:[#allocation145_spill] sm:$0xff] %v24089_v22  ;;  %v24091_v28 = vpop.f32.mrf.mxu0  ;;  %v20331_v22 = vunpack.i.h.bf16 %v20329_v59  ;;  %v20339_v59 = vpop.permute.xlu1 %20338 }
 0x3cd   : > { %27655 = vst [vmem:[#allocation146_spill] sm:$0xff] %v24091_v28  ;;  %18915 = vmatmul.msk.f32.vlgmr.msra.gmra.mxu1 %vm349_vm1, %v24027_v44 }
 0x3ce   : > { %18916 = vmatmul.msk.f32.vlgmr.msra.gmra.mxu2 %vm349_vm1, %v24027_v44  ;;  %18917 = vmatmul.msk.f32.vlgmr.msra.gmra.mxu3 %vm349_vm1, %v24027_v44 }
 0x3cf   : > { %18918 = vmatmul.msk.f32.vlgmr.msrb.gmra.mxu0 %vm349_vm1, %v24027_v44  ;;  %10924 = vmatpush.msra.mxu1 %v10856_v60  ;;  %v10860_v60 = vsel %vm10854_vm14, %v20321_v29, %v20325_v18 }
 0x3d0   : > { %10944 = vmatpush.msra.mxu2 %v10857_v53  ;;  %10964 = vmatpush.msra.mxu3 %v10858_v6  ;;  %v10861_v53 = vsel %vm10854_vm14, %v20325_v18, %v20326_v25  ;;  %v20334_v6 = vpop.permute.xlu0 %20333 }
 0x3d1   : > { %v24105_v15 = vpop.f32.mrf.mxu2  ;;  %v24107_v8 = vpop.f32.mrf.mxu3  ;;  %10984 = vmatpush.msrb.mxu0 %v10859_v54  ;;  %v10863_v54 = vsel %vm10854_vm14, %v20330_v50, %v20331_v22  ;;  %v20335_v29 = vunpack.i.l.bf16 %v20334_v6 }
 0x3d2   : > { %27656 = vst [vmem:[#allocation147_spill] sm:$0xff] %v24105_v15  ;;  %v24109_v28 = vpop.f32.mrf.mxu1 }
 0x3d3   : > { %27657 = vst [vmem:[#allocation148_spill] sm:$0xff] %v24107_v8  ;;  %v20336_v8 = vunpack.i.h.bf16 %v20334_v6  ;;  %v10864_v50 = vsel %vm10854_vm14, %v20331_v22, %v20335_v29 }
 0x3d4   : > { %27658 = vst [vmem:[#allocation149_spill] sm:$0xff] %v24109_v28  ;;  %v24111_v17 = vpop.f32.mrf.mxu0  ;;  %v20340_v28 = vunpack.i.l.bf16 %v20339_v59 }
 0x3d5   : > { %18919 = vmatmul.msk.f32.vlgmr.msrb.gmra.mxu1 %vm349_vm1, %v24027_v44 }
 0x3d6   : > { %18920 = vmatmul.msk.f32.vlgmr.msrb.gmra.mxu2 %vm349_vm1, %v24027_v44  ;;  %18921 = vmatmul.msk.f32.vlgmr.msrb.gmra.mxu3 %vm349_vm1, %v24027_v44  ;;  %v20341_v44 = vunpack.i.h.bf16 %v20339_v59 }
 0x3d7   : > { %18923 = vmatmul.msk.f32.vlgmr.msra.gmra.mxu0 %vm349_vm1, %v24116_v19  ;;  %11004 = vmatpush.msrb.mxu1 %v10860_v60  ;;  %v10865_v60 = vsel %vm10854_vm14, %v20335_v29, %v20336_v8 }
 0x3d8   : > { %11024 = vmatpush.msrb.mxu2 %v10861_v53  ;;  %11044 = vmatpush.msrb.mxu3 %v10862_v27  ;;  %v10866_v53 = vsel %vm10854_vm14, %v20336_v8, %v20340_v28  ;;  %v20344_v27 = vpop.permute.xlu2 %20343  ;;  %v10867_v6 = vsel %vm10854_vm14, %v20340_v28, %v20341_v44 }
 0x3d9   : > { %v24130_v18 = vpop.f32.mrf.mxu2  ;;  %v24132_v25 = vpop.f32.mrf.mxu3  ;;  %11064 = vmatpush.msra.mxu0 %v10863_v54  ;;  %v20345_v22 = vunpack.i.l.bf16 %v20344_v27  ;;  %v20346_v8 = vunpack.i.h.bf16 %v20344_v27 }
 0x3da   : > { %27659 = vst [vmem:[#allocation150_spill] sm:$0xff] %v24130_v18  ;;  %v24134_v15 = vpop.f32.mrf.mxu1 }
 0x3db   : > { %27660 = vst [vmem:[#allocation151_spill] sm:$0xff] %v24132_v25  ;;  %v10868_v18 = vsel %vm10854_vm14, %v20341_v44, %v20345_v22  ;;  %v10869_v28 = vsel %vm10854_vm14, %v20345_v22, %v20346_v8 }
 0x3dc   : > { %v24136_v42 = vpop.f32.mrf.mxu0 }
 0x3dd   : > { %18924 = vmatmul.msk.f32.vlgmr.msra.gmra.mxu1 %vm349_vm1, %v24116_v19 }
 0x3de   : > { %18925 = vmatmul.msk.f32.vlgmr.msra.gmra.mxu2 %vm349_vm1, %v24116_v19  ;;  %18926 = vmatmul.msk.f32.vlgmr.msra.gmra.mxu3 %vm349_vm1, %v24116_v19 }
 0x3df   : > { %18927 = vmatmul.msk.f32.vlgmr.msrb.gmra.mxu0 %vm349_vm1, %v24116_v19  ;;  %11084 = vmatpush.msra.mxu1 %v10864_v50 }
 0x3e0   : > { %11104 = vmatpush.msra.mxu2 %v10865_v60  ;;  %11124 = vmatpush.msra.mxu3 %v10866_v53 }
 0x3e1   : > { %v24150_v54 = vpop.f32.mrf.mxu2  ;;  %v24152_v59 = vpop.f32.mrf.mxu3  ;;  %11144 = vmatpush.msrb.mxu0 %v10867_v6 }
 0x3e2   : > { %27661 = vst [vmem:[#allocation152_spill] sm:$0xff] %v24150_v54  ;;  %v24154_v29 = vpop.f32.mrf.mxu1 }
 0x3e3   : > { %27662 = vst [vmem:[#allocation153_spill] sm:$0xff] %v24152_v59 }
 0x3e4   : > { %27663 = vst [vmem:[#allocation154_spill] sm:$0xff] %v24154_v29  ;;  %v24156_v25 = vpop.f32.mrf.mxu0 }
 0x3e5   : > { %27664 = vst [vmem:[#allocation155_spill] sm:$0xff] %v24156_v25  ;;  %18928 = vmatmul.msk.f32.vlgmr.msrb.gmra.mxu1 %vm349_vm1, %v24116_v19 }
 0x3e6   : > { %18929 = vmatmul.msk.f32.vlgmr.msrb.gmra.mxu2 %vm349_vm1, %v24116_v19  ;;  %18930 = vmatmul.msk.f32.vlgmr.msrb.gmra.mxu3 %vm349_vm1, %v24116_v19 }
 0x3e7   : > { %18931 = vmatmul.msk.f32.vlgmr.msra.gmra.mxu0 %vm349_vm1, %v24116_v19  ;;  %11164 = vmatpush.msrb.mxu1 %v10868_v18 }
 0x3e8   : > { %11184 = vmatpush.msrb.mxu2 %v10869_v28  ;;  %11204 = vmatpush.msrb.mxu3 %v20346_v8 }
 0x3e9   : > { %v24168_v50 = vpop.f32.mrf.mxu2  ;;  %v24170_v44 = vpop.f32.mrf.mxu3 }
 0x3ea   : > { %27665 = vst [vmem:[#allocation156_spill] sm:$0xff] %v24168_v50  ;;  %v24172_v60 = vpop.f32.mrf.mxu1 }
 0x3eb   : > { %27666 = vst [vmem:[#allocation157_spill] sm:$0xff] %v24170_v44 }
 0x3ec   : > { %27667 = vst [vmem:[#allocation158_spill] sm:$0xff] %v24172_v60  ;;  %v24174_v53 = vpop.f32.mrf.mxu0 }
 0x3ed   : > { %27668 = vst [vmem:[#allocation159_spill] sm:$0xff] %v24174_v53  ;;  %18932 = vmatmul.msk.f32.vlgmr.msra.gmra.mxu1 %vm349_vm1, %v24116_v19 }
 0x3ee   : > { %18933 = vmatmul.msk.f32.vlgmr.msra.gmra.mxu2 %vm349_vm1, %v24116_v19  ;;  %18934 = vmatmul.msk.f32.vlgmr.msra.gmra.mxu3 %vm349_vm1, %v24116_v19 }
 0x3ef   : > { %18935 = vmatmul.msk.f32.vlgmr.msrb.gmra.mxu0 %vm349_vm1, %v24116_v19 }
 0x3f1   : > { %v24184_v18 = vpop.f32.mrf.mxu2  ;;  %v24186_v27 = vpop.f32.mrf.mxu3 }
 0x3f2   : > { %27669 = vst [vmem:[#allocation160_spill] sm:$0xff] %v24184_v18  ;;  %v24188_v6 = vpop.f32.mrf.mxu1 }
 0x3f3   : > { %27670 = vst [vmem:[#allocation161_spill] sm:$0xff] %v24186_v27 }
 0x3f4   : > { %27671 = vst [vmem:[#allocation162_spill] sm:$0xff] %v24188_v6  ;;  %v24190_v22 = vpop.f32.mrf.mxu0 }
 0x3f5   : > { %18936 = vmatmul.msk.f32.vlgmr.msrb.gmra.mxu1 %vm349_vm1, %v24116_v19 }
 0x3f6   : > { %18937 = vmatmul.msk.f32.vlgmr.msrb.gmra.mxu2 %vm349_vm1, %v24116_v19  ;;  %18938 = vmatmul.msk.f32.vlgmr.msrb.gmra.mxu3 %vm349_vm1, %v24116_v19 }
 0x3f9   : > { %v24198_v8 = vpop.f32.mrf.mxu2  ;;  %v24200_v28 = vpop.f32.mrf.mxu3 }
 0x3fa   : > { %27672 = vst [vmem:[#allocation163_spill] sm:$0xff] %v24198_v8  ;;  %v24202_v18 = vpop.f32.mrf.mxu1 }
 0x3fb   : > { %27673 = vst [vmem:[#allocation164_spill] sm:$0xff] %v24200_v28 }
 0x3fc   : > { %v24204_v27 = vpop.f32.mrf.mxu0 }
 0x401   : > { %v24206_v6 = vpop.f32.mrf.mxu2  ;;  %v24208_v53 = vpop.f32.mrf.mxu3 }
 0x402   : > { %27674 = vst [vmem:[#allocation165_spill] sm:$0xff] %v24206_v6  ;;  %v24210_v60 = vpop.f32.mrf.mxu1 }
 0x403   : > { %27675 = vst [vmem:[#allocation166_spill] sm:$0xff] %v24208_v53 }
 0x404   : > { %27676 = vst [vmem:[#allocation167_spill] sm:$0xff] %v24210_v60  ;;  %v24212_v44 = vpop.f32.mrf.mxu0 }
 0x405   : > { %27677 = vst [vmem:[#allocation168_spill] sm:$0xff] %v24212_v44 }
 0x409   : > { %v24214_v50 = vpop.f32.mrf.mxu2  ;;  %v24216_v25 = vpop.f32.mrf.mxu3 }
 0x40a   : > { %27678 = vst [vmem:[#allocation169_spill] sm:$0xff] %v24214_v50  ;;  %v24218_v19 = vpop.f32.mrf.mxu1 }
 0x40b   : > { %27679 = vst [vmem:[#allocation170_spill] sm:$0xff] %v24216_v25 }
 0x40c   : > { %27680 = vst [vmem:[#allocation171_spill] sm:$0xff] %v24218_v19  ;;  %v24220_v8 = vpop.f32.mrf.mxu0 }
 0x40d   : > { %27681 = vst [vmem:[#allocation172_spill] sm:$0xff] %v24220_v8 }
 0x411   : > { %v24222_v28 = vpop.f32.mrf.mxu2  ;;  %v24224_v29 = vpop.f32.mrf.mxu3 }
 0x412   : > { %27682 = vst [vmem:[#allocation173_spill] sm:$0xff] %v24222_v28  ;;  %v24226_v59 = vpop.f32.mrf.mxu1 }
 0x413   : > { %27683 = vst [vmem:[#allocation174_spill] sm:$0xff] %v24224_v29  ;;  %v694_v29 = vadd.f32 %v21723_v49, %v21617_v51  ;;  %v794_v51 = vadd.f32 %v21790_v39, %v21664_v12 }
 0x414   : > { %27684 = vst [vmem:[#allocation175_spill] sm:$0xff] %v24226_v59  ;;  %v24228_v6 = vpop.f32.mrf.mxu0 }
 0x415   : > { %v1385_v28 = vadd.f32 %v21849_v33, %v694_v29  ;;  %v854_v33 = vadd.f32 %v21794_v41, %v21668_v20  ;;  %v27694_v20 = vld [vmem:[#allocation7_spill] sm:$0xff] }
 0x417   : > { %v1393_v41 = vadd.f32 %v27694_v20, %v854_v33  ;;  %v27705_v20 = vld [vmem:[#allocation40_spill] sm:$0xff] }
 0x419   : > { %v24230_v53 = vpop.f32.mrf.mxu2  ;;  %v24232_v60 = vpop.f32.mrf.mxu3 }
 0x41a   : > { %27685 = vst [vmem:[#allocation176_spill] sm:$0xff] %v24230_v53  ;;  %v24234_v44 = vpop.f32.mrf.mxu1  ;;  %v1790_v53 = vadd.f32 %v21961_v13, %v1385_v28 }
 0x41b   : > { %27686 = vst [vmem:[#allocation177_spill] sm:$0xff] %v24232_v60  ;;  %v714_v60 = vadd.f32 %v21756_v5, %v21640_v62  ;;  %v874_v62 = vadd.f32 %v21819_v61, %v21691_v32  ;;  %v27696_v61 = vld [vmem:[#allocation11_spill] sm:$0xff] }
 0x41c   : > { %v24236_v50 = vpop.f32.mrf.mxu0 }
 0x41d   : > { %27687 = vst [vmem:[#allocation178_spill] sm:$0xff] %v24236_v50  ;;  %v2195_v50 = vadd.f32 %v22069_v14, %v1790_v53  ;;  %v1386_v5 = vadd.f32 %v21880_v23, %v714_v60  ;;  %v934_v14 = vadd.f32 %v21823_v4, %v21695_v34  ;;  %v27695_v53 = vld [vmem:[#allocation8_spill] sm:$0xff]  ;;  %v27699_v34 = vld [vmem:[#allocation10_spill] sm:$0xff] }
 0x41e   : > { %v1394_v32 = vadd.f32 %v27695_v53, %v874_v62  ;;  %v27697_v60 = vld [vmem:[#allocation32_spill] sm:$0xff] }
 0x41f   : > { %v2600_v13 = vadd.f32 %v22177_v57, %v2195_v50  ;;  %v1791_v23 = vadd.f32 %v27696_v61, %v1386_v5  ;;  %v27698_v50 = vld [vmem:[#allocation9_spill] sm:$0xff]  ;;  %v27706_v53 = vld [vmem:[#allocation16_spill] sm:$0xff] }
 0x420   : > { %v1397_v28 = vadd.f32 %v27698_v50, %v934_v14  ;;  %v27707_v61 = vld [vmem:[#allocation17_spill] sm:$0xff]  ;;  %v27709_v50 = vld [vmem:[#allocation20_spill] sm:$0xff] }
 0x421   : > { %v24238_v25 = vpop.f32.mrf.mxu2  ;;  %v24240_v19 = vpop.f32.mrf.mxu3  ;;  %v3005_v57 = vadd.f32 %v27697_v60, %v2600_v13  ;;  %v27708_v60 = vld [vmem:[#allocation19_spill] sm:$0xff] }
 0x422   : > { %27688 = vst [vmem:[#allocation179_spill] sm:$0xff] %v24238_v25  ;;  %v24242_v8 = vpop.f32.mrf.mxu1  ;;  %v1802_v5 = vadd.f32 %v27706_v53, %v1397_v28  ;;  %v27716_v28 = vld [vmem:[#allocation24_spill] sm:$0xff]  ;;  %v27718_v53 = vld [vmem:[#allocation27_spill] sm:$0xff] }
 0x423   : > { %27689 = vst [vmem:[#allocation180_spill] sm:$0xff] %v24242_v8  ;;  %v774_v8 = vadd.f32 %v21760_v9, %v21644_v2  ;;  %v954_v2 = vadd.f32 %v21845_v30, %v21719_v3  ;;  %v27692_v9 = vld [vmem:[#allocation6_spill] sm:$0xff]  ;;  %v27701_v30 = vld [vmem:[#allocation13_spill] sm:$0xff]  ;;  %v3410_v62 = vadd.f32 %v27705_v20, %v3005_v57 }
 0x424   : > { %v24246_v59 = vpop.f32.mrf.mxu0  ;;  %v1390_v39 = vadd.f32 %v27692_v9, %v794_v51  ;;  %v27703_v9 = vld [vmem:[#allocation15_spill] sm:$0xff]  ;;  %v27717_v20 = vld [vmem:[#allocation26_spill] sm:$0xff] }
 0x425   : > { %v1389_v12 = vadd.f32 %v21884_v0, %v774_v8  ;;  %v1398_v4 = vadd.f32 %v27699_v34, %v954_v2  ;;  %v27702_v8 = vld [vmem:[#allocation14_spill] sm:$0xff]  ;;  %v27710_v34 = vld [vmem:[#allocation21_spill] sm:$0xff] }
 0x426   : > { %v1795_v0 = vadd.f32 %v27701_v30, %v1390_v39  ;;  %v1798_v51 = vadd.f32 %v27702_v8, %v1393_v41  ;;  %v27712_v30 = vld [vmem:[#allocation25_spill] sm:$0xff]  ;;  %v27713_v8 = vld [vmem:[#allocation48_spill] sm:$0xff] }
 0x427   : > { %v1803_v13 = vadd.f32 %v27707_v61, %v1398_v4 }
 0x428   : > { %v2200_v2 = vadd.f32 %v27709_v50, %v1795_v0  ;;  %v27722_v50 = vld [vmem:[#allocation33_spill] sm:$0xff] }
 0x429   : > { %v24253_v54 = vpop.f32.mrf.mxu2  ;;  %v24255_v25 = vpop.f32.mrf.mxu3  ;;  %v2208_v4 = vadd.f32 %v27716_v28, %v1803_v13  ;;  %v27726_v28 = vld [vmem:[#allocation35_spill] sm:$0xff] }
 0x42a   : > { %27690 = vst [vmem:[#allocation181_spill] sm:$0xff] %v24255_v25  ;;  %v24261_v49 = vpop.f32.mrf.mxu1  ;;  %v27704_v25 = vld [vmem:[#allocation18_spill] sm:$0xff]  ;;  %v2605_v0 = vadd.f32 %v27718_v53, %v2200_v2  ;;  %v27727_v2 = vld [vmem:[#allocation36_spill] sm:$0xff] }
 0x42b   : > { %27691 = vst [vmem:[#allocation182_spill] sm:$0xff] %v24261_v49  ;;  %v27700_v49 = vld [vmem:[#allocation12_spill] sm:$0xff]  ;;  %v2196_v33 = vadd.f32 %v27704_v25, %v1791_v23  ;;  %v27715_v23 = vld [vmem:[#allocation23_spill] sm:$0xff] }
 0x42c   : > { %v24275_v29 = vpop.f32.mrf.mxu0  ;;  %v1794_v3 = vadd.f32 %v27700_v49, %v1389_v12  ;;  %v2203_v49 = vadd.f32 %v27710_v34, %v1798_v51  ;;  %v27711_v12 = vld [vmem:[#allocation22_spill] sm:$0xff]  ;;  %v2207_v57 = vadd.f32 %v27715_v23, %v1802_v5  ;;  %v27720_v51 = vld [vmem:[#allocation28_spill] sm:$0xff] }
 0x42d   : > { %27693 = vst [vmem:[#allocation6_spill] sm:$0xff] %v24275_v29  ;;  %v1799_v29 = vadd.f32 %v27703_v9, %v1394_v32  ;;  %v2601_v41 = vadd.f32 %v27712_v30, %v2196_v33  ;;  %v3815_v32 = vadd.f32 %v27713_v8, %v3410_v62  ;;  %v27724_v8 = vld [vmem:[#allocation31_spill] sm:$0xff]  ;;  %v27725_v23 = vld [vmem:[#allocation34_spill] sm:$0xff] }
 0x42e   : > { %v2199_v14 = vadd.f32 %v27708_v60, %v1794_v3  ;;  %v27721_v60 = vld [vmem:[#allocation29_spill] sm:$0xff]  ;;  %v2613_v5 = vadd.f32 %v27724_v8, %v2208_v4  ;;  %v27734_v8 = vld [vmem:[#allocation44_spill] sm:$0xff] }
 0x42f   : > { %v2204_v39 = vadd.f32 %v27711_v12, %v1799_v29  ;;  %v2608_v29 = vadd.f32 %v27720_v51, %v2203_v49  ;;  %v3006_v62 = vadd.f32 %v27722_v50, %v2601_v41  ;;  %v4252_v34 = vadd.f32 %v22695_v36, %v3815_v32  ;;  %v27723_v12 = vld [vmem:[#allocation30_spill] sm:$0xff]  ;;  %v27729_v51 = vld [vmem:[#allocation41_spill] sm:$0xff]  ;;  %v27731_v32 = vld [vmem:[#allocation39_spill] sm:$0xff] }
 0x430   : > { %v2604_v3 = vadd.f32 %v27717_v20, %v2199_v14  ;;  %v2612_v30 = vadd.f32 %v27723_v12, %v2207_v57  ;;  %v3010_v14 = vadd.f32 %v27726_v28, %v2605_v0  ;;  %v3018_v57 = vadd.f32 %v27731_v32, %v2613_v5  ;;  %v27732_v50 = vld [vmem:[#allocation42_spill] sm:$0xff]  ;;  %v27733_v12 = vld [vmem:[#allocation43_spill] sm:$0xff]  ;;  %v27742_v32 = vld [vmem:[#allocation53_spill] sm:$0xff] }
 0x431   : > { %v24297_v9 = vpop.f32.mrf.mxu2  ;;  %v24299_v25 = vpop.f32.mrf.mxu3  ;;  %v2609_v33 = vadd.f32 %v27721_v60, %v2204_v39  ;;  %v3013_v53 = vadd.f32 %v27727_v2, %v2608_v29  ;;  %v3411_v39 = vadd.f32 %v27729_v51, %v3006_v62  ;;  %v4657_v41 = vadd.f32 %v22824_v21, %v4252_v34  ;;  %v27730_v60 = vld [vmem:[#allocation38_spill] sm:$0xff]  ;;  %v27738_v2 = vld [vmem:[#allocation47_spill] sm:$0xff] }
 0x432   : > { %27714 = vst [vmem:[#allocation7_spill] sm:$0xff] %v24299_v25  ;;  %v24305_v61 = vpop.f32.mrf.mxu1  ;;  %v3009_v13 = vadd.f32 %v27725_v23, %v2604_v3  ;;  %v3017_v36 = vadd.f32 %v27730_v60, %v2612_v30  ;;  %v3415_v3 = vadd.f32 %v27733_v12, %v3010_v14  ;;  %v27735_v23 = vld [vmem:[#allocation45_spill] sm:$0xff]  ;;  %v3423_v21 = vadd.f32 %v27738_v2, %v3018_v57  ;;  %v27739_v34 = vld [vmem:[#allocation50_spill] sm:$0xff]  ;;  %v27740_v51 = vld [vmem:[#allocation51_spill] sm:$0xff] }
 0x433   : > { %27719 = vst [vmem:[#allocation8_spill] sm:$0xff] %v24305_v61  ;;  %v27728_v61 = vld [vmem:[#allocation37_spill] sm:$0xff]  ;;  %v3418_v0 = vadd.f32 %v27734_v8, %v3013_v53  ;;  %v27741_v60 = vld [vmem:[#allocation52_spill] sm:$0xff]  ;;  %v27745_v8 = vld [vmem:[#allocation58_spill] sm:$0xff] }
 0x434   : > { %v24315_v20 = vpop.f32.mrf.mxu0  ;;  %v3014_v49 = vadd.f32 %v27728_v61, %v2609_v33  ;;  %v3414_v4 = vadd.f32 %v27732_v50, %v3009_v13  ;;  %v27736_v25 = vld [vmem:[#allocation49_spill] sm:$0xff]  ;;  %v5062_v61 = vadd.f32 %v22948_v31, %v4657_v41  ;;  %v27737_v33 = vld [vmem:[#allocation46_spill] sm:$0xff]  ;;  %v3820_v5 = vadd.f32 %v27740_v51, %v3415_v3  ;;  %v27744_v41 = vld [vmem:[#allocation55_spill] sm:$0xff] }
 0x435   : > { %v3816_v29 = vadd.f32 %v27736_v25, %v3411_v39  ;;  %v3422_v62 = vadd.f32 %v27737_v33, %v3017_v36  ;;  %v3823_v13 = vadd.f32 %v27741_v60, %v3418_v0  ;;  %v27743_v31 = vld [vmem:[#allocation54_spill] sm:$0xff]  ;;  %v3828_v36 = vadd.f32 %v27744_v41, %v3423_v21  ;;  %v27746_v0 = vld [vmem:[#allocation79_spill] sm:$0xff]  ;;  %v27750_v21 = vld [vmem:[#allocation60_spill] sm:$0xff] }
 0x436   : > { %v3419_v28 = vadd.f32 %v27735_v23, %v3014_v49  ;;  %v3819_v30 = vadd.f32 %v27739_v34, %v3414_v4  ;;  %v5467_v49 = vadd.f32 %v23062_v37, %v5062_v61  ;;  %v4257_v4 = vadd.f32 %v22755_v63, %v3820_v5  ;;  %v27748_v61 = vld [vmem:[#allocation57_spill] sm:$0xff]  ;;  %v27752_v51 = vld [vmem:[#allocation62_spill] sm:$0xff]  ;;  %v27754_v60 = vld [vmem:[#allocation87_spill] sm:$0xff] }
 0x437   : > { %v4253_v53 = vadd.f32 %v22725_v46, %v3816_v29  ;;  %v3827_v39 = vadd.f32 %v27743_v31, %v3422_v62  ;;  %v4260_v3 = vadd.f32 %v22759_v48, %v3823_v13  ;;  %v4265_v33 = vadd.f32 %v27748_v61, %v3828_v36  ;;  %v27749_v62 = vld [vmem:[#allocation59_spill] sm:$0xff]  ;;  %v27751_v63 = vld [vmem:[#allocation61_spill] sm:$0xff]  ;;  %v27757_v31 = vld [vmem:[#allocation66_spill] sm:$0xff] }
 0x438   : > { %v3824_v14 = vadd.f32 %v27742_v32, %v3419_v28  ;;  %v4256_v57 = vadd.f32 %v22729_v47, %v3819_v30  ;;  %v5872_v23 = vadd.f32 %v27746_v0, %v5467_v49  ;;  %v27747_v28 = vld [vmem:[#allocation56_spill] sm:$0xff]  ;;  %v4662_v47 = vadd.f32 %v27750_v21, %v4257_v4  ;;  %v27753_v5 = vld [vmem:[#allocation65_spill] sm:$0xff]  ;;  %v27755_v32 = vld [vmem:[#allocation63_spill] sm:$0xff] }
 0x439   : > { %v24337_v50 = vpop.f32.mrf.mxu2  ;;  %v24339_v25 = vpop.f32.mrf.mxu3  ;;  %v4658_v37 = vadd.f32 %v27745_v8, %v4253_v53  ;;  %v4264_v29 = vadd.f32 %v27747_v28, %v3827_v39  ;;  %v4665_v30 = vadd.f32 %v27751_v63, %v4260_v3  ;;  %v27756_v53 = vld [vmem:[#allocation64_spill] sm:$0xff]  ;;  %v27758_v41 = vld [vmem:[#allocation67_spill] sm:$0xff]  ;;  %v27760_v8 = vld [vmem:[#allocation69_spill] sm:$0xff] }
 0x43a   : > { %v24345_v12 = vpop.f32.mrf.mxu1  ;;  %v4261_v46 = vadd.f32 %v22784_v43, %v3824_v14  ;;  %v4661_v2 = vadd.f32 %v27749_v62, %v4256_v57  ;;  %v6277_v13 = vadd.f32 %v27754_v60, %v5872_v23  ;;  %v4670_v49 = vadd.f32 %v27756_v53, %v4265_v33  ;;  %v27759_v57 = vld [vmem:[#allocation68_spill] sm:$0xff]  ;;  %v27762_v61 = vld [vmem:[#allocation95_spill] sm:$0xff]  ;;  %v27763_v62 = vld [vmem:[#allocation70_spill] sm:$0xff] }
 0x43b   : > { %v5063_v43 = vadd.f32 %v27753_v5, %v4658_v37  ;;  %v4669_v14 = vadd.f32 %v27755_v32, %v4264_v29  ;;  %v5067_v36 = vadd.f32 %v27758_v41, %v4662_v47  ;;  %v5070_v4 = vadd.f32 %v27759_v57, %v4665_v30  ;;  %v27761_v28 = vld [vmem:[#allocation72_spill] sm:$0xff]  ;;  %v27764_v21 = vld [vmem:[#allocation71_spill] sm:$0xff]  ;;  %v27765_v63 = vld [vmem:[#allocation73_spill] sm:$0xff] }
 0x43c   : > { %v24355_v34 = vpop.f32.mrf.mxu0  ;;  %v4666_v48 = vadd.f32 %v27752_v51, %v4261_v46  ;;  %v5066_v39 = vadd.f32 %v27757_v31, %v4661_v2  ;;  %v6682_v46 = vadd.f32 %v27762_v61, %v6277_v13  ;;  %v5075_v23 = vadd.f32 %v27764_v21, %v4670_v49  ;;  %v27766_v51 = vld [vmem:[#allocation74_spill] sm:$0xff]  ;;  %v27767_v5 = vld [vmem:[#allocation75_spill] sm:$0xff]  ;;  %v27768_v60 = vld [vmem:[#allocation76_spill] sm:$0xff] }
 0x43d   : > { %v5468_v3 = vadd.f32 %v27761_v28, %v5063_v43  ;;  %v5074_v37 = vadd.f32 %v27763_v62, %v4669_v14  ;;  %v5472_v33 = vadd.f32 %v27766_v51, %v5067_v36  ;;  %v5475_v2 = vadd.f32 %v27767_v5, %v5070_v4  ;;  %v27769_v32 = vld [vmem:[#allocation80_spill] sm:$0xff]  ;;  %v27770_v53 = vld [vmem:[#allocation103_spill] sm:$0xff]  ;;  %v27771_v13 = vld [vmem:[#allocation77_spill] sm:$0xff] }
 0x43e   : > { %v5071_v0 = vadd.f32 %v27760_v8, %v4666_v48  ;;  %v5471_v29 = vadd.f32 %v27765_v63, %v5066_v39  ;;  %v7124_v48 = vadd.f32 %v27770_v53, %v6682_v46  ;;  %v27772_v41 = vld [vmem:[#allocation78_spill] sm:$0xff]  ;;  %v27773_v57 = vld [vmem:[#allocation81_spill] sm:$0xff]  ;;  %v27775_v4 = vld [vmem:[#allocation83_spill] sm:$0xff] }
 0x43f   : > { %v5873_v30 = vadd.f32 %v27769_v32, %v5468_v3  ;;  %v5479_v14 = vadd.f32 %v27771_v13, %v5074_v37  ;;  %v5480_v49 = vadd.f32 %v27772_v41, %v5075_v23  ;;  %v27774_v8 = vld [vmem:[#allocation82_spill] sm:$0xff]  ;;  %v27776_v61 = vld [vmem:[#allocation84_spill] sm:$0xff]  ;;  %v27778_v63 = vld [vmem:[#allocation85_spill] sm:$0xff] }
 0x440   : > { %v5476_v47 = vadd.f32 %v27768_v60, %v5071_v0  ;;  %v5876_v39 = vadd.f32 %v27773_v57, %v5471_v29  ;;  %v5877_v36 = vadd.f32 %v27774_v8, %v5472_v33  ;;  %v5880_v0 = vadd.f32 %v27775_v4, %v5475_v2  ;;  %v27777_v62 = vld [vmem:[#allocation88_spill] sm:$0xff]  ;;  %v27779_v5 = vld [vmem:[#allocation86_spill] sm:$0xff]  ;;  %v27780_v60 = vld [vmem:[#allocation89_spill] sm:$0xff] }
 0x441   : > { %v24377_v31 = vpop.f32.mrf.mxu2  ;;  %v24379_v43 = vpop.f32.mrf.mxu3  ;;  %v6278_v46 = vadd.f32 %v27777_v62, %v5873_v30  ;;  %v7532_v21 = vadd.f32 %v23632_v26, %v7124_v48  ;;  %v5884_v51 = vadd.f32 %v27778_v63, %v5479_v14  ;;  %v5885_v37 = vadd.f32 %v27779_v5, %v5480_v49  ;;  %v27781_v32 = vld [vmem:[#allocation90_spill] sm:$0xff]  ;;  %v27782_v33 = vld [vmem:[#allocation91_spill] sm:$0xff]  ;;  %v27783_v41 = vld [vmem:[#allocation92_spill] sm:$0xff] }
 0x442   : > { %v24385_v28 = vpop.f32.mrf.mxu1  ;;  %v5881_v3 = vadd.f32 %v27776_v61, %v5476_v47  ;;  %v6281_v23 = vadd.f32 %v27780_v60, %v5876_v39  ;;  %v6282_v29 = vadd.f32 %v27781_v32, %v5877_v36  ;;  %v6285_v13 = vadd.f32 %v27782_v33, %v5880_v0  ;;  %v27784_v57 = vld [vmem:[#allocation96_spill] sm:$0xff]  ;;  %v27785_v8 = vld [vmem:[#allocation93_spill] sm:$0xff]  ;;  %v27786_v48 = vld [vmem:[#allocation94_spill] sm:$0xff] }
 0x443   : > { %v6683_v47 = vadd.f32 %v27784_v57, %v6278_v46  ;;  %v7969_v30 = vadd.f32 %v23744_v11, %v7532_v21  ;;  %v6289_v26 = vadd.f32 %v27785_v8, %v5884_v51  ;;  %v6290_v14 = vadd.f32 %v27786_v48, %v5885_v37  ;;  %v27787_v4 = vld [vmem:[#allocation97_spill] sm:$0xff]  ;;  %v27788_v61 = vld [vmem:[#allocation98_spill] sm:$0xff]  ;;  %v27789_v62 = vld [vmem:[#allocation99_spill] sm:$0xff] }
 0x444   : > { %v24395_v53 = vpop.f32.mrf.mxu0  ;;  %v6286_v2 = vadd.f32 %v27783_v41, %v5881_v3  ;;  %v6686_v49 = vadd.f32 %v27787_v4, %v6281_v23  ;;  %v6687_v39 = vadd.f32 %v27788_v61, %v6282_v29  ;;  %v6690_v36 = vadd.f32 %v27789_v62, %v6285_v13  ;;  %v27790_v63 = vld [vmem:[#allocation100_spill] sm:$0xff]  ;;  %v27792_v32 = vld [vmem:[#allocation101_spill] sm:$0xff]  ;;  %v27793_v33 = vld [vmem:[#allocation102_spill] sm:$0xff] }
 0x445   : > { %v27791_v60 = vld [vmem:[#allocation104_spill] sm:$0xff]  ;;  %v8374_v3 = vadd.f32 %v23836_v56, %v7969_v30  ;;  %v6694_v46 = vadd.f32 %v27792_v32, %v6289_v26  ;;  %v6695_v11 = vadd.f32 %v27793_v33, %v6290_v14  ;;  %v27794_v21 = vld [vmem:[#allocation105_spill] sm:$0xff]  ;;  %v27795_v41 = vld [vmem:[#allocation106_spill] sm:$0xff] }
 0x446   : > { %v6691_v5 = vadd.f32 %v27790_v63, %v6286_v2  ;;  %v7125_v0 = vadd.f32 %v27791_v60, %v6683_v47  ;;  %v7128_v51 = vadd.f32 %v27794_v21, %v6686_v49  ;;  %v7129_v37 = vadd.f32 %v27795_v41, %v6687_v39  ;;  %v27796_v57 = vld [vmem:[#allocation107_spill] sm:$0xff]  ;;  %v27797_v8 = vld [vmem:[#allocation108_spill] sm:$0xff]  ;;  %v27798_v56 = vld [vmem:[#allocation109_spill] sm:$0xff] }
 0x447   : > { %v7132_v23 = vadd.f32 %v27796_v57, %v6690_v36  ;;  %v8779_v2 = vadd.f32 %v23930_v38, %v8374_v3  ;;  %v7136_v30 = vadd.f32 %v27798_v56, %v6694_v46  ;;  %v27799_v26 = vld [vmem:[#allocation110_spill] sm:$0xff]  ;;  %v27800_v4 = vld [vmem:[#allocation111_spill] sm:$0xff]  ;;  %v27801_v62 = vld [vmem:[#allocation112_spill] sm:$0xff] }
 0x448   : > { %v7133_v29 = vadd.f32 %v27797_v8, %v6691_v5  ;;  %v7533_v13 = vadd.f32 %v23659_v35, %v7125_v0  ;;  %v7137_v14 = vadd.f32 %v27799_v26, %v6695_v11  ;;  %v7536_v49 = vadd.f32 %v27800_v4, %v7128_v51  ;;  %v27802_v63 = vld [vmem:[#allocation115_spill] sm:$0xff]  ;;  %v27803_v60 = vld [vmem:[#allocation113_spill] sm:$0xff]  ;;  %v27804_v3 = vld [vmem:[#allocation114_spill] sm:$0xff] }
 0x449   : > { %v24417_v48 = vpop.f32.mrf.mxu2  ;;  %v24419_v47 = vpop.f32.mrf.mxu3  ;;  %v7537_v61 = vadd.f32 %v23685_v45, %v7129_v37  ;;  %v7540_v36 = vadd.f32 %v27801_v62, %v7132_v23  ;;  %v9184_v5 = vadd.f32 %v24022_v7, %v8779_v2  ;;  %v7544_v0 = vadd.f32 %v27803_v60, %v7136_v30  ;;  %v27805_v46 = vld [vmem:[#allocation116_spill] sm:$0xff]  ;;  %v27806_v11 = vld [vmem:[#allocation117_spill] sm:$0xff]  ;;  %v27807_v45 = vld [vmem:[#allocation118_spill] sm:$0xff] }
 0x44a   : > { %v24425_v39 = vpop.f32.mrf.mxu1  ;;  %v7541_v35 = vadd.f32 %v23712_v1, %v7133_v29  ;;  %v7970_v38 = vadd.f32 %v27802_v63, %v7533_v13  ;;  %v7545_v32 = vadd.f32 %v27804_v3, %v7137_v14  ;;  %v7973_v33 = vadd.f32 %v27805_v46, %v7536_v49  ;;  %v27808_v37 = vld [vmem:[#allocation119_spill] sm:$0xff]  ;;  %v27809_v23 = vld [vmem:[#allocation122_spill] sm:$0xff]  ;;  %v27810_v29 = vld [vmem:[#allocation120_spill] sm:$0xff] }
 0x44b   : > { %v7974_v21 = vadd.f32 %v27806_v11, %v7537_v61  ;;  %v7977_v41 = vadd.f32 %v27807_v45, %v7540_v36  ;;  %v9589_v8 = vadd.f32 %v24111_v17, %v9184_v5  ;;  %v7981_v7 = vadd.f32 %v27810_v29, %v7544_v0  ;;  %v27811_v13 = vld [vmem:[#allocation121_spill] sm:$0xff]  ;;  %v27812_v56 = vld [vmem:[#allocation123_spill] sm:$0xff]  ;;  %v27813_v26 = vld [vmem:[#allocation124_spill] sm:$0xff] }
 0x44c   : > { %v24435_v51 = vpop.f32.mrf.mxu0  ;;  %v7978_v57 = vadd.f32 %v27808_v37, %v7541_v35  ;;  %v8375_v1 = vadd.f32 %v27809_v23, %v7970_v38  ;;  %v7982_v2 = vadd.f32 %v27811_v13, %v7545_v32  ;;  %v8378_v30 = vadd.f32 %v27812_v56, %v7973_v33  ;;  %v27814_v4 = vld [vmem:[#allocation125_spill] sm:$0xff]  ;;  %v27815_v61 = vld [vmem:[#allocation126_spill] sm:$0xff]  ;;  %v27816_v63 = vld [vmem:[#allocation127_spill] sm:$0xff] }
 0x44d   : > { %v8379_v14 = vadd.f32 %v27813_v26, %v7974_v21  ;;  %v8382_v49 = vadd.f32 %v27814_v4, %v7977_v41  ;;  %v9994_v35 = vadd.f32 %v24190_v22, %v9589_v8  ;;  %v8386_v38 = vadd.f32 %v27816_v63, %v7981_v7  ;;  %v27817_v60 = vld [vmem:[#allocation128_spill] sm:$0xff]  ;;  %v27818_v5 = vld [vmem:[#allocation129_spill] sm:$0xff] }
 0x44e   : > { %v8383_v62 = vadd.f32 %v27815_v61, %v7978_v57  ;;  %v8780_v36 = vadd.f32 %v23955_v55, %v8375_v1  ;;  %v8387_v17 = vadd.f32 %v27817_v60, %v7982_v2  ;;  %v8783_v0 = vadd.f32 %v27818_v5, %v8378_v30  ;;  %v27819_v32 = vld [vmem:[#allocation132_spill] sm:$0xff]  ;;  %v27820_v57 = vld [vmem:[#allocation130_spill] sm:$0xff]  ;;  %v27824_v29 = vld [vmem:[#allocation141_spill] sm:$0xff] }
 0x44f   : > { %v8784_v3 = vadd.f32 %v23977_v58, %v8379_v14  ;;  %v8787_v46 = vadd.f32 %v27819_v32, %v8382_v49  ;;  %v10399_v21 = vadd.f32 %v24228_v6, %v9994_v35  ;;  %v8791_v22 = vadd.f32 %v24000_v24, %v8386_v38  ;;  %v27821_v58 = vld [vmem:[#allocation139_spill] sm:$0xff]  ;;  %v27823_v8 = vld [vmem:[#allocation140_spill] sm:$0xff]  ;;  %v27825_v2 = vld [vmem:[#allocation142_spill] sm:$0xff] }
 0x450   : > { %v8788_v33 = vadd.f32 %v23998_v40, %v8383_v62  ;;  %v9185_v11 = vadd.f32 %v24047_v52, %v8780_v36  ;;  %v8792_v41 = vadd.f32 %v24020_v10, %v8387_v17  ;;  %v9188_v37 = vadd.f32 %v24049_v16, %v8783_v0  ;;  %v27822_v40 = vld [vmem:[#allocation131_spill] sm:$0xff]  ;;  %v27826_v56 = vld [vmem:[#allocation133_spill] sm:$0xff]  ;;  %v27828_v16 = vld [vmem:[#allocation134_spill] sm:$0xff]  ;;  %v24479_v62 = vpop.permute.xlu0 %11228 }
 0x451   : > { %v24457_v45 = vpop.f32.mrf.mxu2  ;;  %v24459_v55 = vpop.f32.mrf.mxu3  ;;  %v9186_v23 = vadd.f32 %v27821_v58, %v27820_v57  ;;  %v9187_v52 = vadd.f32 %v27823_v8, %v27822_v40  ;;  %v9189_v6 = vadd.f32 %v27824_v29, %v8784_v3  ;;  %v10804_v13 = vadd.f32 %v24315_v20, %v10399_v21  ;;  %v27827_v10 = vld [vmem:[#allocation143_spill] sm:$0xff]  ;;  %v27829_v26 = vld [vmem:[#allocation144_spill] sm:$0xff]  ;;  %v27830_v4 = vld [vmem:[#allocation145_spill] sm:$0xff] }
 0x452   : > { %v24466_v1 = vpop.f32.mrf.mxu1  ;;  %v9590_v7 = vadd.f32 %v24134_v15, %v9185_v11  ;;  %v9192_v24 = vadd.f32 %v27825_v2, %v8787_v46  ;;  %v9190_v30 = vadd.f32 %v27827_v10, %v27826_v56  ;;  %v9191_v14 = vadd.f32 %v27829_v26, %v27828_v16  ;;  %v24484_v36 = vld [vmem:[%s27472_s5] sm:$0xff]  ;;  %v27832_v60 = vld [vmem:[#allocation135_spill] sm:$0xff]  ;;  %v27834_v0 = vld [vmem:[#allocation136_spill] sm:$0xff] }
 0x453   : > { %v9193_v49 = vadd.f32 %v27830_v4, %v8788_v33  ;;  %v27831_v15 = vld [vmem:[#allocation146_spill] sm:$0xff]  ;;  %v9593_v35 = vadd.f32 %v24136_v42, %v9188_v37  ;;  %v27833_v17 = vld [vmem:[#allocation147_spill] sm:$0xff]  ;;  %v27835_v3 = vld [vmem:[#allocation148_spill] sm:$0xff] }
 0x454   : > { %v10906_v61 = vpop.f32.mrf.mxu0  ;;  %v9196_v20 = vadd.f32 %v27831_v15, %v8791_v22  ;;  %v9995_v63 = vadd.f32 %v24202_v18, %v9590_v7  ;;  %v9194_v5 = vadd.f32 %v27833_v17, %v27832_v60  ;;  %v9195_v32 = vadd.f32 %v27835_v3, %v27834_v0  ;;  %v27836_v46 = vld [vmem:[#allocation149_spill] sm:$0xff]  ;;  %v27838_v21 = vld [vmem:[#allocation150_spill] sm:$0xff]  ;;  %v27840_v40 = vld [vmem:[#allocation151_spill] sm:$0xff] }
 0x455   : > { %v11209_v38 = vadd.f32 %v10906_v61, %v10804_v13  ;;  %v9197_v33 = vadd.f32 %v27836_v46, %v8792_v41  ;;  %v27837_v11 = vld [vmem:[#allocation137_spill] sm:$0xff]  ;;  %v9998_v58 = vadd.f32 %v24204_v27, %v9593_v35  ;;  %v11267_v18 = vperm.slane %v24484_v36, 0  ;;  %v27839_v37 = vld [vmem:[#allocation138_spill] sm:$0xff]  ;;  %v27841_v29 = vld [vmem:[#allocation152_spill] sm:$0xff] }
 0x456   : > { %v9198_v57 = vadd.f32 %v27838_v21, %v27837_v11  ;;  %v10400_v22 = vadd.f32 %v24234_v44, %v9995_v63  ;;  %v24502_v8 = vadd.f32 %v27840_v40, %v27839_v37  ;;  %v9591_v7 = vadd.f32 %v27841_v29, %v9186_v23  ;;  %v27842_v13 = vld [vmem:[#allocation153_spill] sm:$0xff]  ;;  %v27843_v41 = vld [vmem:[#allocation154_spill] sm:$0xff]  ;;  %v27844_v10 = vld [vmem:[#allocation155_spill] sm:$0xff] }
 0x457   : > { %v11231_v42 = vadd.f32 %v24479_v62, %v11209_v38  ;;  %v9592_v2 = vadd.f32 %v27842_v13, %v9187_v52  ;;  %v9594_v56 = vadd.f32 %v27843_v41, %v9189_v6  ;;  %v9597_v16 = vadd.f32 %v27844_v10, %v9192_v24  ;;  %v27845_v26 = vld [vmem:[#allocation178_spill] sm:$0xff]  ;;  %v27846_v35 = vld [vmem:[#allocation156_spill] sm:$0xff]  ;;  %v27847_v38 = vld [vmem:[#allocation157_spill] sm:$0xff] }
 0x458   : > { %v10403_v27 = vadd.f32 %v27845_v26, %v9998_v58  ;;  %v10805_v44 = vadd.f32 %v24345_v12, %v10400_v22  ;;  %v9595_v63 = vadd.f32 %v27846_v35, %v9190_v30  ;;  %v9596_v60 = vadd.f32 %v27847_v38, %v9191_v14  ;;  %v27848_v23 = vld [vmem:[#allocation158_spill] sm:$0xff]  ;;  %v27849_v52 = vld [vmem:[#allocation159_spill] sm:$0xff]  ;;  %v27850_v3 = vld [vmem:[#allocation160_spill] sm:$0xff] }
 0x459   : > { %v24510_v4 = vpop.f32.mrf.mxu2  ;;  %v24512_v61 = vpop.f32.mrf.mxu3  ;;  %v11247_v15 = vmax.f32 %v11231_v42, 0.0  ;;  %v9598_v17 = vadd.f32 %v27848_v23, %v9193_v49  ;;  %v9601_v0 = vadd.f32 %v27849_v52, %v9196_v20  ;;  %v9599_v24 = vadd.f32 %v27850_v3, %v9194_v5  ;;  %v27851_v21 = vld [vmem:[#allocation161_spill] sm:$0xff]  ;;  %v27852_v22 = vld [vmem:[#allocation162_spill] sm:$0xff]  ;;  %v27855_v20 = vld [vmem:[#allocation167_spill] sm:$0xff] }
 0x45a   : > { %v10926_v6 = vpop.f32.mrf.mxu1  ;;  %v10808_v46 = vadd.f32 %v24355_v34, %v10403_v27  ;;  %v24523_v58 = vadd.f32 %v27851_v21, %v9195_v32  ;;  %v24526_v42 = vadd.f32 %v27852_v22, %v9197_v33  ;;  %v27853_v30 = vld [vmem:[#allocation165_spill] sm:$0xff]  ;;  %v27854_v37 = vld [vmem:[#allocation166_spill] sm:$0xff]  ;;  %v9999_v29 = vadd.f32 %v27855_v20, %v9594_v56  ;;  %v27857_v32 = vld [vmem:[#allocation168_spill] sm:$0xff] }
 0x45b   : > { %v11210_v11 = vadd.f32 %v10926_v6, %v10805_v44  ;;  %v24520_v12 = vmul.f32 %v11267_v18, %v11247_v15  ;;  %v9996_v14 = vadd.f32 %v27853_v30, %v9591_v7  ;;  %v9997_v49 = vadd.f32 %v27854_v37, %v9592_v2  ;;  %v27856_v18 = vld [vmem:[#allocation163_spill] sm:$0xff]  ;;  %v27859_v7 = vld [vmem:[#allocation180_spill] sm:$0xff]  ;;  %v27860_v35 = vld [vmem:[#allocation169_spill] sm:$0xff] }
 0x45c   : > { %v10986_v40 = vpop.f32.mrf.mxu0  ;;  %v11268_v34 = vperm.slane %v24484_v36, 1  ;;  %v24534_v41 = vadd.f32 %v27856_v18, %v9198_v57  ;;  %v10002_v10 = vadd.f32 %v27857_v32, %v9597_v16  ;;  %v27858_v26 = vld [vmem:[#allocation179_spill] sm:$0xff]  ;;  %v10404_v44 = vadd.f32 %v27859_v7, %v9999_v29  ;;  %v27861_v23 = vld [vmem:[#allocation170_spill] sm:$0xff] }
 0x45d   : > { %v11232_v5 = vadd.f32 %v24479_v62, %v11210_v11  ;;  %v11213_v13 = vadd.f32 %v10986_v40, %v10808_v46  ;;  %v10401_v33 = vadd.f32 %v27858_v26, %v9996_v14  ;;  %v10402_v27 = vadd.f32 %v24240_v19, %v9997_v49  ;;  %v27862_v22 = vld [vmem:[#allocation171_spill] sm:$0xff]  ;;  %v27863_v14 = vld [vmem:[#allocation172_spill] sm:$0xff]  ;;  %v27865_v26 = vld [vmem:[#allocation181_spill] sm:$0xff] }
 0x45e   : > { %v11271_v56 = vperm.slane %v24484_v36, 4  ;;  %v10000_v38 = vadd.f32 %v27860_v35, %v9595_v63  ;;  %v10001_v52 = vadd.f32 %v27861_v23, %v9596_v60  ;;  %v10407_v16 = vadd.f32 %v24246_v59, %v10002_v10 }
 0x45f   : > { %v11248_v2 = vmax.f32 %v11232_v5, 0.0  ;;  %v11235_v15 = vadd.f32 %v24479_v62, %v11213_v13  ;;  %v10806_v57 = vadd.f32 %v24377_v31, %v10401_v33  ;;  %v10807_v6 = vadd.f32 %v24379_v43, %v10402_v27  ;;  %v27864_v5 = vld [vmem:[#allocation173_spill] sm:$0xff] }
 0x460   : > { %v10809_v3 = vadd.f32 %v24385_v28, %v10404_v44  ;;  %v10003_v30 = vadd.f32 %v27862_v22, %v9598_v17  ;;  %v10006_v37 = vadd.f32 %v27863_v14, %v9601_v0  ;;  %v10812_v31 = vadd.f32 %v24395_v53, %v10407_v16  ;;  %v24566_v53 = vld [vmem:[%s27472_s5 + $0x8] sm:$0xff]  ;;  %v27866_v44 = vld [vmem:[#allocation182_spill] sm:$0xff] }
 0x461   : > { %v24548_v19 = vmul.f32 %v11268_v34, %v11248_v2  ;;  %v11251_v46 = vmax.f32 %v11235_v15, 0.0  ;;  %v10946_v11 = vpop.f32.mrf.mxu2  ;;  %v10966_v21 = vpop.f32.mrf.mxu3  ;;  %v11269_v20 = vperm.slane %v24484_v36, 2  ;;  %v11270_v0 = vperm.slane %v24484_v36, 3 }
 0x462   : > { %v11211_v63 = vadd.f32 %v10946_v11, %v10806_v57  ;;  %v11212_v49 = vadd.f32 %v10966_v21, %v10807_v6  ;;  %v11006_v60 = vpop.f32.mrf.mxu1  ;;  %v10004_v34 = vadd.f32 %v27864_v5, %v9599_v24  ;;  %v11272_v18 = vperm.slane %v24484_v36, 5  ;;  %v27868_v21 = vld [vmem:[#allocation174_spill] sm:$0xff] }
 0x463   : > { %v24553_v40 = vmul.f32 %v11271_v56, %v11251_v46  ;;  %v11214_v43 = vadd.f32 %v11006_v60, %v10809_v3  ;;  %v24557_v59 = vpack.i.bf16 %v24548_v19, %v24520_v12  ;;  %v10405_v10 = vadd.f32 %v24253_v54, %v10000_v38  ;;  %v27867_v54 = vld [vmem:[#allocation6_spill] sm:$0xff] }
 0x464   : > { %v11233_v28 = vadd.f32 %v24479_v62, %v11211_v63  ;;  %v11234_v17 = vadd.f32 %v24479_v62, %v11212_v49  ;;  %v11066_v29 = vpop.f32.mrf.mxu0  ;;  %v10406_v33 = vadd.f32 %v27865_v26, %v10001_v52  ;;  %v10408_v2 = vadd.f32 %v27866_v44, %v10003_v30 }
 0x465   : > { %v11236_v13 = vadd.f32 %v24479_v62, %v11214_v43  ;;  %v11217_v32 = vadd.f32 %v11066_v29, %v10812_v31  ;;  %20349 = vrot.lane.b32.xlu1 %v24557_v59, %s21096_s14  ;;  %v11275_v24 = vperm.slane %v24566_v53, 0  ;;  %v10810_v35 = vadd.f32 %v24417_v48, %v10405_v10  ;;  %v27871_v10 = vld [vmem:[#allocation8_spill] sm:$0xff] }
 0x466   : > { %v11249_v27 = vmax.f32 %v11233_v28, 0.0  ;;  %v11250_v7 = vmax.f32 %v11234_v17, 0.0  ;;  %v10811_v23 = vadd.f32 %v24419_v47, %v10406_v33  ;;  %v10411_v38 = vadd.f32 %v27867_v54, %v10006_v37 }
 0x467   : > { %v11252_v15 = vmax.f32 %v11236_v13, 0.0  ;;  %v11239_v56 = vadd.f32 %v24479_v62, %v11217_v32  ;;  %v10813_v52 = vadd.f32 %v24425_v39, %v10408_v2  ;;  %v10005_v22 = vadd.f32 %v27868_v21, %v24523_v58 }
 0x468   : > { %v24580_v57 = vmul.f32 %v11269_v20, %v11249_v27  ;;  %v24582_v6 = vmul.f32 %v11270_v0, %v11250_v7  ;;  %v10816_v63 = vadd.f32 %v24435_v51, %v10411_v38  ;;  %v11273_v60 = vperm.slane %v24484_v36, 6  ;;  %v27869_v51 = vld [vmem:[#allocation175_spill] sm:$0xff]  ;;  %v27873_v38 = vld [vmem:[#allocation176_spill] sm:$0xff] }
 0x469   : > { %v24586_v16 = vmul.f32 %v11272_v18, %v11252_v15  ;;  %v11255_v3 = vmax.f32 %v11239_v56, 0.0  ;;  %v11026_v46 = vpop.f32.mrf.mxu2  ;;  %v11046_v11 = vpop.f32.mrf.mxu3  ;;  %v11274_v43 = vperm.slane %v24484_v36, 7  ;;  %v10007_v20 = vadd.f32 %v27869_v51, %v24526_v42  ;;  %v27870_v36 = vld [vmem:[#allocation7_spill] sm:$0xff] }
 0x46a   : > { %v11215_v30 = vadd.f32 %v11026_v46, %v10810_v35  ;;  %v11216_v48 = vadd.f32 %v11046_v11, %v10811_v23  ;;  %v11086_v14 = vpop.f32.mrf.mxu1  ;;  %v24592_v47 = vpack.i.bf16 %v24582_v6, %v24580_v57  ;;  %v11276_v0 = vperm.slane %v24566_v53, 1 }
 0x46b   : > { %v24595_v37 = vmul.f32 %v11275_v24, %v11255_v3  ;;  %v11218_v39 = vadd.f32 %v11086_v14, %v10813_v52  ;;  %v24599_v49 = vpack.i.bf16 %v24586_v16, %v24553_v40  ;;  %11320 = vst [vmem:[#allocation2 + $0x28] sm:$0xff] %v24586_v16  ;;  %v10409_v5 = vadd.f32 %v24297_v9, %v10004_v34  ;;  %v27872_v9 = vld [vmem:[#allocation164_spill] sm:$0xff] }
 0x46c   : > { %v11237_v58 = vadd.f32 %v24479_v62, %v11215_v30  ;;  %v11238_v31 = vadd.f32 %v24479_v62, %v11216_v48  ;;  %v11146_v28 = vpop.f32.mrf.mxu0  ;;  %20354 = vrot.lane.b32.xlu2 %v24592_v47, %s21096_s14  ;;  %v10410_v13 = vadd.f32 %v27870_v36, %v10005_v22  ;;  %v10412_v26 = vadd.f32 %v27871_v10, %v10007_v20 }
 0x46d   : > { %11323 = vst [vmem:[#allocation2 + $0x40] sm:$0xff] %v24595_v37  ;;  %v11240_v17 = vadd.f32 %v24479_v62, %v11218_v39  ;;  %v11221_v29 = vadd.f32 %v11146_v28, %v10816_v63  ;;  %20359 = vrot.lane.b32.xlu1 %v24599_v49, %s21096_s14  ;;  %v11279_v27 = vperm.slane %v24566_v53, 4  ;;  %v10814_v7 = vadd.f32 %v24457_v45, %v10409_v5 }
 0x46e   : > { %v11253_v18 = vmax.f32 %v11237_v58, 0.0  ;;  %v11254_v32 = vmax.f32 %v11238_v31, 0.0  ;;  %v10815_v44 = vadd.f32 %v24459_v55, %v10410_v13  ;;  %v9604_v34 = vadd.f32 %v27872_v9, %v24502_v8  ;;  %v27874_v8 = vld [vmem:[#allocation177_spill] sm:$0xff] }
 0x46f   : > { %v11256_v33 = vmax.f32 %v11240_v17, 0.0  ;;  %v11243_v42 = vadd.f32 %v24479_v62, %v11221_v29  ;;  %v10817_v56 = vadd.f32 %v24466_v1, %v10412_v26  ;;  %v10008_v52 = vadd.f32 %v27873_v38, %v24534_v41 }
 0x470   : > { %v24622_v2 = vmul.f32 %v11273_v60, %v11253_v18  ;;  %v24624_v15 = vmul.f32 %v11274_v43, %v11254_v32  ;;  %v10009_v11 = vadd.f32 %v27874_v8, %v9604_v34  ;;  %v11277_v30 = vperm.slane %v24566_v53, 2 }
 0x471   : > { %v24629_v24 = vmul.f32 %v11276_v0, %v11256_v33  ;;  %v11259_v35 = vmax.f32 %v11243_v42, 0.0  ;;  %v11106_v23 = vpop.f32.mrf.mxu2  ;;  %v11126_v54 = vpop.f32.mrf.mxu3  ;;  %v11278_v14 = vperm.slane %v24566_v53, 3  ;;  %v11280_v39 = vperm.slane %v24566_v53, 5 }
 0x472   : > { %11321 = vst [vmem:[#allocation2 + $0x30] sm:$0xff] %v24622_v2  ;;  %v11219_v45 = vadd.f32 %v11106_v23, %v10814_v7  ;;  %v11220_v55 = vadd.f32 %v11126_v54, %v10815_v44  ;;  %v11166_v3 = vpop.f32.mrf.mxu1  ;;  %v24636_v46 = vpack.i.bf16 %v24624_v15, %v24622_v2  ;;  %v10413_v58 = vadd.f32 %v24337_v50, %v10008_v52 }
 0x473   : > { %11322 = vst [vmem:[#allocation2 + $0x38] sm:$0xff] %v24624_v15  ;;  %v24640_v1 = vmul.f32 %v11279_v27, %v11259_v35  ;;  %v11222_v21 = vadd.f32 %v11166_v3, %v10817_v56  ;;  %v24644_v22 = vpack.i.bf16 %v24629_v24, %v24595_v37  ;;  %v10414_v60 = vadd.f32 %v24339_v25, %v10009_v11  ;;  %v15945_v25 = vld [vmem:[#allocation2 + $0x28] sm:$0xff] }
 0x474   : > { %11324 = vst [vmem:[#allocation2 + $0x48] sm:$0xff] %v24629_v24  ;;  %v11241_v41 = vadd.f32 %v24479_v62, %v11219_v45  ;;  %v11242_v48 = vadd.f32 %v24479_v62, %v11220_v55  ;;  %20364 = vrot.lane.b32.xlu2 %v24636_v46, %s21096_s14  ;;  %v10818_v51 = vadd.f32 %v24510_v4, %v10413_v58  ;;  %v15948_v10 = vld [vmem:[#allocation2 + $0x40] sm:$0xff]  ;;  %v11281_v33 = vperm.slane %v24566_v53, 6  ;;  %v24746_v55 = vld [vmem:[%s27470_s3 + $0x8] sm:$0xff] }
 0x475   : > { %11327 = vst [vmem:[#allocation2 + $0x60] sm:$0xff] %v24640_v1  ;;  %v11244_v63 = vadd.f32 %v24479_v62, %v11222_v21  ;;  %20369 = vrot.lane.b32.xlu0 %v24644_v22, %s21096_s14  ;;  %20374 = vrot.lane.b32.xlu1 %v24557_v59, %s21097_s15  ;;  %v10819_v20 = vadd.f32 %v24512_v61, %v10414_v60  ;;  %v11282_v27 = vperm.slane %v24566_v53, 7  ;;  %s27881_s14 = smov 23  }
 0x476   : > { %v11257_v31 = vmax.f32 %v11241_v41, 0.0  ;;  %v11258_v43 = vmax.f32 %v11242_v48, 0.0 }
 0x477   : > { %v11260_v28 = vmax.f32 %v11244_v63, 0.0 }
 0x478   : > { %v24664_v17 = vmul.f32 %v11277_v30, %v11257_v31  ;;  %v24666_v0 = vmul.f32 %v11278_v14, %v11258_v43  ;;  %v24771_v14 = vld [vmem:[%s27470_s3] sm:$0xff] }
 0x479   : > { %v11312_v29 = vmul.f32 %v11280_v39, %v11260_v28  ;;  %v11186_v5 = vpop.f32.mrf.mxu2  ;;  %v11206_v36 = vpop.f32.mrf.mxu3  ;;  %v15946_v13 = vld [vmem:[#allocation2 + $0x30] sm:$0xff] }
 0x47a   : > { %11325 = vst [vmem:[#allocation2 + $0x50] sm:$0xff] %v24664_v17  ;;  %v11223_v50 = vadd.f32 %v11186_v5, %v10818_v51  ;;  %v11224_v18 = vadd.f32 %v11206_v36, %v10819_v20  ;;  %v15947_v32 = vld [vmem:[#allocation2 + $0x38] sm:$0xff]  ;;  %v24670_v4 = vpack.i.bf16 %v15946_v13, %v15945_v25 }
 0x47b   : > { %11326 = vst [vmem:[#allocation2 + $0x58] sm:$0xff] %v24666_v0  ;;  %v24672_v61 = vpack.i.bf16 %v15948_v10, %v15947_v32  ;;  %v15949_v56 = vld [vmem:[#allocation2 + $0x48] sm:$0xff]  ;;  %v24843_v10 = vld [vmem:[%s27470_s3 + $0x10] sm:$0xff] }
 0x47c   : > { %11328 = vst [vmem:[#allocation2 + $0x68] sm:$0xff] %v11312_v29  ;;  %v11245_v26 = vadd.f32 %v24479_v62, %v11223_v50  ;;  %v11246_v42 = vadd.f32 %v24479_v62, %v11224_v18  ;;  %20379 = vrot.lane.b32.xlu2 %v24592_v47, %s21097_s15  ;;  %v15952_v62 = vld [vmem:[#allocation2 + $0x60] sm:$0xff]  ;;  %v24808_v29 = vpack.i.bf16 %v24666_v0, %v24664_v17 }
 0x47d   : > { %20384 = vrot.lane.b32.xlu0 %v24599_v49, %s21097_s15  ;;  %20389 = vrot.lane.b32.xlu1 %v24636_v46, %s21097_s15 }
 0x47e   : > { %v11261_v7 = vmax.f32 %v11245_v26, 0.0  ;;  %v11262_v44 = vmax.f32 %v11246_v42, 0.0 }
 0x480   : > { %v11313_v9 = vmul.f32 %v11281_v33, %v11261_v7  ;;  %v11314_v34 = vmul.f32 %v11282_v27, %v11262_v44 }
 0x481   : > { %v15950_v35 = vld [vmem:[#allocation2 + $0x50] sm:$0xff] }
 0x482   : > { %11329 = vst [vmem:[#allocation2 + $0x70] sm:$0xff] %v11313_v9  ;;  %v15951_v23 = vld [vmem:[#allocation2 + $0x58] sm:$0xff]  ;;  %v24684_v54 = vpack.i.bf16 %v15950_v35, %v15949_v56 }
 0x483   : > { %11330 = vst.msk [vmem:[#allocation2 + $0x78] sm:$0xff] %vm6327_vm15, %v11314_v34  ;;  %v24687_v53 = vpack.i.bf16 %v15952_v62, %v15951_v23 }
 0x484   : > { %20394 = vrot.lane.b32.xlu2 %v24644_v22, %s21097_s15  ;;  %s27882_s15 = smov 22  }
 0x485   : > { %20399 = vrot.lane.b32.xlu0 %v24557_v59, %s21098_s16  ;;  %20404 = vrot.lane.b32.xlu1 %v24592_v47, %s21098_s16 }
 0x48c   : > { %20409 = vrot.lane.b32.xlu2 %v24599_v49, %s21098_s16 }
 0x48d   : > { %20414 = vrot.lane.b32.xlu0 %v24636_v46, %s21098_s16  ;;  %20419 = vrot.lane.b32.xlu1 %v24644_v22, %s21098_s16  ;;  %s27878_s16 = smov 41  }
 0x494   : > { %20424 = vrot.lane.b32.xlu2 %v24557_v59, %s21099_s17 }
 0x495   : > { %20429 = vrot.lane.b32.xlu0 %v24592_v47, %s21099_s17  ;;  %20434 = vrot.lane.b32.xlu1 %v24599_v49, %s21099_s17 }
 0x49c   : > { %20439 = vrot.lane.b32.xlu2 %v24636_v46, %s21099_s17 }
 0x49d   : > { %20444 = vrot.lane.b32.xlu0 %v24644_v22, %s21099_s17  ;;  %20449 = vrot.lane.b32.xlu1 %v24557_v59, %s21100_s20 }
 0x4a4   : > { %20454 = vrot.lane.b32.xlu2 %v24592_v47, %s21100_s20 }
 0x4a5   : > { %20459 = vrot.lane.b32.xlu0 %v24599_v49, %s21100_s20  ;;  %20464 = vrot.lane.b32.xlu1 %v24636_v46, %s21100_s20 }
 0x4ac   : > { %20469 = vrot.lane.b32.xlu2 %v24644_v22, %s21100_s20  ;;  %s27875_s20 = smov 59  }
 0x4ad   : > { %20474 = vrot.lane.b32.xlu0 %v24557_v59, %s21101_s29  ;;  %20479 = vrot.lane.b32.xlu1 %v24592_v47, %s21101_s29 }
 0x4b4   : > { %20484 = vrot.lane.b32.xlu2 %v24599_v49, %s21101_s29 }
 0x4b5   : > { %20489 = vrot.lane.b32.xlu0 %v24636_v46, %s21101_s29  ;;  %20499 = vrot.lane.b32.xlu1 %v24644_v22, %s21101_s29 }
 0x4bc   : > { %12859 = vrot.lane.b32.xlu2 %v24664_v17, %s21101_s29  ;;  %s27879_s29 = smov 40  }
 0x4bd   : > { %20494 = vrot.lane.b32.xlu0 %v24557_v59, %s21102_s11  ;;  %20504 = vrot.lane.b32.xlu1 %v24592_v47, %s21102_s11 }
 0x4c4   : > { %20509 = vrot.lane.b32.xlu2 %v24599_v49, %s21102_s11 }
 0x4c5   : > { %20514 = vrot.lane.b32.xlu0 %v24636_v46, %s21102_s11  ;;  %20519 = vrot.lane.b32.xlu1 %v24644_v22, %s21102_s11 }
 0x4c6   : > { %v20355_v38 = vpop.permute.xlu2 %20354 }
 0x4c7   : > { %v20357_v52 = vunpack.i.h.bf16 %v20355_v38  ;;  %v20356_v45 = vunpack.i.l.bf16 %v20355_v38 }
 0x4c9   : > { %v11376_v3 = vsel %vm317_vm0, %v20356_v45, %v20357_v52 }
 0x4ca   : > { %11451 = vmatpush.msra.mxu2 %v11376_v3 }
 0x4cb   : > { %18942 = vmatmul.msk.f32.vlgmr.msra.gmra.mxu2 %vm349_vm1, %v24746_v55 }
 0x4cc   : > { %13116 = vrot.lane.b32.xlu2 %v24664_v17, %s21102_s11  ;;  %s27895_s11 = smov 83  }
 0x4cd   : > { %20524 = vrot.lane.b32.xlu0 %v24557_v59, %s21103_s19  ;;  %20529 = vrot.lane.b32.xlu1 %v24592_v47, %s21103_s19 }
 0x4ce   : > { %v20365_v8 = vpop.permute.xlu2 %20364 }
 0x4cf   : > { %v20367_v11 = vunpack.i.h.bf16 %v20365_v8  ;;  %v20366_v21 = vunpack.i.l.bf16 %v20365_v8 }
 0x4d1   : > { %v11380_v41 = vsel %vm317_vm0, %v20366_v21, %v20367_v11 }
 0x4d2   : > { %11531 = vmatpush.msrb.mxu2 %v11380_v41 }
 0x4d3   : > { %18946 = vmatmul.msk.f32.vlgmr.msrb.gmra.mxu2 %vm349_vm1, %v24746_v55 }
 0x4d4   : > { %11614 = vmatpush.msra.mxu2 %v24520_v12  ;;  %20534 = vrot.lane.b32.xlu2 %v24599_v49, %s21103_s19 }
 0x4d5   : > { %20539 = vrot.lane.b32.xlu0 %v24636_v46, %s21103_s19  ;;  %20544 = vrot.lane.b32.xlu1 %v24644_v22, %s21103_s19 }
 0x4d6   : > { %11694 = vmatpush.msrb.mxu2 %v24553_v40  ;;  %v24777_v40 = vpop.permute.xlu2 %20379 }
 0x4d7   : > { %v20350_v59 = vpop.permute.xlu1 %20349  ;;  %v20382_v39 = vunpack.i.h.bf16 %v24777_v40  ;;  %v20381_v58 = vunpack.i.l.bf16 %v24777_v40 }
 0x4d8   : > { %v20352_v30 = vunpack.i.h.bf16 %v20350_v59  ;;  %v20351_v48 = vunpack.i.l.bf16 %v20350_v59 }
 0x4d9   : > { %v11823_v20 = vsel %vm1030_vm2, %v20381_v58, %v20382_v39 }
 0x4da   : > { %v11374_v12 = vsel %vm317_vm0, %v20351_v48, %v20352_v30  ;;  %v11375_v63 = vsel %vm317_vm0, %v20352_v30, %v20356_v45 }
 0x4db   : > { %18950 = vmatmul.msk.f32.vlgmr.msra.gmra.mxu2 %vm349_vm1, %v24771_v14  ;;  %11411 = vmatpush.msra.mxu0 %v11374_v12 }
 0x4dc   : > { %11774 = vmatpush.msra.mxu2 %v24595_v37  ;;  %13373 = vrot.lane.b32.xlu2 %v24664_v17, %s21103_s19  ;;  %s27884_s19 = smov 119  }
 0x4dd   : > { %11431 = vmatpush.msra.mxu1 %v11375_v63  ;;  %18940 = vmatmul.msk.f32.vlgmr.msra.gmra.mxu0 %vm349_vm1, %v24746_v55 }
 0x4de   : > { %18941 = vmatmul.msk.f32.vlgmr.msra.gmra.mxu1 %vm349_vm1, %v24746_v55  ;;  %20549 = vrot.lane.b32.xlu0 %v24592_v47, %s21104_s9  ;;  %v24818_v17 = vpop.permute.xlu2 %20394 }
 0x4df   : > { %20554 = vrot.lane.b32.xlu1 %v24599_v49, %s21104_s9  ;;  %v20360_v37 = vpop.permute.xlu1 %20359  ;;  %v20397_v59 = vunpack.i.h.bf16 %v24818_v17  ;;  %v20396_v30 = vunpack.i.l.bf16 %v24818_v17 }
 0x4e0   : > { %v20362_v60 = vunpack.i.h.bf16 %v20360_v37  ;;  %v20361_v31 = vunpack.i.l.bf16 %v20360_v37 }
 0x4e1   : > { %v11829_v12 = vsel %vm1030_vm2, %v20396_v30, %v20397_v59 }
 0x4e2   : > { %v11377_v43 = vsel %vm317_vm0, %v20357_v52, %v20361_v31  ;;  %v11378_v28 = vsel %vm317_vm0, %v20361_v31, %v20362_v60  ;;  %v11379_v51 = vsel %vm317_vm0, %v20362_v60, %v20366_v21 }
 0x4e3   : > { %18954 = vmatmul.msk.f32.vlgmr.msrb.gmra.mxu2 %vm349_vm1, %v24771_v14  ;;  %11471 = vmatpush.msra.mxu3 %v11377_v43 }
 0x4e4   : > { %11898 = vmatpush.msrb.mxu2 %v11823_v20  ;;  %20559 = vrot.lane.b32.xlu2 %v24636_v46, %s21104_s9 }
 0x4e5   : > { %11491 = vmatpush.msrb.mxu0 %v11378_v28  ;;  %11511 = vmatpush.msrb.mxu1 %v11379_v51 }
 0x4e6   : > { %18943 = vmatmul.msk.f32.vlgmr.msra.gmra.mxu3 %vm349_vm1, %v24746_v55  ;;  %18944 = vmatmul.msk.f32.vlgmr.msrb.gmra.mxu0 %vm349_vm1, %v24746_v55  ;;  %v24856_v33 = vpop.permute.xlu2 %20409 }
 0x4e7   : > { %18945 = vmatmul.msk.f32.vlgmr.msrb.gmra.mxu1 %vm349_vm1, %v24746_v55  ;;  %20564 = vrot.lane.b32.xlu0 %v24644_v22, %s21104_s9  ;;  %v20370_v5 = vpop.permute.xlu0 %20369  ;;  %v20375_v36 = vpop.permute.xlu1 %20374  ;;  %v20412_v7 = vunpack.i.h.bf16 %v24856_v33  ;;  %v20411_v44 = vunpack.i.l.bf16 %v24856_v33 }
 0x4e8   : > { %20574 = vrot.lane.b32.xlu1 %v24808_v29, %s21104_s9  ;;  %v20372_v13 = vunpack.i.h.bf16 %v20370_v5  ;;  %v20371_v50 = vunpack.i.l.bf16 %v20370_v5  ;;  %v20376_v26 = vunpack.i.l.bf16 %v20375_v36 }
 0x4e9   : > { %v12079_v23 = vsel %vm1435_vm3, %v20411_v44, %v20412_v7 }
 0x4ea   : > { %11591 = vmatpush.msra.mxu1 %v20372_v13  ;;  %v11381_v18 = vsel %vm317_vm0, %v20367_v11, %v20371_v50  ;;  %v11382_v25 = vsel %vm317_vm0, %v20371_v50, %v20372_v13  ;;  %v24909_v11 = vld [vmem:[%s27470_s3 + $0x18] sm:$0xff]  ;;  %vm27887_vm0 = vcmask 334848  }
 0x4eb   : > { %18958 = vmatmul.msk.f32.vlgmr.msra.gmra.mxu2 %vm349_vm1, %v24771_v14  ;;  %11551 = vmatpush.msrb.mxu3 %v11381_v18 }
 0x4ec   : > { %13652 = vrot.lane.b32.xlu2 %v24640_v1, %s21104_s9  ;;  %11571 = vmatpush.msra.mxu0 %v11382_v25  ;;  %s27880_s9 = smov 24  }
 0x4ed   : > { %11674 = vmatpush.msrb.mxu1 %v24582_v6  ;;  %11634 = vmatpush.msra.mxu3 %v24548_v19 }
 0x4ee   : > { %18947 = vmatmul.msk.f32.vlgmr.msrb.gmra.mxu3 %vm349_vm1, %v24746_v55  ;;  %18948 = vmatmul.msk.f32.vlgmr.msra.gmra.mxu0 %vm349_vm1, %v24746_v55  ;;  %v24915_v21 = vpop.permute.xlu2 %20424 }
 0x4ef   : > { %18949 = vmatmul.msk.f32.vlgmr.msra.gmra.mxu1 %vm349_vm1, %v24746_v55  ;;  %11654 = vmatpush.msrb.mxu0 %v24580_v57  ;;  %v20385_v0 = vpop.permute.xlu0 %20384  ;;  %v24833_v32 = vpop.permute.xlu1 %20389 }
 0x4f0   : > { %11754 = vmatpush.msra.mxu1 %v24624_v15  ;;  %20569 = vrot.lane.b32.xlu0 %v24592_v47, %s27875_s20  ;;  %v20392_v19 = vunpack.i.h.bf16 %v24833_v32  ;;  %v20391_v6 = vunpack.i.l.bf16 %v24833_v32  ;;  %v20377_v15 = vunpack.i.h.bf16 %v20375_v36  ;;  %v20387_v35 = vunpack.i.h.bf16 %v20385_v0 }
 0x4f1   : > { %20579 = vrot.lane.b32.xlu1 %v24599_v49, %s27875_s20  ;;  %11714 = vmatpush.msrb.mxu3 %v24586_v16 }
 0x4f2   : > { %11734 = vmatpush.msra.mxu0 %v24622_v2  ;;  %v11827_v57 = vsel %vm1030_vm2, %v20391_v6, %v20392_v19  ;;  %v11821_v16 = vsel %vm1030_vm2, %v20376_v26, %v20377_v15  ;;  %v11822_v2 = vsel %vm1030_vm2, %v20377_v15, %v20381_v58  ;;  %v11826_v52 = vsel %vm1030_vm2, %v20387_v35, %v20391_v6 }
 0x4f3   : > { %18963 = vmatmul.msk.f32.vlgmr.msrb.gmra.mxu2 %vm349_vm1, %v24843_v10  ;;  %v11828_v48 = vsel %vm1030_vm2, %v20392_v19, %v20396_v30  ;;  %v20426_v26 = vunpack.i.l.bf16 %v24915_v21 }
 0x4f4   : > { %20584 = vrot.lane.b32.xlu2 %v24636_v46, %s27875_s20  ;;  %11978 = vmatpush.msra.mxu2 %v11827_v57  ;;  %v25005_v57 = vld [vmem:[%s27470_s3 + $0x20] sm:$0xff] }
 0x4f6   : > { %18951 = vmatmul.msk.f32.vlgmr.msra.gmra.mxu3 %vm349_vm1, %v24771_v14  ;;  %18952 = vmatmul.msk.f32.vlgmr.msrb.gmra.mxu0 %vm349_vm1, %v24771_v14  ;;  %v24953_v31 = vpop.permute.xlu2 %20439 }
 0x4f7   : > { %18953 = vmatmul.msk.f32.vlgmr.msrb.gmra.mxu1 %vm349_vm1, %v24771_v14  ;;  %11794 = vmatpush.msra.mxu3 %v24629_v24  ;;  %v24867_v42 = vpop.permute.xlu0 %20399  ;;  %v24869_v27 = vpop.permute.xlu1 %20404  ;;  %v20386_v24 = vunpack.i.l.bf16 %v20385_v0  ;;  %v20442_v28 = vunpack.i.h.bf16 %v24953_v31  ;;  %v20441_v51 = vunpack.i.l.bf16 %v24953_v31 }
 0x4f8   : > { %11858 = vmatpush.msrb.mxu0 %v11821_v16  ;;  %11878 = vmatpush.msrb.mxu1 %v11822_v2  ;;  %v20402_v9 = vunpack.i.h.bf16 %v24867_v42  ;;  %v20401_v34 = vunpack.i.l.bf16 %v24867_v42  ;;  %v20407_v60 = vunpack.i.h.bf16 %v24869_v27 }
 0x4f9   : > { %20589 = vrot.lane.b32.xlu0 %v24644_v22, %s27875_s20  ;;  %20594 = vrot.lane.b32.xlu1 %v24808_v29, %s27875_s20  ;;  %v11824_v62 = vsel %vm1030_vm2, %v20382_v39, %v20386_v24  ;;  %v11825_v38 = vsel %vm1030_vm2, %v20386_v24, %v20387_v35  ;;  %v20406_v39 = vunpack.i.l.bf16 %v24869_v27  ;;  %v12335_v18 = vsel %vm1840_vm4, %v20441_v51, %v20442_v28  ;;  %vm27888_vm2 = vmmov %vm27887_vm0 }
 0x4fa   : > { %v12075_v56 = vsel %vm1435_vm3, %v20401_v34, %v20402_v9  ;;  %v12078_v5 = vsel %vm1435_vm3, %v20407_v60, %v20411_v44 }
 0x4fb   : > { %18967 = vmatmul.msk.f32.vlgmr.msra.gmra.mxu2 %vm349_vm1, %v24843_v10  ;;  %v12076_v43 = vsel %vm1435_vm3, %v20402_v9, %v20406_v39  ;;  %v12077_v20 = vsel %vm1435_vm3, %v20406_v39, %v20407_v60 }
 0x4fc   : > { %13909 = vrot.lane.b32.xlu2 %v24640_v1, %s27875_s20  ;;  %12112 = vmatpush.msrb.mxu2 %v12075_v56  ;;  %s27883_s20 = smov 120  }
 0x4fe   : > { %12192 = vmatpush.msra.mxu2 %v12079_v23  ;;  %18955 = vmatmul.msk.f32.vlgmr.msrb.gmra.mxu3 %vm349_vm1, %v24771_v14  ;;  %v25011_v15 = vpop.permute.xlu2 %20454 }
 0x4ff   : > { %18956 = vmatmul.msk.f32.vlgmr.msra.gmra.mxu0 %vm349_vm1, %v24771_v14  ;;  %18957 = vmatmul.msk.f32.vlgmr.msra.gmra.mxu1 %vm349_vm1, %v24771_v14  ;;  %v24900_v45 = vpop.permute.xlu0 %20414  ;;  %v24902_v55 = vpop.permute.xlu1 %20419 }
 0x500   : > { %11918 = vmatpush.msrb.mxu3 %v11824_v62  ;;  %11938 = vmatpush.msra.mxu0 %v11825_v38  ;;  %v20422_v3 = vunpack.i.h.bf16 %v24902_v55  ;;  %v20421_v8 = vunpack.i.l.bf16 %v24902_v55  ;;  %v20416_v36 = vunpack.i.l.bf16 %v24900_v45  ;;  %v20417_v50 = vunpack.i.h.bf16 %v24900_v45  ;;  %v25075_v55 = vld [vmem:[%s27470_s3 + $0x28] sm:$0xff] }
 0x501   : > { %11958 = vmatpush.msra.mxu1 %v11826_v52  ;;  %20599 = vrot.lane.b32.xlu0 %v24592_v47, %s27876_s28 }
 0x502   : > { %20604 = vrot.lane.b32.xlu1 %v24599_v49, %s27876_s28  ;;  %v12083_v41 = vsel %vm1435_vm3, %v20421_v8, %v20422_v3  ;;  %v12080_v17 = vsel %vm1435_vm3, %v20412_v7, %v20416_v36  ;;  %v12081_v19 = vsel %vm1435_vm3, %v20416_v36, %v20417_v50  ;;  %v12082_v6 = vsel %vm1435_vm3, %v20417_v50, %v20421_v8  ;;  %vm27890_vm3 = vmmov %vm27887_vm0 }
 0x503   : > { %18972 = vmatmul.msk.f32.vlgmr.msrb.gmra.mxu2 %vm349_vm1, %v24909_v11 }
 0x504   : > { %20609 = vrot.lane.b32.xlu2 %v24636_v46, %s27876_s28  ;;  %12272 = vmatpush.msrb.mxu2 %v12083_v41 }
 0x506   : > { %18959 = vmatmul.msk.f32.vlgmr.msra.gmra.mxu3 %vm349_vm1, %v24771_v14  ;;  %v25051_v56 = vpop.permute.xlu2 %20469 }
 0x507   : > { %18961 = vmatmul.msk.f32.vlgmr.msrb.gmra.mxu0 %vm349_vm1, %v24843_v10  ;;  %18962 = vmatmul.msk.f32.vlgmr.msrb.gmra.mxu1 %vm349_vm1, %v24843_v10  ;;  %v24936_v63 = vpop.permute.xlu0 %20429  ;;  %v24945_v58 = vpop.permute.xlu1 %20434  ;;  %v20472_v23 = vunpack.i.h.bf16 %v25051_v56  ;;  %v20471_v62 = vunpack.i.l.bf16 %v25051_v56 }
 0x508   : > { %11998 = vmatpush.msra.mxu3 %v11828_v48  ;;  %12018 = vmatpush.msrb.mxu0 %v11829_v12  ;;  %v20432_v40 = vunpack.i.h.bf16 %v24936_v63  ;;  %v20431_v14 = vunpack.i.l.bf16 %v24936_v63  ;;  %v20436_v9 = vunpack.i.l.bf16 %v24945_v58  ;;  %v20437_v34 = vunpack.i.h.bf16 %v24945_v58 }
 0x509   : > { %12038 = vmatpush.msrb.mxu1 %v20397_v59  ;;  %20614 = vrot.lane.b32.xlu0 %v24644_v22, %s27876_s28  ;;  %v12591_v41 = vsel %vm2245_vm5, %v20471_v62, %v20472_v23 }
 0x50a   : > { %20619 = vrot.lane.b32.xlu1 %v24808_v29, %s27876_s28  ;;  %v12331_v37 = vsel %vm1840_vm4, %v20431_v14, %v20432_v40  ;;  %v12332_v35 = vsel %vm1840_vm4, %v20432_v40, %v20436_v9  ;;  %v12333_v52 = vsel %vm1840_vm4, %v20436_v9, %v20437_v34  ;;  %v12334_v45 = vsel %vm1840_vm4, %v20437_v34, %v20441_v51 }
 0x50b   : > { %18976 = vmatmul.msk.f32.vlgmr.msra.gmra.mxu2 %vm349_vm1, %v24909_v11  ;;  %v20457_v40 = vunpack.i.h.bf16 %v25011_v15 }
 0x50c   : > { %14166 = vrot.lane.b32.xlu2 %v24640_v1, %s27876_s28  ;;  %12406 = vmatpush.msra.mxu2 %v12331_v37 }
 0x50e   : > { %18964 = vmatmul.msk.f32.vlgmr.msrb.gmra.mxu3 %vm349_vm1, %v24843_v10  ;;  %v25101_v30 = vpop.permute.xlu2 %20484 }
 0x50f   : > { %18965 = vmatmul.msk.f32.vlgmr.msra.gmra.mxu0 %vm349_vm1, %v24843_v10  ;;  %18966 = vmatmul.msk.f32.vlgmr.msra.gmra.mxu1 %vm349_vm1, %v24843_v10  ;;  %v24975_v13 = vpop.permute.xlu0 %20444  ;;  %v24985_v25 = vpop.permute.xlu1 %20449 }
 0x510   : > { %12132 = vmatpush.msrb.mxu3 %v12076_v43  ;;  %12152 = vmatpush.msra.mxu0 %v12077_v20  ;;  %v20452_v0 = vunpack.i.h.bf16 %v24985_v25  ;;  %v20451_v32 = vunpack.i.l.bf16 %v24985_v25  ;;  %v20447_v8 = vunpack.i.h.bf16 %v24975_v13 }
 0x511   : > { %12172 = vmatpush.msra.mxu1 %v12078_v5  ;;  %20624 = vrot.lane.b32.xlu0 %v24592_v47, %s27877_s12 }
 0x512   : > { %20629 = vrot.lane.b32.xlu1 %v24599_v49, %s27877_s12  ;;  %v12583_v33 = vsel %vm2245_vm5, %v20451_v32, %v20452_v0 }
 0x513   : > { %18980 = vmatmul.msk.f32.vlgmr.msrb.gmra.mxu2 %vm349_vm1, %v24909_v11 }
 0x514   : > { %12486 = vmatpush.msrb.mxu2 %v12335_v18  ;;  %20634 = vrot.lane.b32.xlu2 %v24636_v46, %s27877_s12 }
 0x516   : > { %18968 = vmatmul.msk.f32.vlgmr.msra.gmra.mxu3 %vm349_vm1, %v24843_v10  ;;  %v25142_v51 = vpop.permute.xlu2 %12859 }
 0x517   : > { %18969 = vmatmul.msk.f32.vlgmr.msrb.gmra.mxu0 %vm349_vm1, %v24843_v10  ;;  %18970 = vmatmul.msk.f32.vlgmr.msrb.gmra.mxu1 %vm349_vm1, %v24843_v10  ;;  %v20427_v10 = vunpack.i.h.bf16 %v24915_v21  ;;  %v25020_v16 = vpop.permute.xlu0 %20459  ;;  %v25036_v44 = vpop.permute.xlu1 %20464 }
 0x518   : > { %12212 = vmatpush.msra.mxu3 %v12080_v17  ;;  %12232 = vmatpush.msrb.mxu0 %v12081_v19  ;;  %v20462_v2 = vunpack.i.h.bf16 %v25020_v16  ;;  %v20461_v42 = vunpack.i.l.bf16 %v25020_v16  ;;  %v20466_v20 = vunpack.i.l.bf16 %v25036_v44  ;;  %v20467_v5 = vunpack.i.h.bf16 %v25036_v44  ;;  %v25181_v19 = vld [vmem:[%s27470_s3 + $0x30] sm:$0xff] }
 0x519   : > { %12252 = vmatpush.msrb.mxu1 %v12082_v6  ;;  %20639 = vrot.lane.b32.xlu0 %v24644_v22, %s27877_s12  ;;  %v12329_v27 = vsel %vm1840_vm4, %v20426_v26, %v20427_v10  ;;  %v12330_v7 = vsel %vm1840_vm4, %v20427_v10, %v20431_v14  ;;  %v20456_v14 = vunpack.i.l.bf16 %v25011_v15  ;;  %v20486_v44 = vunpack.i.l.bf16 %v25101_v30 }
 0x51a   : > { %20644 = vrot.lane.b32.xlu1 %v24808_v29, %s27877_s12  ;;  %v12587_v24 = vsel %vm2245_vm5, %v20461_v42, %v20462_v2  ;;  %v12588_v50 = vsel %vm2245_vm5, %v20462_v2, %v20466_v20  ;;  %v12590_v32 = vsel %vm2245_vm5, %v20467_v5, %v20471_v62 }
 0x51b   : > { %18985 = vmatmul.msk.f32.vlgmr.msra.gmra.mxu2 %vm349_vm1, %v25005_v57  ;;  %v12584_v37 = vsel %vm2245_vm5, %v20452_v0, %v20456_v14  ;;  %v12585_v43 = vsel %vm2245_vm5, %v20456_v14, %v20457_v40  ;;  %v12589_v0 = vsel %vm2245_vm5, %v20466_v20, %v20467_v5 }
 0x51c   : > { %12620 = vmatpush.msra.mxu2 %v12583_v33  ;;  %14423 = vrot.lane.b32.xlu2 %v24640_v1, %s27877_s12 }
 0x51e   : > { %18973 = vmatmul.msk.f32.vlgmr.msrb.gmra.mxu3 %vm349_vm1, %v24909_v11  ;;  %v25187_v6 = vpop.permute.xlu2 %20509 }
 0x51f   : > { %18974 = vmatmul.msk.f32.vlgmr.msra.gmra.mxu0 %vm349_vm1, %v24909_v11  ;;  %18975 = vmatmul.msk.f32.vlgmr.msra.gmra.mxu1 %vm349_vm1, %v24909_v11  ;;  %v25064_v38 = vpop.permute.xlu0 %20474  ;;  %v25083_v21 = vpop.permute.xlu1 %20479  ;;  %v20512_v33 = vunpack.i.h.bf16 %v25187_v6  ;;  %v20511_v16 = vunpack.i.l.bf16 %v25187_v6 }
 0x520   : > { %12292 = vmatpush.msrb.mxu3 %v20422_v3  ;;  %12366 = vmatpush.msra.mxu0 %v12329_v27  ;;  %v20446_v3 = vunpack.i.l.bf16 %v24975_v13  ;;  %v20482_v48 = vunpack.i.h.bf16 %v25083_v21  ;;  %v20481_v12 = vunpack.i.l.bf16 %v25083_v21  ;;  %v20476_v15 = vunpack.i.l.bf16 %v25064_v38 }
 0x521   : > { %12386 = vmatpush.msra.mxu1 %v12330_v7  ;;  %20649 = vrot.lane.b32.xlu0 %v24592_v47, %s27878_s16  ;;  %v20487_v7 = vunpack.i.h.bf16 %v25101_v30  ;;  %v13122_v9 = vsel %vm3055_vm7, %v20511_v16, %v20512_v33 }
 0x522   : > { %20654 = vrot.lane.b32.xlu1 %v24599_v49, %s27878_s16  ;;  %v12336_v59 = vsel %vm1840_vm4, %v20442_v28, %v20446_v3  ;;  %v12337_v63 = vsel %vm1840_vm4, %v20446_v3, %v20447_v8  ;;  %v12863_v39 = vsel %vm2650_vm6, %v20481_v12, %v20482_v48  ;;  %v12586_v28 = vsel %vm2245_vm5, %v20457_v40, %v20461_v42  ;;  %vm27892_vm5 = vmmov %vm27887_vm0 }
 0x523   : > { %18989 = vmatmul.msk.f32.vlgmr.msrb.gmra.mxu2 %vm349_vm1, %v25005_v57  ;;  %vm27891_vm4 = vcmask 326656  }
 0x524   : > { %12700 = vmatpush.msrb.mxu2 %v12587_v24  ;;  %20659 = vrot.lane.b32.xlu2 %v24636_v46, %s27878_s16  ;;  %v12864_v24 = vsel %vm2650_vm6, %v20482_v48, %v20486_v44 }
 0x526   : > { %18977 = vmatmul.msk.f32.vlgmr.msra.gmra.mxu3 %vm349_vm1, %v24909_v11  ;;  %v25231_v34 = vpop.permute.xlu2 %13116 }
 0x527   : > { %18978 = vmatmul.msk.f32.vlgmr.msrb.gmra.mxu0 %vm349_vm1, %v24909_v11  ;;  %18979 = vmatmul.msk.f32.vlgmr.msrb.gmra.mxu1 %vm349_vm1, %v24909_v11  ;;  %v25125_v58 = vpop.permute.xlu1 %20499 }
 0x528   : > { %12426 = vmatpush.msra.mxu3 %v12332_v35  ;;  %12446 = vmatpush.msrb.mxu0 %v12333_v52  ;;  %v20501_v3 = vunpack.i.l.bf16 %v25125_v58 }
 0x529   : > { %12466 = vmatpush.msrb.mxu1 %v12334_v45  ;;  %20664 = vrot.lane.b32.xlu0 %v24644_v22, %s27878_s16  ;;  %v25255_v45 = vld [vmem:[%s27470_s3 + $0x38] sm:$0xff] }
 0x52a   : > { %20669 = vrot.lane.b32.xlu1 %v24808_v29, %s27878_s16 }
 0x52b   : > { %18994 = vmatmul.msk.f32.vlgmr.msra.gmra.mxu2 %vm349_vm1, %v25075_v55 }
 0x52c   : > { %12780 = vmatpush.msra.mxu2 %v12591_v41  ;;  %14680 = vrot.lane.b32.xlu2 %v24640_v1, %s27878_s16 }
 0x52e   : > { %18981 = vmatmul.msk.f32.vlgmr.msrb.gmra.mxu3 %vm349_vm1, %v24909_v11  ;;  %v25108_v11 = vpop.permute.xlu0 %20489  ;;  %v25283_v48 = vpop.permute.xlu2 %20534 }
 0x52f   : > { %18983 = vmatmul.msk.f32.vlgmr.msra.gmra.mxu0 %vm349_vm1, %v25005_v57  ;;  %18984 = vmatmul.msk.f32.vlgmr.msra.gmra.mxu1 %vm349_vm1, %v25005_v57  ;;  %v20492_v60 = vunpack.i.h.bf16 %v25108_v11  ;;  %v20491_v31 = vunpack.i.l.bf16 %v25108_v11  ;;  %v25170_v17 = vpop.permute.xlu1 %20504 }
 0x530   : > { %12506 = vmatpush.msrb.mxu3 %v12336_v59  ;;  %12526 = vmatpush.msra.mxu0 %v12337_v63  ;;  %v20507_v14 = vunpack.i.h.bf16 %v25170_v17 }
 0x531   : > { %12546 = vmatpush.msra.mxu1 %v20447_v8  ;;  %20674 = vrot.lane.b32.xlu0 %v24592_v47, %s27879_s29  ;;  %v12867_v13 = vsel %vm2650_vm6, %v20491_v31, %v20492_v60  ;;  %v12866_v52 = vsel %vm2650_vm6, %v20487_v7, %v20491_v31  ;;  %v20502_v8 = vunpack.i.h.bf16 %v25125_v58  ;;  %v12868_v59 = vsel %vm2650_vm6, %v20492_v60, %v20501_v3 }
 0x532   : > { %20679 = vrot.lane.b32.xlu1 %v24599_v49, %s27879_s29 }
 0x533   : > { %18998 = vmatmul.msk.f32.vlgmr.msrb.gmra.mxu2 %vm349_vm1, %v25075_v55  ;;  %v12870_v40 = vsel %vm2650_vm6, %v20502_v8, %v25142_v51 }
 0x534   : > { %12939 = vmatpush.msrb.mxu2 %v12863_v39  ;;  %20684 = vrot.lane.b32.xlu2 %v24636_v46, %s27879_s29  ;;  %v20506_v39 = vunpack.i.l.bf16 %v25170_v17 }
 0x536   : > { %18986 = vmatmul.msk.f32.vlgmr.msra.gmra.mxu3 %vm349_vm1, %v25005_v57  ;;  %v25150_v36 = vpop.permute.xlu0 %20494 }
 0x537   : > { %18987 = vmatmul.msk.f32.vlgmr.msrb.gmra.mxu0 %vm349_vm1, %v25005_v57  ;;  %18988 = vmatmul.msk.f32.vlgmr.msrb.gmra.mxu1 %vm349_vm1, %v25005_v57  ;;  %v20497_v18 = vunpack.i.h.bf16 %v25150_v36  ;;  %v20496_v25 = vunpack.i.l.bf16 %v25150_v36  ;;  %v25214_v27 = vpop.permute.xlu1 %20519  ;;  %v25330_v36 = vpop.permute.xlu2 %13373 }
 0x538   : > { %12640 = vmatpush.msra.mxu3 %v12584_v37  ;;  %12660 = vmatpush.msrb.mxu0 %v12585_v43  ;;  %v20522_v35 = vunpack.i.h.bf16 %v25214_v27 }
 0x539   : > { %12680 = vmatpush.msrb.mxu1 %v12586_v28  ;;  %20689 = vrot.lane.b32.xlu0 %v24644_v22, %s27879_s29  ;;  %v13118_v10 = vsel %vm3055_vm7, %v20496_v25, %v20497_v18  ;;  %v13119_v43 = vsel %vm3055_vm7, %v20497_v18, %v20506_v39  ;;  %v13120_v28 = vsel %vm3055_vm7, %v20506_v39, %v20507_v14 }
 0x53a   : > { %20694 = vrot.lane.b32.xlu1 %v24808_v29, %s27879_s29 }
 0x53b   : > { %19002 = vmatmul.msk.f32.vlgmr.msra.gmra.mxu2 %vm349_vm1, %v25075_v55 }
 0x53c   : > { %13019 = vmatpush.msra.mxu2 %v12867_v13  ;;  %14937 = vrot.lane.b32.xlu2 %v24640_v1, %s27879_s29  ;;  %v13121_v13 = vsel %vm3055_vm7, %v20507_v14, %v20511_v16  ;;  %v25440_v14 = vld [vmem:[#allocation2 + $0x68] sm:$0xff]  ;;  %s27889_s29 = smov 84  }
 0x53e   : > { %18990 = vmatmul.msk.f32.vlgmr.msrb.gmra.mxu3 %vm349_vm1, %v25005_v57  ;;  %v25198_v26 = vpop.permute.xlu0 %20514 }
 0x53f   : > { %18991 = vmatmul.msk.f32.vlgmr.msra.gmra.mxu0 %vm349_vm1, %v25005_v57  ;;  %18992 = vmatmul.msk.f32.vlgmr.msra.gmra.mxu1 %vm349_vm1, %v25005_v57  ;;  %v20477_v57 = vunpack.i.h.bf16 %v25064_v38  ;;  %v12865_v38 = vsel %vm2650_vm6, %v20486_v44, %v20487_v7  ;;  %v25263_v21 = vpop.permute.xlu1 %20529  ;;  %v20517_v18 = vunpack.i.h.bf16 %v25198_v26  ;;  %v20516_v25 = vunpack.i.l.bf16 %v25198_v26 }
 0x540   : > { %12720 = vmatpush.msrb.mxu3 %v12588_v50  ;;  %12740 = vmatpush.msra.mxu0 %v12589_v0  ;;  %v20531_v63 = vunpack.i.l.bf16 %v25263_v21 }
 0x541   : > { %12760 = vmatpush.msra.mxu1 %v12590_v32  ;;  %20699 = vrot.lane.b32.xlu0 %v24592_v47, %s27880_s9  ;;  %v12861_v2 = vsel %vm2650_vm6, %v20476_v15, %v20477_v57  ;;  %v12862_v42 = vsel %vm2650_vm6, %v20477_v57, %v20481_v12  ;;  %v20532_v12 = vunpack.i.h.bf16 %v25263_v21  ;;  %v13124_v57 = vsel %vm3055_vm7, %v20516_v25, %v20517_v18 }
 0x542   : > { %20704 = vrot.lane.b32.xlu1 %v24599_v49, %s27880_s9 }
 0x543   : > { %19007 = vmatmul.msk.f32.vlgmr.msrb.gmra.mxu2 %vm349_vm1, %v25181_v19  ;;  %v13377_v60 = vsel %vm3460_vm8, %v20531_v63, %v20532_v12 }
 0x544   : > { %13156 = vmatpush.msrb.mxu2 %v13118_v10  ;;  %20709 = vrot.lane.b32.xlu2 %v24636_v46, %s27880_s9 }
 0x546   : > { %18995 = vmatmul.msk.f32.vlgmr.msra.gmra.mxu3 %vm349_vm1, %v25075_v55  ;;  %v25244_v62 = vpop.permute.xlu0 %20524 }
 0x547   : > { %18996 = vmatmul.msk.f32.vlgmr.msrb.gmra.mxu0 %vm349_vm1, %v25075_v55  ;;  %18997 = vmatmul.msk.f32.vlgmr.msrb.gmra.mxu1 %vm349_vm1, %v25075_v55  ;;  %v25311_v31 = vpop.permute.xlu1 %20544  ;;  %v20526_v7 = vunpack.i.l.bf16 %v25244_v62 }
 0x548   : > { %12800 = vmatpush.msra.mxu3 %v20472_v23  ;;  %12899 = vmatpush.msrb.mxu0 %v12861_v2  ;;  %v20521_v23 = vunpack.i.l.bf16 %v25214_v27  ;;  %v25381_v2 = vpop.permute.xlu2 %20559 }
 0x549   : > { %12919 = vmatpush.msrb.mxu1 %v12862_v42  ;;  %20714 = vrot.lane.b32.xlu0 %v24644_v22, %s27880_s9  ;;  %v20527_v42 = vunpack.i.h.bf16 %v25244_v62 }
 0x54a   : > { %20719 = vrot.lane.b32.xlu1 %v24808_v29, %s27880_s9  ;;  %v13126_v41 = vsel %vm3055_vm7, %v20521_v23, %v20522_v35 }
 0x54b   : > { %19011 = vmatmul.msk.f32.vlgmr.msra.gmra.mxu2 %vm349_vm1, %v25181_v19 }
 0x54c   : > { %13236 = vmatpush.msra.mxu2 %v13122_v9  ;;  %15194 = vrot.lane.b32.xlu2 %v24640_v1, %s27880_s9 }
 0x54e   : > { %18999 = vmatmul.msk.f32.vlgmr.msrb.gmra.mxu3 %vm349_vm1, %v25075_v55  ;;  %v25240_v56 = vpop.f32.mrf.mxu2  ;;  %v25292_v11 = vpop.permute.xlu0 %20539 }
 0x54f   : > { %19000 = vmatmul.msk.f32.vlgmr.msra.gmra.mxu0 %vm349_vm1, %v25075_v55  ;;  %19001 = vmatmul.msk.f32.vlgmr.msra.gmra.mxu1 %vm349_vm1, %v25075_v55  ;;  %v20542_v20 = vunpack.i.h.bf16 %v25292_v11  ;;  %v20541_v5 = vunpack.i.l.bf16 %v25292_v11 }
 0x550   : > { %12959 = vmatpush.msrb.mxu3 %v12864_v24  ;;  %12979 = vmatpush.msra.mxu0 %v12865_v38  ;;  %v20562_v24 = vunpack.i.h.bf16 %v25381_v2  ;;  %v20561_v38 = vunpack.i.l.bf16 %v25381_v2 }
 0x551   : > { %12999 = vmatpush.msra.mxu1 %v12866_v52  ;;  %20724 = vrot.lane.b32.xlu0 %v24592_v47, %s27881_s14  ;;  %v13381_v32 = vsel %vm3460_vm8, %v20541_v5, %v20542_v20  ;;  %v25361_v16 = vpop.permute.xlu1 %20554  ;;  %v13376_v52 = vsel %vm3460_vm8, %v20527_v42, %v20531_v63 }
 0x552   : > { %20729 = vrot.lane.b32.xlu1 %v24599_v49, %s27881_s14 }
 0x553   : > { %19016 = vmatmul.msk.f32.vlgmr.msrb.gmra.mxu2 %vm349_vm1, %v25255_v45 }
 0x554   : > { %13316 = vmatpush.msrb.mxu2 %v13126_v41  ;;  %20734 = vrot.lane.b32.xlu2 %v24636_v46, %s27881_s14  ;;  %v13658_v41 = vsel %vm3897_vm9, %v20561_v38, %v20562_v24 }
 0x556   : > { %19003 = vmatmul.msk.f32.vlgmr.msra.gmra.mxu3 %vm349_vm1, %v25075_v55  ;;  %v25281_v30 = vpop.f32.mrf.mxu2  ;;  %v12869_v55 = vsel %vm2650_vm6, %v20501_v3, %v20502_v8  ;;  %v25338_v17 = vpop.permute.xlu0 %20549  ;;  %v20536_v8 = vunpack.i.l.bf16 %v25283_v48  ;;  %vm27893_vm6 = vmmov %vm27887_vm0 }
 0x557   : > { %19005 = vmatmul.msk.f32.vlgmr.msrb.gmra.mxu0 %vm349_vm1, %v25181_v19  ;;  %19006 = vmatmul.msk.f32.vlgmr.msrb.gmra.mxu1 %vm349_vm1, %v25181_v19  ;;  %v20552_v10 = vunpack.i.h.bf16 %v25338_v17  ;;  %v20551_v26 = vunpack.i.l.bf16 %v25338_v17 }
 0x558   : > { %13039 = vmatpush.msra.mxu3 %v12868_v59  ;;  %13059 = vmatpush.msrb.mxu0 %v12869_v55  ;;  %v25431_v59 = vld [vmem:[#allocation2 + $0x70] sm:$0xff]  ;;  %v13378_v39 = vsel %vm3460_vm8, %v20532_v12, %v20536_v8 }
 0x559   : > { %13079 = vmatpush.msrb.mxu1 %v12870_v40  ;;  %20739 = vrot.lane.b32.xlu0 %v24644_v22, %s27881_s14  ;;  %v13654_v44 = vsel %vm3897_vm9, %v20551_v26, %v20552_v10  ;;  %v25437_v40 = vpop.permute.xlu2 %13652 }
 0x55a   : > { %20744 = vrot.lane.b32.xlu1 %v24808_v29, %s27881_s14  ;;  %v11413_v58 = vpop.f32.mrf.mxu0  ;;  %v25414_v27 = vpop.permute.xlu1 %20574 }
 0x55b   : > { %v25300_v37 = vpop.f32.mrf.mxu1  ;;  %19020 = vmatmul.msk.f32.vlgmr.msra.gmra.mxu2 %vm349_vm1, %v25255_v45 }
 0x55c   : > { %13453 = vmatpush.msra.mxu2 %v13377_v60  ;;  %15451 = vrot.lane.b32.xlu2 %v24640_v1, %s27881_s14  ;;  %v25452_v60 = vpack.i.bf16 %v25431_v59, %v25440_v14 }
 0x55e   : > { %19008 = vmatmul.msk.f32.vlgmr.msrb.gmra.mxu3 %vm349_vm1, %v25181_v19  ;;  %v11616_v51 = vpop.f32.mrf.mxu2 }
 0x55f   : > { %19009 = vmatmul.msk.f32.vlgmr.msra.gmra.mxu0 %vm349_vm1, %v25181_v19  ;;  %19010 = vmatmul.msk.f32.vlgmr.msra.gmra.mxu1 %vm349_vm1, %v25181_v19  ;;  %v25328_v50 = vadd.f32 %v11616_v51, %v11413_v58 }
 0x560   : > { %13176 = vmatpush.msrb.mxu3 %v13119_v43  ;;  %13196 = vmatpush.msra.mxu0 %v13120_v28  ;;  %v20576_v28 = vunpack.i.l.bf16 %v25414_v27 }
 0x561   : > { %13216 = vmatpush.msra.mxu1 %v13121_v13  ;;  %20749 = vrot.lane.b32.xlu0 %v24592_v47, %s27882_s15  ;;  %v25468_v13 = vld [vmem:[%s27470_s3 + $0x48] sm:$0xff] }
 0x562   : > { %20754 = vrot.lane.b32.xlu1 %v24599_v49, %s27882_s15  ;;  %v13123_v49 = vsel %vm3055_vm7, %v20512_v33, %v20516_v25  ;;  %v25373_v33 = vld [vmem:[%s27470_s3 + $0x40] sm:$0xff]  ;;  %v20547_v25 = vunpack.i.h.bf16 %v25311_v31 }
 0x563   : > { %v11493_v0 = vpop.f32.mrf.mxu0  ;;  %19024 = vmatmul.msk.f32.vlgmr.msrb.gmra.mxu2 %vm349_vm1, %v25255_v45 }
 0x564   : > { %v25347_v47 = vpop.f32.mrf.mxu1  ;;  %13533 = vmatpush.msrb.mxu2 %v13381_v32  ;;  %20759 = vrot.lane.b32.xlu2 %v24636_v46, %s27882_s15  ;;  %v13125_v46 = vsel %vm3055_vm7, %v20517_v18, %v20521_v23  ;;  %v13127_v23 = vsel %vm3055_vm7, %v20522_v35, %v25231_v34  ;;  %v20537_v35 = vunpack.i.h.bf16 %v25283_v48  ;;  %v25479_v32 = vpop.permute.xlu1 %20579  ;;  %vm27894_vm7 = vmmov %vm27887_vm0 }
 0x566   : > { %19012 = vmatmul.msk.f32.vlgmr.msra.gmra.mxu3 %vm349_vm1, %v25181_v19  ;;  %v11696_v15 = vpop.f32.mrf.mxu2  ;;  %v13379_v58 = vsel %vm3460_vm8, %v20536_v8, %v20537_v35  ;;  %v13380_v21 = vsel %vm3460_vm8, %v20537_v35, %v20541_v5  ;;  %v20546_v5 = vunpack.i.l.bf16 %v25311_v31 }
 0x567   : > { %19013 = vmatmul.msk.f32.vlgmr.msrb.gmra.mxu0 %vm349_vm1, %v25181_v19  ;;  %19014 = vmatmul.msk.f32.vlgmr.msrb.gmra.mxu1 %vm349_vm1, %v25181_v19  ;;  %v25368_v6 = vadd.f32 %v11696_v15, %v11493_v0 }
 0x568   : > { %13256 = vmatpush.msra.mxu3 %v13123_v49  ;;  %13276 = vmatpush.msrb.mxu0 %v13124_v57  ;;  %v13382_v31 = vsel %vm3460_vm8, %v20542_v20, %v20546_v5  ;;  %v13383_v26 = vsel %vm3460_vm8, %v20546_v5, %v20547_v25 }
 0x569   : > { %13296 = vmatpush.msrb.mxu1 %v13125_v46  ;;  %20764 = vrot.lane.b32.xlu0 %v24644_v22, %s27882_s15  ;;  %v25379_v19 = vpop.f32.mrf.mxu3 }
 0x56a   : > { %20769 = vrot.lane.b32.xlu1 %v24808_v29, %s27882_s15  ;;  %v25394_v29 = vpop.permute.xlu0 %20564 }
 0x56b   : > { %19029 = vmatmul.msk.f32.vlgmr.msra.gmra.mxu2 %vm349_vm1, %v25373_v33  ;;  %v11573_v9 = vpop.f32.mrf.mxu0 }
 0x56c   : > { %v25390_v22 = vpop.f32.mrf.mxu1  ;;  %13692 = vmatpush.msra.mxu2 %v13654_v44  ;;  %15708 = vrot.lane.b32.xlu2 %v24640_v1, %s27882_s15  ;;  %v13375_v1 = vsel %vm3460_vm8, %v20526_v7, %v20527_v42  ;;  %v25501_v42 = vpop.permute.xlu2 %20584  ;;  %v20582_v7 = vunpack.i.h.bf16 %v25479_v32  ;;  %v20581_v44 = vunpack.i.l.bf16 %v25479_v32  ;;  %s27886_s15 = smov 101  }
 0x56e   : > { %19017 = vmatmul.msk.f32.vlgmr.msrb.gmra.mxu3 %vm349_vm1, %v25255_v45  ;;  %v11776_v62 = vpop.f32.mrf.mxu2 }
 0x56f   : > { %19018 = vmatmul.msk.f32.vlgmr.msra.gmra.mxu0 %vm349_vm1, %v25255_v45  ;;  %19019 = vmatmul.msk.f32.vlgmr.msra.gmra.mxu1 %vm349_vm1, %v25255_v45  ;;  %v25412_v3 = vadd.f32 %v11776_v62, %v11573_v9  ;;  %v20557_v9 = vunpack.i.h.bf16 %v25361_v16 }
 0x570   : > { %13336 = vmatpush.msrb.mxu3 %v13127_v23  ;;  %13413 = vmatpush.msra.mxu0 %v13375_v1  ;;  %v20556_v23 = vunpack.i.l.bf16 %v25361_v16  ;;  %v25533_v16 = vpop.permute.xlu1 %20594 }
 0x571   : > { %13433 = vmatpush.msra.mxu1 %v13376_v52  ;;  %20774 = vrot.lane.b32.xlu0 %v24670_v4, %s27883_s20  ;;  %v25420_v34 = vpop.f32.mrf.mxu3 }
 0x572   : > { %20779 = vrot.lane.b32.xlu1 %v24672_v61, %s27883_s20  ;;  %v25456_v51 = vpop.permute.xlu0 %20569  ;;  %v13655_v35 = vsel %vm3897_vm9, %v20552_v10, %v20556_v23  ;;  %v13656_v8 = vsel %vm3897_vm9, %v20556_v23, %v20557_v9 }
 0x573   : > { %19033 = vmatmul.msk.f32.vlgmr.msrb.gmra.mxu2 %vm349_vm1, %v25373_v33  ;;  %v11656_v63 = vpop.f32.mrf.mxu0 }
 0x574   : > { %v25433_v55 = vpop.f32.mrf.mxu1  ;;  %13772 = vmatpush.msrb.mxu2 %v13658_v41  ;;  %20784 = vrot.lane.b32.xlu2 %v24684_v54, %s27883_s20  ;;  %v11657_v48 = vadd.f32 %v11656_v63, %v25240_v56  ;;  %v20577_v56 = vunpack.i.h.bf16 %v25414_v27  ;;  %v25553_v17 = vpop.permute.xlu2 %13909 }
 0x576   : > { %19021 = vmatmul.msk.f32.vlgmr.msra.gmra.mxu3 %vm349_vm1, %v25255_v45  ;;  %v11900_v43 = vpop.f32.mrf.mxu2  ;;  %v13662_v49 = vsel %vm3897_vm9, %v20576_v28, %v20577_v56 }
 0x577   : > { %19022 = vmatmul.msk.f32.vlgmr.msrb.gmra.mxu0 %vm349_vm1, %v25255_v45  ;;  %19023 = vmatmul.msk.f32.vlgmr.msrb.gmra.mxu1 %vm349_vm1, %v25255_v45  ;;  %v25463_v12 = vadd.f32 %v11900_v43, %v11657_v48  ;;  %v20566_v43 = vunpack.i.l.bf16 %v25394_v29 }
 0x578   : > { %13473 = vmatpush.msra.mxu3 %v13378_v39  ;;  %13493 = vmatpush.msrb.mxu0 %v13379_v58  ;;  %v20567_v58 = vunpack.i.h.bf16 %v25394_v29 }
 0x579   : > { %13513 = vmatpush.msrb.mxu1 %v13380_v21  ;;  %20789 = vrot.lane.b32.xlu0 %v24687_v53, %s27883_s20  ;;  %v11636_v18 = vpop.f32.mrf.mxu3  ;;  %v13659_v29 = vsel %vm3897_vm9, %v20562_v24, %v20566_v43  ;;  %v11677_v24 = vadd.f32 %v25433_v55, %v25379_v19  ;;  %v20572_v19 = vunpack.i.h.bf16 %v25456_v51  ;;  %v20571_v55 = vunpack.i.l.bf16 %v25456_v51 }
 0x57a   : > { %20794 = vrot.lane.b32.xlu1 %v25452_v60, %s27883_s20  ;;  %v25477_v0 = vadd.f32 %v11636_v18, %v25300_v37  ;;  %v25511_v11 = vpop.permute.xlu0 %20589 }
 0x57b   : > { %19038 = vmatmul.msk.f32.vlgmr.msra.gmra.mxu2 %vm349_vm1, %v25468_v13  ;;  %v20592_v63 = vunpack.i.h.bf16 %v25511_v11  ;;  %v20591_v48 = vunpack.i.l.bf16 %v25511_v11 }
 0x57c   : > { %v11736_v57 = vpop.f32.mrf.mxu0  ;;  %v25488_v15 = vpop.f32.mrf.mxu1  ;;  %13852 = vmatpush.msra.mxu2 %v13662_v49  ;;  %20799 = vrot.lane.b32.xlu2 %v24670_v4, %s27884_s19  ;;  %v13660_v49 = vsel %vm3897_vm9, %v20566_v43, %v20567_v58 }
 0x57d   : > { %v11737_v37 = vadd.f32 %v11736_v57, %v25281_v30  ;;  %v13917_v18 = vsel %vm4302_vm10, %v20591_v48, %v20592_v63  ;;  %v11757_v27 = vadd.f32 %v25488_v15, %v25420_v34 }
 0x57e   : > { %19025 = vmatmul.msk.f32.vlgmr.msrb.gmra.mxu3 %vm349_vm1, %v25255_v45  ;;  %v11980_v46 = vpop.f32.mrf.mxu2  ;;  %v13384_v45 = vsel %vm3460_vm8, %v20547_v25, %v25330_v36  ;;  %v13913_v36 = vsel %vm4302_vm10, %v20581_v44, %v20582_v7  ;;  %vm27896_vm8 = vmmov %vm27891_vm4 }
 0x57f   : > { %19027 = vmatmul.msk.f32.vlgmr.msra.gmra.mxu0 %vm349_vm1, %v25373_v33  ;;  %19028 = vmatmul.msk.f32.vlgmr.msra.gmra.mxu1 %vm349_vm1, %v25373_v33  ;;  %v25509_v30 = vadd.f32 %v11980_v46, %v11737_v37  ;;  %v25602_v46 = vld [vmem:[%s27470_s3 + $0x50] sm:$0xff] }
 0x580   : > { %13553 = vmatpush.msrb.mxu3 %v13382_v31  ;;  %13573 = vmatpush.msra.mxu0 %v13383_v26  ;;  %v25588_v26 = vpop.permute.xlu1 %20604 }
 0x581   : > { %13593 = vmatpush.msra.mxu1 %v13384_v45  ;;  %20804 = vrot.lane.b32.xlu0 %v24672_v61, %s27884_s19  ;;  %v11716_v20 = vpop.f32.mrf.mxu3  ;;  %v25610_v45 = vpop.permute.xlu2 %20609 }
 0x582   : > { %20809 = vrot.lane.b32.xlu1 %v24684_v54, %s27884_s19  ;;  %v25520_v62 = vadd.f32 %v11716_v20, %v25347_v47  ;;  %v20612_v51 = vunpack.i.h.bf16 %v25610_v45 }
 0x583   : > { %19042 = vmatmul.msk.f32.vlgmr.msrb.gmra.mxu2 %vm349_vm1, %v25468_v13 }
 0x584   : > { %v11860_v1 = vpop.f32.mrf.mxu0  ;;  %v25529_v52 = vpop.f32.mrf.mxu1  ;;  %13989 = vmatpush.msrb.mxu2 %v13913_v36  ;;  %20814 = vrot.lane.b32.xlu2 %v24687_v53, %s27884_s19 }
 0x585   : > { %v12043_v47 = vadd.f32 %v11860_v1, %v25328_v50  ;;  %v13657_v50 = vsel %vm3897_vm9, %v20557_v9, %v20561_v38  ;;  %v25564_v38 = vpop.permute.xlu0 %20599 }
 0x586   : > { %19030 = vmatmul.msk.f32.vlgmr.msra.gmra.mxu3 %vm349_vm1, %v25373_v33  ;;  %v12114_v41 = vpop.f32.mrf.mxu2  ;;  %v20602_v37 = vunpack.i.h.bf16 %v25564_v38  ;;  %v20601_v31 = vunpack.i.l.bf16 %v25564_v38 }
 0x587   : > { %19031 = vmatmul.msk.f32.vlgmr.msrb.gmra.mxu0 %vm349_vm1, %v25373_v33  ;;  %19032 = vmatmul.msk.f32.vlgmr.msrb.gmra.mxu1 %vm349_vm1, %v25373_v33  ;;  %v25551_v39 = vadd.f32 %v12114_v41, %v12043_v47  ;;  %v13663_v47 = vsel %vm3897_vm9, %v20577_v56, %v25437_v40  ;;  %v13912_v41 = vsel %vm4302_vm10, %v20572_v19, %v20581_v44  ;;  %v20586_v44 = vunpack.i.l.bf16 %v25501_v42 }
 0x588   : > { %13712 = vmatpush.msra.mxu3 %v13655_v35  ;;  %13732 = vmatpush.msrb.mxu0 %v13656_v8  ;;  %v14168_v20 = vsel %vm4707_vm11, %v20601_v31, %v20602_v37  ;;  %v20611_v8 = vunpack.i.l.bf16 %v25610_v45  ;;  %v25646_v40 = vpop.permute.xlu1 %20619 }
 0x589   : > { %13752 = vmatpush.msrb.mxu1 %v13657_v50  ;;  %20819 = vrot.lane.b32.xlu0 %v25452_v60, %s27884_s19  ;;  %v11796_v10 = vpop.f32.mrf.mxu3  ;;  %s21052_s19 = scalar_lea.hbm %s27473_s6, 160 }
 0x58a   : > { %20824 = vrot.lane.b32.xlu1 %v24670_v4, %s21115_s10  ;;  %v25562_v21 = vadd.f32 %v11796_v10, %v25390_v22  ;;  %v20587_v10 = vunpack.i.h.bf16 %v25501_v42  ;;  %v14172_v34 = vsel %vm4707_vm11, %v20611_v8, %v20612_v51 }
 0x58b   : > { %19046 = vmatmul.msk.f32.vlgmr.msra.gmra.mxu2 %vm349_vm1, %v25468_v13 }
 0x58c   : > { %v11940_v25 = vpop.f32.mrf.mxu0  ;;  %v25573_v5 = vpop.f32.mrf.mxu1  ;;  %14069 = vmatpush.msra.mxu2 %v13917_v18  ;;  %20829 = vrot.lane.b32.xlu2 %v24672_v61, %s21115_s10 }
 0x58d   : > { %v12047_v22 = vadd.f32 %v11940_v25, %v25368_v6  ;;  %v13661_v6 = vsel %vm3897_vm9, %v20567_v58, %v20576_v28  ;;  %v25623_v36 = vpop.permute.xlu0 %20614  ;;  %v25667_v18 = vpop.permute.xlu2 %14166  ;;  %v13914_v25 = vsel %vm4302_vm10, %v20582_v7, %v20586_v44  ;;  %v12044_v7 = vadd.f32 %v25529_v52, %v25477_v0  ;;  %vm27897_vm9 = vmmov %vm27887_vm0 }
 0x58e   : > { %19034 = vmatmul.msk.f32.vlgmr.msrb.gmra.mxu3 %vm349_vm1, %v25373_v33  ;;  %v12194_v57 = vpop.f32.mrf.mxu2  ;;  %v12048_v11 = vadd.f32 %v25573_v5, %v25520_v62 }
 0x58f   : > { %19035 = vmatmul.msk.f32.vlgmr.msra.gmra.mxu0 %vm349_vm1, %v25373_v33  ;;  %19036 = vmatmul.msk.f32.vlgmr.msra.gmra.mxu1 %vm349_vm1, %v25373_v33  ;;  %v25595_v2 = vadd.f32 %v12194_v57, %v12047_v22  ;;  %v13915_v22 = vsel %vm4302_vm10, %v20586_v44, %v20587_v10  ;;  %v20621_v57 = vunpack.i.l.bf16 %v25646_v40 }
 0x590   : > { %13792 = vmatpush.msrb.mxu3 %v13659_v29  ;;  %13812 = vmatpush.msra.mxu0 %v13660_v49  ;;  %v20622_v49 = vunpack.i.h.bf16 %v25646_v40  ;;  %v25704_v0 = vpop.permute.xlu1 %20629 }
 0x591   : > { %13832 = vmatpush.msra.mxu1 %v13661_v6  ;;  %20834 = vrot.lane.b32.xlu0 %v24684_v54, %s21115_s10  ;;  %v11920_v33 = vpop.f32.mrf.mxu3  ;;  %v25694_v6 = vld [vmem:[%s27470_s3 + $0x58] sm:$0xff] }
 0x592   : > { %20839 = vrot.lane.b32.xlu1 %v24687_v53, %s21115_s10  ;;  %v25608_v28 = vadd.f32 %v11920_v33, %v11677_v24  ;;  %v20596_v33 = vunpack.i.l.bf16 %v25533_v16  ;;  %v14176_v52 = vsel %vm4707_vm11, %v20621_v57, %v20622_v49 }
 0x593   : > { %19051 = vmatmul.msk.f32.vlgmr.msrb.gmra.mxu2 %vm349_vm1, %v25602_v46 }
 0x594   : > { %v12020_v9 = vpop.f32.mrf.mxu0  ;;  %v25619_v23 = vpop.f32.mrf.mxu1  ;;  %14206 = vmatpush.msrb.mxu2 %v14168_v20  ;;  %20844 = vrot.lane.b32.xlu2 %v25452_v60, %s21115_s10  ;;  %s27885_s10 = smov 102  }
 0x595   : > { %v12051_v1 = vadd.f32 %v12020_v9, %v25412_v3  ;;  %v13911_v3 = vsel %vm4302_vm10, %v20571_v55, %v20572_v19  ;;  %v25680_v31 = vpop.permute.xlu0 %20624  ;;  %v25713_v55 = vld [vmem:[#allocation2 + $0x78] sm:$0xff]  ;;  %v12052_v38 = vadd.f32 %v25619_v23, %v25562_v21 }
 0x596   : > { %19039 = vmatmul.msk.f32.vlgmr.msra.gmra.mxu3 %vm349_vm1, %v25468_v13  ;;  %v12274_v35 = vpop.f32.mrf.mxu2 }
 0x597   : > { %19040 = vmatmul.msk.f32.vlgmr.msrb.gmra.mxu0 %vm349_vm1, %v25468_v13  ;;  %19041 = vmatmul.msk.f32.vlgmr.msrb.gmra.mxu1 %vm349_vm1, %v25468_v13  ;;  %v25642_v50 = vadd.f32 %v12274_v35, %v12051_v1  ;;  %v13918_v1 = vsel %vm4302_vm10, %v20592_v63, %v20596_v33 }
 0x598   : > { %13872 = vmatpush.msra.mxu3 %v13663_v47  ;;  %13949 = vmatpush.msrb.mxu0 %v13911_v3  ;;  %v25728_v3 = vpop.permute.xlu2 %20634 }
 0x599   : > { %13969 = vmatpush.msrb.mxu1 %v13912_v41  ;;  %20849 = vrot.lane.b32.xlu0 %v24670_v4, %s27885_s10  ;;  %v12000_v56 = vpop.f32.mrf.mxu3  ;;  %v20632_v41 = vunpack.i.h.bf16 %v25704_v0 }
 0x59a   : > { %20854 = vrot.lane.b32.xlu1 %v24672_v61, %s27885_s10  ;;  %v25654_v58 = vadd.f32 %v12000_v56, %v11757_v27  ;;  %v20631_v27 = vunpack.i.l.bf16 %v25704_v0 }
 0x59b   : > { %19055 = vmatmul.msk.f32.vlgmr.msra.gmra.mxu2 %vm349_vm1, %v25602_v46 }
 0x59c   : > { %v12154_v15 = vpop.f32.mrf.mxu0  ;;  %v25663_v43 = vpop.f32.mrf.mxu1  ;;  %14286 = vmatpush.msra.mxu2 %v14172_v34  ;;  %20859 = vrot.lane.b32.xlu2 %v24684_v54, %s27885_s10  ;;  %v14427_v62 = vsel %vm5112_vm12, %v20631_v27, %v20632_v41 }
 0x59d   : > { %v12299_v42 = vadd.f32 %v12154_v15, %v25463_v12  ;;  %v13916_v12 = vsel %vm4302_vm10, %v20587_v10, %v20591_v48  ;;  %v20597_v48 = vunpack.i.h.bf16 %v25533_v16  ;;  %v25740_v63 = vpop.permute.xlu0 %20639  ;;  %v20607_v10 = vunpack.i.h.bf16 %v25588_v26  ;;  %v25761_v15 = vpop.permute.xlu1 %20644 }
 0x59e   : > { %19043 = vmatmul.msk.f32.vlgmr.msrb.gmra.mxu3 %vm349_vm1, %v25468_v13  ;;  %v12408_v29 = vpop.f32.mrf.mxu2 }
 0x59f   : > { %19044 = vmatmul.msk.f32.vlgmr.msra.gmra.mxu0 %vm349_vm1, %v25468_v13  ;;  %19045 = vmatmul.msk.f32.vlgmr.msra.gmra.mxu1 %vm349_vm1, %v25468_v13  ;;  %v25687_v32 = vadd.f32 %v12408_v29, %v12299_v42  ;;  %v13919_v47 = vsel %vm4302_vm10, %v20596_v33, %v20597_v48  ;;  %v20642_v29 = vunpack.i.h.bf16 %v25740_v63 }
 0x5a0   : > { %14009 = vmatpush.msrb.mxu3 %v13914_v25  ;;  %14029 = vmatpush.msra.mxu0 %v13915_v22 }
 0x5a1   : > { %14049 = vmatpush.msra.mxu1 %v13916_v12  ;;  %20864 = vrot.lane.b32.xlu0 %v24687_v53, %s27885_s10  ;;  %v12134_v24 = vpop.f32.mrf.mxu3  ;;  %v20641_v12 = vunpack.i.l.bf16 %v25740_v63 }
 0x5a2   : > { %20874 = vrot.lane.b32.xlu1 %v25452_v60, %s27885_s10  ;;  %v25702_v19 = vadd.f32 %v12134_v24, %v12044_v7 }
 0x5a3   : > { %19060 = vmatmul.msk.f32.vlgmr.msrb.gmra.mxu2 %vm349_vm1, %v25694_v6  ;;  %v14431_v21 = vsel %vm5112_vm12, %v20641_v12, %v20642_v29 }
 0x5a4   : > { %v12234_v20 = vpop.f32.mrf.mxu0  ;;  %v25715_v9 = vpop.f32.mrf.mxu1  ;;  %14366 = vmatpush.msrb.mxu2 %v14176_v52  ;;  %16769 = vrot.lane.b32.xlu2 %v25713_v55, %s27885_s10  ;;  %s19240_s10 = smul.u32 80, %s21179_s25 }
 0x5a5   : > { %v12303_v16 = vadd.f32 %v12234_v20, %v25509_v30  ;;  %v25793_v52 = vpop.permute.xlu0 %20649  ;;  %v12304_v40 = vadd.f32 %v25715_v9, %v25654_v58 }
 0x5a6   : > { %19047 = vmatmul.msk.f32.vlgmr.msra.gmra.mxu3 %vm349_vm1, %v25468_v13  ;;  %v12488_v35 = vpop.f32.mrf.mxu2  ;;  %v13920_v13 = vsel %vm4302_vm10, %v20597_v48, %v25553_v17  ;;  %v20606_v17 = vunpack.i.l.bf16 %v25588_v26  ;;  %v20617_v48 = vunpack.i.h.bf16 %v25623_v36  ;;  %vm27898_vm10 = vmmov %vm27887_vm0  ;;  %s18412_s25 = scalar_lea.hbm %s27473_s6, %s19240_s10 }
 0x5a7   : > { %19049 = vmatmul.msk.f32.vlgmr.msrb.gmra.mxu0 %vm349_vm1, %v25602_v46  ;;  %19050 = vmatmul.msk.f32.vlgmr.msrb.gmra.mxu1 %vm349_vm1, %v25602_v46  ;;  %v25736_v30 = vadd.f32 %v12488_v35, %v12303_v16  ;;  %v20652_v35 = vunpack.i.h.bf16 %v25793_v52  ;;  %s18416_s16 = sshll.u32 %s18412_s25, 4  ;;  %s18417_s16 = int_to_ptr.hbm [resolvable:$true] %s18416_s16 }
 0x5a8   : > { %14089 = vmatpush.msra.mxu3 %v13918_v1  ;;  %14109 = vmatpush.msrb.mxu0 %v13919_v47  ;;  %v14169_v42 = vsel %vm4707_vm11, %v20602_v37, %v20606_v17  ;;  %v14170_v25 = vsel %vm4707_vm11, %v20606_v17, %v20607_v10  ;;  %v25783_v37 = vpop.permute.xlu2 %14423 }
 0x5a9   : > { %14129 = vmatpush.msrb.mxu1 %v13920_v13  ;;  %20869 = vrot.lane.b32.xlu0 %v24670_v4, %s27886_s15  ;;  %v12214_v56 = vpop.f32.mrf.mxu3  ;;  %v20651_v13 = vunpack.i.l.bf16 %v25793_v52 }
 0x5aa   : > { %20879 = vrot.lane.b32.xlu1 %v24672_v61, %s27886_s15  ;;  %v25748_v44 = vadd.f32 %v12214_v56, %v12048_v11  ;;  %v25817_v11 = vpop.permute.xlu1 %20654  ;;  %v25831_v56 = vld [vmem:[%s27470_s3 + $0x60] sm:$0xff] }
 0x5ab   : > { %19064 = vmatmul.msk.f32.vlgmr.msra.gmra.mxu2 %vm349_vm1, %v25694_v6  ;;  %v14682_v17 = vsel %vm27887_vm0, %v20651_v13, %v20652_v35 }
 0x5ac   : > { %v12368_v5 = vpop.f32.mrf.mxu0  ;;  %v25757_v34 = vpop.f32.mrf.mxu1  ;;  %14503 = vmatpush.msra.mxu2 %v14427_v62  ;;  %20884 = vrot.lane.b32.xlu2 %v24684_v54, %s27886_s15 }
 0x5ad   : > { %v12551_v26 = vadd.f32 %v12368_v5, %v25551_v39  ;;  %v14171_v39 = vsel %vm4707_vm11, %v20607_v10, %v20611_v8  ;;  %v20616_v8 = vunpack.i.l.bf16 %v25623_v36 }
 0x5ae   : > { %19052 = vmatmul.msk.f32.vlgmr.msrb.gmra.mxu3 %vm349_vm1, %v25602_v46  ;;  %v12622_v22 = vpop.f32.mrf.mxu2 }
 0x5af   : > { %19053 = vmatmul.msk.f32.vlgmr.msra.gmra.mxu0 %vm349_vm1, %v25602_v46  ;;  %19054 = vmatmul.msk.f32.vlgmr.msra.gmra.mxu1 %vm349_vm1, %v25602_v46  ;;  %v25779_v7 = vadd.f32 %v12622_v22, %v12551_v26  ;;  %v14173_v16 = vsel %vm4707_vm11, %v20612_v51, %v20616_v8  ;;  %v14174_v1 = vsel %vm4707_vm11, %v20616_v8, %v20617_v48  ;;  %v25852_v26 = vpop.permute.xlu0 %20664 }
 0x5b0   : > { %14226 = vmatpush.msrb.mxu3 %v14169_v42  ;;  %14246 = vmatpush.msra.mxu0 %v14170_v25  ;;  %v12300_v51 = vadd.f32 %v25663_v43, %v25608_v28  ;;  %v25839_v10 = vpop.permute.xlu2 %20659  ;;  %v20627_v28 = vunpack.i.h.bf16 %v25680_v31  ;;  %v20626_v43 = vunpack.i.l.bf16 %v25680_v31  ;;  %v14177_v25 = vsel %vm4707_vm11, %v20622_v49, %v25667_v18 }
 0x5b1   : > { %14266 = vmatpush.msra.mxu1 %v14171_v39  ;;  %20889 = vrot.lane.b32.xlu0 %v24687_v53, %s27886_s15  ;;  %v12294_v24 = vpop.f32.mrf.mxu3  ;;  %v20662_v31 = vunpack.i.h.bf16 %v25839_v10  ;;  %v20661_v39 = vunpack.i.l.bf16 %v25839_v10 }
 0x5b2   : > { %20899 = vrot.lane.b32.xlu1 %v25452_v60, %s27886_s15  ;;  %v25791_v33 = vadd.f32 %v12294_v24, %v12052_v38  ;;  %v14426_v38 = vsel %vm5112_vm12, %v20627_v28, %v20631_v27  ;;  %v25875_v18 = vpop.permute.xlu1 %20669  ;;  %v20636_v27 = vunpack.i.l.bf16 %v25728_v3 }
 0x5b3   : > { %19068 = vmatmul.msk.f32.vlgmr.msrb.gmra.mxu2 %vm349_vm1, %v25694_v6  ;;  %v14686_v58 = vsel %vm27888_vm2, %v20661_v39, %v20662_v31  ;;  %v20671_v13 = vunpack.i.l.bf16 %v25875_v18 }
 0x5b4   : > { %v12448_v23 = vpop.f32.mrf.mxu0  ;;  %v25802_v20 = vpop.f32.mrf.mxu1  ;;  %14583 = vmatpush.msrb.mxu2 %v14431_v21  ;;  %17026 = vrot.lane.b32.xlu2 %v25713_v55, %s27886_s15 }
 0x5b5   : > { %v12555_v36 = vadd.f32 %v12448_v23, %v25595_v2  ;;  %v14175_v2 = vsel %vm4707_vm11, %v20617_v48, %v20621_v57  ;;  %v20637_v48 = vunpack.i.h.bf16 %v25728_v3  ;;  %v12556_v63 = vadd.f32 %v25802_v20, %v25748_v44  ;;  %vm27899_vm11 = vmmov %vm27887_vm0 }
 0x5b6   : > { %19056 = vmatmul.msk.f32.vlgmr.msra.gmra.mxu3 %vm349_vm1, %v25602_v46  ;;  %v12702_v47 = vpop.f32.mrf.mxu2 }
 0x5b7   : > { %19057 = vmatmul.msk.f32.vlgmr.msrb.gmra.mxu0 %vm349_vm1, %v25602_v46  ;;  %19058 = vmatmul.msk.f32.vlgmr.msrb.gmra.mxu1 %vm349_vm1, %v25602_v46  ;;  %v25824_v45 = vadd.f32 %v12702_v47, %v12555_v36  ;;  %v14428_v36 = vsel %vm5112_vm12, %v20632_v41, %v20636_v27  ;;  %v20672_v47 = vunpack.i.h.bf16 %v25875_v18  ;;  %v12552_v41 = vadd.f32 %v25757_v34, %v25702_v19 }
 0x5b8   : > { %14306 = vmatpush.msra.mxu3 %v14173_v16  ;;  %14326 = vmatpush.msrb.mxu0 %v14174_v1  ;;  %v25896_v23 = vpop.permute.xlu2 %14680  ;;  %v14429_v16 = vsel %vm5112_vm12, %v20636_v27, %v20637_v48 }
 0x5b9   : > { %14346 = vmatpush.msrb.mxu1 %v14175_v2  ;;  %20894 = vrot.lane.b32.xlu0 %v24670_v4, %s21118_s18  ;;  %v12428_v46 = vpop.f32.mrf.mxu3  ;;  %v25909_v2 = vpop.permute.xlu0 %20674  ;;  %v14690_v34 = vsel %vm27890_vm3, %v20671_v13, %v20672_v47 }
 0x5ba   : > { %20904 = vrot.lane.b32.xlu1 %v24672_v61, %s21118_s18  ;;  %v25837_v57 = vadd.f32 %v12428_v46, %v12300_v51  ;;  %v25923_v51 = vld [vmem:[%s27470_s3 + $0x68] sm:$0xff]  ;;  %v25933_v19 = vpop.permute.xlu1 %20679 }
 0x5bb   : > { %19073 = vmatmul.msk.f32.vlgmr.msra.gmra.mxu2 %vm349_vm1, %v25831_v56 }
 0x5bc   : > { %v12528_v62 = vpop.f32.mrf.mxu0  ;;  %v25848_v5 = vpop.f32.mrf.mxu1  ;;  %14720 = vmatpush.msra.mxu2 %v14682_v17  ;;  %20909 = vrot.lane.b32.xlu2 %v24684_v54, %s21118_s18 }
 0x5bd   : > { %v12559_v42 = vadd.f32 %v12528_v62, %v25642_v50  ;;  %v14425_v50 = vsel %vm5112_vm12, %v20626_v43, %v20627_v28  ;;  %v20646_v28 = vunpack.i.l.bf16 %v25761_v15  ;;  %v12560_v52 = vadd.f32 %v25848_v5, %v25791_v33 }
 0x5be   : > { %19061 = vmatmul.msk.f32.vlgmr.msrb.gmra.mxu3 %vm349_vm1, %v25694_v6  ;;  %v12782_v22 = vpop.f32.mrf.mxu2 }
 0x5bf   : > { %19062 = vmatmul.msk.f32.vlgmr.msra.gmra.mxu0 %vm349_vm1, %v25694_v6  ;;  %19063 = vmatmul.msk.f32.vlgmr.msra.gmra.mxu1 %vm349_vm1, %v25694_v6  ;;  %v25871_v24 = vadd.f32 %v12782_v22, %v12559_v42  ;;  %v14432_v42 = vsel %vm5112_vm12, %v20642_v29, %v20646_v28 }
 0x5c0   : > { %14386 = vmatpush.msrb.mxu3 %v14177_v25  ;;  %14463 = vmatpush.msra.mxu0 %v14425_v50  ;;  %v25955_v50 = vpop.permute.xlu2 %20684 }
 0x5c1   : > { %14483 = vmatpush.msra.mxu1 %v14426_v38  ;;  %20914 = vrot.lane.b32.xlu0 %v24687_v53, %s21118_s18  ;;  %v12508_v49 = vpop.f32.mrf.mxu3  ;;  %v20682_v38 = vunpack.i.h.bf16 %v25933_v19  ;;  %v25967_v29 = vpop.permute.xlu0 %20689 }
 0x5c2   : > { %20924 = vrot.lane.b32.xlu1 %v25452_v60, %s21118_s18  ;;  %v25883_v8 = vadd.f32 %v12508_v49, %v12304_v40  ;;  %v20681_v40 = vunpack.i.l.bf16 %v25933_v19 }
 0x5c3   : > { %19077 = vmatmul.msk.f32.vlgmr.msrb.gmra.mxu2 %vm349_vm1, %v25831_v56 }
 0x5c4   : > { %v12662_v9 = vpop.f32.mrf.mxu0  ;;  %v25892_v21 = vpop.f32.mrf.mxu1  ;;  %14800 = vmatpush.msrb.mxu2 %v14686_v58  ;;  %17283 = vrot.lane.b32.xlu2 %v25713_v55, %s21118_s18  ;;  %v14941_v44 = vsel %vm27891_vm4, %v20681_v40, %v20682_v38  ;;  %s21046_s18 = sshra.s32 %s18417_s16, 4  ;;  %s21047_s18 = int_to_ptr.hbm [resolvable:$true] %s21046_s18 }
 0x5c5   : > { %v12807_v3 = vadd.f32 %v12662_v9, %v25687_v32  ;;  %v14430_v32 = vsel %vm5112_vm12, %v20637_v48, %v20641_v12  ;;  %v20647_v12 = vunpack.i.h.bf16 %v25761_v15  ;;  %v20657_v48 = vunpack.i.h.bf16 %v25817_v11  ;;  %v25988_v9 = vpop.permute.xlu1 %20694  ;;  %s21048_s20 = scalar_lea.hbm %s21047_s18, 80  ;;  %p21053_p0 = scmp.lt.s32.totalorder %s21047_s18, %s27473_s6 }
 0x5c6   : > { %19065 = vmatmul.msk.f32.vlgmr.msra.gmra.mxu3 %vm349_vm1, %v25694_v6  ;;  %v12941_v1 = vpop.f32.mrf.mxu2  ;;  %p21049_p11 = scmp.ne.s32.totalorder %s21047_s18, %s21048_s20  ;;  %p21054_p1 = scmp.lt.s32.totalorder %s21052_s19, %s21048_s20 }
 0x5c7   : > { %19066 = vmatmul.msk.f32.vlgmr.msrb.gmra.mxu0 %vm349_vm1, %v25694_v6  ;;  %19067 = vmatmul.msk.f32.vlgmr.msrb.gmra.mxu1 %vm349_vm1, %v25694_v6  ;;  %v25916_v0 = vadd.f32 %v12941_v1, %v12807_v3  ;;  %v14433_v25 = vsel %vm5112_vm12, %v20646_v28, %v20647_v12  ;;  %v20692_v1 = vunpack.i.h.bf16 %v25967_v29 }
 0x5c8   : > { %14523 = vmatpush.msra.mxu3 %v14428_v36  ;;  %14543 = vmatpush.msrb.mxu0 %v14429_v16  ;;  %p21050_p12 = pnand %p21049_p11, %p21196_p5  ;;  %p21055_p2 = por %p21054_p1, %p21053_p0 }
 0x5c9   : > { %14563 = vmatpush.msrb.mxu1 %v14430_v32  ;;  %20919 = vrot.lane.b32.xlu0 %v24670_v4, %s27889_s29  ;;  %v12642_v46 = vpop.f32.mrf.mxu3  ;;  %v20691_v32 = vunpack.i.l.bf16 %v25967_v29 }
 0x5ca   : > { %20929 = vrot.lane.b32.xlu1 %v24672_v61, %s27889_s29  ;;  %v25931_v43 = vadd.f32 %v12642_v46, %v12552_v41  ;;  %p21051_p13 = pneg %p21050_p12 }
 0x5cb   : > { %19082 = vmatmul.msk.f32.vlgmr.msra.gmra.mxu2 %vm349_vm1, %v25923_v51  ;;  %v14945_v33 = vsel %vm27896_vm8, %v20691_v32, %v20692_v1 }
 0x5cc   : > { %v12742_v17 = vpop.f32.mrf.mxu0  ;;  %v25942_v62 = vpop.f32.mrf.mxu1  ;;  %14880 = vmatpush.msra.mxu2 %v14690_v34  ;;  %20934 = vrot.lane.b32.xlu2 %v24684_v54, %s27889_s29  ;;  %p21056_p3 = pnand %p21055_p2, %p21051_p13 }
 0x5cd   : > { %v12811_v15 = vadd.f32 %v12742_v17, %v25736_v30  ;;  %v26020_v34 = vpop.permute.xlu0 %20699  ;;  %v12812_v18 = vadd.f32 %v25942_v62, %v25883_v8 }
 0x5ce   : > { %19069 = vmatmul.msk.f32.vlgmr.msrb.gmra.mxu3 %vm349_vm1, %v25694_v6  ;;  %v13021_v22 = vpop.f32.mrf.mxu2  ;;  %v14434_v6 = vsel %vm5112_vm12, %v20647_v12, %v25783_v37  ;;  %v20656_v37 = vunpack.i.l.bf16 %v25817_v11  ;;  %v20667_v12 = vunpack.i.h.bf16 %v25852_v26  ;;  %vm27900_vm12 = vmmov %vm27887_vm0 }
 0x5cf   : > { %19071 = vmatmul.msk.f32.vlgmr.msra.gmra.mxu0 %vm349_vm1, %v25831_v56  ;;  %19072 = vmatmul.msk.f32.vlgmr.msra.gmra.mxu1 %vm349_vm1, %v25831_v56  ;;  %v25963_v30 = vadd.f32 %v13021_v22, %v12811_v15  ;;  %v20702_v22 = vunpack.i.h.bf16 %v26020_v34  ;;  %vm27901_vm0 = vmmov %vm27891_vm4 }
 0x5d0   : > { %14603 = vmatpush.msrb.mxu3 %v14432_v42  ;;  %14623 = vmatpush.msra.mxu0 %v14433_v25  ;;  %v14683_v3 = vsel %vm27892_vm5, %v20652_v35, %v20656_v37  ;;  %v14684_v36 = vsel %vm27893_vm6, %v20656_v37, %v20657_v48  ;;  %v26010_v35 = vpop.permute.xlu2 %14937  ;;  %vm27902_vm2 = vmmov %vm27901_vm0 }
 0x5d1   : > { %14643 = vmatpush.msra.mxu1 %v14434_v6  ;;  %20939 = vrot.lane.b32.xlu0 %v24687_v53, %s27889_s29  ;;  %v12722_v49 = vpop.f32.mrf.mxu3  ;;  %v20701_v6 = vunpack.i.l.bf16 %v26020_v34  ;;  %vm27903_vm3 = vmmov %vm27901_vm0 }
 0x5d2   : > { %20949 = vrot.lane.b32.xlu1 %v25452_v60, %s27889_s29  ;;  %v25975_v27 = vadd.f32 %v12722_v49, %v12556_v63  ;;  %v26044_v63 = vpop.permute.xlu1 %20704  ;;  %v26058_v49 = vld [vmem:[%s27470_s3 + $0x70] sm:$0xff]  ;;  %vm27904_vm4 = vmmov %vm27901_vm0 }
 0x5d3   : > { %19086 = vmatmul.msk.f32.vlgmr.msrb.gmra.mxu2 %vm349_vm1, %v25923_v51  ;;  %v15196_v37 = vsel %vm6327_vm15, %v20701_v6, %v20702_v22  ;;  %vm27905_vm5 = vmmov %vm27901_vm0  ;;  %v20696_v6 = vunpack.i.l.bf16 %v25988_v9 }
 0x5d4   : > { %v12901_v20 = vpop.f32.mrf.mxu0  ;;  %v25984_v58 = vpop.f32.mrf.mxu1  ;;  %15017 = vmatpush.msrb.mxu2 %v14941_v44  ;;  %17540 = vrot.lane.b32.xlu2 %v25713_v55, %s27889_s29  ;;  %vm27906_vm6 = vmmov %vm27901_vm0 }
 0x5d5   : > { %v13084_v11 = vadd.f32 %v12901_v20, %v25779_v7  ;;  %v14685_v7 = vsel %vm27894_vm7, %v20657_v48, %v20661_v39  ;;  %v20666_v39 = vunpack.i.l.bf16 %v25852_v26  ;;  %vm27907_vm7 = vmmov %vm27901_vm0 }
 0x5d6   : > { %19074 = vmatmul.msk.f32.vlgmr.msra.gmra.mxu3 %vm349_vm1, %v25831_v56  ;;  %v13158_v16 = vpop.f32.mrf.mxu2  ;;  %vm27908_vm8 = vmmov %vm27901_vm0 }
 0x5d7   : > { %19075 = vmatmul.msk.f32.vlgmr.msrb.gmra.mxu0 %vm349_vm1, %v25831_v56  ;;  %19076 = vmatmul.msk.f32.vlgmr.msrb.gmra.mxu1 %vm349_vm1, %v25831_v56  ;;  %v26006_v41 = vadd.f32 %v13158_v16, %v13084_v11  ;;  %v14687_v15 = vsel %vm27897_vm9, %v20662_v31, %v20666_v39  ;;  %v14688_v42 = vsel %vm27898_vm10, %v20666_v39, %v20667_v12  ;;  %vm27909_vm9 = vcmask 187392  }
 0x5d8   : > { %14740 = vmatpush.msra.mxu3 %v14683_v3  ;;  %14760 = vmatpush.msrb.mxu0 %v14684_v36  ;;  %v12808_v31 = vadd.f32 %v25892_v21, %v25837_v57  ;;  %v26066_v48 = vpop.permute.xlu2 %20709  ;;  %v20677_v57 = vunpack.i.h.bf16 %v25909_v2  ;;  %v20676_v21 = vunpack.i.l.bf16 %v25909_v2  ;;  %v14691_v3 = vsel %vm27900_vm12, %v20672_v47, %v25896_v23  ;;  %vm27910_vm10 = vmmov %vm27909_vm9 }
 0x5d9   : > { %14780 = vmatpush.msrb.mxu1 %v14685_v7  ;;  %20944 = vrot.lane.b32.xlu0 %v24670_v4, %s27895_s11  ;;  %v12802_v46 = vpop.f32.mrf.mxu3  ;;  %v20712_v2 = vunpack.i.h.bf16 %v26066_v48  ;;  %v20711_v16 = vunpack.i.l.bf16 %v26066_v48  ;;  %vm27912_vm12 = vmmov %vm27909_vm9 }
 0x5da   : > { %20954 = vrot.lane.b32.xlu1 %v24672_v61, %s27895_s11  ;;  %v26018_v28 = vadd.f32 %v12802_v46, %v12560_v52  ;;  %v14940_v7 = vsel %vm27902_vm2, %v20677_v57, %v20681_v40  ;;  %v26102_v23 = vpop.permute.xlu1 %20719  ;;  %v20687_v46 = vunpack.i.h.bf16 %v25955_v50  ;;  %v20686_v40 = vunpack.i.l.bf16 %v25955_v50 }
 0x5db   : > { %19090 = vmatmul.msk.f32.vlgmr.msra.gmra.mxu2 %vm349_vm1, %v25923_v51  ;;  %v15200_v8 = vsel %vm6327_vm15, %v20711_v16, %v20712_v2 }
 0x5dc   : > { %v12981_v5 = vpop.f32.mrf.mxu0  ;;  %v26029_v17 = vpop.f32.mrf.mxu1  ;;  %15097 = vmatpush.msra.mxu2 %v14945_v33  ;;  %20959 = vrot.lane.b32.xlu2 %v24684_v54, %s27895_s11  ;;  %v14942_v39 = vsel %vm27903_vm3, %v20682_v38, %v20686_v40  ;;  %v14943_v33 = vsel %vm27904_vm4, %v20686_v40, %v20687_v46  ;;  %v13085_v38 = vadd.f32 %v25984_v58, %v25931_v43 }
 0x5dd   : > { %v13088_v26 = vadd.f32 %v12981_v5, %v25824_v45  ;;  %v14689_v45 = vsel %vm27899_vm11, %v20667_v12, %v20671_v13  ;;  %v20993_v43 = vpack.i.bf16 %v25713_v55, %v25431_v59  ;;  %v14946_v59 = vsel %vm27906_vm6, %v20692_v1, %v20696_v6 }
 0x5de   : > { %19078 = vmatmul.msk.f32.vlgmr.msrb.gmra.mxu3 %vm349_vm1, %v25831_v56  ;;  %v13238_v25 = vpop.f32.mrf.mxu2  ;;  %vm27911_vm11 = vcmask 179200  }
 0x5df   : > { %19079 = vmatmul.msk.f32.vlgmr.msra.gmra.mxu0 %vm349_vm1, %v25831_v56  ;;  %19080 = vmatmul.msk.f32.vlgmr.msra.gmra.mxu1 %vm349_vm1, %v25831_v56  ;;  %v26051_v10 = vadd.f32 %v13238_v25, %v13088_v26  ;;  %v20722_v26 = vunpack.i.h.bf16 %v26102_v23 }
 0x5e0   : > { %14820 = vmatpush.msrb.mxu3 %v14687_v15  ;;  %14840 = vmatpush.msra.mxu0 %v14688_v42  ;;  %v26150_v42 = vld [vmem:[%s27470_s3 + $0x78] sm:$0xff] }
 0x5e1   : > { %14860 = vmatpush.msra.mxu1 %v14689_v45  ;;  %20964 = vrot.lane.b32.xlu0 %v24687_v53, %s27895_s11  ;;  %v12961_v56 = vpop.f32.mrf.mxu3 }
 0x5e2   : > { %20974 = vrot.lane.b32.xlu1 %v25452_v60, %s27895_s11  ;;  %v26064_v13 = vadd.f32 %v12961_v56, %v12808_v31  ;;  %v26079_v60 = vpop.permute.xlu0 %20714  ;;  %v26162_v58 = vpop.permute.xlu1 %20729  ;;  %v18300_v56 = vld [vmem:[%s27471_s4] sm:$0xff] }
 0x5e3   : > { %19095 = vmatmul.msk.f32.vlgmr.msrb.gmra.mxu2 %vm349_vm1, %v26058_v49 }
 0x5e4   : > { %v13061_v44 = vpop.f32.mrf.mxu0  ;;  %v26075_v20 = vpop.f32.mrf.mxu1  ;;  %15234 = vmatpush.msrb.mxu2 %v15196_v37  ;;  %17797 = vrot.lane.b32.xlu2 %v25713_v55, %s27895_s11  ;;  %v13089_v37 = vadd.f32 %v26029_v17, %v25975_v27 }
 0x5e5   : > { %v13092_v11 = vadd.f32 %v13061_v44, %v25871_v24  ;;  %v14939_v24 = vsel %vm27901_vm0, %v20676_v21, %v20677_v57  ;;  %v13093_v34 = vadd.f32 %v26075_v20, %v26018_v28  ;;  %vm27913_vm0 = vmmov %vm27909_vm9 }
 0x5e6   : > { %19083 = vmatmul.msk.f32.vlgmr.msra.gmra.mxu3 %vm349_vm1, %v25923_v51  ;;  %v13318_v36 = vpop.f32.mrf.mxu2  ;;  %vm27915_vm2 = vmmov %vm27913_vm0 }
 0x5e7   : > { %19084 = vmatmul.msk.f32.vlgmr.msrb.gmra.mxu0 %vm349_vm1, %v25923_v51  ;;  %19085 = vmatmul.msk.f32.vlgmr.msrb.gmra.mxu1 %vm349_vm1, %v25923_v51  ;;  %v26098_v52 = vadd.f32 %v13318_v36, %v13092_v11  ;;  %v20706_v36 = vunpack.i.l.bf16 %v26044_v63  ;;  %vm27916_vm3 = vmmov %vm27913_vm0 }
 0x5e8   : > { %14900 = vmatpush.msra.mxu3 %v14691_v3  ;;  %14977 = vmatpush.msrb.mxu0 %v14939_v24  ;;  %v20707_v3 = vunpack.i.h.bf16 %v26044_v63  ;;  %vm27917_vm4 = vmmov %vm27913_vm0 }
 0x5e9   : > { %14997 = vmatpush.msrb.mxu1 %v14940_v7  ;;  %20969 = vrot.lane.b32.xlu0 %v24670_v4, %s21121_s26  ;;  %v13041_v47 = vpop.f32.mrf.mxu3  ;;  %v15197_v63 = vsel %vm6327_vm15, %v20702_v22, %v20706_v36  ;;  %vm27919_vm6 = vmmov %vm27913_vm0 }
 0x5ea   : > { %20979 = vrot.lane.b32.xlu1 %v24672_v61, %s21121_s26  ;;  %v26110_v12 = vadd.f32 %v13041_v47, %v12812_v18  ;;  %v26123_v61 = vpop.permute.xlu2 %15194  ;;  %v26136_v15 = vpop.permute.xlu0 %20724  ;;  %v15198_v47 = vsel %vm6327_vm15, %v20706_v36, %v20707_v3 }
 0x5eb   : > { %19099 = vmatmul.msk.f32.vlgmr.msra.gmra.mxu2 %vm349_vm1, %v26058_v49  ;;  %v26213_v7 = vpop.permute.xlu1 %20744 }
 0x5ec   : > { %v13198_v4 = vpop.f32.mrf.mxu0  ;;  %v26119_v62 = vpop.f32.mrf.mxu1  ;;  %15314 = vmatpush.msra.mxu2 %v15200_v8  ;;  %20984 = vrot.lane.b32.xlu2 %v24684_v54, %s21121_s26  ;;  %v20721_v54 = vunpack.i.l.bf16 %v26102_v23 }
 0x5ed   : > { %v13343_v50 = vadd.f32 %v13198_v4, %v25916_v0  ;;  %v14944_v0 = vsel %vm27905_vm5, %v20687_v46, %v20691_v32  ;;  %v20697_v32 = vunpack.i.h.bf16 %v25988_v9  ;;  %vm27918_vm5 = vmmov %vm27911_vm11 }
 0x5ee   : > { %19087 = vmatmul.msk.f32.vlgmr.msrb.gmra.mxu3 %vm349_vm1, %v25923_v51  ;;  %v13455_v5 = vpop.f32.mrf.mxu2 }
 0x5ef   : > { %19088 = vmatmul.msk.f32.vlgmr.msra.gmra.mxu0 %vm349_vm1, %v25923_v51  ;;  %19089 = vmatmul.msk.f32.vlgmr.msra.gmra.mxu1 %vm349_vm1, %v25923_v51  ;;  %v26143_v19 = vadd.f32 %v13455_v5, %v13343_v50  ;;  %v14947_v55 = vsel %vm27907_vm7, %v20696_v6, %v20697_v32  ;;  %v14948_v29 = vsel %vm27908_vm8, %v20697_v32, %v26010_v35  ;;  %vm27920_vm7 = vmmov %vm27913_vm0 }
 0x5f0   : > { %15037 = vmatpush.msrb.mxu3 %v14942_v39  ;;  %15057 = vmatpush.msra.mxu0 %v14943_v33  ;;  %v20717_v39 = vunpack.i.h.bf16 %v26079_v60  ;;  %v20716_v33 = vunpack.i.l.bf16 %v26079_v60  ;;  %vm27921_vm8 = vmmov %vm27913_vm0 }
 0x5f1   : > { %15077 = vmatpush.msra.mxu1 %v14944_v0  ;;  %20989 = vrot.lane.b32.xlu0 %v24687_v53, %s21121_s26  ;;  %v13178_v25 = vpop.f32.mrf.mxu3  ;;  %v15204_v53 = vsel %vm6327_vm15, %v20721_v54, %v20722_v26 }
 0x5f2   : > { %18050 = vrot.lane.b32.xlu1 %v25440_v14, %s21121_s26  ;;  %v26158_v45 = vadd.f32 %v13178_v25, %v13085_v38  ;;  %v26186_v21 = vpop.permute.xlu2 %20734  ;;  %v26198_v44 = vpop.permute.xlu0 %20739  ;;  %v15201_v60 = vsel %vm6327_vm15, %v20712_v2, %v20716_v33  ;;  %v15202_v25 = vsel %vm6327_vm15, %v20716_v33, %v20717_v39  ;;  %v13344_v2 = vadd.f32 %v26119_v62, %v26064_v13  ;;  %v26355_v33 = vld [vmem:[%s27470_s3 + $0x88] sm:$0xff] }
 0x5f3   : > { %19104 = vmatmul.msk.f32.vlgmr.msrb.gmra.mxu2 %vm349_vm1, %v26150_v42  ;;  %v20742_v40 = vunpack.i.h.bf16 %v26198_v44  ;;  %v20741_v8 = vunpack.i.l.bf16 %v26198_v44 }
 0x5f4   : > { %v13278_v14 = vpop.f32.mrf.mxu0  ;;  %v26171_v31 = vpop.f32.mrf.mxu1  ;;  %15394 = vmatpush.msrb.mxu2 %v15204_v53  ;;  %20994 = vrot.lane.b32.xlu2 %v20993_v43, %s21121_s26 }
 0x5f5   : > { %v13347_v9 = vadd.f32 %v13278_v14, %v25963_v30  ;;  %v20732_v30 = vunpack.i.h.bf16 %v26162_v58  ;;  %v15459_v28 = vsel %vm27910_vm10, %v20741_v8, %v20742_v40  ;;  %v26263_v53 = vpop.permute.xlu1 %20754  ;;  %v26277_v14 = vld [vmem:[%s27470_s3 + $0x80] sm:$0xff]  ;;  %v13348_v23 = vadd.f32 %v26171_v31, %v26110_v12  ;;  %vm27923_vm10 = vmmov %vm27918_vm5 }
 0x5f6   : > { %19091 = vmatmul.msk.f32.vlgmr.msra.gmra.mxu3 %vm349_vm1, %v25923_v51  ;;  %v13535_v57 = vpop.f32.mrf.mxu2  ;;  %v20731_v51 = vunpack.i.l.bf16 %v26162_v58 }
 0x5f7   : > { %19093 = vmatmul.msk.f32.vlgmr.msrb.gmra.mxu0 %vm349_vm1, %v26058_v49  ;;  %19094 = vmatmul.msk.f32.vlgmr.msrb.gmra.mxu1 %vm349_vm1, %v26058_v49  ;;  %v26194_v1 = vadd.f32 %v13535_v57, %v13347_v9 }
 0x5f8   : > { %15117 = vmatpush.msra.mxu3 %v14946_v59  ;;  %15137 = vmatpush.msrb.mxu0 %v14947_v55  ;;  %v15455_v27 = vsel %vm27909_vm9, %v20731_v51, %v20732_v30  ;;  %v20727_v55 = vunpack.i.h.bf16 %v26136_v15  ;;  %vm27922_vm9 = vcmask 982016  }
 0x5f9   : > { %15157 = vmatpush.msrb.mxu1 %v14948_v29  ;;  %18303 = vperm.xlu0 %20347, %v18300_v56   ;;  %v13258_v11 = vpop.f32.mrf.mxu3 }
 0x5fa   : > { %v26202_v24 = vadd.f32 %v13258_v11, %v13089_v37  ;;  %v26235_v22 = vpop.permute.xlu2 %15451  ;;  %v26241_v0 = vpop.permute.xlu0 %20749  ;;  %v15454_v36 = vsel %vm27913_vm0, %v20727_v55, %v20731_v51  ;;  %vm27926_vm0 = vmmov %vm27922_vm9 }
 0x5fb   : > { %19108 = vmatmul.msk.f32.vlgmr.msra.gmra.mxu2 %vm349_vm1, %v26150_v42  ;;  %v20752_v6 = vunpack.i.h.bf16 %v26241_v0  ;;  %v20751_v43 = vunpack.i.l.bf16 %v26241_v0 }
 0x5fc   : > { %v13415_v35 = vpop.f32.mrf.mxu0  ;;  %v26211_v17 = vpop.f32.mrf.mxu1  ;;  %15531 = vmatpush.msra.mxu2 %v15455_v27 }
 0x5fd   : > { %v13598_v18 = vadd.f32 %v13415_v35, %v26006_v41  ;;  %v15199_v41 = vsel %vm6327_vm15, %v20707_v3, %v20711_v16  ;;  %v15710_v13 = vsel %vm27911_vm11, %v20751_v43, %v20752_v6  ;;  %v20737_v35 = vunpack.i.h.bf16 %v26186_v21 }
 0x5fe   : > { %19096 = vmatmul.msk.f32.vlgmr.msrb.gmra.mxu3 %vm349_vm1, %v26058_v49  ;;  %v13694_v46 = vpop.f32.mrf.mxu2 }
 0x5ff   : > { %19097 = vmatmul.msk.f32.vlgmr.msra.gmra.mxu0 %vm349_vm1, %v26058_v49  ;;  %19098 = vmatmul.msk.f32.vlgmr.msra.gmra.mxu1 %vm349_vm1, %v26058_v49  ;;  %v26231_v4 = vadd.f32 %v13694_v46, %v13598_v18  ;;  %v20736_v18 = vunpack.i.l.bf16 %v26186_v21 }
 0x600   : > { %15254 = vmatpush.msrb.mxu3 %v15197_v63  ;;  %15274 = vmatpush.msra.mxu0 %v15198_v47 }
 0x601   : > { %15294 = vmatpush.msra.mxu1 %v15199_v41  ;;  %v13338_v50 = vpop.f32.mrf.mxu3  ;;  %v15456_v21 = vsel %vm27915_vm2, %v20732_v30, %v20736_v18  ;;  %v15457_v46 = vsel %vm27916_vm3, %v20736_v18, %v20737_v35  ;;  %v13599_v30 = vadd.f32 %v26211_v17, %v26158_v45  ;;  %vm27928_vm2 = vmmov %vm27918_vm5 }
 0x602   : > { %v26239_v5 = vadd.f32 %v13338_v50, %v13093_v34  ;;  %v26303_v3 = vpop.permute.xlu0 %20764  ;;  %vm27929_vm3 = vmmov %vm27928_vm2 }
 0x603   : > { %19112 = vmatmul.msk.f32.vlgmr.msrb.gmra.mxu2 %vm349_vm1, %v26150_v42 }
 0x604   : > { %v13495_v20 = vpop.f32.mrf.mxu0  ;;  %v26250_v16 = vpop.f32.mrf.mxu1  ;;  %15611 = vmatpush.msrb.mxu2 %v15459_v28 }
 0x605   : > { %v13602_v38 = vadd.f32 %v13495_v20, %v26051_v10  ;;  %v15203_v10 = vsel %vm6327_vm15, %v20717_v39, %v20721_v54  ;;  %v20726_v54 = vunpack.i.l.bf16 %v26136_v15  ;;  %v15205_v15 = vsel %vm6327_vm15, %v20722_v26, %v26123_v61  ;;  %v26315_v61 = vpop.permute.xlu1 %20769  ;;  %vm27914_vm15 = vmmov %vm27911_vm11 }
 0x606   : > { %19100 = vmatmul.msk.f32.vlgmr.msra.gmra.mxu3 %vm349_vm1, %v26058_v49  ;;  %v13774_v32 = vpop.f32.mrf.mxu2  ;;  %v20772_v50 = vunpack.i.h.bf16 %v26315_v61  ;;  %v20771_v39 = vunpack.i.l.bf16 %v26315_v61  ;;  %v13603_v44 = vadd.f32 %v26250_v16, %v26202_v24  ;;  %vm27924_vm11 = vmmov %vm27918_vm5 }
 0x607   : > { %19101 = vmatmul.msk.f32.vlgmr.msrb.gmra.mxu0 %vm349_vm1, %v26058_v49  ;;  %19102 = vmatmul.msk.f32.vlgmr.msrb.gmra.mxu1 %vm349_vm1, %v26058_v49  ;;  %v26270_v48 = vadd.f32 %v13774_v32, %v13602_v38  ;;  %v26281_v49 = vpop.permute.xlu2 %20759  ;;  %v20747_v38 = vunpack.i.h.bf16 %v26213_v7 }
 0x608   : > { %15334 = vmatpush.msra.mxu3 %v15201_v60  ;;  %15354 = vmatpush.msrb.mxu0 %v15202_v25  ;;  %v20762_v29 = vunpack.i.h.bf16 %v26281_v49  ;;  %v20761_v11 = vunpack.i.l.bf16 %v26281_v49  ;;  %v20746_v60 = vunpack.i.l.bf16 %v26213_v7  ;;  %v15718_v45 = vsel %vm27918_vm5, %v20771_v39, %v20772_v50 }
 0x609   : > { %15374 = vmatpush.msrb.mxu1 %v15203_v10  ;;  %v13475_v9 = vpop.f32.mrf.mxu3 }
 0x60a   : > { %v26279_v59 = vadd.f32 %v13475_v9, %v13344_v2  ;;  %v15714_v12 = vsel %vm27914_vm15, %v20761_v11, %v20762_v29  ;;  %v26357_v28 = vpop.permute.xlu0 %20774  ;;  %v15460_v7 = vsel %vm27919_vm6, %v20742_v40, %v20746_v60  ;;  %v15461_v10 = vsel %vm27920_vm7, %v20746_v60, %v20747_v38  ;;  %vm27927_vm15 = vmmov %vm27918_vm5 }
 0x60b   : > { %19117 = vmatmul.msk.f32.vlgmr.msra.gmra.mxu2 %vm349_vm1, %v26277_v14  ;;  %vm27932_vm6 = vmmov %vm27926_vm0 }
 0x60c   : > { %v13575_v62 = vpop.f32.mrf.mxu0  ;;  %v26290_v56 = vpop.f32.mrf.mxu1  ;;  %15748 = vmatpush.msra.mxu2 %v15710_v13  ;;  %v20757_v13 = vunpack.i.h.bf16 %v26263_v53  ;;  %vm27933_vm7 = vmmov %vm27926_vm0 }
 0x60d   : > { %v13606_v57 = vadd.f32 %v13575_v62, %v26098_v52  ;;  %v15453_v52 = vsel %vm27912_vm12, %v20726_v54, %v20727_v55  ;;  %v26363_v25 = vpop.permute.xlu1 %20779  ;;  %v20756_v62 = vunpack.i.l.bf16 %v26263_v53  ;;  %vm27925_vm12 = vmmov %vm27918_vm5  ;;  %v13607_v0 = vadd.f32 %v26290_v56, %v26239_v5 }
 0x60e   : > { %19105 = vmatmul.msk.f32.vlgmr.msrb.gmra.mxu3 %vm349_vm1, %v26150_v42  ;;  %v13854_v37 = vpop.f32.mrf.mxu2  ;;  %v20782_v9 = vunpack.i.h.bf16 %v26363_v25  ;;  %v20781_v55 = vunpack.i.l.bf16 %v26363_v25  ;;  %vm27931_vm5 = vmmov %vm27928_vm2 }
 0x60f   : > { %19106 = vmatmul.msk.f32.vlgmr.msra.gmra.mxu0 %vm349_vm1, %v26150_v42  ;;  %19107 = vmatmul.msk.f32.vlgmr.msra.gmra.mxu1 %vm349_vm1, %v26150_v42  ;;  %v26311_v27 = vadd.f32 %v13854_v37, %v13606_v57  ;;  %v26339_v34 = vpop.permute.xlu2 %15708  ;;  %v15711_v53 = vsel %vm27923_vm10, %v20752_v6, %v20756_v62  ;;  %vm27936_vm10 = vmmov %vm27926_vm0 }
 0x610   : > { %15414 = vmatpush.msrb.mxu3 %v15205_v15  ;;  %15491 = vmatpush.msra.mxu0 %v15453_v52  ;;  %v15987_v24 = vsel %vm27922_vm9, %v20781_v55, %v20782_v9  ;;  %v15712_v52 = vsel %vm27924_vm11, %v20756_v62, %v20757_v13  ;;  %vm27935_vm9 = vmmov %vm27926_vm0 }
 0x611   : > { %15511 = vmatpush.msra.mxu1 %v15454_v36  ;;  %v13555_v26 = vpop.f32.mrf.mxu3  ;;  %vm27937_vm11 = vmmov %vm27926_vm0 }
 0x612   : > { %v26319_v63 = vadd.f32 %v13555_v26, %v13348_v23  ;;  %v26399_v15 = vpop.permute.xlu0 %20789 }
 0x613   : > { %19121 = vmatmul.msk.f32.vlgmr.msrb.gmra.mxu2 %vm349_vm1, %v26277_v14  ;;  %v20792_v23 = vunpack.i.h.bf16 %v26399_v15  ;;  %v20791_v26 = vunpack.i.l.bf16 %v26399_v15 }
 0x614   : > { %v13734_v31 = vpop.f32.mrf.mxu0  ;;  %v26328_v51 = vpop.f32.mrf.mxu1  ;;  %15828 = vmatpush.msrb.mxu2 %v15714_v12  ;;  %v20766_v12 = vunpack.i.l.bf16 %v26303_v3 }
 0x615   : > { %v13879_v47 = vadd.f32 %v13734_v31, %v26143_v19  ;;  %v15458_v19 = vsel %vm27917_vm4, %v20737_v35, %v20741_v8  ;;  %v26430_v6 = vpop.permute.xlu1 %20794  ;;  %v15991_v5 = vsel %vm27926_vm0, %v20791_v26, %v20792_v23  ;;  %v13880_v49 = vadd.f32 %v26328_v51, %v26279_v59 }
 0x616   : > { %19109 = vmatmul.msk.f32.vlgmr.msra.gmra.mxu3 %vm349_vm1, %v26150_v42  ;;  %v13991_v41 = vpop.f32.mrf.mxu2  ;;  %vm27930_vm4 = vcmask 973824  }
 0x617   : > { %19110 = vmatmul.msk.f32.vlgmr.msrb.gmra.mxu0 %vm349_vm1, %v26150_v42  ;;  %19111 = vmatmul.msk.f32.vlgmr.msrb.gmra.mxu1 %vm349_vm1, %v26150_v42  ;;  %v26348_v58 = vadd.f32 %v13991_v41, %v13879_v47  ;;  %v26393_v40 = vpop.permute.xlu2 %20784 }
 0x618   : > { %15551 = vmatpush.msra.mxu3 %v15456_v21  ;;  %15571 = vmatpush.msrb.mxu0 %v15457_v46  ;;  %v20767_v21 = vunpack.i.h.bf16 %v26303_v3  ;;  %v15715_v3 = vsel %vm27927_vm15, %v20762_v29, %v20766_v12  ;;  %v26470_v29 = vld [vmem:[%s27470_s3 + $0x90] sm:$0xff]  ;;  %v20787_v62 = vunpack.i.h.bf16 %v26393_v40  ;;  %vm27939_vm15 = vmmov %vm27926_vm0 }
 0x619   : > { %15591 = vmatpush.msrb.mxu1 %v15458_v19  ;;  %v13714_v20 = vpop.f32.mrf.mxu3 }
 0x61a   : > { %v26361_v8 = vadd.f32 %v13714_v20, %v13599_v30  ;;  %v15717_v20 = vsel %vm27929_vm3, %v20767_v21, %v20771_v39  ;;  %vm27941_vm3 = vmmov %vm27930_vm4 }
 0x61b   : > { %19126 = vmatmul.msk.f32.vlgmr.msra.gmra.mxu2 %vm349_vm1, %v26355_v33 }
 0x61c   : > { %v13814_v17 = vpop.f32.mrf.mxu0  ;;  %v26372_v32 = vpop.f32.mrf.mxu1  ;;  %15908 = vmatpush.msra.mxu2 %v15718_v45  ;;  %v20777_v45 = vunpack.i.h.bf16 %v26357_v28 }
 0x61d   : > { %v13883_v43 = vadd.f32 %v13814_v17, %v26194_v1  ;;  %v20776_v17 = vunpack.i.l.bf16 %v26357_v28  ;;  %v15719_v28 = vsel %vm27931_vm5, %v20772_v50, %v26339_v34  ;;  %v13884_v61 = vadd.f32 %v26372_v32, %v26319_v63  ;;  %vm27943_vm5 = vmmov %vm27941_vm3 }
 0x61e   : > { %19113 = vmatmul.msk.f32.vlgmr.msrb.gmra.mxu3 %vm349_vm1, %v26150_v42  ;;  %v14071_v2 = vpop.f32.mrf.mxu2  ;;  %v15462_v42 = vsel %vm27921_vm8, %v20747_v38, %v26235_v22  ;;  %vm27934_vm8 = vmmov %vm27930_vm4 }
 0x61f   : > { %19115 = vmatmul.msk.f32.vlgmr.msra.gmra.mxu0 %vm349_vm1, %v26277_v14  ;;  %19116 = vmatmul.msk.f32.vlgmr.msra.gmra.mxu1 %vm349_vm1, %v26277_v14  ;;  %v26389_v1 = vadd.f32 %v14071_v2, %v13883_v43  ;;  %v26435_v47 = vpop.permute.xlu2 %20799  ;;  %v26478_v43 = vpop.permute.xlu1 %20809  ;;  %v15985_v2 = vsel %vm27932_vm6, %v20776_v17, %v20777_v45 }
 0x620   : > { %15631 = vmatpush.msrb.mxu3 %v15460_v7  ;;  %15651 = vmatpush.msra.mxu0 %v15461_v10  ;;  %v20802_v41 = vunpack.i.h.bf16 %v26435_v47  ;;  %v20801_v30 = vunpack.i.l.bf16 %v26435_v47 }
 0x621   : > { %15671 = vmatpush.msra.mxu1 %v15462_v42  ;;  %v13794_v54 = vpop.f32.mrf.mxu3 }
 0x622   : > { %v26397_v57 = vadd.f32 %v13794_v54, %v13603_v44  ;;  %v16239_v59 = vsel %vm27930_vm4, %v20801_v30, %v20802_v41  ;;  %v20812_v44 = vunpack.i.h.bf16 %v26478_v43  ;;  %v20811_v54 = vunpack.i.l.bf16 %v26478_v43 }
 0x623   : > { %19130 = vmatmul.msk.f32.vlgmr.msrb.gmra.mxu2 %vm349_vm1, %v26355_v33 }
 0x624   : > { %v13951_v22 = vpop.f32.mrf.mxu0  ;;  %v26408_v16 = vpop.f32.mrf.mxu1  ;;  %16062 = vmatpush.msrb.mxu2 %v15987_v24  ;;  %v20786_v24 = vunpack.i.l.bf16 %v26393_v40  ;;  %v16243_v63 = vsel %vm27934_vm8, %v20811_v54, %v20812_v44  ;;  %vm27946_vm8 = vmmov %vm27941_vm3 }
 0x625   : > { %v14134_v37 = vadd.f32 %v13951_v22, %v26231_v4  ;;  %v15713_v4 = vsel %vm27925_vm12, %v20757_v13, %v20761_v11  ;;  %v14135_v25 = vadd.f32 %v26408_v16, %v26361_v8  ;;  %vm27938_vm12 = vmmov %vm27930_vm4 }
 0x626   : > { %19118 = vmatmul.msk.f32.vlgmr.msra.gmra.mxu3 %vm349_vm1, %v26277_v14  ;;  %v14208_v36 = vpop.f32.mrf.mxu2  ;;  %v15988_v40 = vsel %vm27935_vm9, %v20782_v9, %v20786_v24  ;;  %v26548_v9 = vld [vmem:[%s27470_s3 + $0x98] sm:$0xff]  ;;  %vm27942_vm4 = vmmov %vm27941_vm3 }
 0x627   : > { %19119 = vmatmul.msk.f32.vlgmr.msrb.gmra.mxu0 %vm349_vm1, %v26277_v14  ;;  %19120 = vmatmul.msk.f32.vlgmr.msrb.gmra.mxu1 %vm349_vm1, %v26277_v14  ;;  %v26426_v35 = vadd.f32 %v14208_v36, %v14134_v37  ;;  %v26508_v34 = vpop.permute.xlu2 %20814  ;;  %vm27947_vm9 = vmmov %vm27941_vm3 }
 0x628   : > { %15768 = vmatpush.msra.mxu3 %v15711_v53  ;;  %15788 = vmatpush.msrb.mxu0 %v15712_v52  ;;  %v15989_v52 = vsel %vm27936_vm10, %v20786_v24, %v20787_v62  ;;  %v20816_v24 = vunpack.i.l.bf16 %v26508_v34  ;;  %vm27948_vm10 = vcmask 834560  }
 0x629   : > { %15808 = vmatpush.msrb.mxu1 %v15713_v4  ;;  %v13874_v18 = vpop.f32.mrf.mxu3 }
 0x62a   : > { %v26433_v31 = vadd.f32 %v13874_v18, %v13607_v0 }
 0x62b   : > { %19134 = vmatmul.msk.f32.vlgmr.msra.gmra.mxu2 %vm349_vm1, %v26355_v33 }
 0x62c   : > { %v14031_v56 = vpop.f32.mrf.mxu0  ;;  %v26445_v11 = vpop.f32.mrf.mxu1  ;;  %16142 = vmatpush.msra.mxu2 %v15991_v5  ;;  %v20796_v5 = vunpack.i.l.bf16 %v26430_v6 }
 0x62d   : > { %v14138_v46 = vadd.f32 %v14031_v56, %v26270_v48  ;;  %v15716_v48 = vsel %vm27928_vm2, %v20766_v12, %v20767_v21  ;;  %v26550_v12 = vpop.permute.xlu1 %20824  ;;  %vm27940_vm2 = vcmask 965632  }
 0x62e   : > { %19122 = vmatmul.msk.f32.vlgmr.msrb.gmra.mxu3 %vm349_vm1, %v26277_v14  ;;  %v14288_v19 = vpop.f32.mrf.mxu2  ;;  %vm27944_vm6 = vmmov %vm27940_vm2 }
 0x62f   : > { %19123 = vmatmul.msk.f32.vlgmr.msra.gmra.mxu0 %vm349_vm1, %v26277_v14  ;;  %19124 = vmatmul.msk.f32.vlgmr.msra.gmra.mxu1 %vm349_vm1, %v26277_v14  ;;  %v26463_v38 = vadd.f32 %v14288_v19, %v14138_v46  ;;  %v26472_v14 = vpop.permute.xlu0 %20804  ;;  %v20797_v46 = vunpack.i.h.bf16 %v26430_v6  ;;  %v15992_v6 = vsel %vm27926_vm0, %v20792_v23, %v20796_v5  ;;  %vm27951_vm0 = vmmov %vm27948_vm10 }
 0x630   : > { %15848 = vmatpush.msrb.mxu3 %v15715_v3  ;;  %15868 = vmatpush.msra.mxu0 %v15716_v48 }
 0x631   : > { %15888 = vmatpush.msra.mxu1 %v15717_v20  ;;  %v14011_v60 = vpop.f32.mrf.mxu3 }
 0x632   : > { %v26476_v39 = vadd.f32 %v14011_v60, %v13880_v49  ;;  %v20807_v60 = vunpack.i.h.bf16 %v26472_v14 }
 0x633   : > { %19139 = vmatmul.msk.f32.vlgmr.msrb.gmra.mxu2 %vm349_vm1, %v26470_v29 }
 0x634   : > { %v14111_v51 = vpop.f32.mrf.mxu0  ;;  %v26485_v7 = vpop.f32.mrf.mxu1  ;;  %16276 = vmatpush.msrb.mxu2 %v16239_v59 }
 0x635   : > { %v14142_v10 = vadd.f32 %v14111_v51, %v26311_v27  ;;  %v15986_v27 = vsel %vm27933_vm7, %v20777_v45, %v20781_v55  ;;  %v20806_v45 = vunpack.i.l.bf16 %v26472_v14  ;;  %v26590_v59 = vpop.permute.xlu1 %20839  ;;  %v14143_v47 = vadd.f32 %v26485_v7, %v26433_v31  ;;  %vm27945_vm7 = vmmov %vm27941_vm3 }
 0x636   : > { %19127 = vmatmul.msk.f32.vlgmr.msra.gmra.mxu3 %vm349_vm1, %v26355_v33  ;;  %v14368_v42 = vpop.f32.mrf.mxu2 }
 0x637   : > { %19128 = vmatmul.msk.f32.vlgmr.msrb.gmra.mxu0 %vm349_vm1, %v26355_v33  ;;  %19129 = vmatmul.msk.f32.vlgmr.msrb.gmra.mxu1 %vm349_vm1, %v26355_v33  ;;  %v26504_v13 = vadd.f32 %v14368_v42, %v14142_v10  ;;  %v26514_v37 = vpop.permute.xlu0 %20819  ;;  %v16240_v14 = vsel %vm27941_vm3, %v20802_v41, %v20806_v45  ;;  %v20842_v42 = vunpack.i.h.bf16 %v26590_v59  ;;  %vm27953_vm3 = vmmov %vm27940_vm2 }
 0x638   : > { %15928 = vmatpush.msra.mxu3 %v15719_v28  ;;  %16022 = vmatpush.msrb.mxu0 %v15985_v2  ;;  %v20822_v4 = vunpack.i.h.bf16 %v26514_v37  ;;  %v20821_v0 = vunpack.i.l.bf16 %v26514_v37  ;;  %v16241_v28 = vsel %vm27942_vm4, %v20806_v45, %v20807_v60  ;;  %vm27954_vm4 = vmmov %vm27951_vm0 }
 0x639   : > { %16042 = vmatpush.msrb.mxu1 %v15986_v27  ;;  %v14091_v50 = vpop.f32.mrf.mxu3  ;;  %v20841_v27 = vunpack.i.l.bf16 %v26590_v59 }
 0x63a   : > { %v26512_v22 = vadd.f32 %v14091_v50, %v13884_v61  ;;  %v16247_v8 = vsel %vm27938_vm12, %v20821_v0, %v20822_v4  ;;  %vm27950_vm12 = vmmov %vm27940_vm2 }
 0x63b   : > { %19143 = vmatmul.msk.f32.vlgmr.msra.gmra.mxu2 %vm349_vm1, %v26470_v29  ;;  %v16499_v31 = vsel %vm27944_vm6, %v20841_v27, %v20842_v42  ;;  %vm27956_vm6 = vmmov %vm27940_vm2 }
 0x63c   : > { %v14248_v32 = vpop.f32.mrf.mxu0  ;;  %v26523_v55 = vpop.f32.mrf.mxu1  ;;  %16356 = vmatpush.msra.mxu2 %v16243_v63 }
 0x63d   : > { %v14393_v53 = vadd.f32 %v14248_v32, %v26348_v58  ;;  %v15990_v58 = vsel %vm27937_vm11, %v20787_v62, %v20791_v26  ;;  %v26555_v26 = vpop.permute.xlu2 %20829  ;;  %v20817_v62 = vunpack.i.h.bf16 %v26508_v34  ;;  %v16244_v34 = vsel %vm27945_vm7, %v20812_v44, %v20816_v24  ;;  %vm27949_vm11 = vmmov %vm27940_vm2 }
 0x63e   : > { %19131 = vmatmul.msk.f32.vlgmr.msrb.gmra.mxu3 %vm349_vm1, %v26355_v33  ;;  %v14505_v36 = vpop.f32.mrf.mxu2  ;;  %v20832_v48 = vunpack.i.h.bf16 %v26555_v26  ;;  %v20831_v20 = vunpack.i.l.bf16 %v26555_v26  ;;  %v14394_v44 = vadd.f32 %v26523_v55, %v26476_v39  ;;  %vm27957_vm7 = vcmask 826368  }
 0x63f   : > { %19132 = vmatmul.msk.f32.vlgmr.msra.gmra.mxu0 %vm349_vm1, %v26355_v33  ;;  %19133 = vmatmul.msk.f32.vlgmr.msra.gmra.mxu1 %vm349_vm1, %v26355_v33  ;;  %v26541_v18 = vadd.f32 %v14505_v36, %v14393_v53  ;;  %v26584_v15 = vpop.permute.xlu0 %20834 }
 0x640   : > { %16082 = vmatpush.msrb.mxu3 %v15988_v40  ;;  %16102 = vmatpush.msra.mxu0 %v15989_v52  ;;  %v16245_v40 = vsel %vm27946_vm8, %v20816_v24, %v20817_v62  ;;  %v20836_v37 = vunpack.i.l.bf16 %v26584_v15  ;;  %vm27958_vm8 = vmmov %vm27951_vm0 }
 0x641   : > { %16122 = vmatpush.msra.mxu1 %v15990_v58  ;;  %v14228_v21 = vpop.f32.mrf.mxu3 }
 0x642   : > { %v26553_v56 = vadd.f32 %v14228_v21, %v14135_v25  ;;  %v26649_v25 = vpop.permute.xlu1 %20854  ;;  %v26663_v21 = vld [vmem:[%s27470_s3 + $0xa0] sm:$0xff] }
 0x643   : > { %19148 = vmatmul.msk.f32.vlgmr.msrb.gmra.mxu2 %vm349_vm1, %v26548_v9 }
 0x644   : > { %v14328_v16 = vpop.f32.mrf.mxu0  ;;  %v26565_v3 = vpop.f32.mrf.mxu1  ;;  %16436 = vmatpush.msrb.mxu2 %v16247_v8  ;;  %v20827_v8 = vunpack.i.h.bf16 %v26550_v12 }
 0x645   : > { %v14397_v19 = vadd.f32 %v14328_v16, %v26389_v1  ;;  %v15993_v1 = vsel %vm27939_vm15, %v20796_v5, %v20797_v46  ;;  %v26621_v41 = vpop.permute.xlu2 %20844  ;;  %vm27952_vm15 = vmmov %vm27940_vm2 }
 0x646   : > { %19135 = vmatmul.msk.f32.vlgmr.msra.gmra.mxu3 %vm349_vm1, %v26355_v33  ;;  %v14585_v30 = vpop.f32.mrf.mxu2  ;;  %v14139_v33 = vadd.f32 %v26445_v11, %v26397_v57  ;;  %v16495_v57 = vsel %vm27940_vm2, %v20831_v20, %v20832_v48 }
 0x647   : > { %19137 = vmatmul.msk.f32.vlgmr.msrb.gmra.mxu0 %vm349_vm1, %v26470_v29  ;;  %19138 = vmatmul.msk.f32.vlgmr.msrb.gmra.mxu1 %vm349_vm1, %v26470_v29  ;;  %v26580_v49 = vadd.f32 %v14585_v30, %v14397_v19  ;;  %v26627_v32 = vpop.permute.xlu0 %20849 }
 0x648   : > { %16162 = vmatpush.msra.mxu3 %v15992_v6  ;;  %16182 = vmatpush.msrb.mxu0 %v15993_v1  ;;  %v20852_v36 = vunpack.i.h.bf16 %v26627_v32  ;;  %v20851_v58 = vunpack.i.l.bf16 %v26627_v32 }
 0x649   : > { %16202 = vmatpush.msrb.mxu1 %v20797_v46  ;;  %v14308_v23 = vpop.f32.mrf.mxu3 }
 0x64a   : > { %v26588_v17 = vadd.f32 %v14308_v23, %v14139_v33  ;;  %v16771_v39 = vsel %vm27948_vm10, %v20851_v58, %v20852_v36  ;;  %v26699_v45 = vpop.permute.xlu1 %20874  ;;  %vm27960_vm10 = vmmov %vm27951_vm0 }
 0x64b   : > { %19152 = vmatmul.msk.f32.vlgmr.msra.gmra.mxu2 %vm349_vm1, %v26548_v9 }
 0x64c   : > { %v14465_v11 = vpop.f32.mrf.mxu0  ;;  %v26599_v51 = vpop.f32.mrf.mxu1  ;;  %16570 = vmatpush.msra.mxu2 %v16495_v57 }
 0x64d   : > { %v14648_v10 = vadd.f32 %v14465_v11, %v26426_v35  ;;  %v16242_v35 = vsel %vm27943_vm5, %v20807_v60, %v20811_v54  ;;  %v14398_v60 = vadd.f32 %v26565_v3, %v26512_v22  ;;  %v20837_v11 = vunpack.i.h.bf16 %v26584_v15  ;;  %vm27955_vm5 = vmmov %vm27940_vm2 }
 0x64e   : > { %19140 = vmatmul.msk.f32.vlgmr.msrb.gmra.mxu3 %vm349_vm1, %v26470_v29  ;;  %v14722_v2 = vpop.f32.mrf.mxu2  ;;  %v16496_v15 = vsel %vm27952_vm15, %v20832_v48, %v20836_v37  ;;  %v14649_v48 = vadd.f32 %v26599_v51, %v26553_v56  ;;  %vm27963_vm15 = vmmov %vm27951_vm0 }
 0x64f   : > { %19141 = vmatmul.msk.f32.vlgmr.msra.gmra.mxu0 %vm349_vm1, %v26470_v29  ;;  %19142 = vmatmul.msk.f32.vlgmr.msra.gmra.mxu1 %vm349_vm1, %v26470_v29  ;;  %v26617_v61 = vadd.f32 %v14722_v2, %v14648_v10  ;;  %v26678_v19 = vpop.permute.xlu0 %20864 }
 0x650   : > { %16296 = vmatpush.msrb.mxu3 %v16240_v14  ;;  %16316 = vmatpush.msra.mxu0 %v16241_v28  ;;  %v16497_v28 = vsel %vm27940_vm2, %v20836_v37, %v20837_v11  ;;  %vm27964_vm2 = vcmask 818176  }
 0x651   : > { %16336 = vmatpush.msra.mxu1 %v16242_v35  ;;  %v14388_v50 = vpop.f32.mrf.mxu3  ;;  %v20877_v35 = vunpack.i.h.bf16 %v26699_v45 }
 0x652   : > { %v26625_v63 = vadd.f32 %v14388_v50, %v14143_v47  ;;  %v20876_v47 = vunpack.i.l.bf16 %v26699_v45 }
 0x653   : > { %19156 = vmatmul.msk.f32.vlgmr.msrb.gmra.mxu2 %vm349_vm1, %v26548_v9 }
 0x654   : > { %v14545_v7 = vpop.f32.mrf.mxu0  ;;  %v26636_v54 = vpop.f32.mrf.mxu1  ;;  %16650 = vmatpush.msrb.mxu2 %v16499_v31  ;;  %v16779_v56 = vsel %vm27954_vm4, %v20876_v47, %v20877_v35  ;;  %vm27966_vm4 = vmmov %vm27957_vm7 }
 0x655   : > { %v14652_v53 = vadd.f32 %v14545_v7, %v26463_v38  ;;  %v16246_v38 = vsel %vm27947_vm9, %v20817_v62, %v20821_v0  ;;  %v20826_v0 = vunpack.i.l.bf16 %v26550_v12  ;;  %v26741_v62 = vld [vmem:[%s27470_s3 + $0xa8] sm:$0xff]  ;;  %v20847_v7 = vunpack.i.h.bf16 %v26621_v41  ;;  %vm27959_vm9 = vmmov %vm27951_vm0 }
 0x656   : > { %19144 = vmatmul.msk.f32.vlgmr.msra.gmra.mxu3 %vm349_vm1, %v26470_v29  ;;  %v14802_v52 = vpop.f32.mrf.mxu2  ;;  %v14653_v59 = vadd.f32 %v26636_v54, %v26588_v17 }
 0x657   : > { %19145 = vmatmul.msk.f32.vlgmr.msrb.gmra.mxu0 %vm349_vm1, %v26470_v29  ;;  %19146 = vmatmul.msk.f32.vlgmr.msrb.gmra.mxu1 %vm349_vm1, %v26470_v29  ;;  %v26656_v43 = vadd.f32 %v14802_v52, %v14652_v53  ;;  %v26667_v29 = vpop.permute.xlu2 %20859  ;;  %v16493_v33 = vsel %vm27949_vm11, %v20826_v0, %v20827_v8  ;;  %v26727_v50 = vpop.permute.xlu0 %20869  ;;  %v20846_v53 = vunpack.i.l.bf16 %v26621_v41  ;;  %v20856_v0 = vunpack.i.l.bf16 %v26649_v25  ;;  %vm27961_vm11 = vmmov %vm27957_vm7 }
 0x658   : > { %16376 = vmatpush.msra.mxu3 %v16244_v34  ;;  %16396 = vmatpush.msrb.mxu0 %v16245_v40  ;;  %v20862_v30 = vunpack.i.h.bf16 %v26667_v29  ;;  %v20861_v1 = vunpack.i.l.bf16 %v26667_v29 }
 0x659   : > { %16416 = vmatpush.msrb.mxu1 %v16246_v38  ;;  %v14525_v5 = vpop.f32.mrf.mxu3  ;;  %v16500_v41 = vsel %vm27955_vm5, %v20842_v42, %v20846_v53  ;;  %vm27967_vm5 = vmmov %vm27966_vm4 }
 0x65a   : > { %v26665_v46 = vadd.f32 %v14525_v5, %v14394_v44  ;;  %v16775_v22 = vsel %vm27951_vm0, %v20861_v1, %v20862_v30 }
 0x65b   : > { %19161 = vmatmul.msk.f32.vlgmr.msra.gmra.mxu2 %vm349_vm1, %v26663_v21 }
 0x65c   : > { %v14625_v55 = vpop.f32.mrf.mxu0  ;;  %v26676_v16 = vpop.f32.mrf.mxu1  ;;  %16809 = vmatpush.msra.mxu2 %v16771_v39 }
 0x65d   : > { %v14656_v6 = vadd.f32 %v14625_v55, %v26504_v13  ;;  %v16494_v13 = vsel %vm27950_vm12, %v20827_v8, %v20831_v20  ;;  %v20857_v8 = vunpack.i.h.bf16 %v26649_v25  ;;  %v16772_v25 = vsel %vm27958_vm8, %v20852_v36, %v20856_v0  ;;  %vm27962_vm12 = vmmov %vm27951_vm0 }
 0x65e   : > { %19149 = vmatmul.msk.f32.vlgmr.msrb.gmra.mxu3 %vm349_vm1, %v26548_v9  ;;  %v14882_v12 = vpop.f32.mrf.mxu2  ;;  %v14657_v32 = vadd.f32 %v26676_v16, %v26625_v63  ;;  %vm27970_vm8 = vmmov %vm27966_vm4 }
 0x65f   : > { %19150 = vmatmul.msk.f32.vlgmr.msra.gmra.mxu0 %vm349_vm1, %v26548_v9  ;;  %19151 = vmatmul.msk.f32.vlgmr.msra.gmra.mxu1 %vm349_vm1, %v26548_v9  ;;  %v26695_v23 = vadd.f32 %v14882_v12, %v14656_v6  ;;  %v26714_v10 = vpop.permute.xlu2 %16769  ;;  %v26777_v42 = vpop.permute.xlu0 %20889 }
 0x660   : > { %16456 = vmatpush.msrb.mxu3 %v20822_v4  ;;  %16530 = vmatpush.msra.mxu0 %v16493_v33  ;;  %v16773_v33 = vsel %vm27959_vm9, %v20856_v0, %v20857_v8  ;;  %vm27971_vm9 = vmmov %vm27966_vm4 }
 0x661   : > { %16550 = vmatpush.msra.mxu1 %v16494_v13  ;;  %v14605_v57 = vpop.f32.mrf.mxu3 }
 0x662   : > { %v26703_v4 = vadd.f32 %v14605_v57, %v14398_v60  ;;  %v20892_v60 = vunpack.i.h.bf16 %v26777_v42  ;;  %v20891_v57 = vunpack.i.l.bf16 %v26777_v42 }
 0x663   : > { %19165 = vmatmul.msk.f32.vlgmr.msrb.gmra.mxu2 %vm349_vm1, %v26663_v21 }
 0x664   : > { %v14762_v3 = vpop.f32.mrf.mxu0  ;;  %v26712_v20 = vpop.f32.mrf.mxu1  ;;  %16889 = vmatpush.msrb.mxu2 %v16775_v22  ;;  %v20867_v22 = vunpack.i.h.bf16 %v26678_v19  ;;  %v17034_v63 = vsel %vm27961_vm11, %v20891_v57, %v20892_v60  ;;  %vm27973_vm11 = vmmov %vm27966_vm4 }
 0x665   : > { %v14907_v14 = vadd.f32 %v14762_v3, %v26541_v18  ;;  %v16498_v18 = vsel %vm27953_vm3, %v20837_v11, %v20841_v27  ;;  %v26747_v27 = vpop.permute.xlu1 %20879  ;;  %v20866_v3 = vunpack.i.l.bf16 %v26678_v19  ;;  %vm27965_vm3 = vmmov %vm27951_vm0 }
 0x666   : > { %19153 = vmatmul.msk.f32.vlgmr.msra.gmra.mxu3 %vm349_vm1, %v26548_v9  ;;  %v15019_v2 = vpop.f32.mrf.mxu2  ;;  %v20882_v38 = vunpack.i.h.bf16 %v26747_v27  ;;  %v20881_v44 = vunpack.i.l.bf16 %v26747_v27 }
 0x667   : > { %19154 = vmatmul.msk.f32.vlgmr.msrb.gmra.mxu0 %vm349_vm1, %v26548_v9  ;;  %19155 = vmatmul.msk.f32.vlgmr.msrb.gmra.mxu1 %vm349_vm1, %v26548_v9  ;;  %v26734_v26 = vadd.f32 %v15019_v2, %v14907_v14  ;;  %v26766_v58 = vpop.permute.xlu2 %20884  ;;  %v16776_v19 = vsel %vm27962_vm12, %v20862_v30, %v20866_v3  ;;  %v16777_v2 = vsel %vm27951_vm0, %v20866_v3, %v20867_v22  ;;  %vm27974_vm12 = vmmov %vm27966_vm4 }
 0x668   : > { %16590 = vmatpush.msra.mxu3 %v16496_v15  ;;  %16610 = vmatpush.msrb.mxu0 %v16497_v28  ;;  %v17030_v17 = vsel %vm27957_vm7, %v20881_v44, %v20882_v38  ;;  %v26820_v15 = vpop.permute.xlu0 %20894  ;;  %v14908_v30 = vadd.f32 %v26712_v20, %v26665_v46  ;;  %vm27969_vm7 = vmmov %vm27966_vm4 }
 0x669   : > { %16630 = vmatpush.msrb.mxu1 %v16498_v18  ;;  %v14742_v24 = vpop.f32.mrf.mxu3  ;;  %vm27975_vm0 = vmmov %vm27966_vm4 }
 0x66a   : > { %v26743_v31 = vadd.f32 %v14742_v24, %v14649_v48  ;;  %v20897_v48 = vunpack.i.h.bf16 %v26820_v15  ;;  %v20896_v24 = vunpack.i.l.bf16 %v26820_v15 }
 0x66b   : > { %19170 = vmatmul.msk.f32.vlgmr.msra.gmra.mxu2 %vm349_vm1, %v26741_v62 }
 0x66c   : > { %v14842_v51 = vpop.f32.mrf.mxu0  ;;  %v26756_v34 = vpop.f32.mrf.mxu1  ;;  %16969 = vmatpush.msra.mxu2 %v16779_v56  ;;  %v17285_v46 = vsel %vm27964_vm2, %v20896_v24, %v20897_v48 }
 0x66d   : > { %v14911_v40 = vadd.f32 %v14842_v51, %v26580_v49  ;;  %v26792_v6 = vpop.permute.xlu1 %20899  ;;  %v14912_v45 = vadd.f32 %v26756_v34, %v26703_v4 }
 0x66e   : > { %19157 = vmatmul.msk.f32.vlgmr.msrb.gmra.mxu3 %vm349_vm1, %v26548_v9  ;;  %v15099_v52 = vpop.f32.mrf.mxu2  ;;  %v16501_v9 = vsel %vm27956_vm6, %v20846_v53, %v20847_v7  ;;  %v26856_v53 = vld [vmem:[%s27470_s3 + $0xb0] sm:$0xff]  ;;  %vm27968_vm6 = vmmov %vm27964_vm2 }
 0x66f   : > { %19159 = vmatmul.msk.f32.vlgmr.msra.gmra.mxu0 %vm349_vm1, %v26663_v21  ;;  %19160 = vmatmul.msk.f32.vlgmr.msra.gmra.mxu1 %vm349_vm1, %v26663_v21  ;;  %v26773_v49 = vadd.f32 %v15099_v52, %v14911_v40  ;;  %v26814_v36 = vpop.permute.xlu2 %17026  ;;  %v20872_v40 = vunpack.i.h.bf16 %v26727_v50 }
 0x670   : > { %16670 = vmatpush.msrb.mxu3 %v16500_v41  ;;  %16690 = vmatpush.msra.mxu0 %v16501_v9  ;;  %v26871_v52 = vpop.permute.xlu0 %20914 }
 0x671   : > { %16710 = vmatpush.msra.mxu1 %v20847_v7  ;;  %v14822_v5 = vpop.f32.mrf.mxu3  ;;  %v17029_v0 = vsel %vm27967_vm5, %v20872_v40, %v20881_v44 }
 0x672   : > { %v26781_v39 = vadd.f32 %v14822_v5, %v14653_v59 }
 0x673   : > { %19174 = vmatmul.msk.f32.vlgmr.msrb.gmra.mxu2 %vm349_vm1, %v26741_v62 }
 0x674   : > { %v14979_v54 = vpop.f32.mrf.mxu0  ;;  %v26790_v55 = vpop.f32.mrf.mxu1  ;;  %17106 = vmatpush.msrb.mxu2 %v17030_v17 }
 0x675   : > { %v15162_v12 = vadd.f32 %v14979_v54, %v26617_v61  ;;  %v16774_v61 = vsel %vm27960_vm10, %v20857_v8, %v20861_v1  ;;  %v26842_v7 = vpop.permute.xlu1 %20904  ;;  %v20887_v54 = vunpack.i.h.bf16 %v26766_v58  ;;  %vm27972_vm10 = vmmov %vm27964_vm2 }
 0x676   : > { %19162 = vmatmul.msk.f32.vlgmr.msra.gmra.mxu3 %vm349_vm1, %v26663_v21  ;;  %v15236_v13 = vpop.f32.mrf.mxu2 }
 0x677   : > { %19163 = vmatmul.msk.f32.vlgmr.msrb.gmra.mxu0 %vm349_vm1, %v26663_v21  ;;  %19164 = vmatmul.msk.f32.vlgmr.msrb.gmra.mxu1 %vm349_vm1, %v26663_v21  ;;  %v26810_v11 = vadd.f32 %v15236_v13, %v15162_v12  ;;  %v20886_v12 = vunpack.i.l.bf16 %v26766_v58 }
 0x678   : > { %16829 = vmatpush.msra.mxu3 %v16772_v25  ;;  %16849 = vmatpush.msrb.mxu0 %v16773_v33  ;;  %v26922_v3 = vpop.permute.xlu0 %20919 }
 0x679   : > { %16869 = vmatpush.msrb.mxu1 %v16774_v61  ;;  %v14902_v37 = vpop.f32.mrf.mxu3  ;;  %v17031_v58 = vsel %vm27969_vm7, %v20882_v38, %v20886_v12  ;;  %v17032_v61 = vsel %vm27970_vm8, %v20886_v12, %v20887_v54  ;;  %v15163_v38 = vadd.f32 %v26790_v55, %v26743_v31  ;;  %vm27981_vm7 = vmmov %vm27964_vm2 }
 0x67a   : > { %v26818_v14 = vadd.f32 %v14902_v37, %v14657_v32  ;;  %vm27982_vm8 = vmmov %vm27964_vm2 }
 0x67b   : > { %19178 = vmatmul.msk.f32.vlgmr.msra.gmra.mxu2 %vm349_vm1, %v26741_v62 }
 0x67c   : > { %v15059_v16 = vpop.f32.mrf.mxu0  ;;  %v26829_v1 = vpop.f32.mrf.mxu1  ;;  %17186 = vmatpush.msra.mxu2 %v17034_v63  ;;  %v26936_v63 = vld [vmem:[%s27470_s3 + $0xb8] sm:$0xff] }
 0x67d   : > { %v15166_v28 = vadd.f32 %v15059_v16, %v26656_v43  ;;  %v16778_v43 = vsel %vm27963_vm15, %v20867_v22, %v20876_v47  ;;  %v20871_v47 = vunpack.i.l.bf16 %v26727_v50  ;;  %v16780_v50 = vsel %vm27965_vm3, %v20877_v35, %v26714_v10  ;;  %v26894_v10 = vpop.permute.xlu1 %20924  ;;  %vm27977_vm3 = vmmov %vm27964_vm2 }
 0x67e   : > { %19166 = vmatmul.msk.f32.vlgmr.msrb.gmra.mxu3 %vm349_vm1, %v26663_v21  ;;  %v15316_v18 = vpop.f32.mrf.mxu2  ;;  %v20927_v37 = vunpack.i.h.bf16 %v26894_v10  ;;  %v20926_v22 = vunpack.i.l.bf16 %v26894_v10  ;;  %v15167_v42 = vadd.f32 %v26829_v1, %v26781_v39  ;;  %vm27976_vm15 = vcmask 687104  }
 0x67f   : > { %19167 = vmatmul.msk.f32.vlgmr.msra.gmra.mxu0 %vm349_vm1, %v26663_v21  ;;  %19168 = vmatmul.msk.f32.vlgmr.msra.gmra.mxu1 %vm349_vm1, %v26663_v21  ;;  %v26849_v29 = vadd.f32 %v15316_v18, %v15166_v28  ;;  %v26860_v21 = vpop.permute.xlu2 %20909  ;;  %v20902_v28 = vunpack.i.h.bf16 %v26792_v6  ;;  %vm27979_vm5 = vmmov %vm27976_vm15 }
 0x680   : > { %16909 = vmatpush.msrb.mxu3 %v16776_v19  ;;  %16929 = vmatpush.msra.mxu0 %v16777_v2  ;;  %v20912_v59 = vunpack.i.h.bf16 %v26860_v21  ;;  %v20911_v8 = vunpack.i.l.bf16 %v26860_v21  ;;  %v20901_v19 = vunpack.i.l.bf16 %v26792_v6  ;;  %v17293_v31 = vsel %vm27972_vm10, %v20926_v22, %v20927_v37  ;;  %vm27984_vm10 = vmmov %vm27979_vm5 }
 0x681   : > { %16949 = vmatpush.msra.mxu1 %v16778_v43  ;;  %v15039_v56 = vpop.f32.mrf.mxu3 }
 0x682   : > { %v26858_v51 = vadd.f32 %v15039_v56, %v14908_v30  ;;  %v17289_v4 = vsel %vm27968_vm6, %v20911_v8, %v20912_v59  ;;  %v17035_v6 = vsel %vm27973_vm11, %v20892_v60, %v20901_v19  ;;  %v17036_v43 = vsel %vm27974_vm12, %v20901_v19, %v20902_v28  ;;  %v26974_v60 = vpop.permute.xlu0 %20939  ;;  %vm27980_vm6 = vmmov %vm27964_vm2 }
 0x683   : > { %19183 = vmatmul.msk.f32.vlgmr.msrb.gmra.mxu2 %vm349_vm1, %v26856_v53  ;;  %vm27985_vm11 = vmmov %vm27979_vm5 }
 0x684   : > { %v15139_v20 = vpop.f32.mrf.mxu0  ;;  %v26869_v41 = vpop.f32.mrf.mxu1  ;;  %17323 = vmatpush.msrb.mxu2 %v17285_v46  ;;  %vm27986_vm12 = vmmov %vm27979_vm5 }
 0x685   : > { %v15170_v9 = vadd.f32 %v15139_v20, %v26695_v23  ;;  %v17028_v23 = vsel %vm27966_vm4, %v20871_v47, %v20872_v40  ;;  %v20907_v20 = vunpack.i.h.bf16 %v26842_v7  ;;  %vm27978_vm4 = vmmov %vm27964_vm2  ;;  %v15171_v15 = vadd.f32 %v26869_v41, %v26818_v14 }
 0x686   : > { %19171 = vmatmul.msk.f32.vlgmr.msra.gmra.mxu3 %vm349_vm1, %v26741_v62  ;;  %v15396_v5 = vpop.f32.mrf.mxu2 }
 0x687   : > { %19172 = vmatmul.msk.f32.vlgmr.msrb.gmra.mxu0 %vm349_vm1, %v26741_v62  ;;  %19173 = vmatmul.msk.f32.vlgmr.msrb.gmra.mxu1 %vm349_vm1, %v26741_v62  ;;  %v26890_v17 = vadd.f32 %v15396_v5, %v15170_v9  ;;  %v26909_v33 = vpop.permute.xlu2 %17283  ;;  %v20906_v9 = vunpack.i.l.bf16 %v26842_v7 }
 0x688   : > { %16989 = vmatpush.msra.mxu3 %v16780_v50  ;;  %17066 = vmatpush.msrb.mxu0 %v17028_v23 }
 0x689   : > { %17086 = vmatpush.msrb.mxu1 %v17029_v0  ;;  %v15119_v35 = vpop.f32.mrf.mxu3  ;;  %v17286_v7 = vsel %vm27964_vm2, %v20897_v48, %v20906_v9  ;;  %v17287_v0 = vsel %vm27977_vm3, %v20906_v9, %v20907_v20 }
 0x68a   : > { %v26898_v25 = vadd.f32 %v15119_v35, %v14912_v45  ;;  %v20942_v35 = vunpack.i.h.bf16 %v26974_v60 }
 0x68b   : > { %19187 = vmatmul.msk.f32.vlgmr.msra.gmra.mxu2 %vm349_vm1, %v26856_v53 }
 0x68c   : > { %v15276_v34 = vpop.f32.mrf.mxu0  ;;  %v26907_v44 = vpop.f32.mrf.mxu1  ;;  %17403 = vmatpush.msra.mxu2 %v17289_v4 }
 0x68d   : > { %v15421_v13 = vadd.f32 %v15276_v34, %v26734_v26  ;;  %v17033_v26 = vsel %vm27971_vm9, %v20887_v54, %v20891_v57  ;;  %v26942_v57 = vpop.permute.xlu1 %20929  ;;  %v20941_v54 = vunpack.i.l.bf16 %v26974_v60  ;;  %v20917_v34 = vunpack.i.h.bf16 %v26871_v52  ;;  %vm27983_vm9 = vmmov %vm27964_vm2 }
 0x68e   : > { %19175 = vmatmul.msk.f32.vlgmr.msrb.gmra.mxu3 %vm349_vm1, %v26741_v62  ;;  %v15533_v32 = vpop.f32.mrf.mxu2  ;;  %v20932_v40 = vunpack.i.h.bf16 %v26942_v57  ;;  %v20931_v47 = vunpack.i.l.bf16 %v26942_v57 }
 0x68f   : > { %19176 = vmatmul.msk.f32.vlgmr.msra.gmra.mxu0 %vm349_vm1, %v26741_v62  ;;  %19177 = vmatmul.msk.f32.vlgmr.msra.gmra.mxu1 %vm349_vm1, %v26741_v62  ;;  %v26929_v27 = vadd.f32 %v15533_v32, %v15421_v13  ;;  %v26962_v56 = vpop.permute.xlu2 %20934  ;;  %v20916_v13 = vunpack.i.l.bf16 %v26871_v52  ;;  %v17548_v14 = vsel %vm27979_vm5, %v20941_v54, %v20942_v35 }
 0x690   : > { %17126 = vmatpush.msrb.mxu3 %v17031_v58  ;;  %17146 = vmatpush.msra.mxu0 %v17032_v61  ;;  %v17544_v39 = vsel %vm27976_vm15, %v20931_v47, %v20932_v40  ;;  %v27017_v61 = vpop.permute.xlu0 %20944 }
 0x691   : > { %17166 = vmatpush.msra.mxu1 %v17033_v26  ;;  %v15256_v16 = vpop.f32.mrf.mxu3  ;;  %v17290_v52 = vsel %vm27980_vm6, %v20912_v59, %v20916_v13  ;;  %v17291_v26 = vsel %vm27981_vm7, %v20916_v13, %v20917_v34  ;;  %v15422_v59 = vadd.f32 %v26907_v44, %v26858_v51 }
 0x692   : > { %v26940_v2 = vadd.f32 %v15256_v16, %v15163_v38  ;;  %v20947_v16 = vunpack.i.h.bf16 %v27017_v61 }
 0x693   : > { %19192 = vmatmul.msk.f32.vlgmr.msrb.gmra.mxu2 %vm349_vm1, %v26936_v63 }
 0x694   : > { %v15356_v55 = vpop.f32.mrf.mxu0  ;;  %v26951_v18 = vpop.f32.mrf.mxu1  ;;  %17483 = vmatpush.msrb.mxu2 %v17293_v31  ;;  %v27053_v31 = vld [vmem:[%s27470_s3 + $0xc0] sm:$0xff] }
 0x695   : > { %v15425_v24 = vadd.f32 %v15356_v55, %v26773_v49  ;;  %v26989_v5 = vpop.permute.xlu1 %20949  ;;  %v15426_v10 = vadd.f32 %v26951_v18, %v26898_v25 }
 0x696   : > { %19179 = vmatmul.msk.f32.vlgmr.msra.gmra.mxu3 %vm349_vm1, %v26741_v62  ;;  %v15613_v30 = vpop.f32.mrf.mxu2  ;;  %v17037_v62 = vsel %vm27975_vm0, %v20902_v28, %v26814_v36  ;;  %v20946_v28 = vunpack.i.l.bf16 %v27017_v61  ;;  %vm27987_vm0 = vmmov %vm27979_vm5 }
 0x697   : > { %19181 = vmatmul.msk.f32.vlgmr.msrb.gmra.mxu0 %vm349_vm1, %v26856_v53  ;;  %19182 = vmatmul.msk.f32.vlgmr.msrb.gmra.mxu1 %vm349_vm1, %v26856_v53  ;;  %v26970_v49 = vadd.f32 %v15613_v30, %v15425_v24  ;;  %v27011_v48 = vpop.permute.xlu2 %17540  ;;  %vm27988_vm15 = vmmov %vm27987_vm0 }
 0x698   : > { %17206 = vmatpush.msra.mxu3 %v17035_v6  ;;  %17226 = vmatpush.msrb.mxu0 %v17036_v43  ;;  %v20922_v6 = vunpack.i.h.bf16 %v26922_v3  ;;  %v17799_v51 = vsel %vm10449_vm13, %v20946_v28, %v20947_v16  ;;  %vm27989_vm2 = vmmov %vm27987_vm0 }
 0x699   : > { %17246 = vmatpush.msrb.mxu1 %v17037_v62  ;;  %v15336_v46 = vpop.f32.mrf.mxu3  ;;  %vm27990_vm3 = vmmov %vm27987_vm0 }
 0x69a   : > { %v26978_v50 = vadd.f32 %v15336_v46, %v15167_v42  ;;  %v17543_v9 = vsel %vm27985_vm11, %v20922_v6, %v20931_v47 }
 0x69b   : > { %19196 = vmatmul.msk.f32.vlgmr.msra.gmra.mxu2 %vm349_vm1, %v26936_v63 }
 0x69c   : > { %v15493_v36 = vpop.f32.mrf.mxu0  ;;  %v26987_v1 = vpop.f32.mrf.mxu1  ;;  %17620 = vmatpush.msra.mxu2 %v17544_v39 }
 0x69d   : > { %v15676_v23 = vadd.f32 %v15493_v36, %v26810_v11  ;;  %v17288_v11 = vsel %vm27978_vm4, %v20907_v20, %v20911_v8  ;;  %v27039_v19 = vpop.permute.xlu1 %20954  ;;  %v27079_v20 = vpop.permute.xlu0 %20964  ;;  %v20937_v36 = vunpack.i.h.bf16 %v26962_v56  ;;  %v15677_v57 = vadd.f32 %v26987_v1, %v26940_v2  ;;  %vm27991_vm4 = vmmov %vm27987_vm0 }
 0x69e   : > { %19184 = vmatmul.msk.f32.vlgmr.msrb.gmra.mxu3 %vm349_vm1, %v26856_v53  ;;  %v15750_v45 = vpop.f32.mrf.mxu2 }
 0x69f   : > { %19185 = vmatmul.msk.f32.vlgmr.msra.gmra.mxu0 %vm349_vm1, %v26856_v53  ;;  %19186 = vmatmul.msk.f32.vlgmr.msra.gmra.mxu1 %vm349_vm1, %v26856_v53  ;;  %v27007_v12 = vadd.f32 %v15750_v45, %v15676_v23  ;;  %v20936_v23 = vunpack.i.l.bf16 %v26962_v56 }
 0x6a0   : > { %17343 = vmatpush.msrb.mxu3 %v17286_v7  ;;  %17363 = vmatpush.msra.mxu0 %v17287_v0 }
 0x6a1   : > { %17383 = vmatpush.msra.mxu1 %v17288_v11  ;;  %v15416_v4 = vpop.f32.mrf.mxu3  ;;  %v17545_v56 = vsel %vm27986_vm12, %v20932_v40, %v20936_v23  ;;  %v17546_v45 = vsel %vm27987_vm0, %v20936_v23, %v20937_v36  ;;  %v27127_v40 = vld [vmem:[%s27470_s3 + $0xc8] sm:$0xff] }
 0x6a2   : > { %v27015_v58 = vadd.f32 %v15416_v4, %v15171_v15 }
 0x6a3   : > { %19200 = vmatmul.msk.f32.vlgmr.msrb.gmra.mxu2 %vm349_vm1, %v26936_v63 }
 0x6a4   : > { %v15573_v41 = vpop.f32.mrf.mxu0  ;;  %v27026_v8 = vpop.f32.mrf.mxu1  ;;  %17700 = vmatpush.msrb.mxu2 %v17548_v14 }
 0x6a5   : > { %v15680_v32 = vadd.f32 %v15573_v41, %v26849_v29  ;;  %v17292_v29 = vsel %vm27982_vm8, %v20917_v34, %v20926_v22  ;;  %v20921_v22 = vunpack.i.l.bf16 %v26922_v3  ;;  %v17294_v3 = vsel %vm27983_vm9, %v20927_v37, %v26909_v33  ;;  %v27091_v33 = vpop.permute.xlu1 %20974  ;;  %v27129_v13 = vpop.permute.xlu0 %20969 }
 0x6a6   : > { %19188 = vmatmul.msk.f32.vlgmr.msra.gmra.mxu3 %vm349_vm1, %v26856_v53  ;;  %v15830_v38 = vpop.f32.mrf.mxu2  ;;  %v20977_v15 = vunpack.i.h.bf16 %v27091_v33  ;;  %v20976_v4 = vunpack.i.l.bf16 %v27091_v33  ;;  %v20952_v41 = vunpack.i.h.bf16 %v26989_v5  ;;  %v15681_v60 = vadd.f32 %v27026_v8, %v26978_v50 }
 0x6a7   : > { %19189 = vmatmul.msk.f32.vlgmr.msrb.gmra.mxu0 %vm349_vm1, %v26856_v53  ;;  %19190 = vmatmul.msk.f32.vlgmr.msrb.gmra.mxu1 %vm349_vm1, %v26856_v53  ;;  %v27046_v21 = vadd.f32 %v15830_v38, %v15680_v32  ;;  %v27057_v53 = vpop.permute.xlu2 %20959  ;;  %v20951_v32 = vunpack.i.l.bf16 %v26989_v5 }
 0x6a8   : > { %17423 = vmatpush.msra.mxu3 %v17290_v52  ;;  %17443 = vmatpush.msrb.mxu0 %v17291_v26  ;;  %v20962_v62 = vunpack.i.h.bf16 %v27057_v53  ;;  %v20961_v46 = vunpack.i.l.bf16 %v27057_v53  ;;  %v17807_v2 = vsel %vm10449_vm13, %v20976_v4, %v20977_v15  ;;  %v27235_v53 = vld [vmem:[%s27470_s3 + $0xd0] sm:$0xff] }
 0x6a9   : > { %17463 = vmatpush.msrb.mxu1 %v17292_v29  ;;  %v15553_v55 = vpop.f32.mrf.mxu3  ;;  %v17549_v5 = vsel %vm27989_vm2, %v20942_v35, %v20951_v32  ;;  %v17550_v29 = vsel %vm27990_vm3, %v20951_v32, %v20952_v41  ;;  %v18289_v35 = vld [vmem:[%s21211_s13 + $0x28] sm:$0xff]  ;;  %v18295_v32 = vld [vmem:[%s21211_s13 + $0x58] sm:$0xff] }
 0x6aa   : > { %v27055_v24 = vadd.f32 %v15553_v55, %v15422_v59  ;;  %v17803_v47 = vsel %vm10449_vm13, %v20961_v46, %v20962_v62  ;;  %18327 = vrot.lane.b32.xlu1 %v18289_v35, %s21121_s26 }
 0x6ab   : > { %19205 = vmatmul.msk.f32.vlgmr.msra.gmra.mxu2 %vm349_vm1, %v27053_v31 }
 0x6ac   : > { %v15653_v44 = vpop.f32.mrf.mxu0  ;;  %v27066_v43 = vpop.f32.mrf.mxu1  ;;  %17837 = vmatpush.msra.mxu2 %v17799_v51  ;;  %v20957_v51 = vunpack.i.h.bf16 %v27039_v19 }
 0x6ad   : > { %v15684_v30 = vadd.f32 %v15653_v44, %v26890_v17  ;;  %v17542_v17 = vsel %vm27984_vm10, %v20921_v22, %v20922_v6  ;;  %v27133_v52 = vpop.permute.xlu1 %20979  ;;  %v20956_v44 = vunpack.i.l.bf16 %v27039_v19  ;;  %v15685_v61 = vadd.f32 %v27066_v43, %v27015_v58 }
 0x6ae   : > { %19193 = vmatmul.msk.f32.vlgmr.msrb.gmra.mxu3 %vm349_vm1, %v26936_v63  ;;  %v15910_v42 = vpop.f32.mrf.mxu2  ;;  %v20982_v55 = vunpack.i.h.bf16 %v27133_v52 }
 0x6af   : > { %19194 = vmatmul.msk.f32.vlgmr.msra.gmra.mxu0 %vm349_vm1, %v26936_v63  ;;  %19195 = vmatmul.msk.f32.vlgmr.msra.gmra.mxu1 %vm349_vm1, %v26936_v63  ;;  %v27087_v39 = vadd.f32 %v15910_v42, %v15684_v30  ;;  %v17800_v19 = vsel %vm10449_vm13, %v20947_v16, %v20956_v44  ;;  %v18291_v16 = vld [vmem:[%s21211_s13 + $0x38] sm:$0xff] }
 0x6b0   : > { %17503 = vmatpush.msrb.mxu3 %v17294_v3  ;;  %17580 = vmatpush.msra.mxu0 %v17542_v17  ;;  %v27167_v3 = vpop.permute.xlu0 %20989 }
 0x6b1   : > { %17600 = vmatpush.msra.mxu1 %v17543_v9  ;;  %v15633_v37 = vpop.f32.mrf.mxu3  ;;  %v17801_v9 = vsel %vm10449_vm13, %v20956_v44, %v20957_v51  ;;  %18331 = vrot.lane.b32.xlu0 %v18291_v16, %s21121_s26 }
 0x6b2   : > { %v15683_v7 = vadd.f32 %v15633_v37, %v15426_v10  ;;  %v20992_v37 = vunpack.i.h.bf16 %v27167_v3 }
 0x6b3   : > { %19209 = vmatmul.msk.f32.vlgmr.msrb.gmra.mxu2 %vm349_vm1, %v27053_v31 }
 0x6b4   : > { %v15790_v25 = vpop.f32.mrf.mxu0  ;;  %v27102_v18 = vpop.f32.mrf.mxu1  ;;  %17917 = vmatpush.msrb.mxu2 %v17803_v47 }
 0x6b5   : > { %v15935_v0 = vadd.f32 %v15790_v25, %v26929_v27  ;;  %v17547_v27 = vsel %vm27988_vm15, %v20937_v36, %v20941_v54  ;;  %v17802_v36 = vsel %vm10449_vm13, %v20957_v51, %v20961_v46  ;;  %v20966_v25 = vunpack.i.l.bf16 %v27079_v20 }
 0x6b6   : > { %19197 = vmatmul.msk.f32.vlgmr.msra.gmra.mxu3 %vm349_vm1, %v26936_v63  ;;  %v16064_v11 = vpop.f32.mrf.mxu2  ;;  %v20967_v46 = vunpack.i.h.bf16 %v27079_v20 }
 0x6b7   : > { %19198 = vmatmul.msk.f32.vlgmr.msrb.gmra.mxu0 %vm349_vm1, %v26936_v63  ;;  %19199 = vmatmul.msk.f32.vlgmr.msrb.gmra.mxu1 %vm349_vm1, %v26936_v63  ;;  %v27120_v34 = vadd.f32 %v16064_v11, %v15935_v0  ;;  %v17804_v20 = vsel %vm10449_vm13, %v20962_v62, %v20966_v25 }
 0x6b8   : > { %17640 = vmatpush.msra.mxu3 %v17545_v56  ;;  %17660 = vmatpush.msrb.mxu0 %v17546_v45  ;;  %v17798_v56 = vpop.permute.xlu2 %17797 }
 0x6b9   : > { %17680 = vmatpush.msrb.mxu1 %v17547_v27  ;;  %v15770_v14 = vpop.f32.mrf.mxu3 }
 0x6ba   : > { %v15934_v54 = vadd.f32 %v15770_v14, %v15677_v57  ;;  %v17805_v14 = vsel %vm10449_vm13, %v20966_v25, %v20967_v46  ;;  %v18297_v25 = vld [vmem:[%s21211_s13 + $0x68] sm:$0xff] }
 0x6bb   : > { %19214 = vmatmul.msk.f32.vlgmr.msra.gmra.mxu2 %vm349_vm1, %v27127_v40 }
 0x6bc   : > { %v15870_v1 = vpop.f32.mrf.mxu0  ;;  %v15890_v26 = vpop.f32.mrf.mxu1  ;;  %17997 = vmatpush.msra.mxu2 %v17807_v2  ;;  %v20972_v2 = vunpack.i.h.bf16 %v27129_v13 }
 0x6bd   : > { %v15939_v38 = vadd.f32 %v15870_v1, %v26970_v49  ;;  %v27143_v28 = vadd.f32 %v15890_v26, %v15683_v7  ;;  %v20981_v49 = vunpack.i.l.bf16 %v27133_v52  ;;  %v18292_v7 = vld [vmem:[%s21211_s13 + $0x40] sm:$0xff] }
 0x6be   : > { %19201 = vmatmul.msk.f32.vlgmr.msrb.gmra.mxu3 %vm349_vm1, %v26936_v63  ;;  %v16144_v59 = vpop.f32.mrf.mxu2  ;;  %v17551_v63 = vsel %vm27991_vm4, %v20952_v41, %v27011_v48  ;;  %18333 = vrot.lane.b32.xlu1 %v18292_v7, %s21121_s26 }
 0x6bf   : > { %19203 = vmatmul.msk.f32.vlgmr.msra.gmra.mxu0 %vm349_vm1, %v27053_v31  ;;  %19204 = vmatmul.msk.f32.vlgmr.msra.gmra.mxu1 %vm349_vm1, %v27053_v31  ;;  %v27159_v6 = vadd.f32 %v16144_v59, %v15939_v38  ;;  %v18058_v50 = vsel %vm10854_vm14, %v20981_v49, %v20982_v55 }
 0x6c0   : > { %17720 = vmatpush.msrb.mxu3 %v17549_v5  ;;  %17740 = vmatpush.msra.mxu0 %v17550_v29  ;;  %v20985_v38 = vpop.permute.xlu2 %20984  ;;  %v18057_v29 = vsel %vm10854_vm14, %v20972_v2, %v20981_v49 }
 0x6c1   : > { %17760 = vmatpush.msra.mxu1 %v17551_v63  ;;  %v15850_v22 = vpop.f32.mrf.mxu3  ;;  %v18290_v63 = vld [vmem:[%s21211_s13 + $0x30] sm:$0xff]  ;;  %v20986_v35 = vunpack.i.l.bf16 %v20985_v38 }
 0x6c2   : > { %v15938_v30 = vadd.f32 %v15850_v22, %v15681_v60  ;;  %18329 = vrot.lane.b32.xlu2 %v18290_v63, %s21121_s26  ;;  %v20987_v60 = vunpack.i.h.bf16 %v20985_v38 }
 0x6c3   : > { %19218 = vmatmul.msk.f32.vlgmr.msrb.gmra.mxu2 %vm349_vm1, %v27127_v40 }
 0x6c4   : > { %v16024_v48 = vpop.f32.mrf.mxu0  ;;  %v16044_v8 = vpop.f32.mrf.mxu1  ;;  %18134 = vmatpush.msrb.mxu2 %v18058_v50  ;;  %v18294_v50 = vld [vmem:[%s21211_s13 + $0x50] sm:$0xff] }
 0x6c5   : > { %v16207_v42 = vadd.f32 %v16024_v48, %v27007_v12  ;;  %v27177_v17 = vadd.f32 %v16044_v8, %v15934_v54  ;;  %v20991_v12 = vunpack.i.l.bf16 %v27167_v3  ;;  %v15936_v54 = vadd.f32 %v27102_v18, %v27055_v24  ;;  %18337 = vrot.lane.b32.xlu0 %v18294_v50, %s21121_s26 }
 0x6c6   : > { %19206 = vmatmul.msk.f32.vlgmr.msra.gmra.mxu3 %vm349_vm1, %v27053_v31  ;;  %v16278_v10 = vpop.f32.mrf.mxu2  ;;  %18339 = vrot.lane.b32.xlu1 %v18295_v32, %s21121_s26 }
 0x6c7   : > { %19207 = vmatmul.msk.f32.vlgmr.msrb.gmra.mxu0 %vm349_vm1, %v27053_v31  ;;  %19208 = vmatmul.msk.f32.vlgmr.msrb.gmra.mxu1 %vm349_vm1, %v27053_v31  ;;  %v27194_v23 = vadd.f32 %v16278_v10, %v16207_v42  ;;  %v18062_v58 = vsel %vm10854_vm14, %v20991_v12, %v20992_v37  ;;  %v18061_v48 = vsel %vm10854_vm14, %v20987_v60, %v20991_v12  ;;  %v18293_v42 = vld [vmem:[%s21211_s13 + $0x48] sm:$0xff] }
 0x6c8   : > { %17857 = vmatpush.msra.mxu3 %v17800_v19  ;;  %17877 = vmatpush.msrb.mxu0 %v17801_v9  ;;  %v20995_v19 = vpop.permute.xlu2 %20994 }
 0x6c9   : > { %17897 = vmatpush.msrb.mxu1 %v17802_v36  ;;  %v15930_v47 = vpop.f32.mrf.mxu3  ;;  %v20997_v9 = vunpack.i.h.bf16 %v20995_v19  ;;  %v20996_v10 = vunpack.i.l.bf16 %v20995_v19  ;;  %v18051_v36 = vpop.permute.xlu1 %18050 }
 0x6ca   : > { %v15942_v0 = vadd.f32 %v15930_v47, %v15685_v61  ;;  %18335 = vrot.lane.b32.xlu2 %v18293_v42, %s21121_s26  ;;  %v18063_v47 = vsel %vm10854_vm14, %v20992_v37, %v18051_v36 }
 0x6cb   : > { %19222 = vmatmul.msk.f32.vlgmr.msra.gmra.mxu2 %vm349_vm1, %v27127_v40 }
 0x6cc   : > { %v16104_v43 = vpop.f32.mrf.mxu0  ;;  %v16124_v45 = vpop.f32.mrf.mxu1  ;;  %18214 = vmatpush.msra.mxu2 %v18062_v58 }
 0x6cd   : > { %v16211_v11 = vadd.f32 %v16104_v43, %v27046_v21  ;;  %v27212_v27 = vadd.f32 %v16124_v45, %v15938_v30  ;;  %v17806_v21 = vsel %vm10449_vm13, %v20967_v46, %v20976_v4  ;;  %v20971_v4 = vunpack.i.l.bf16 %v27129_v13  ;;  %v18296_v46 = vld [vmem:[%s21211_s13 + $0x60] sm:$0xff]  ;;  %18343 = vrot.lane.b32.xlu0 %v18297_v25, %s21121_s26 }
 0x6ce   : > { %19210 = vmatmul.msk.f32.vlgmr.msrb.gmra.mxu3 %vm349_vm1, %v27053_v31  ;;  %v16358_v57 = vpop.f32.mrf.mxu2  ;;  %v17808_v13 = vsel %vm10449_vm13, %v20977_v15, %v17798_v56  ;;  %v18064_v56 = vsel %vm10854_vm14, %v18051_v36, %v20996_v10 }
 0x6cf   : > { %19211 = vmatmul.msk.f32.vlgmr.msra.gmra.mxu0 %vm349_vm1, %v27053_v31  ;;  %19212 = vmatmul.msk.f32.vlgmr.msra.gmra.mxu1 %vm349_vm1, %v27053_v31  ;;  %v27227_v41 = vadd.f32 %v16358_v57, %v16211_v11 }
 0x6d0   : > { %17937 = vmatpush.msrb.mxu3 %v17804_v20  ;;  %17957 = vmatpush.msra.mxu0 %v17805_v14 }
 0x6d1   : > { %17977 = vmatpush.msra.mxu1 %v17806_v21  ;;  %v16084_v31 = vpop.f32.mrf.mxu3 }
 0x6d2   : > { %v16210_v62 = vadd.f32 %v16084_v31, %v15936_v54  ;;  %18341 = vrot.lane.b32.xlu2 %v18296_v46, %s21121_s26 }
 0x6d3   : > { %19227 = vmatmul.msk.f32.vlgmr.msrb.gmra.mxu2 %vm349_vm1, %v27235_v53 }
 0x6d4   : > { %v16184_v24 = vpop.f32.mrf.mxu0  ;;  %v16204_v18 = vpop.f32.mrf.mxu1 }
 0x6d5   : > { %v16215_v1 = vadd.f32 %v16184_v24, %v27087_v39  ;;  %v27243_v26 = vadd.f32 %v16204_v18, %v15942_v0  ;;  %v18056_v39 = vsel %vm10854_vm14, %v20971_v4, %v20972_v2  ;;  %v18298_v0 = vld [vmem:[%s21211_s13 + $0x70] sm:$0xff] }
 0x6d6   : > { %19215 = vmatmul.msk.f32.vlgmr.msra.gmra.mxu3 %vm349_vm1, %v27127_v40  ;;  %v16438_v5 = vpop.f32.mrf.mxu2  ;;  %18345 = vrot.lane.b32.xlu1 %v18298_v0, %s21121_s26 }
 0x6d7   : > { %19216 = vmatmul.msk.f32.vlgmr.msrb.gmra.mxu0 %vm349_vm1, %v27127_v40  ;;  %19217 = vmatmul.msk.f32.vlgmr.msrb.gmra.mxu1 %vm349_vm1, %v27127_v40  ;;  %v27258_v59 = vadd.f32 %v16438_v5, %v16215_v1 }
 0x6d8   : > { %18017 = vmatpush.msra.mxu3 %v17808_v13  ;;  %18094 = vmatpush.msrb.mxu0 %v18056_v39 }
 0x6d9   : > { %18114 = vmatpush.msrb.mxu1 %v18057_v29  ;;  %v16164_v33 = vpop.f32.mrf.mxu3 }
 0x6da   : > { %v16214_v15 = vadd.f32 %v16164_v33, %v27143_v28  ;;  %v18059_v28 = vsel %vm10854_vm14, %v20982_v55, %v20986_v35 }
 0x6db   : > { %19231 = vmatmul.msk.f32.vlgmr.msra.gmra.mxu2 %vm349_vm1, %v27235_v53 }
 0x6dc   : > { %v16318_v22 = vpop.f32.mrf.mxu0  ;;  %v16338_v51 = vpop.f32.mrf.mxu1 }
 0x6dd   : > { %v16463_v49 = vadd.f32 %v16318_v22, %v27120_v34  ;;  %v27266_v44 = vadd.f32 %v16338_v51, %v16210_v62  ;;  %v18060_v34 = vsel %vm10854_vm14, %v20986_v35, %v20987_v60 }
 0x6de   : > { %19219 = vmatmul.msk.f32.vlgmr.msrb.gmra.mxu3 %vm349_vm1, %v27127_v40  ;;  %v16572_v30 = vpop.f32.mrf.mxu2 }
 0x6df   : > { %19220 = vmatmul.msk.f32.vlgmr.msra.gmra.mxu0 %vm349_vm1, %v27127_v40  ;;  %19221 = vmatmul.msk.f32.vlgmr.msra.gmra.mxu1 %vm349_vm1, %v27127_v40  ;;  %v27282_v8 = vadd.f32 %v16572_v30, %v16463_v49 }
 0x6e0   : > { %18154 = vmatpush.msrb.mxu3 %v18059_v28  ;;  %18174 = vmatpush.msra.mxu0 %v18060_v34 }
 0x6e1   : > { %18194 = vmatpush.msra.mxu1 %v18061_v48  ;;  %v16298_v52 = vpop.f32.mrf.mxu3 }
 0x6e2   : > { %v16462_v55 = vadd.f32 %v16298_v52, %v27177_v17 }
 0x6e4   : > { %v16398_v12 = vpop.f32.mrf.mxu0  ;;  %v16418_v61 = vpop.f32.mrf.mxu1 }
 0x6e5   : > { %v16467_v16 = vadd.f32 %v16398_v12, %v27159_v6  ;;  %v16468_v7 = vadd.f32 %v16418_v61, %v16214_v15  ;;  %v18065_v6 = vsel %vm10854_vm14, %v20996_v10, %v20997_v9 }
 0x6e6   : > { %19223 = vmatmul.msk.f32.vlgmr.msra.gmra.mxu3 %vm349_vm1, %v27127_v40  ;;  %v16652_v17 = vpop.f32.mrf.mxu2 }
 0x6e7   : > { %19225 = vmatmul.msk.f32.vlgmr.msrb.gmra.mxu0 %vm349_vm1, %v27235_v53  ;;  %19226 = vmatmul.msk.f32.vlgmr.msrb.gmra.mxu1 %vm349_vm1, %v27235_v53  ;;  %v16721_v3 = vadd.f32 %v16652_v17, %v16467_v16 }
 0x6e8   : > { %18234 = vmatpush.msra.mxu3 %v18063_v47  ;;  %18254 = vmatpush.msrb.mxu0 %v18064_v56 }
 0x6e9   : > { %18274 = vmatpush.msrb.mxu1 %v18065_v6  ;;  %v16378_v37 = vpop.f32.mrf.mxu3 }
 0x6ea   : > { %v16466_v40 = vadd.f32 %v16378_v37, %v27212_v27 }
 0x6ec   : > { %v16532_v58 = vpop.f32.mrf.mxu0  ;;  %v16552_v43 = vpop.f32.mrf.mxu1 }
 0x6ed   : > { %v16715_v45 = vadd.f32 %v16532_v58, %v27194_v23  ;;  %v16716_v11 = vadd.f32 %v16552_v43, %v16462_v55 }
 0x6ee   : > { %19228 = vmatmul.msk.f32.vlgmr.msrb.gmra.mxu3 %vm349_vm1, %v27235_v53  ;;  %v16811_v20 = vpop.f32.mrf.mxu2 }
 0x6ef   : > { %19229 = vmatmul.msk.f32.vlgmr.msra.gmra.mxu0 %vm349_vm1, %v27235_v53  ;;  %19230 = vmatmul.msk.f32.vlgmr.msra.gmra.mxu1 %vm349_vm1, %v27235_v53  ;;  %v16994_v57 = vadd.f32 %v16811_v20, %v16715_v45 }
 0x6f1   : > { %v16458_v14 = vpop.f32.mrf.mxu3 }
 0x6f2   : > { %v16470_v27 = vadd.f32 %v16458_v14, %v27243_v26  ;;  %v18299_v26 = vld [vmem:[%s21211_s13 + $0x78] sm:$0xff]  ;;  %s242_s13 = sand.u32 1, %s21086_s22  }
 0x6f3   : > { %18347 = vrot.lane.b32.xlu2 %v18299_v26, %s21121_s26  ;;  %s19238_s26 = smul.u32 80, %s242_s13  ;;  %s18401_s17 = scalar_lea.sflag [#allocation4], %s242_s13 }
 0x6f4   : > { %v16612_v21 = vpop.f32.mrf.mxu0  ;;  %v16632_v32 = vpop.f32.mrf.mxu1 }
 0x6f5   : > { %v16719_v23 = vadd.f32 %v16612_v21, %v27227_v41  ;;  %v16720_v54 = vadd.f32 %v16632_v32, %v16466_v40  ;;  %s27381_s28 = scalar_lea.vmem [#allocation3], %s19238_s26 }
 0x6f6   : > { %19232 = vmatmul.msk.f32.vlgmr.msra.gmra.mxu3 %vm349_vm1, %v27235_v53  ;;  %v16891_v31 = vpop.f32.mrf.mxu2  ;;  %s18414_s15 = sshll.u32 %s27381_s28, 4  ;;  %s18415_s15 = int_to_ptr.vmem [resolvable:$true] %s18414_s15 }
 0x6f7   : > { %19233 = vmatmul.msk.f32.vlgmr.msrb.gmra.mxu0 %vm349_vm1, %v27235_v53  ;;  %19234 = vmatmul.msk.f32.vlgmr.msrb.gmra.mxu1 %vm349_vm1, %v27235_v53  ;;  %v16998_v62 = vadd.f32 %v16891_v31, %v16719_v23  ;;  %vm18398_vm1 = vcmask 867328  }
 0x6f9   : > { %v16592_v2 = vpop.f32.mrf.mxu3 }
 0x6fa   : > { %v16718_v4 = vadd.f32 %v16592_v2, %v27266_v44 }
 0x6fc   : > { %v16692_v24 = vpop.f32.mrf.mxu0  ;;  %v16712_v18 = vpop.f32.mrf.mxu1 }
 0x6fd   : > { %v16723_v1 = vadd.f32 %v16692_v24, %v27258_v59  ;;  %v16724_v41 = vadd.f32 %v16712_v18, %v16470_v27 }
 0x6fe   : > { %v16971_v38 = vpop.f32.mrf.mxu2 }
 0x6ff   : > { %v17002_v13 = vadd.f32 %v16971_v38, %v16723_v1  ;;  %v27357_v38 = vpop.permute.xlu0 %18303 }
 0x701   : > { %v16672_v5 = vpop.f32.mrf.mxu3 }
 0x702   : > { %v16722_v39 = vadd.f32 %v16672_v5, %v16468_v7 }
 0x704   : > { %v16851_v29 = vpop.f32.mrf.mxu0  ;;  %v16871_v63 = vpop.f32.mrf.mxu1 }
 0x705   : > { %v16996_v53 = vadd.f32 %v16851_v29, %v27282_v8  ;;  %v16997_v33 = vadd.f32 %v16871_v63, %v16718_v4 }
 0x706   : > { %v17108_v15 = vpop.f32.mrf.mxu2 }
 0x707   : > { %v17253_v60 = vadd.f32 %v17108_v15, %v16996_v53 }
 0x709   : > { %v16831_v35 = vpop.f32.mrf.mxu3 }
 0x70a   : > { %v16995_v22 = vadd.f32 %v16831_v35, %v16716_v11 }
 0x70c   : > { %v16931_v51 = vpop.f32.mrf.mxu0  ;;  %v16951_v49 = vpop.f32.mrf.mxu1 }
 0x70d   : > { %v17000_v59 = vadd.f32 %v16931_v51, %v16721_v3  ;;  %v17001_v44 = vadd.f32 %v16951_v49, %v16722_v39 }
 0x70e   : > { %v17188_v28 = vpop.f32.mrf.mxu2 }
 0x70f   : > { %v27327_v30 = vadd.f32 %v17188_v28, %v17000_v59 }
 0x711   : > { %v16911_v50 = vpop.f32.mrf.mxu3 }
 0x712   : > { %v16999_v34 = vadd.f32 %v16911_v50, %v16720_v54 }
 0x714   : > { %v17068_v48 = vpop.f32.mrf.mxu0  ;;  %v17088_v42 = vpop.f32.mrf.mxu1 }
 0x715   : > { %v17251_v19 = vadd.f32 %v17068_v48, %v16994_v57  ;;  %v27329_v52 = vadd.f32 %v17088_v42, %v16995_v22 }
 0x716   : > { %v17325_v8 = vpop.f32.mrf.mxu2 }
 0x717   : > { %v27331_v55 = vadd.f32 %v17325_v8, %v17251_v19 }
 0x719   : > { %v16991_v9 = vpop.f32.mrf.mxu3 }
 0x71a   : > { %v17003_v10 = vadd.f32 %v16991_v9, %v16724_v41 }
 0x71c   : > { %v17148_v36 = vpop.f32.mrf.mxu0  ;;  %v17168_v12 = vpop.f32.mrf.mxu1 }
 0x71d   : > { %v17255_v61 = vadd.f32 %v17148_v36, %v16998_v62  ;;  %v27333_v16 = vadd.f32 %v17168_v12, %v16999_v34  ;;  %v18330_v24 = vpop.permute.xlu2 %18329  ;;  %v18328_v1 = vpop.permute.xlu1 %18327 }
 0x71e   : > { %v17405_v7 = vpop.f32.mrf.mxu2 }
 0x71f   : > { %v27335_v47 = vadd.f32 %v17405_v7, %v17255_v61 }
 0x721   : > { %v17128_v17 = vpop.f32.mrf.mxu3 }
 0x722   : > { %v27337_v25 = vadd.f32 %v17128_v17, %v16997_v33 }
 0x723   : > { %v18332_v22 = vpop.permute.xlu0 %18331 }
 0x724   : > { %v17228_v0 = vpop.f32.mrf.mxu0  ;;  %v17248_v56 = vpop.f32.mrf.mxu1 }
 0x725   : > { %v17259_v6 = vadd.f32 %v17228_v0, %v17002_v13  ;;  %v27339_v3 = vadd.f32 %v17248_v56, %v17003_v10  ;;  %v27363_v63 = vpop.permute.xlu2 %18335 }
 0x726   : > { %v17485_v46 = vpop.f32.mrf.mxu2 }
 0x727   : > { %v27341_v37 = vadd.f32 %v17485_v46, %v17259_v6 }
 0x729   : > { %v17208_v40 = vpop.f32.mrf.mxu3 }
 0x72a   : > { %v27343_v58 = vadd.f32 %v17208_v40, %v17001_v44 }
 0x72c   : > { %v17365_v43 = vpop.f32.mrf.mxu0  ;;  %v27345_v45 = vpop.f32.mrf.mxu1 }
 0x72d   : > { %v17510_v5 = vadd.f32 %v17365_v43, %v17253_v60  ;;  %v27378_v9 = vpop.permute.xlu2 %18341 }
 0x72e   : > { %v17622_v11 = vpop.f32.mrf.mxu2 }
 0x72f   : > { %v17767_v29 = vadd.f32 %v17622_v11, %v17510_v5 }
 0x730   : > { %v27365_v53 = vpop.permute.xlu1 %18333 }
 0x731   : > { %v17345_v20 = vpop.f32.mrf.mxu3  ;;  %v18351_v60 = vsel %vm10854_vm14, %v18332_v22, %v27365_v53 }
 0x732   : > { %v17509_v12 = vadd.f32 %v17345_v20, %v27329_v52 }
 0x734   : > { %v17445_v57 = vpop.f32.mrf.mxu0  ;;  %v27347_v14 = vpop.f32.mrf.mxu1 }
 0x735   : > { %v17514_v59 = vadd.f32 %v17445_v57, %v27327_v30 }
 0x736   : > { %v17702_v27 = vpop.f32.mrf.mxu2 }
 0x737   : > { %v17771_v50 = vadd.f32 %v17702_v27, %v17514_v59  ;;  %v18338_v59 = vpop.permute.xlu0 %18337 }
 0x738   : > { %v18340_v10 = vpop.permute.xlu1 %18339 }
 0x739   : > { %v17425_v21 = vpop.f32.mrf.mxu3  ;;  %v18355_v61 = vsel %vm10854_vm14, %v18340_v10, %v27378_v9 }
 0x73a   : > { %v17513_v27 = vadd.f32 %v17425_v21, %v27333_v16 }
 0x73c   : > { %v17582_v32 = vpop.f32.mrf.mxu0  ;;  %v17602_v23 = vpop.f32.mrf.mxu1 }
 0x73d   : > { %v17765_v7 = vadd.f32 %v17582_v32, %v27331_v55  ;;  %v17766_v17 = vadd.f32 %v17602_v23, %v17509_v12  ;;  %v18349_v55 = vsel %vm10854_vm14, %v18328_v1, %v18330_v24  ;;  %v18350_v32 = vsel %vm10854_vm14, %v18330_v24, %v18332_v22 }
 0x73e   : > { %v17839_v54 = vpop.f32.mrf.mxu2 }
 0x73f   : > { %v18022_v6 = vadd.f32 %v17839_v54, %v17765_v7  ;;  %v18352_v7 = vsel %vm10854_vm14, %v27365_v53, %v27363_v63 }
 0x741   : > { %v27349_v31 = vpop.f32.mrf.mxu3 }
 0x744   : > { %v17662_v62 = vpop.f32.mrf.mxu0  ;;  %v17682_v2 = vpop.f32.mrf.mxu1 }
 0x745   : > { %v17769_v23 = vadd.f32 %v17662_v62, %v27335_v47  ;;  %v17770_v54 = vadd.f32 %v17682_v2, %v17513_v27  ;;  %v18354_v62 = vsel %vm10854_vm14, %v18338_v59, %v18340_v10  ;;  %v17517_v2 = vadd.f32 %v27349_v31, %v27339_v3 }
 0x746   : > { %v17919_v4 = vpop.f32.mrf.mxu2 }
 0x749   : > { %v27351_v18 = vpop.f32.mrf.mxu3 }
 0x74c   : > { %v27353_v41 = vpop.f32.mrf.mxu0  ;;  %v27355_v26 = vpop.f32.mrf.mxu1 }
 0x74e   : > { %v27359_v13 = vpop.f32.mrf.mxu2 }
 0x751   : > { %v27361_v39 = vpop.f32.mrf.mxu3 }
 0x754   : > { %v17879_v33 = vpop.f32.mrf.mxu0  ;;  %v27367_v15 = vpop.f32.mrf.mxu1 }
 0x755   : > { %v18024_v35 = vadd.f32 %v17879_v33, %v17767_v29 }
 0x756   : > { %v18136_v51 = vpop.f32.mrf.mxu2 }
 0x757   : > { %v18281_v49 = vadd.f32 %v18136_v51, %v18024_v35 }
 0x759   : > { %v18308_v44 = vadd.f32 %v27357_v38, %v18281_v49  ;;  %v17859_v28 = vpop.f32.mrf.mxu3  ;;  %v18026_v49 = vadd.f32 %v17919_v4, %v17769_v23 }
 0x75a   : > { %v18023_v46 = vadd.f32 %v17859_v28, %v17766_v17 }
 0x75b   : > { %v18371_v34 = vadd.f32 %v18351_v60, %v18308_v44  ;;  %v17511_v44 = vadd.f32 %v27345_v45, %v27337_v25  ;;  %v18353_v25 = vsel %vm10854_vm14, %v27363_v63, %v18338_v59  ;;  %v17773_v45 = vadd.f32 %v27353_v41, %v27341_v37 }
 0x75c   : > { %v17959_v48 = vpop.f32.mrf.mxu0  ;;  %v27376_v42 = vpop.f32.mrf.mxu1 }
 0x75d   : > { %v18381_v19 = vmax.f32 %v18371_v34, 0.0  ;;  %v18028_v8 = vadd.f32 %v17959_v48, %v17771_v50  ;;  %v17768_v47 = vadd.f32 %v27351_v18, %v17511_v44  ;;  %v17774_v18 = vadd.f32 %v27355_v26, %v17517_v2 }
 0x75e   : > { %v18216_v36 = vpop.f32.mrf.mxu2  ;;  %v18030_v3 = vadd.f32 %v27359_v13, %v17773_v45 }
 0x75f   : > { %18391 = vst [vmem:[%s27381_s28 + $0x10] sm:$0xff] %v18381_v19  ;;  %v18285_v30 = vadd.f32 %v18216_v36, %v18028_v8  ;;  %v18025_v34 = vadd.f32 %v27367_v15, %v17768_v47  ;;  %v18348_v15 = vpop.permute.xlu2 %18347 }
 0x761   : > { %v18312_v0 = vadd.f32 %v27357_v38, %v18285_v30  ;;  %v17939_v56 = vpop.f32.mrf.mxu3  ;;  %v18346_v30 = vpop.permute.xlu1 %18345 }
 0x762   : > { %v18027_v60 = vadd.f32 %v17939_v56, %v17770_v54 }
 0x763   : > { %v18375_v40 = vadd.f32 %v18355_v61, %v18312_v0  ;;  %v17515_v61 = vadd.f32 %v27347_v14, %v27343_v58  ;;  %v18344_v0 = vpop.permute.xlu0 %18343  ;;  %v18358_v58 = vsel %vm10854_vm14, %v18346_v30, %v18348_v15 }
 0x764   : > { %v18096_v43 = vpop.f32.mrf.mxu0  ;;  %v18116_v52 = vpop.f32.mrf.mxu1 }
 0x765   : > { %v18385_v11 = vmax.f32 %v18375_v40, 0.0  ;;  %v18279_v20 = vadd.f32 %v18096_v43, %v18022_v6  ;;  %v18280_v57 = vadd.f32 %v18116_v52, %v18023_v46  ;;  %v17772_v56 = vadd.f32 %v27361_v39, %v17515_v61 }
 0x766   : > { %v18357_v46 = vsel %vm10854_vm14, %v18344_v0, %v18346_v30 }
 0x767   : > { %18395 = vst [vmem:[%s27381_s28 + $0x30] sm:$0xff] %v18385_v11  ;;  %v18306_v5 = vadd.f32 %v27357_v38, %v18279_v20  ;;  %v18307_v29 = vadd.f32 %v27357_v38, %v18280_v57  ;;  %v18029_v53 = vadd.f32 %v27376_v42, %v17772_v56  ;;  %v18356_v42 = vsel %vm10854_vm14, %v27378_v9, %v18344_v0 }
 0x769   : > { %v18369_v33 = vadd.f32 %v18349_v55, %v18306_v5  ;;  %v18370_v35 = vadd.f32 %v18350_v32, %v18307_v29  ;;  %v18019_v51 = vpop.f32.mrf.mxu3 }
 0x76a   : > { %v18031_v31 = vadd.f32 %v18019_v51, %v17774_v18 }
 0x76b   : > { %v18379_v16 = vmax.f32 %v18369_v33, 0.0  ;;  %v18380_v21 = vmax.f32 %v18370_v35, 0.0 }
 0x76c   : > { %v18176_v28 = vpop.f32.mrf.mxu0  ;;  %v18196_v50 = vpop.f32.mrf.mxu1 }
 0x76d   : > { %18389 = vst [vmem:[%s27381_s28] sm:$0xff] %v18379_v16  ;;  %v18283_v1 = vadd.f32 %v18176_v28, %v18026_v49  ;;  %v18284_v24 = vadd.f32 %v18196_v50, %v18027_v60 }
 0x76e   : > { %18390 = vst [vmem:[%s27381_s28 + $0x8] sm:$0xff] %v18380_v21 }
 0x76f   : > { %v18310_v4 = vadd.f32 %v27357_v38, %v18283_v1  ;;  %v18311_v22 = vadd.f32 %v27357_v38, %v18284_v24 }
 0x771   : > { %v18373_v48 = vadd.f32 %v18353_v25, %v18310_v4  ;;  %v18374_v19 = vadd.f32 %v18354_v62, %v18311_v22  ;;  %v18156_v8 = vpop.f32.mrf.mxu3 }
 0x772   : > { %v18282_v10 = vadd.f32 %v18156_v8, %v18025_v34 }
 0x773   : > { %v18383_v36 = vmax.f32 %v18373_v48, 0.0  ;;  %v18384_v12 = vmax.f32 %v18374_v19, 0.0 }
 0x774   : > { %v18309_v37 = vadd.f32 %v27357_v38, %v18282_v10  ;;  %v18256_v41 = vpop.f32.mrf.mxu0  ;;  %v18276_v26 = vpop.f32.mrf.mxu1 }
 0x775   : > { %18393 = vst [vmem:[%s27381_s28 + $0x20] sm:$0xff] %v18383_v36  ;;  %v18287_v13 = vadd.f32 %v18256_v41, %v18030_v3  ;;  %v18288_v17 = vadd.f32 %v18276_v26, %v18031_v31 }
 0x776   : > { %18394 = vst [vmem:[%s27381_s28 + $0x28] sm:$0xff] %v18384_v12  ;;  %v18372_v6 = vadd.f32 %v18352_v7, %v18309_v37 }
 0x777   : > { %v18314_v14 = vadd.f32 %v27357_v38, %v18287_v13  ;;  %v18315_v63 = vadd.f32 %v27357_v38, %v18288_v17 }
 0x778   : > { %v18382_v40 = vmax.f32 %v18372_v6, 0.0 }
 0x779   : > { %v18377_v43 = vadd.f32 %v18357_v46, %v18314_v14  ;;  %v18378_v52 = vadd.f32 %v18358_v58, %v18315_v63  ;;  %v18236_v39 = vpop.f32.mrf.mxu3 }
 0x77a   : > { %18392 = vst [vmem:[%s27381_s28 + $0x18] sm:$0xff] %v18382_v40  ;;  %v18286_v11 = vadd.f32 %v18236_v39, %v18029_v53 }
 0x77b   : > { %v18387_v20 = vmax.f32 %v18377_v43, 0.0  ;;  %v18388_v57 = vmax.f32 %v18378_v52, 0.0 }
 0x77c   : > { %v18313_v27 = vadd.f32 %v27357_v38, %v18286_v11 }
 0x77d   : > { %18397 = vst [vmem:[%s27381_s28 + $0x40] sm:$0xff] %v18387_v20 }
 0x77e   : > { %18399 = vst.msk [vmem:[%s27381_s28 + $0x48] sm:$0xff] %vm18398_vm1, %v18388_v57  ;;  %v18376_v5 = vadd.f32 %v18356_v42, %v18313_v27 }
 0x780   : > { %v18386_v29 = vmax.f32 %v18376_v5, 0.0 }
 0x782   : > { %18396 = vst [vmem:[%s27381_s28 + $0x38] sm:$0xff] %v18386_v29 }
 0x783   : > { %21059 = shalt.err (!%p21056_p3)
}
 0x784   : > { %19241 = dma.vmem_to_hbm [thread:$0]  (%p21196_p5), %s18415_s15, 1280, %s18417_s16, %s18401_s17  }
 0x785 PF: > { %p19247_p4 = scmp.ge.s32.totalorder %s21094_s24, 2  ;;  %s18428_s13 = sand.u32 1, %s21082_s21  }
 0x786   : > { %s18429_s28 = scalar_lea.sflag [#allocation4], %s18428_s13 }
 0x787   : > { %p19244_p7 = pnand %p19247_p4, %p21200_p6 }
 0x789   : > { %p19245_p8 = pneg %p19244_p7 }
 0x78b   : > { %21077 = dma.done.wait (%p19245_p8), %s18429_s28, 1280  }
 0x78c   : > { %21079 = vsyncadd (%p19245_p8), %s18429_s28, 4294966016  ;;  %p16_p9 = scmp.ge.s32.totalorder %s21183_s27, 4   ;;  %s27992_s21 = smov %s21086_s22 }
 0x78d   : > { %s27993_s22 = smov %s21090_s23  ;;  %s27994_s23 = smov %s21194_s30 }
 0x78e   : > { %s27995_s24 = smov %s21183_s27  ;;  %18 = sbr.rel (!%p16_p9) target bundleno = 3 (0x3), region = 131 }
 0x793   :  { %18435 = vsyncpa [#allocation4], 1 }
 0x794   :  { %18437 = vsyncpa [#allocation4 + $0x1], 1 }

</bundles_post_ra>
